<compile_context>
chip_gen: v6e
topology: v6e:2x2x1
jax: 0.10.0
libtpu: 0.0.40
codegen_flags: <defaults>
</compile_context>

<pallas_src>
import math

import jax
import jax.numpy as jnp
from jax.experimental import pallas as pl
from jax.experimental.pallas import tpu as pltpu

# ---- small ViT config (ViT-base structure, scaled down) ----
IMG = 32
PATCH = 16
CHANNELS = 3
HIDDEN = 32          # vit_hidden_size (768 in the real model)
HEADS = 4
LAYERS = 2
MLP = 64
NUM_CLASSES = 4
LN_EPS = 1e-12       # ViT config layer_norm_eps
LEAKY_SLOPE = 0.1
N_PATCHES = (IMG // PATCH) ** 2
SEQ = N_PATCHES + 1          # 5 real tokens (CLS + patches)
S_PAD = 8                    # padded to one sublane tile
K_PATCH = CHANNELS * PATCH * PATCH   # 768

# ---- row offsets inside the packed 32-wide parameter slab ----
_R_PW = 0                                 # patch_w rows              [0, 768)
_R_ADD = _R_PW + K_PATCH                  # token add rows (cls/pos/b) [768, 776)
_R_FLNG = _R_ADD + S_PAD                  # final LN gamma             776
_R_FLNB = _R_FLNG + 1                     # final LN beta              777
_R_LN = _R_FLNB + 1                       # per-layer LN rows (4/layer)[778, 786)
_R_BO = _R_LN + LAYERS * 4                # per-layer attn-out bias    [786, 788)
_R_B2 = _R_BO + LAYERS                    # per-layer mlp-out bias     [788, 790)
_R_WO = _R_B2 + LAYERS                    # per-layer Wo (D rows each) [790, 854)
_R_W2 = _R_WO + LAYERS * HIDDEN           # per-layer W2 (MLP rows)    [854, 982)
_R_END = _R_W2 + LAYERS * MLP
_ROWS32 = ((_R_END + 7) // 8) * 8         # 984 (pad to sublane tile)

_HEAD2_ROWS = 256 + 1 + 128 + 1           # hw2 | hb2 | hw3(pad128) | hb3(pad128)


# ----------------------------- in-kernel math -----------------------------
def _gelu(x):
    # tanh-approximate GELU (EUP tanh); small deviation from exact erf-GELU.
    c = 0.7978845608028654  # sqrt(2/pi)
    return 0.5 * x * (1.0 + jnp.tanh(c * (x + 0.044715 * x * x * x)))


def _layernorm(x, g, b, eps):
    mu = jnp.mean(x, axis=-1, keepdims=True)
    var = jnp.maximum(jnp.mean(x * x, axis=-1, keepdims=True) - mu * mu, 0.0)
    return (x - mu) * jax.lax.rsqrt(var + eps) * g + b


def _leaky_relu(x, slope):
    return jnp.where(x >= 0, x, slope * x)


# ------------------------------- kernel ----------------------------------
def vit_forward_kernel(x_ref, s32_ref, wqkv_ref, w1_ref, h1_ref, h2_ref, o_ref):
    """Patch-embed -> 2 encoder layers -> final LN -> 3-layer classifier."""
    f32 = jnp.float32
    D = HIDDEN
    dh = D // HEADS
    scale = 1.0 / math.sqrt(dh)
    BS = x_ref.shape[0]              # B_TILE * S_PAD token rows
    B = BS // S_PAD

    # ---- patch embedding + token assembly (no scratch round-trip) ----
    # x rows are pre-padded to S_PAD rows/image (zeros at CLS/pad slots), so
    # the matmul output already has the padded layout; add_full holds
    # [cls+pos0, patch_b+pos1..4, 0, 0, 0] and is broadcast-added per image.
    pw = s32_ref[_R_PW:_R_PW + K_PATCH, :]
    add_full = s32_ref[_R_ADD:_R_ADD + S_PAD, :]
    pe = jnp.dot(x_ref[...], pw, preferred_element_type=f32)        # (B*S, D)
    x2d = (pe.reshape(B, S_PAD, D) + add_full[None, :, :]).reshape(BS, D)

    # additive key mask: padded positions excluded from every softmax
    kidx = jax.lax.broadcasted_iota(jnp.int32, (1, 1, S_PAD), 2)
    key_mask = jnp.where(kidx < SEQ, 0.0, -1e30).astype(f32)

    # ---- encoder layers (static unrolled loop, packed weights) ----
    for l in range(LAYERS):
        r = _R_LN + 4 * l
        ln1g, ln1b = s32_ref[r + 0:r + 1, :], s32_ref[r + 1:r + 2, :]
        ln2g, ln2b = s32_ref[r + 2:r + 3, :], s32_ref[r + 3:r + 4, :]
        bo_l = s32_ref[_R_BO + l:_R_BO + l + 1, :]
        b2_l = s32_ref[_R_B2 + l:_R_B2 + l + 1, :]
        wo_l = s32_ref[_R_WO + l * D:_R_WO + (l + 1) * D, :]
        w2_l = s32_ref[_R_W2 + l * MLP:_R_W2 + (l + 1) * MLP, :]
        wqkv_l = wqkv_ref[l]                                 # (D+1, 3D)
        w1b_l = w1_ref[l]                                    # (D+1, MLP)

        # -- multi-head self-attention (pre-LN), all heads batched --
        h = _layernorm(x2d, ln1g, ln1b, LN_EPS)
        qkv = (jnp.dot(h, wqkv_l[0:D, :], preferred_element_type=f32)
               + wqkv_l[D:D + 1, :])                         # (B*S, 3D)
        qkv3 = qkv.reshape(B, S_PAD, 3 * D)

        def heads(off):
            # (B, S, D) column-split per head, heads stacked on the batch axis
            return jnp.concatenate(
                [qkv3[:, :, off + hd * dh: off + (hd + 1) * dh]
                 for hd in range(HEADS)], axis=0)            # (H*B, S, dh)

        qh, kh, vh = heads(0), heads(D), heads(2 * D)
        s = (jnp.einsum('nqd,nkd->nqk', qh, kh,
                        preferred_element_type=f32) * scale + key_mask)
        s = s - jnp.max(s, axis=-1, keepdims=True)
        e = jnp.exp(s)
        p = e / jnp.sum(e, axis=-1, keepdims=True)           # exact division
        ctx = jnp.einsum('nqk,nkd->nqd', p, vh,
                         preferred_element_type=f32)         # (H*B, S, dh)
        ctx2d = jnp.concatenate(
            [ctx[hd * B:(hd + 1) * B] for hd in range(HEADS)],
            axis=-1).reshape(BS, D)                          # (B*S, D)
        x2d = x2d + jnp.dot(ctx2d, wo_l, preferred_element_type=f32) + bo_l

        # -- MLP (pre-LN, GELU) --
        h = _layernorm(x2d, ln2g, ln2b, LN_EPS)
        m1 = _gelu(jnp.dot(h, w1b_l[0:D, :], preferred_element_type=f32)
                   + w1b_l[D:D + 1, :])
        x2d = x2d + jnp.dot(m1, w2_l, preferred_element_type=f32) + b2_l

    # ---- CLS extraction via gather-by-matmul (no sublane gathers) ----
    rid = jax.lax.broadcasted_iota(jnp.int32, (B, BS), 0)
    cid = jax.lax.broadcasted_iota(jnp.int32, (B, BS), 1)
    sel = (cid == rid * S_PAD).astype(f32)                   # (B, B*S)
    cls_feat = jnp.dot(sel, x2d, preferred_element_type=f32)  # (B, D)

    # ---- final ViT layernorm (per-token, so CLS-only is equivalent) + head ----
    hf = _layernorm(cls_feat, s32_ref[_R_FLNG:_R_FLNG + 1, :],
                    s32_ref[_R_FLNB:_R_FLNB + 1, :], LN_EPS)
    h1 = _leaky_relu(jnp.dot(hf, h1_ref[0:HIDDEN, :], preferred_element_type=f32)
                     + h1_ref[HIDDEN:HIDDEN + 1, :], LEAKY_SLOPE)
    # Dropout(0.4): identity at inference
    h2 = _leaky_relu(jnp.dot(h1, h2_ref[0:256, :], preferred_element_type=f32)
                     + h2_ref[256:257, :], LEAKY_SLOPE)
    # Dropout(0.3): identity at inference
    # hw3/hb3 are zero-padded to 128 lanes -> lane-dense (B, 128) store.
    o_ref[...] = (jnp.dot(h2, h2_ref[257:385, :], preferred_element_type=f32)
                  + h2_ref[385:386, :])


# ------------------------------ host glue ----------------------------------
def _round_up(a, m):
    return (a + m - 1) // m * m


def init_params(key):
    """Deterministic synthetic weights, packed into lane-aligned slabs."""
    def nrm(k, shape, scale=0.02):
        return scale * jax.random.normal(k, shape, dtype=jnp.float32)

    keys = iter(jax.random.split(key, 16))
    D, L = HIDDEN, LAYERS
    zeros = lambda *s: jnp.zeros(s, jnp.float32)
    ones = lambda *s: jnp.ones(s, jnp.float32)

    patch_w = nrm(next(keys), (K_PATCH, D))
    patch_b = zeros(1, D)
    cls = nrm(next(keys), (1, D))
    pos = nrm(next(keys), (SEQ, D))
    # token-assembly rows: row0 = cls+pos0, rows1..4 = patch_b+pos, rows5..7 = 0
    add_full = jnp.concatenate(
        [cls + pos[0:1], patch_b + pos[1:SEQ], zeros(S_PAD - SEQ, D)], axis=0)

    ln_rows = []
    for _ in range(L):
        ln_rows += [ones(1, D), zeros(1, D), ones(1, D), zeros(1, D)]

    wqkv = nrm(next(keys), (L, D, 3 * D)); bqkv = zeros(L, 1, 3 * D)
    wo = nrm(next(keys), (L, D, D));       bo = zeros(L, 1, D)
    w1 = nrm(next(keys), (L, D, MLP));     b1 = zeros(L, 1, MLP)
    w2 = nrm(next(keys), (L, MLP, D));     b2 = zeros(L, 1, D)
    fln_g, fln_b = ones(1, D), zeros(1, D)
    hw1 = nrm(next(keys), (D, 256));       hb1 = zeros(1, 256)
    hw2 = nrm(next(keys), (256, 128));     hb2 = zeros(1, 128)
    hw3 = nrm(next(keys), (128, NUM_CLASSES)); hb3 = zeros(1, NUM_CLASSES)

    # --- pack the 32-wide slab (rows laid out per the _R_* offsets) ---
    slab32 = jnp.concatenate(
        [patch_w, add_full, fln_g, fln_b] + ln_rows
        + [bo[l] for l in range(L)] + [b2[l] for l in range(L)]
        + [wo[l] for l in range(L)] + [w2[l] for l in range(L)]
        + [zeros(_ROWS32 - _R_END, D)], axis=0)
    assert slab32.shape == (_ROWS32, D), slab32.shape

    wqkv_slab = jnp.concatenate([wqkv, bqkv], axis=1)        # (L, D+1, 3D)
    w1_slab = jnp.concatenate([w1, b1], axis=1)              # (L, D+1, MLP)
    head1 = jnp.concatenate([hw1, hb1], axis=0)              # (D+1, 256)
    hw3p = zeros(128, 128).at[:, :NUM_CLASSES].set(hw3)
    hb3p = zeros(1, 128).at[:, :NUM_CLASSES].set(hb3)
    head2 = jnp.concatenate([hw2, hb2, hw3p, hb3p], axis=0)  # (386, 128)
    assert head2.shape == (_HEAD2_ROWS, 128), head2.shape

    return {'slab32': slab32, 'wqkv': wqkv_slab, 'w1': w1_slab,
            'head1': head1, 'head2': head2}


@jax.jit
def forward(params, images):
    """images: (B, C, IMG, IMG) NCHW float32 -> logits (B, NUM_CLASSES)."""
    B = images.shape[0]
    nH = nW = IMG // PATCH
    b_tile = min(64, _round_up(B, 8))          # images per grid step
    b_pad = _round_up(B, b_tile)
    n_tiles = b_pad // b_tile

    # im2col for the stride-16/kernel-16 patch conv; flattening order (c,ph,pw)
    # matches PyTorch Conv2d weights.
    # TODO(synk): fold this NCHW->patch gather into the kernel via a
    # patch-indexed DMA instead of materializing the im2col result in HBM.
    x = images.reshape(B, CHANNELS, nH, PATCH, nW, PATCH)
    x = x.transpose(0, 2, 4, 1, 3, 5).reshape(B, N_PATCHES, K_PATCH)
    # pad: batch -> b_pad and 4 patch rows -> S_PAD rows/image (row 0 = CLS
    # slot, rows SEQ.. = pad); zero rows give zero patch-embed output and the
    # kernel adds CLS/pos/bias from the slab.
    x = jnp.pad(x, ((0, b_pad - B), (1, S_PAD - SEQ), (0, 0)))
    x = x.reshape(b_pad * S_PAD, K_PATCH)

    out = pl.pallas_call(
        vit_forward_kernel,
        out_shape=jax.ShapeDtypeStruct((b_pad, 128), jnp.float32),
        grid=(n_tiles,),
        in_specs=[
            pl.BlockSpec((b_tile * S_PAD, K_PATCH), lambda i: (i, 0)),
            pl.BlockSpec((_ROWS32, HIDDEN), lambda i: (0, 0)),
            pl.BlockSpec((LAYERS, HIDDEN + 1, 3 * HIDDEN), lambda i: (0, 0, 0)),
            pl.BlockSpec((LAYERS, HIDDEN + 1, MLP), lambda i: (0, 0, 0)),
            pl.BlockSpec((HIDDEN + 1, 256), lambda i: (0, 0)),
            pl.BlockSpec((_HEAD2_ROWS, 128), lambda i: (0, 0)),
        ],
        out_specs=pl.BlockSpec((b_tile, 128), lambda i: (i, 0)),
        compiler_params=pltpu.CompilerParams(
            dimension_semantics=("parallel",)),
    )(x, params['slab32'], params['wqkv'], params['w1'],
      params['head1'], params['head2'])
    return out[:B, :NUM_CLASSES]


if __name__ == "__main__":
    key = jax.random.PRNGKey(0)
    pkey, xkey = jax.random.split(key)
    params = init_params(pkey)
    images = jax.random.normal(xkey, (2, CHANNELS, IMG, IMG), dtype=jnp.float32)

    logits = forward(params, images)
    jax.block_until_ready(logits)
    assert logits.shape == (2, NUM_CLASSES), logits.shape
    assert bool(jnp.all(jnp.isfinite(logits))), "non-finite logits"
    print("KERNEL_OK")
</pallas_src>

<mosaic_0001>
module attributes {stable_mosaic.version = 11 : i64} {
  func.func @vit_forward_kernel(%arg0: i32, %arg1: memref<64x768xf32, #tpu.memory_space<vmem>>, %arg2: memref<984x32xf32, #tpu.memory_space<vmem>>, %arg3: memref<2x33x96xf32, #tpu.memory_space<vmem>>, %arg4: memref<2x33x64xf32, #tpu.memory_space<vmem>>, %arg5: memref<33x256xf32, #tpu.memory_space<vmem>>, %arg6: memref<386x128xf32, #tpu.memory_space<vmem>>, %arg7: memref<8x128xf32, #tpu.memory_space<vmem>>) attributes {dimension_semantics = [#tpu.dimension_semantics<parallel>], iteration_bounds = array<i64: 1>, scalar_prefetch = 0 : i64, scratch_operands = 0 : i64, tpu.core_type = #tpu.core_type<tc>, window_params = [{transform_indices = @transform_0, window_bounds = array<i64: 64, 768>}, {pipeline_mode = #tpu.pipeline_mode<synchronous>, transform_indices = @transform_1, window_bounds = array<i64: 984, 32>}, {pipeline_mode = #tpu.pipeline_mode<synchronous>, transform_indices = @transform_2, window_bounds = array<i64: 2, 33, 96>}, {pipeline_mode = #tpu.pipeline_mode<synchronous>, transform_indices = @transform_3, window_bounds = array<i64: 2, 33, 64>}, {pipeline_mode = #tpu.pipeline_mode<synchronous>, transform_indices = @transform_4, window_bounds = array<i64: 33, 256>}, {pipeline_mode = #tpu.pipeline_mode<synchronous>, transform_indices = @transform_5, window_bounds = array<i64: 386, 128>}, {transform_indices = @transform_6, window_bounds = array<i64: 8, 128>}]} {
    %c0 = arith.constant 0 : index
    %c0_0 = arith.constant 0 : index
    %0 = vector.load %arg2[%c0, %c0_0] : memref<984x32xf32, #tpu.memory_space<vmem>>, vector<768x32xf32>
    %c768 = arith.constant 768 : index
    %c0_1 = arith.constant 0 : index
    %1 = vector.load %arg2[%c768, %c0_1] : memref<984x32xf32, #tpu.memory_space<vmem>>, vector<8x32xf32>
    %c0_2 = arith.constant 0 : index
    %c0_3 = arith.constant 0 : index
    %2 = vector.load %arg1[%c0_2, %c0_3] : memref<64x768xf32, #tpu.memory_space<vmem>>, vector<64x768xf32>
    %cst = arith.constant dense<0.000000e+00> : vector<64x32xf32>
    %3 = tpu.matmul %2, %0, %cst {dimension_numbers = #tpu.dot_dimension_numbers<[1], [0], [0], [1], [0, 0, 1, 1], [], []>} : vector<64x768xf32>, vector<768x32xf32>, vector<64x32xf32> -> vector<64x32xf32>
    %4 = vector.shape_cast %3 : vector<64x32xf32> to vector<8x8x32xf32>
    %5 = vector.shape_cast %1 : vector<8x32xf32> to vector<1x8x32xf32>
    %6 = vector.broadcast %5 : vector<1x8x32xf32> to vector<8x8x32xf32>
    %7 = arith.addf %4, %6 : vector<8x8x32xf32>
    %8 = vector.shape_cast %7 : vector<8x8x32xf32> to vector<64x32xf32>
    %9 = tpu.iota {dimensions = array<i32: 2>} : vector<1x1x8xi32>
    %c5_i32 = arith.constant 5 : i32
    %10 = vector.broadcast %c5_i32 : i32 to vector<1x1x8xi32>
    %11 = arith.cmpi slt, %9, %10 : vector<1x1x8xi32>
    %cst_4 = arith.constant 0.000000e+00 : f32
    %cst_5 = arith.constant -1.000000e+30 : f32
    %12 = vector.broadcast %cst_4 : f32 to vector<1x1x8xf32>
    %13 = vector.broadcast %cst_5 : f32 to vector<1x1x8xf32>
    %14 = arith.select %11, %12, %13 : vector<1x1x8xi1>, vector<1x1x8xf32>
    %c778 = arith.constant 778 : index
    %c0_6 = arith.constant 0 : index
    %15 = vector.load %arg2[%c778, %c0_6] : memref<984x32xf32, #tpu.memory_space<vmem>>, vector<1x32xf32>
    %c779 = arith.constant 779 : index
    %c0_7 = arith.constant 0 : index
    %16 = vector.load %arg2[%c779, %c0_7] : memref<984x32xf32, #tpu.memory_space<vmem>>, vector<1x32xf32>
    %c780 = arith.constant 780 : index
    %c0_8 = arith.constant 0 : index
    %17 = vector.load %arg2[%c780, %c0_8] : memref<984x32xf32, #tpu.memory_space<vmem>>, vector<1x32xf32>
    %c781 = arith.constant 781 : index
    %c0_9 = arith.constant 0 : index
    %18 = vector.load %arg2[%c781, %c0_9] : memref<984x32xf32, #tpu.memory_space<vmem>>, vector<1x32xf32>
    %c786 = arith.constant 786 : index
    %c0_10 = arith.constant 0 : index
    %19 = vector.load %arg2[%c786, %c0_10] : memref<984x32xf32, #tpu.memory_space<vmem>>, vector<1x32xf32>
    %c788 = arith.constant 788 : index
    %c0_11 = arith.constant 0 : index
    %20 = vector.load %arg2[%c788, %c0_11] : memref<984x32xf32, #tpu.memory_space<vmem>>, vector<1x32xf32>
    %c790 = arith.constant 790 : index
    %c0_12 = arith.constant 0 : index
    %21 = vector.load %arg2[%c790, %c0_12] : memref<984x32xf32, #tpu.memory_space<vmem>>, vector<32x32xf32>
    %c854 = arith.constant 854 : index
    %c0_13 = arith.constant 0 : index
    %22 = vector.load %arg2[%c854, %c0_13] : memref<984x32xf32, #tpu.memory_space<vmem>>, vector<64x32xf32>
    %c0_14 = arith.constant 0 : index
    %c0_15 = arith.constant 0 : index
    %c0_16 = arith.constant 0 : index
    %23 = vector.load %arg3[%c0_14, %c0_15, %c0_16] : memref<2x33x96xf32, #tpu.memory_space<vmem>>, vector<1x33x96xf32>
    %24 = vector.shape_cast %23 : vector<1x33x96xf32> to vector<33x96xf32>
    %c0_17 = arith.constant 0 : index
    %c0_18 = arith.constant 0 : index
    %c0_19 = arith.constant 0 : index
    %25 = vector.load %arg4[%c0_17, %c0_18, %c0_19] : memref<2x33x64xf32, #tpu.memory_space<vmem>>, vector<1x33x64xf32>
    %26 = vector.shape_cast %25 : vector<1x33x64xf32> to vector<33x64xf32>
    %cst_20 = arith.constant dense<0.000000e+00> : vector<64xf32>
    %27 = vector.multi_reduction <add>, %8, %cst_20 [1] : vector<64x32xf32> to vector<64xf32>
    %28 = vector.shape_cast %27 : vector<64xf32> to vector<64x1xf32>
    %cst_21 = arith.constant 3.200000e+01 : f32
    %29 = vector.broadcast %cst_21 : f32 to vector<64x1xf32>
    %30 = arith.divf %28, %29 : vector<64x1xf32>
    %31 = arith.mulf %8, %8 : vector<64x32xf32>
    %cst_22 = arith.constant dense<0.000000e+00> : vector<64xf32>
    %32 = vector.multi_reduction <add>, %31, %cst_22 [1] : vector<64x32xf32> to vector<64xf32>
    %33 = vector.shape_cast %32 : vector<64xf32> to vector<64x1xf32>
    %cst_23 = arith.constant 3.200000e+01 : f32
    %34 = vector.broadcast %cst_23 : f32 to vector<64x1xf32>
    %35 = arith.divf %33, %34 : vector<64x1xf32>
    %36 = arith.mulf %30, %30 : vector<64x1xf32>
    %37 = arith.subf %35, %36 : vector<64x1xf32>
    %cst_24 = arith.constant 0.000000e+00 : f32
    %38 = vector.broadcast %cst_24 : f32 to vector<64x1xf32>
    %39 = arith.maximumf %37, %38 : vector<64x1xf32>
    %40 = vector.broadcast %30 : vector<64x1xf32> to vector<64x32xf32>
    %41 = arith.subf %8, %40 : vector<64x32xf32>
    %cst_25 = arith.constant 9.99999996E-13 : f32
    %42 = vector.broadcast %cst_25 : f32 to vector<64x1xf32>
    %43 = arith.addf %39, %42 : vector<64x1xf32>
    %44 = math.rsqrt %43 : vector<64x1xf32>
    %45 = vector.broadcast %44 : vector<64x1xf32> to vector<64x32xf32>
    %46 = arith.mulf %41, %45 : vector<64x32xf32>
    %47 = vector.broadcast %15 : vector<1x32xf32> to vector<64x32xf32>
    %48 = arith.mulf %46, %47 : vector<64x32xf32>
    %49 = vector.broadcast %16 : vector<1x32xf32> to vector<64x32xf32>
    %50 = arith.addf %48, %49 : vector<64x32xf32>
    %51 = vector.extract_strided_slice %24 {offsets = [0, 0], sizes = [32, 96], strides = [1, 1]} : vector<33x96xf32> to vector<32x96xf32>
    %cst_26 = arith.constant dense<0.000000e+00> : vector<64x96xf32>
    %52 = tpu.matmul %50, %51, %cst_26 {dimension_numbers = #tpu.dot_dimension_numbers<[1], [0], [0], [1], [0, 0, 1, 1], [], []>} : vector<64x32xf32>, vector<32x96xf32>, vector<64x96xf32> -> vector<64x96xf32>
    %53 = vector.extract_strided_slice %24 {offsets = [32, 0], sizes = [1, 96], strides = [1, 1]} : vector<33x96xf32> to vector<1x96xf32>
    %54 = vector.broadcast %53 : vector<1x96xf32> to vector<64x96xf32>
    %55 = arith.addf %52, %54 : vector<64x96xf32>
    %56 = vector.shape_cast %55 : vector<64x96xf32> to vector<8x8x96xf32>
    %57 = vector.extract_strided_slice %56 {offsets = [0, 0, 0], sizes = [8, 8, 8], strides = [1, 1, 1]} : vector<8x8x96xf32> to vector<8x8x8xf32>
    %58 = vector.extract_strided_slice %56 {offsets = [0, 0, 8], sizes = [8, 8, 8], strides = [1, 1, 1]} : vector<8x8x96xf32> to vector<8x8x8xf32>
    %59 = vector.extract_strided_slice %56 {offsets = [0, 0, 16], sizes = [8, 8, 8], strides = [1, 1, 1]} : vector<8x8x96xf32> to vector<8x8x8xf32>
    %60 = vector.extract_strided_slice %56 {offsets = [0, 0, 24], sizes = [8, 8, 8], strides = [1, 1, 1]} : vector<8x8x96xf32> to vector<8x8x8xf32>
    %61 = tpu.concatenate %57, %58, %59, %60 in 0 : vector<8x8x8xf32>, vector<8x8x8xf32>, vector<8x8x8xf32>, vector<8x8x8xf32> -> vector<32x8x8xf32>
    %62 = vector.extract_strided_slice %56 {offsets = [0, 0, 32], sizes = [8, 8, 8], strides = [1, 1, 1]} : vector<8x8x96xf32> to vector<8x8x8xf32>
    %63 = vector.extract_strided_slice %56 {offsets = [0, 0, 40], sizes = [8, 8, 8], strides = [1, 1, 1]} : vector<8x8x96xf32> to vector<8x8x8xf32>
    %64 = vector.extract_strided_slice %56 {offsets = [0, 0, 48], sizes = [8, 8, 8], strides = [1, 1, 1]} : vector<8x8x96xf32> to vector<8x8x8xf32>
    %65 = vector.extract_strided_slice %56 {offsets = [0, 0, 56], sizes = [8, 8, 8], strides = [1, 1, 1]} : vector<8x8x96xf32> to vector<8x8x8xf32>
    %66 = tpu.concatenate %62, %63, %64, %65 in 0 : vector<8x8x8xf32>, vector<8x8x8xf32>, vector<8x8x8xf32>, vector<8x8x8xf32> -> vector<32x8x8xf32>
    %67 = vector.extract_strided_slice %56 {offsets = [0, 0, 64], sizes = [8, 8, 8], strides = [1, 1, 1]} : vector<8x8x96xf32> to vector<8x8x8xf32>
    %68 = vector.extract_strided_slice %56 {offsets = [0, 0, 72], sizes = [8, 8, 8], strides = [1, 1, 1]} : vector<8x8x96xf32> to vector<8x8x8xf32>
    %69 = vector.extract_strided_slice %56 {offsets = [0, 0, 80], sizes = [8, 8, 8], strides = [1, 1, 1]} : vector<8x8x96xf32> to vector<8x8x8xf32>
    %70 = vector.extract_strided_slice %56 {offsets = [0, 0, 88], sizes = [8, 8, 8], strides = [1, 1, 1]} : vector<8x8x96xf32> to vector<8x8x8xf32>
    %71 = tpu.concatenate %67, %68, %69, %70 in 0 : vector<8x8x8xf32>, vector<8x8x8xf32>, vector<8x8x8xf32>, vector<8x8x8xf32> -> vector<32x8x8xf32>
    "tpu.trace_start"() <{level = 10 : i32, message = "nqd,nkd->nqk"}> : () -> ()
    %cst_27 = arith.constant dense<0.000000e+00> : vector<32x8x8xf32>
    %72 = tpu.matmul %61, %66, %cst_27 {dimension_numbers = #tpu.dot_dimension_numbers<[2], [2], [1], [1], [0, 0, 0, 1, 1, 1], [0], [0]>} : vector<32x8x8xf32>, vector<32x8x8xf32>, vector<32x8x8xf32> -> vector<32x8x8xf32>
    "tpu.trace_stop"() : () -> ()
    %cst_28 = arith.constant 0.353553385 : f32
    %73 = vector.broadcast %cst_28 : f32 to vector<32x8x8xf32>
    %74 = arith.mulf %72, %73 : vector<32x8x8xf32>
    %75 = vector.broadcast %14 : vector<1x1x8xf32> to vector<32x8x8xf32>
    %76 = arith.addf %74, %75 : vector<32x8x8xf32>
    %cst_29 = arith.constant dense<0xFF800000> : vector<32x8xf32>
    %77 = vector.multi_reduction <maximumf>, %76, %cst_29 [2] : vector<32x8x8xf32> to vector<32x8xf32>
    %78 = vector.shape_cast %77 : vector<32x8xf32> to vector<32x8x1xf32>
    %79 = vector.broadcast %78 : vector<32x8x1xf32> to vector<32x8x8xf32>
    %80 = arith.subf %76, %79 : vector<32x8x8xf32>
    %81 = math.exp %80 : vector<32x8x8xf32>
    %cst_30 = arith.constant dense<0.000000e+00> : vector<32x8xf32>
    %82 = vector.multi_reduction <add>, %81, %cst_30 [2] : vector<32x8x8xf32> to vector<32x8xf32>
    %83 = vector.shape_cast %82 : vector<32x8xf32> to vector<32x8x1xf32>
    %84 = vector.broadcast %83 : vector<32x8x1xf32> to vector<32x8x8xf32>
    %85 = arith.divf %81, %84 : vector<32x8x8xf32>
    "tpu.trace_start"() <{level = 10 : i32, message = "nqk,nkd->nqd"}> : () -> ()
    %cst_31 = arith.constant dense<0.000000e+00> : vector<32x8x8xf32>
    %86 = tpu.matmul %85, %71, %cst_31 {dimension_numbers = #tpu.dot_dimension_numbers<[2], [1], [1], [2], [0, 0, 0, 1, 1, 2], [0], [0]>} : vector<32x8x8xf32>, vector<32x8x8xf32>, vector<32x8x8xf32> -> vector<32x8x8xf32>
    "tpu.trace_stop"() : () -> ()
    %87 = vector.extract_strided_slice %86 {offsets = [0, 0, 0], sizes = [8, 8, 8], strides = [1, 1, 1]} : vector<32x8x8xf32> to vector<8x8x8xf32>
    %88 = vector.extract_strided_slice %86 {offsets = [8, 0, 0], sizes = [8, 8, 8], strides = [1, 1, 1]} : vector<32x8x8xf32> to vector<8x8x8xf32>
    %89 = vector.extract_strided_slice %86 {offsets = [16, 0, 0], sizes = [8, 8, 8], strides = [1, 1, 1]} : vector<32x8x8xf32> to vector<8x8x8xf32>
    %90 = vector.extract_strided_slice %86 {offsets = [24, 0, 0], sizes = [8, 8, 8], strides = [1, 1, 1]} : vector<32x8x8xf32> to vector<8x8x8xf32>
    %91 = tpu.concatenate %87, %88, %89, %90 in 2 : vector<8x8x8xf32>, vector<8x8x8xf32>, vector<8x8x8xf32>, vector<8x8x8xf32> -> vector<8x8x32xf32>
    %92 = vector.shape_cast %91 : vector<8x8x32xf32> to vector<64x32xf32>
    %cst_32 = arith.constant dense<0.000000e+00> : vector<64x32xf32>
    %93 = tpu.matmul %92, %21, %cst_32 {dimension_numbers = #tpu.dot_dimension_numbers<[1], [0], [0], [1], [0, 0, 1, 1], [], []>} : vector<64x32xf32>, vector<32x32xf32>, vector<64x32xf32> -> vector<64x32xf32>
    %94 = arith.addf %8, %93 : vector<64x32xf32>
    %95 = vector.broadcast %19 : vector<1x32xf32> to vector<64x32xf32>
    %96 = arith.addf %94, %95 : vector<64x32xf32>
    %cst_33 = arith.constant dense<0.000000e+00> : vector<64xf32>
    %97 = vector.multi_reduction <add>, %96, %cst_33 [1] : vector<64x32xf32> to vector<64xf32>
    %98 = vector.shape_cast %97 : vector<64xf32> to vector<64x1xf32>
    %cst_34 = arith.constant 3.200000e+01 : f32
    %99 = vector.broadcast %cst_34 : f32 to vector<64x1xf32>
    %100 = arith.divf %98, %99 : vector<64x1xf32>
    %101 = arith.mulf %96, %96 : vector<64x32xf32>
    %cst_35 = arith.constant dense<0.000000e+00> : vector<64xf32>
    %102 = vector.multi_reduction <add>, %101, %cst_35 [1] : vector<64x32xf32> to vector<64xf32>
    %103 = vector.shape_cast %102 : vector<64xf32> to vector<64x1xf32>
    %cst_36 = arith.constant 3.200000e+01 : f32
    %104 = vector.broadcast %cst_36 : f32 to vector<64x1xf32>
    %105 = arith.divf %103, %104 : vector<64x1xf32>
    %106 = arith.mulf %100, %100 : vector<64x1xf32>
    %107 = arith.subf %105, %106 : vector<64x1xf32>
    %cst_37 = arith.constant 0.000000e+00 : f32
    %108 = vector.broadcast %cst_37 : f32 to vector<64x1xf32>
    %109 = arith.maximumf %107, %108 : vector<64x1xf32>
    %110 = vector.broadcast %100 : vector<64x1xf32> to vector<64x32xf32>
    %111 = arith.subf %96, %110 : vector<64x32xf32>
    %cst_38 = arith.constant 9.99999996E-13 : f32
    %112 = vector.broadcast %cst_38 : f32 to vector<64x1xf32>
    %113 = arith.addf %109, %112 : vector<64x1xf32>
    %114 = math.rsqrt %113 : vector<64x1xf32>
    %115 = vector.broadcast %114 : vector<64x1xf32> to vector<64x32xf32>
    %116 = arith.mulf %111, %115 : vector<64x32xf32>
    %117 = vector.broadcast %17 : vector<1x32xf32> to vector<64x32xf32>
    %118 = arith.mulf %116, %117 : vector<64x32xf32>
    %119 = vector.broadcast %18 : vector<1x32xf32> to vector<64x32xf32>
    %120 = arith.addf %118, %119 : vector<64x32xf32>
    %121 = vector.extract_strided_slice %26 {offsets = [0, 0], sizes = [32, 64], strides = [1, 1]} : vector<33x64xf32> to vector<32x64xf32>
    %cst_39 = arith.constant dense<0.000000e+00> : vector<64x64xf32>
    %122 = tpu.matmul %120, %121, %cst_39 {dimension_numbers = #tpu.dot_dimension_numbers<[1], [0], [0], [1], [0, 0, 1, 1], [], []>} : vector<64x32xf32>, vector<32x64xf32>, vector<64x64xf32> -> vector<64x64xf32>
    %123 = vector.extract_strided_slice %26 {offsets = [32, 0], sizes = [1, 64], strides = [1, 1]} : vector<33x64xf32> to vector<1x64xf32>
    %124 = vector.broadcast %123 : vector<1x64xf32> to vector<64x64xf32>
    %125 = arith.addf %122, %124 : vector<64x64xf32>
    %cst_40 = arith.constant 5.000000e-01 : f32
    %126 = vector.broadcast %cst_40 : f32 to vector<64x64xf32>
    %127 = arith.mulf %126, %125 : vector<64x64xf32>
    %cst_41 = arith.constant 4.471500e-02 : f32
    %128 = vector.broadcast %cst_41 : f32 to vector<64x64xf32>
    %129 = arith.mulf %128, %125 : vector<64x64xf32>
    %130 = arith.mulf %129, %125 : vector<64x64xf32>
    %131 = arith.mulf %130, %125 : vector<64x64xf32>
    %132 = arith.addf %125, %131 : vector<64x64xf32>
    %cst_42 = arith.constant 0.797884583 : f32
    %133 = vector.broadcast %cst_42 : f32 to vector<64x64xf32>
    %134 = arith.mulf %133, %132 : vector<64x64xf32>
    %135 = math.tanh %134 : vector<64x64xf32>
    %cst_43 = arith.constant 1.000000e+00 : f32
    %136 = vector.broadcast %cst_43 : f32 to vector<64x64xf32>
    %137 = arith.addf %136, %135 : vector<64x64xf32>
    %138 = arith.mulf %127, %137 : vector<64x64xf32>
    %cst_44 = arith.constant dense<0.000000e+00> : vector<64x32xf32>
    %139 = tpu.matmul %138, %22, %cst_44 {dimension_numbers = #tpu.dot_dimension_numbers<[1], [0], [0], [1], [0, 0, 1, 1], [], []>} : vector<64x64xf32>, vector<64x32xf32>, vector<64x32xf32> -> vector<64x32xf32>
    %140 = arith.addf %96, %139 : vector<64x32xf32>
    %141 = vector.broadcast %20 : vector<1x32xf32> to vector<64x32xf32>
    %142 = arith.addf %140, %141 : vector<64x32xf32>
    %c782 = arith.constant 782 : index
    %c0_45 = arith.constant 0 : index
    %143 = vector.load %arg2[%c782, %c0_45] : memref<984x32xf32, #tpu.memory_space<vmem>>, vector<1x32xf32>
    %c783 = arith.constant 783 : index
    %c0_46 = arith.constant 0 : index
    %144 = vector.load %arg2[%c783, %c0_46] : memref<984x32xf32, #tpu.memory_space<vmem>>, vector<1x32xf32>
    %c784 = arith.constant 784 : index
    %c0_47 = arith.constant 0 : index
    %145 = vector.load %arg2[%c784, %c0_47] : memref<984x32xf32, #tpu.memory_space<vmem>>, vector<1x32xf32>
    %c785 = arith.constant 785 : index
    %c0_48 = arith.constant 0 : index
    %146 = vector.load %arg2[%c785, %c0_48] : memref<984x32xf32, #tpu.memory_space<vmem>>, vector<1x32xf32>
    %c787 = arith.constant 787 : index
    %c0_49 = arith.constant 0 : index
    %147 = vector.load %arg2[%c787, %c0_49] : memref<984x32xf32, #tpu.memory_space<vmem>>, vector<1x32xf32>
    %c789 = arith.constant 789 : index
    %c0_50 = arith.constant 0 : index
    %148 = vector.load %arg2[%c789, %c0_50] : memref<984x32xf32, #tpu.memory_space<vmem>>, vector<1x32xf32>
    %c822 = arith.constant 822 : index
    %c0_51 = arith.constant 0 : index
    %149 = vector.load %arg2[%c822, %c0_51] : memref<984x32xf32, #tpu.memory_space<vmem>>, vector<32x32xf32>
    %c918 = arith.constant 918 : index
    %c0_52 = arith.constant 0 : index
    %150 = vector.load %arg2[%c918, %c0_52] : memref<984x32xf32, #tpu.memory_space<vmem>>, vector<64x32xf32>
    %c1 = arith.constant 1 : index
    %c0_53 = arith.constant 0 : index
    %c0_54 = arith.constant 0 : index
    %151 = vector.load %arg3[%c1, %c0_53, %c0_54] : memref<2x33x96xf32, #tpu.memory_space<vmem>>, vector<1x33x96xf32>
    %152 = vector.shape_cast %151 : vector<1x33x96xf32> to vector<33x96xf32>
    %c1_55 = arith.constant 1 : index
    %c0_56 = arith.constant 0 : index
    %c0_57 = arith.constant 0 : index
    %153 = vector.load %arg4[%c1_55, %c0_56, %c0_57] : memref<2x33x64xf32, #tpu.memory_space<vmem>>, vector<1x33x64xf32>
    %154 = vector.shape_cast %153 : vector<1x33x64xf32> to vector<33x64xf32>
    %cst_58 = arith.constant dense<0.000000e+00> : vector<64xf32>
    %155 = vector.multi_reduction <add>, %142, %cst_58 [1] : vector<64x32xf32> to vector<64xf32>
    %156 = vector.shape_cast %155 : vector<64xf32> to vector<64x1xf32>
    %cst_59 = arith.constant 3.200000e+01 : f32
    %157 = vector.broadcast %cst_59 : f32 to vector<64x1xf32>
    %158 = arith.divf %156, %157 : vector<64x1xf32>
    %159 = arith.mulf %142, %142 : vector<64x32xf32>
    %cst_60 = arith.constant dense<0.000000e+00> : vector<64xf32>
    %160 = vector.multi_reduction <add>, %159, %cst_60 [1] : vector<64x32xf32> to vector<64xf32>
    %161 = vector.shape_cast %160 : vector<64xf32> to vector<64x1xf32>
    %cst_61 = arith.constant 3.200000e+01 : f32
    %162 = vector.broadcast %cst_61 : f32 to vector<64x1xf32>
    %163 = arith.divf %161, %162 : vector<64x1xf32>
    %164 = arith.mulf %158, %158 : vector<64x1xf32>
    %165 = arith.subf %163, %164 : vector<64x1xf32>
    %cst_62 = arith.constant 0.000000e+00 : f32
    %166 = vector.broadcast %cst_62 : f32 to vector<64x1xf32>
    %167 = arith.maximumf %165, %166 : vector<64x1xf32>
    %168 = vector.broadcast %158 : vector<64x1xf32> to vector<64x32xf32>
    %169 = arith.subf %142, %168 : vector<64x32xf32>
    %cst_63 = arith.constant 9.99999996E-13 : f32
    %170 = vector.broadcast %cst_63 : f32 to vector<64x1xf32>
    %171 = arith.addf %167, %170 : vector<64x1xf32>
    %172 = math.rsqrt %171 : vector<64x1xf32>
    %173 = vector.broadcast %172 : vector<64x1xf32> to vector<64x32xf32>
    %174 = arith.mulf %169, %173 : vector<64x32xf32>
    %175 = vector.broadcast %143 : vector<1x32xf32> to vector<64x32xf32>
    %176 = arith.mulf %174, %175 : vector<64x32xf32>
    %177 = vector.broadcast %144 : vector<1x32xf32> to vector<64x32xf32>
    %178 = arith.addf %176, %177 : vector<64x32xf32>
    %179 = vector.extract_strided_slice %152 {offsets = [0, 0], sizes = [32, 96], strides = [1, 1]} : vector<33x96xf32> to vector<32x96xf32>
    %cst_64 = arith.constant dense<0.000000e+00> : vector<64x96xf32>
    %180 = tpu.matmul %178, %179, %cst_64 {dimension_numbers = #tpu.dot_dimension_numbers<[1], [0], [0], [1], [0, 0, 1, 1], [], []>} : vector<64x32xf32>, vector<32x96xf32>, vector<64x96xf32> -> vector<64x96xf32>
    %181 = vector.extract_strided_slice %152 {offsets = [32, 0], sizes = [1, 96], strides = [1, 1]} : vector<33x96xf32> to vector<1x96xf32>
    %182 = vector.broadcast %181 : vector<1x96xf32> to vector<64x96xf32>
    %183 = arith.addf %180, %182 : vector<64x96xf32>
    %184 = vector.shape_cast %183 : vector<64x96xf32> to vector<8x8x96xf32>
    %185 = vector.extract_strided_slice %184 {offsets = [0, 0, 0], sizes = [8, 8, 8], strides = [1, 1, 1]} : vector<8x8x96xf32> to vector<8x8x8xf32>
    %186 = vector.extract_strided_slice %184 {offsets = [0, 0, 8], sizes = [8, 8, 8], strides = [1, 1, 1]} : vector<8x8x96xf32> to vector<8x8x8xf32>
    %187 = vector.extract_strided_slice %184 {offsets = [0, 0, 16], sizes = [8, 8, 8], strides = [1, 1, 1]} : vector<8x8x96xf32> to vector<8x8x8xf32>
    %188 = vector.extract_strided_slice %184 {offsets = [0, 0, 24], sizes = [8, 8, 8], strides = [1, 1, 1]} : vector<8x8x96xf32> to vector<8x8x8xf32>
    %189 = tpu.concatenate %185, %186, %187, %188 in 0 : vector<8x8x8xf32>, vector<8x8x8xf32>, vector<8x8x8xf32>, vector<8x8x8xf32> -> vector<32x8x8xf32>
    %190 = vector.extract_strided_slice %184 {offsets = [0, 0, 32], sizes = [8, 8, 8], strides = [1, 1, 1]} : vector<8x8x96xf32> to vector<8x8x8xf32>
    %191 = vector.extract_strided_slice %184 {offsets = [0, 0, 40], sizes = [8, 8, 8], strides = [1, 1, 1]} : vector<8x8x96xf32> to vector<8x8x8xf32>
    %192 = vector.extract_strided_slice %184 {offsets = [0, 0, 48], sizes = [8, 8, 8], strides = [1, 1, 1]} : vector<8x8x96xf32> to vector<8x8x8xf32>
    %193 = vector.extract_strided_slice %184 {offsets = [0, 0, 56], sizes = [8, 8, 8], strides = [1, 1, 1]} : vector<8x8x96xf32> to vector<8x8x8xf32>
    %194 = tpu.concatenate %190, %191, %192, %193 in 0 : vector<8x8x8xf32>, vector<8x8x8xf32>, vector<8x8x8xf32>, vector<8x8x8xf32> -> vector<32x8x8xf32>
    %195 = vector.extract_strided_slice %184 {offsets = [0, 0, 64], sizes = [8, 8, 8], strides = [1, 1, 1]} : vector<8x8x96xf32> to vector<8x8x8xf32>
    %196 = vector.extract_strided_slice %184 {offsets = [0, 0, 72], sizes = [8, 8, 8], strides = [1, 1, 1]} : vector<8x8x96xf32> to vector<8x8x8xf32>
    %197 = vector.extract_strided_slice %184 {offsets = [0, 0, 80], sizes = [8, 8, 8], strides = [1, 1, 1]} : vector<8x8x96xf32> to vector<8x8x8xf32>
    %198 = vector.extract_strided_slice %184 {offsets = [0, 0, 88], sizes = [8, 8, 8], strides = [1, 1, 1]} : vector<8x8x96xf32> to vector<8x8x8xf32>
    %199 = tpu.concatenate %195, %196, %197, %198 in 0 : vector<8x8x8xf32>, vector<8x8x8xf32>, vector<8x8x8xf32>, vector<8x8x8xf32> -> vector<32x8x8xf32>
    "tpu.trace_start"() <{level = 10 : i32, message = "nqd,nkd->nqk"}> : () -> ()
    %cst_65 = arith.constant dense<0.000000e+00> : vector<32x8x8xf32>
    %200 = tpu.matmul %189, %194, %cst_65 {dimension_numbers = #tpu.dot_dimension_numbers<[2], [2], [1], [1], [0, 0, 0, 1, 1, 1], [0], [0]>} : vector<32x8x8xf32>, vector<32x8x8xf32>, vector<32x8x8xf32> -> vector<32x8x8xf32>
    "tpu.trace_stop"() : () -> ()
    %cst_66 = arith.constant 0.353553385 : f32
    %201 = vector.broadcast %cst_66 : f32 to vector<32x8x8xf32>
    %202 = arith.mulf %200, %201 : vector<32x8x8xf32>
    %203 = vector.broadcast %14 : vector<1x1x8xf32> to vector<32x8x8xf32>
    %204 = arith.addf %202, %203 : vector<32x8x8xf32>
    %cst_67 = arith.constant dense<0xFF800000> : vector<32x8xf32>
    %205 = vector.multi_reduction <maximumf>, %204, %cst_67 [2] : vector<32x8x8xf32> to vector<32x8xf32>
    %206 = vector.shape_cast %205 : vector<32x8xf32> to vector<32x8x1xf32>
    %207 = vector.broadcast %206 : vector<32x8x1xf32> to vector<32x8x8xf32>
    %208 = arith.subf %204, %207 : vector<32x8x8xf32>
    %209 = math.exp %208 : vector<32x8x8xf32>
    %cst_68 = arith.constant dense<0.000000e+00> : vector<32x8xf32>
    %210 = vector.multi_reduction <add>, %209, %cst_68 [2] : vector<32x8x8xf32> to vector<32x8xf32>
    %211 = vector.shape_cast %210 : vector<32x8xf32> to vector<32x8x1xf32>
    %212 = vector.broadcast %211 : vector<32x8x1xf32> to vector<32x8x8xf32>
    %213 = arith.divf %209, %212 : vector<32x8x8xf32>
    "tpu.trace_start"() <{level = 10 : i32, message = "nqk,nkd->nqd"}> : () -> ()
    %cst_69 = arith.constant dense<0.000000e+00> : vector<32x8x8xf32>
    %214 = tpu.matmul %213, %199, %cst_69 {dimension_numbers = #tpu.dot_dimension_numbers<[2], [1], [1], [2], [0, 0, 0, 1, 1, 2], [0], [0]>} : vector<32x8x8xf32>, vector<32x8x8xf32>, vector<32x8x8xf32> -> vector<32x8x8xf32>
    "tpu.trace_stop"() : () -> ()
    %215 = vector.extract_strided_slice %214 {offsets = [0, 0, 0], sizes = [8, 8, 8], strides = [1, 1, 1]} : vector<32x8x8xf32> to vector<8x8x8xf32>
    %216 = vector.extract_strided_slice %214 {offsets = [8, 0, 0], sizes = [8, 8, 8], strides = [1, 1, 1]} : vector<32x8x8xf32> to vector<8x8x8xf32>
    %217 = vector.extract_strided_slice %214 {offsets = [16, 0, 0], sizes = [8, 8, 8], strides = [1, 1, 1]} : vector<32x8x8xf32> to vector<8x8x8xf32>
    %218 = vector.extract_strided_slice %214 {offsets = [24, 0, 0], sizes = [8, 8, 8], strides = [1, 1, 1]} : vector<32x8x8xf32> to vector<8x8x8xf32>
    %219 = tpu.concatenate %215, %216, %217, %218 in 2 : vector<8x8x8xf32>, vector<8x8x8xf32>, vector<8x8x8xf32>, vector<8x8x8xf32> -> vector<8x8x32xf32>
    %220 = vector.shape_cast %219 : vector<8x8x32xf32> to vector<64x32xf32>
    %cst_70 = arith.constant dense<0.000000e+00> : vector<64x32xf32>
    %221 = tpu.matmul %220, %149, %cst_70 {dimension_numbers = #tpu.dot_dimension_numbers<[1], [0], [0], [1], [0, 0, 1, 1], [], []>} : vector<64x32xf32>, vector<32x32xf32>, vector<64x32xf32> -> vector<64x32xf32>
    %222 = arith.addf %142, %221 : vector<64x32xf32>
    %223 = vector.broadcast %147 : vector<1x32xf32> to vector<64x32xf32>
    %224 = arith.addf %222, %223 : vector<64x32xf32>
    %cst_71 = arith.constant dense<0.000000e+00> : vector<64xf32>
    %225 = vector.multi_reduction <add>, %224, %cst_71 [1] : vector<64x32xf32> to vector<64xf32>
    %226 = vector.shape_cast %225 : vector<64xf32> to vector<64x1xf32>
    %cst_72 = arith.constant 3.200000e+01 : f32
    %227 = vector.broadcast %cst_72 : f32 to vector<64x1xf32>
    %228 = arith.divf %226, %227 : vector<64x1xf32>
    %229 = arith.mulf %224, %224 : vector<64x32xf32>
    %cst_73 = arith.constant dense<0.000000e+00> : vector<64xf32>
    %230 = vector.multi_reduction <add>, %229, %cst_73 [1] : vector<64x32xf32> to vector<64xf32>
    %231 = vector.shape_cast %230 : vector<64xf32> to vector<64x1xf32>
    %cst_74 = arith.constant 3.200000e+01 : f32
    %232 = vector.broadcast %cst_74 : f32 to vector<64x1xf32>
    %233 = arith.divf %231, %232 : vector<64x1xf32>
    %234 = arith.mulf %228, %228 : vector<64x1xf32>
    %235 = arith.subf %233, %234 : vector<64x1xf32>
    %cst_75 = arith.constant 0.000000e+00 : f32
    %236 = vector.broadcast %cst_75 : f32 to vector<64x1xf32>
    %237 = arith.maximumf %235, %236 : vector<64x1xf32>
    %238 = vector.broadcast %228 : vector<64x1xf32> to vector<64x32xf32>
    %239 = arith.subf %224, %238 : vector<64x32xf32>
    %cst_76 = arith.constant 9.99999996E-13 : f32
    %240 = vector.broadcast %cst_76 : f32 to vector<64x1xf32>
    %241 = arith.addf %237, %240 : vector<64x1xf32>
    %242 = math.rsqrt %241 : vector<64x1xf32>
    %243 = vector.broadcast %242 : vector<64x1xf32> to vector<64x32xf32>
    %244 = arith.mulf %239, %243 : vector<64x32xf32>
    %245 = vector.broadcast %145 : vector<1x32xf32> to vector<64x32xf32>
    %246 = arith.mulf %244, %245 : vector<64x32xf32>
    %247 = vector.broadcast %146 : vector<1x32xf32> to vector<64x32xf32>
    %248 = arith.addf %246, %247 : vector<64x32xf32>
    %249 = vector.extract_strided_slice %154 {offsets = [0, 0], sizes = [32, 64], strides = [1, 1]} : vector<33x64xf32> to vector<32x64xf32>
    %cst_77 = arith.constant dense<0.000000e+00> : vector<64x64xf32>
    %250 = tpu.matmul %248, %249, %cst_77 {dimension_numbers = #tpu.dot_dimension_numbers<[1], [0], [0], [1], [0, 0, 1, 1], [], []>} : vector<64x32xf32>, vector<32x64xf32>, vector<64x64xf32> -> vector<64x64xf32>
    %251 = vector.extract_strided_slice %154 {offsets = [32, 0], sizes = [1, 64], strides = [1, 1]} : vector<33x64xf32> to vector<1x64xf32>
    %252 = vector.broadcast %251 : vector<1x64xf32> to vector<64x64xf32>
    %253 = arith.addf %250, %252 : vector<64x64xf32>
    %cst_78 = arith.constant 5.000000e-01 : f32
    %254 = vector.broadcast %cst_78 : f32 to vector<64x64xf32>
    %255 = arith.mulf %254, %253 : vector<64x64xf32>
    %cst_79 = arith.constant 4.471500e-02 : f32
    %256 = vector.broadcast %cst_79 : f32 to vector<64x64xf32>
    %257 = arith.mulf %256, %253 : vector<64x64xf32>
    %258 = arith.mulf %257, %253 : vector<64x64xf32>
    %259 = arith.mulf %258, %253 : vector<64x64xf32>
    %260 = arith.addf %253, %259 : vector<64x64xf32>
    %cst_80 = arith.constant 0.797884583 : f32
    %261 = vector.broadcast %cst_80 : f32 to vector<64x64xf32>
    %262 = arith.mulf %261, %260 : vector<64x64xf32>
    %263 = math.tanh %262 : vector<64x64xf32>
    %cst_81 = arith.constant 1.000000e+00 : f32
    %264 = vector.broadcast %cst_81 : f32 to vector<64x64xf32>
    %265 = arith.addf %264, %263 : vector<64x64xf32>
    %266 = arith.mulf %255, %265 : vector<64x64xf32>
    %cst_82 = arith.constant dense<0.000000e+00> : vector<64x32xf32>
    %267 = tpu.matmul %266, %150, %cst_82 {dimension_numbers = #tpu.dot_dimension_numbers<[1], [0], [0], [1], [0, 0, 1, 1], [], []>} : vector<64x64xf32>, vector<64x32xf32>, vector<64x32xf32> -> vector<64x32xf32>
    %268 = arith.addf %224, %267 : vector<64x32xf32>
    %269 = vector.broadcast %148 : vector<1x32xf32> to vector<64x32xf32>
    %270 = arith.addf %268, %269 : vector<64x32xf32>
    %271 = tpu.iota {dimensions = array<i32: 0>} : vector<8x64xi32>
    %272 = tpu.iota {dimensions = array<i32: 1>} : vector<8x64xi32>
    %c8_i32 = arith.constant 8 : i32
    %273 = vector.broadcast %c8_i32 : i32 to vector<8x64xi32>
    %274 = arith.muli %271, %273 : vector<8x64xi32>
    %275 = arith.cmpi eq, %272, %274 : vector<8x64xi32>
    %276 = arith.extui %275 : vector<8x64xi1> to vector<8x64xi32>
    %277 = arith.sitofp %276 : vector<8x64xi32> to vector<8x64xf32>
    %cst_83 = arith.constant dense<0.000000e+00> : vector<8x32xf32>
    %278 = tpu.matmul %277, %270, %cst_83 {dimension_numbers = #tpu.dot_dimension_numbers<[1], [0], [0], [1], [0, 0, 1, 1], [], []>} : vector<8x64xf32>, vector<64x32xf32>, vector<8x32xf32> -> vector<8x32xf32>
    %c776 = arith.constant 776 : index
    %c0_84 = arith.constant 0 : index
    %279 = vector.load %arg2[%c776, %c0_84] : memref<984x32xf32, #tpu.memory_space<vmem>>, vector<1x32xf32>
    %c777 = arith.constant 777 : index
    %c0_85 = arith.constant 0 : index
    %280 = vector.load %arg2[%c777, %c0_85] : memref<984x32xf32, #tpu.memory_space<vmem>>, vector<1x32xf32>
    %cst_86 = arith.constant dense<0.000000e+00> : vector<8xf32>
    %281 = vector.multi_reduction <add>, %278, %cst_86 [1] : vector<8x32xf32> to vector<8xf32>
    %282 = vector.shape_cast %281 : vector<8xf32> to vector<8x1xf32>
    %cst_87 = arith.constant 3.200000e+01 : f32
    %283 = vector.broadcast %cst_87 : f32 to vector<8x1xf32>
    %284 = arith.divf %282, %283 : vector<8x1xf32>
    %285 = arith.mulf %278, %278 : vector<8x32xf32>
    %cst_88 = arith.constant dense<0.000000e+00> : vector<8xf32>
    %286 = vector.multi_reduction <add>, %285, %cst_88 [1] : vector<8x32xf32> to vector<8xf32>
    %287 = vector.shape_cast %286 : vector<8xf32> to vector<8x1xf32>
    %cst_89 = arith.constant 3.200000e+01 : f32
    %288 = vector.broadcast %cst_89 : f32 to vector<8x1xf32>
    %289 = arith.divf %287, %288 : vector<8x1xf32>
    %290 = arith.mulf %284, %284 : vector<8x1xf32>
    %291 = arith.subf %289, %290 : vector<8x1xf32>
    %cst_90 = arith.constant 0.000000e+00 : f32
    %292 = vector.broadcast %cst_90 : f32 to vector<8x1xf32>
    %293 = arith.maximumf %291, %292 : vector<8x1xf32>
    %294 = vector.broadcast %284 : vector<8x1xf32> to vector<8x32xf32>
    %295 = arith.subf %278, %294 : vector<8x32xf32>
    %cst_91 = arith.constant 9.99999996E-13 : f32
    %296 = vector.broadcast %cst_91 : f32 to vector<8x1xf32>
    %297 = arith.addf %293, %296 : vector<8x1xf32>
    %298 = math.rsqrt %297 : vector<8x1xf32>
    %299 = vector.broadcast %298 : vector<8x1xf32> to vector<8x32xf32>
    %300 = arith.mulf %295, %299 : vector<8x32xf32>
    %301 = vector.broadcast %279 : vector<1x32xf32> to vector<8x32xf32>
    %302 = arith.mulf %300, %301 : vector<8x32xf32>
    %303 = vector.broadcast %280 : vector<1x32xf32> to vector<8x32xf32>
    %304 = arith.addf %302, %303 : vector<8x32xf32>
    %c0_92 = arith.constant 0 : index
    %c0_93 = arith.constant 0 : index
    %305 = vector.load %arg5[%c0_92, %c0_93] : memref<33x256xf32, #tpu.memory_space<vmem>>, vector<32x256xf32>
    %cst_94 = arith.constant dense<0.000000e+00> : vector<8x256xf32>
    %306 = tpu.matmul %304, %305, %cst_94 {dimension_numbers = #tpu.dot_dimension_numbers<[1], [0], [0], [1], [0, 0, 1, 1], [], []>} : vector<8x32xf32>, vector<32x256xf32>, vector<8x256xf32> -> vector<8x256xf32>
    %c32 = arith.constant 32 : index
    %c0_95 = arith.constant 0 : index
    %307 = vector.load %arg5[%c32, %c0_95] : memref<33x256xf32, #tpu.memory_space<vmem>>, vector<1x256xf32>
    %308 = vector.broadcast %307 : vector<1x256xf32> to vector<8x256xf32>
    %309 = arith.addf %306, %308 : vector<8x256xf32>
    %cst_96 = arith.constant 0.000000e+00 : f32
    %310 = vector.broadcast %cst_96 : f32 to vector<8x256xf32>
    %311 = arith.cmpf oge, %309, %310 : vector<8x256xf32>
    %cst_97 = arith.constant 1.000000e-01 : f32
    %312 = vector.broadcast %cst_97 : f32 to vector<8x256xf32>
    %313 = arith.mulf %312, %309 : vector<8x256xf32>
    %314 = arith.select %311, %309, %313 : vector<8x256xi1>, vector<8x256xf32>
    %c0_98 = arith.constant 0 : index
    %c0_99 = arith.constant 0 : index
    %315 = vector.load %arg6[%c0_98, %c0_99] : memref<386x128xf32, #tpu.memory_space<vmem>>, vector<256x128xf32>
    %cst_100 = arith.constant dense<0.000000e+00> : vector<8x128xf32>
    %316 = tpu.matmul %314, %315, %cst_100 {dimension_numbers = #tpu.dot_dimension_numbers<[1], [0], [0], [1], [0, 0, 1, 1], [], []>} : vector<8x256xf32>, vector<256x128xf32>, vector<8x128xf32> -> vector<8x128xf32>
    %c256 = arith.constant 256 : index
    %c0_101 = arith.constant 0 : index
    %317 = vector.load %arg6[%c256, %c0_101] : memref<386x128xf32, #tpu.memory_space<vmem>>, vector<1x128xf32>
    %318 = vector.broadcast %317 : vector<1x128xf32> to vector<8x128xf32>
    %319 = arith.addf %316, %318 : vector<8x128xf32>
    %cst_102 = arith.constant 0.000000e+00 : f32
    %320 = vector.broadcast %cst_102 : f32 to vector<8x128xf32>
    %321 = arith.cmpf oge, %319, %320 : vector<8x128xf32>
    %cst_103 = arith.constant 1.000000e-01 : f32
    %322 = vector.broadcast %cst_103 : f32 to vector<8x128xf32>
    %323 = arith.mulf %322, %319 : vector<8x128xf32>
    %324 = arith.select %321, %319, %323 : vector<8x128xi1>, vector<8x128xf32>
    %c257 = arith.constant 257 : index
    %c0_104 = arith.constant 0 : index
    %325 = vector.load %arg6[%c257, %c0_104] : memref<386x128xf32, #tpu.memory_space<vmem>>, vector<128x128xf32>
    %cst_105 = arith.constant dense<0.000000e+00> : vector<8x128xf32>
    %326 = tpu.matmul %324, %325, %cst_105 {dimension_numbers = #tpu.dot_dimension_numbers<[1], [0], [0], [1], [0, 0, 1, 1], [], []>} : vector<8x128xf32>, vector<128x128xf32>, vector<8x128xf32> -> vector<8x128xf32>
    %c385 = arith.constant 385 : index
    %c0_106 = arith.constant 0 : index
    %327 = vector.load %arg6[%c385, %c0_106] : memref<386x128xf32, #tpu.memory_space<vmem>>, vector<1x128xf32>
    %328 = vector.broadcast %327 : vector<1x128xf32> to vector<8x128xf32>
    %329 = arith.addf %326, %328 : vector<8x128xf32>
    %c0_107 = arith.constant 0 : index
    %c0_108 = arith.constant 0 : index
    %330 = vector.load %arg7[%c0_107, %c0_108] : memref<8x128xf32, #tpu.memory_space<vmem>>, vector<8x128xf32>
    tpu.vector_store %arg7[%c0_107, %c0_108], %329 {strides = array<i32>} : memref<8x128xf32, #tpu.memory_space<vmem>>, vector<8x128xf32>,
    return
  }
  func.func @transform_0(%arg0: i32) -> (i32, i32) {
    %c0_i32 = arith.constant 0 : i32
    %c0_i32_0 = arith.constant 0 : i32
    return %arg0, %c0_i32 : i32, i32
  }
  func.func @transform_1(%arg0: i32) -> (i32, i32) {
    %c0_i32 = arith.constant 0 : i32
    %c0_i32_0 = arith.constant 0 : i32
    %c0_i32_1 = arith.constant 0 : i32
    return %c0_i32, %c0_i32_0 : i32, i32
  }
  func.func @transform_2(%arg0: i32) -> (i32, i32, i32) {
    %c0_i32 = arith.constant 0 : i32
    %c0_i32_0 = arith.constant 0 : i32
    %c0_i32_1 = arith.constant 0 : i32
    %c0_i32_2 = arith.constant 0 : i32
    return %c0_i32, %c0_i32_0, %c0_i32_1 : i32, i32, i32
  }
  func.func @transform_3(%arg0: i32) -> (i32, i32, i32) {
    %c0_i32 = arith.constant 0 : i32
    %c0_i32_0 = arith.constant 0 : i32
    %c0_i32_1 = arith.constant 0 : i32
    %c0_i32_2 = arith.constant 0 : i32
    return %c0_i32, %c0_i32_0, %c0_i32_1 : i32, i32, i32
  }
  func.func @transform_4(%arg0: i32) -> (i32, i32) {
    %c0_i32 = arith.constant 0 : i32
    %c0_i32_0 = arith.constant 0 : i32
    %c0_i32_1 = arith.constant 0 : i32
    return %c0_i32, %c0_i32_0 : i32, i32
  }
  func.func @transform_5(%arg0: i32) -> (i32, i32) {
    %c0_i32 = arith.constant 0 : i32
    %c0_i32_0 = arith.constant 0 : i32
    %c0_i32_1 = arith.constant 0 : i32
    return %c0_i32, %c0_i32_0 : i32, i32
  }
  func.func @transform_6(%arg0: i32) -> (i32, i32) {
    %c0_i32 = arith.constant 0 : i32
    %c0_i32_0 = arith.constant 0 : i32
    return %arg0, %c0_i32 : i32, i32
  }
}

</mosaic_0001>

<bundles_post_ra>
// kernel: forward.1
= control target key start
LH: loop header
LB: loop body
LE: loop exit
PB: predicated region body
PF: predicated region fallthrough
CT: control target
= control target key end

     0   :  { %vm523_vm0 = vcmask 261120   ;;  %s15887_s12 = smov 120   ;;  %s15888_s13 = smov 112   ;;  %vm15890_vm1 = vmmov 0   ;;  %vm868_vm2 = vcmask 64512   ;;  %vm6251_vm4 = vcmask 130048   ;;  %s19430_s1 = inlined_call_operand.vmem [shape: f32[984,32], index: 1, kind: input, shape index: {}]   ;;  %s19431_s0 = inlined_call_operand.vmem [shape: f32[64,768], index: 0, kind: input, shape index: {}]   ;;  %s19432_s2 = inlined_call_operand.vmem [shape: f32[2,33,96], index: 2, kind: input, shape index: {}]   ;;  %s19433_s3 = inlined_call_operand.vmem [shape: f32[2,33,64], index: 3, kind: input, shape index: {}]   ;;  %s19434_s4 = inlined_call_operand.vmem [shape: f32[33,256], index: 4, kind: input, shape index: {}]   ;;  %s19435_s5 = inlined_call_operand.vmem [shape: f32[386,128], index: 5, kind: input, shape index: {}]   ;;  %s19436_s6 = inlined_call_operand.vmem [shape: f32[8,128], index: 6, kind: output, shape index: {}]  }
   0x1   :  { %v54_v0 = vld [vmem:[%s19430_s1 + $0xf8] sm:$0xff]  ;;  %v53_v4 = vld [vmem:[%s19430_s1 + $0xf0] sm:$0xff]  ;;  %v52_v8 = vld [vmem:[%s19430_s1 + $0xe8] sm:$0xff]  ;;  %s15891_s14 = smov 104   ;;  %s15892_s15 = smov 96   ;;  %vm6260_vm5 = vcmask 195584  }
   0x2   :  { %v86_v1 = vld [vmem:[%s19430_s1 + $0x1f8] sm:$0xff]  ;;  %14055 = vmatprep.subr.mxu0 %v54_v0  ;;  %v85_v5 = vld [vmem:[%s19430_s1 + $0x1f0] sm:$0xff]  ;;  %v84_v9 = vld [vmem:[%s19430_s1 + $0x1e8] sm:$0xff]  ;;  %s15893_s16 = smov 64   ;;  %s15895_s17 = smov 8   ;;  %vm6775_vm6 = vcmask 523264  }
   0x3   :  { %v38_v2 = vld [vmem:[%s19430_s1 + $0x78] sm:$0xff]  ;;  %14111 = vmatprep.subr.mxu1 %v86_v1  ;;  %v37_v6 = vld [vmem:[%s19430_s1 + $0x70] sm:$0xff]  ;;  %v36_v10 = vld [vmem:[%s19430_s1 + $0x68] sm:$0xff]  ;;  %s15896_s18 = smov 16   ;;  %s15897_s26 = smov 24  }
   0x4   :  { %v70_v3 = vld [vmem:[%s19430_s1 + $0x178] sm:$0xff]  ;;  %14056 = vmatpush3.msra.mxu0 %v38_v2  ;;  %v69_v7 = vld [vmem:[%s19430_s1 + $0x170] sm:$0xff]  ;;  %v68_v11 = vld [vmem:[%s19430_s1 + $0x168] sm:$0xff] }
   0x5   :  { %14112 = vmatpush3.msra.mxu1 %v70_v3  ;;  %14057 = vmatprep.subr.mxu0 %v53_v4  ;;  %v51_v12 = vld [vmem:[%s19430_s1 + $0xe0] sm:$0xff]  ;;  %v50_v16 = vld [vmem:[%s19430_s1 + $0xd8] sm:$0xff]  ;;  %v49_v20 = vld [vmem:[%s19430_s1 + $0xd0] sm:$0xff] }
   0x6   :  { %14113 = vmatprep.subr.mxu1 %v85_v5  ;;  %14058 = vmatpush3.msra.mxu0 %v37_v6  ;;  %v83_v13 = vld [vmem:[%s19430_s1 + $0x1e0] sm:$0xff]  ;;  %v82_v17 = vld [vmem:[%s19430_s1 + $0x1d8] sm:$0xff]  ;;  %v81_v21 = vld [vmem:[%s19430_s1 + $0x1d0] sm:$0xff] }
   0x7   :  { %14114 = vmatpush3.msra.mxu1 %v69_v7  ;;  %14059 = vmatprep.subr.mxu0 %v52_v8  ;;  %v35_v14 = vld [vmem:[%s19430_s1 + $0x60] sm:$0xff]  ;;  %v34_v18 = vld [vmem:[%s19430_s1 + $0x58] sm:$0xff]  ;;  %v33_v22 = vld [vmem:[%s19430_s1 + $0x50] sm:$0xff] }
   0x8   :  { %14115 = vmatprep.subr.mxu1 %v84_v9  ;;  %v67_v15 = vld [vmem:[%s19430_s1 + $0x160] sm:$0xff]  ;;  %14060 = vmatpush3.msra.mxu0 %v36_v10  ;;  %v66_v19 = vld [vmem:[%s19430_s1 + $0x158] sm:$0xff]  ;;  %v65_v23 = vld [vmem:[%s19430_s1 + $0x150] sm:$0xff] }
   0x9   :  { %14116 = vmatpush3.msra.mxu1 %v68_v11  ;;  %14061 = vmatprep.subr.mxu0 %v51_v12  ;;  %v48_v24 = vld [vmem:[%s19430_s1 + $0xc8] sm:$0xff]  ;;  %v47_v28 = vld [vmem:[%s19430_s1 + $0xc0] sm:$0xff]  ;;  %v46_v32 = vld [vmem:[%s19430_s1 + $0xb8] sm:$0xff] }
   0xa   :  { %14117 = vmatprep.subr.mxu1 %v83_v13  ;;  %14062 = vmatpush3.msra.mxu0 %v35_v14  ;;  %v80_v25 = vld [vmem:[%s19430_s1 + $0x1c8] sm:$0xff]  ;;  %v79_v29 = vld [vmem:[%s19430_s1 + $0x1c0] sm:$0xff]  ;;  %v78_v33 = vld [vmem:[%s19430_s1 + $0x1b8] sm:$0xff] }
   0xb   :  { %14118 = vmatpush3.msra.mxu1 %v67_v15  ;;  %14063 = vmatprep.subr.mxu0 %v50_v16  ;;  %v32_v26 = vld [vmem:[%s19430_s1 + $0x48] sm:$0xff]  ;;  %v31_v30 = vld [vmem:[%s19430_s1 + $0x40] sm:$0xff]  ;;  %v30_v34 = vld [vmem:[%s19430_s1 + $0x38] sm:$0xff] }
   0xc   :  { %14119 = vmatprep.subr.mxu1 %v82_v17  ;;  %14064 = vmatpush3.msra.mxu0 %v34_v18  ;;  %v64_v27 = vld [vmem:[%s19430_s1 + $0x148] sm:$0xff]  ;;  %v63_v31 = vld [vmem:[%s19430_s1 + $0x140] sm:$0xff]  ;;  %v62_v35 = vld [vmem:[%s19430_s1 + $0x138] sm:$0xff] }
   0xd   :  { %14120 = vmatpush3.msra.mxu1 %v66_v19  ;;  %14065 = vmatprep.subr.mxu0 %v49_v20  ;;  %v45_v36 = vld [vmem:[%s19430_s1 + $0xb0] sm:$0xff]  ;;  %v44_v40 = vld [vmem:[%s19430_s1 + $0xa8] sm:$0xff]  ;;  %v43_v44 = vld [vmem:[%s19430_s1 + $0xa0] sm:$0xff] }
   0xe   :  { %14121 = vmatprep.subr.mxu1 %v81_v21  ;;  %14066 = vmatpush3.msra.mxu0 %v33_v22  ;;  %v77_v37 = vld [vmem:[%s19430_s1 + $0x1b0] sm:$0xff]  ;;  %v76_v41 = vld [vmem:[%s19430_s1 + $0x1a8] sm:$0xff]  ;;  %v75_v45 = vld [vmem:[%s19430_s1 + $0x1a0] sm:$0xff] }
   0xf   :  { %14122 = vmatpush3.msra.mxu1 %v65_v23  ;;  %14067 = vmatprep.subr.mxu0 %v48_v24  ;;  %v29_v38 = vld [vmem:[%s19430_s1 + $0x30] sm:$0xff]  ;;  %v28_v42 = vld [vmem:[%s19430_s1 + $0x28] sm:$0xff]  ;;  %v27_v46 = vld [vmem:[%s19430_s1 + $0x20] sm:$0xff] }
  0x10   :  { %14123 = vmatprep.subr.mxu1 %v80_v25  ;;  %14068 = vmatpush3.msra.mxu0 %v32_v26  ;;  %v61_v39 = vld [vmem:[%s19430_s1 + $0x130] sm:$0xff]  ;;  %v60_v43 = vld [vmem:[%s19430_s1 + $0x128] sm:$0xff]  ;;  %v59_v47 = vld [vmem:[%s19430_s1 + $0x120] sm:$0xff] }
  0x11   :  { %14124 = vmatpush3.msra.mxu1 %v64_v27  ;;  %14069 = vmatprep.subr.mxu0 %v47_v28  ;;  %v42_v48 = vld [vmem:[%s19430_s1 + $0x98] sm:$0xff]  ;;  %v41_v52 = vld [vmem:[%s19430_s1 + $0x90] sm:$0xff]  ;;  %v40_v56 = vld [vmem:[%s19430_s1 + $0x88] sm:$0xff] }
  0x12   :  { %14125 = vmatprep.subr.mxu1 %v79_v29  ;;  %14070 = vmatpush3.msra.mxu0 %v31_v30  ;;  %v74_v49 = vld [vmem:[%s19430_s1 + $0x198] sm:$0xff]  ;;  %v73_v53 = vld [vmem:[%s19430_s1 + $0x190] sm:$0xff]  ;;  %v72_v57 = vld [vmem:[%s19430_s1 + $0x188] sm:$0xff] }
  0x13   :  { %14126 = vmatpush3.msra.mxu1 %v63_v31  ;;  %14071 = vmatprep.subr.mxu0 %v46_v32  ;;  %v26_v50 = vld [vmem:[%s19430_s1 + $0x18] sm:$0xff]  ;;  %v25_v54 = vld [vmem:[%s19430_s1 + $0x10] sm:$0xff]  ;;  %v24_v58 = vld [vmem:[%s19430_s1 + $0x8] sm:$0xff] }
  0x14   :  { %14127 = vmatprep.subr.mxu1 %v78_v33  ;;  %14072 = vmatpush3.msra.mxu0 %v30_v34  ;;  %v58_v51 = vld [vmem:[%s19430_s1 + $0x118] sm:$0xff]  ;;  %v57_v55 = vld [vmem:[%s19430_s1 + $0x110] sm:$0xff]  ;;  %v56_v59 = vld [vmem:[%s19430_s1 + $0x108] sm:$0xff] }
  0x15   :  { %14128 = vmatpush3.msra.mxu1 %v62_v35  ;;  %14073 = vmatprep.subr.mxu0 %v45_v36  ;;  %v39_v60 = vld [vmem:[%s19430_s1 + $0x80] sm:$0xff]  ;;  %v121_v63 = vld [vmem:[%s19431_s0 + $0x8] sm:$0xff]  ;;  %v123_v1 = vld [vmem:[%s19431_s0 + $0x18] sm:$0xff] }
  0x16   :  { %14129 = vmatprep.subr.mxu1 %v77_v37  ;;  %14074 = vmatpush3.msra.mxu0 %v29_v38  ;;  %v71_v61 = vld [vmem:[%s19430_s1 + $0x180] sm:$0xff]  ;;  %v122_v3 = vld [vmem:[%s19431_s0 + $0x10] sm:$0xff]  ;;  %v118_v4 = vld [vmem:[%s19430_s1 + $0x2f8] sm:$0xff] }
  0x17   :  { %14130 = vmatpush3.msra.mxu1 %v61_v39  ;;  %14075 = vmatprep.subr.mxu0 %v44_v40  ;;  %v23_v62 = vld [vmem:[%s19430_s1] sm:$0xff]  ;;  %v127_v5 = vld [vmem:[%s19431_s0 + $0x38] sm:$0xff]  ;;  %v129_v7 = vld [vmem:[%s19431_s0 + $0x48] sm:$0xff] }
  0x18   :  { %14131 = vmatprep.subr.mxu1 %v76_v41  ;;  %14076 = vmatpush3.msra.mxu0 %v28_v42  ;;  %v55_v0 = vld [vmem:[%s19430_s1 + $0x100] sm:$0xff]  ;;  %v102_v6 = vld [vmem:[%s19430_s1 + $0x278] sm:$0xff]  ;;  %v117_v8 = vld [vmem:[%s19430_s1 + $0x2f0] sm:$0xff] }
  0x19   :  { %14132 = vmatpush3.msra.mxu1 %v60_v43  ;;  %14077 = vmatprep.subr.mxu0 %v43_v44  ;;  %v120_v2 = vld [vmem:[%s19431_s0] sm:$0xff]  ;;  %v101_v9 = vld [vmem:[%s19430_s1 + $0x270] sm:$0xff]  ;;  %v116_v12 = vld [vmem:[%s19430_s1 + $0x2e8] sm:$0xff] }
  0x1a   :  { %14133 = vmatprep.subr.mxu1 %v75_v45  ;;  %14078 = vmatpush3.msra.mxu0 %v27_v46  ;;  %v128_v10 = vld [vmem:[%s19431_s0 + $0x40] sm:$0xff]  ;;  %v126_v11 = vld [vmem:[%s19431_s0 + $0x30] sm:$0xff]  ;;  %v100_v13 = vld [vmem:[%s19430_s1 + $0x268] sm:$0xff] }
  0x1b   :  { %14134 = vmatpush3.msra.mxu1 %v59_v47  ;;  %14079 = vmatprep.subr.mxu0 %v42_v48  ;;  %v133_v14 = vld [vmem:[%s19431_s0 + $0x68] sm:$0xff]  ;;  %v115_v15 = vld [vmem:[%s19430_s1 + $0x2e0] sm:$0xff]  ;;  %v135_v16 = vld [vmem:[%s19431_s0 + $0x78] sm:$0xff] }
  0x1c   :  { %14135 = vmatprep.subr.mxu1 %v74_v49  ;;  %14080 = vmatpush3.msra.mxu0 %v26_v50  ;;  %v99_v17 = vld [vmem:[%s19430_s1 + $0x260] sm:$0xff]  ;;  %v134_v18 = vld [vmem:[%s19431_s0 + $0x70] sm:$0xff]  ;;  %v114_v20 = vld [vmem:[%s19430_s1 + $0x2d8] sm:$0xff] }
  0x1d   :  { %14136 = vmatpush3.msra.mxu1 %v58_v51  ;;  %14081 = vmatprep.subr.mxu0 %v41_v52  ;;  %v132_v19 = vld [vmem:[%s19431_s0 + $0x60] sm:$0xff]  ;;  %v98_v21 = vld [vmem:[%s19430_s1 + $0x258] sm:$0xff]  ;;  %v113_v23 = vld [vmem:[%s19430_s1 + $0x2d0] sm:$0xff] }
  0x1e   :  { %14137 = vmatprep.subr.mxu1 %v73_v53  ;;  %14082 = vmatpush3.msra.mxu0 %v25_v54  ;;  %v139_v22 = vld [vmem:[%s19431_s0 + $0x98] sm:$0xff]  ;;  %v141_v24 = vld [vmem:[%s19431_s0 + $0xa8] sm:$0xff]  ;;  %v97_v25 = vld [vmem:[%s19430_s1 + $0x250] sm:$0xff] }
  0x1f   :  { %14138 = vmatpush3.msra.mxu1 %v57_v55  ;;  %14083 = vmatprep.subr.mxu0 %v40_v56  ;;  %v140_v26 = vld [vmem:[%s19431_s0 + $0xa0] sm:$0xff]  ;;  %v138_v27 = vld [vmem:[%s19431_s0 + $0x90] sm:$0xff]  ;;  %v112_v28 = vld [vmem:[%s19430_s1 + $0x2c8] sm:$0xff] }
  0x20   :  { %14139 = vmatprep.subr.mxu1 %v72_v57  ;;  %14084 = vmatpush3.msra.mxu0 %v24_v58  ;;  %v96_v29 = vld [vmem:[%s19430_s1 + $0x248] sm:$0xff]  ;;  %v111_v31 = vld [vmem:[%s19430_s1 + $0x2c0] sm:$0xff]  ;;  %v147_v32 = vld [vmem:[%s19431_s0 + $0xd8] sm:$0xff] }
  0x21   :  { %14140 = vmatpush3.msra.mxu1 %v56_v59  ;;  %14085 = vmatprep.subr.mxu0 %v39_v60  ;;  %v145_v30 = vld [vmem:[%s19431_s0 + $0xc8] sm:$0xff]  ;;  %v95_v33 = vld [vmem:[%s19430_s1 + $0x240] sm:$0xff]  ;;  %v146_v34 = vld [vmem:[%s19431_s0 + $0xd0] sm:$0xff] }
  0x22   :  { %14141 = vmatprep.subr.mxu1 %v71_v61  ;;  %14086 = vmatpush3.msra.mxu0 %v23_v62  ;;  %v144_v35 = vld [vmem:[%s19431_s0 + $0xc0] sm:$0xff]  ;;  %v110_v36 = vld [vmem:[%s19430_s1 + $0x2b8] sm:$0xff]  ;;  %v109_v39 = vld [vmem:[%s19430_s1 + $0x2b0] sm:$0xff] }
  0x23   :  { %232 = vmatprep.mubr.f32.mxu0 %v121_v63  ;;  %14142 = vmatpush3.msra.mxu1 %v55_v0  ;;  %v94_v37 = vld [vmem:[%s19430_s1 + $0x238] sm:$0xff]  ;;  %v153_v40 = vld [vmem:[%s19431_s0 + $0x108] sm:$0xff]  ;;  %v93_v41 = vld [vmem:[%s19430_s1 + $0x230] sm:$0xff] }
  0x24   :  { %337 = vmatprep.mubr.f32.mxu1 %v123_v1  ;;  %233 = vmatmul.mubr.f32.vlgmr.msra.gmra.mxu0 %v120_v2  ;;  %v151_v38 = vld [vmem:[%s19431_s0 + $0xf8] sm:$0xff]  ;;  %v152_v42 = vld [vmem:[%s19431_s0 + $0x100] sm:$0xff]  ;;  %v150_v43 = vld [vmem:[%s19431_s0 + $0xf0] sm:$0xff] }
  0x25   :  { %338 = vmatmul.mubr.f32.vlgmr.msra.gmra.mxu1 %v122_v3  ;;  %14167 = vmatprep.subr.mxu0 %v118_v4  ;;  %v108_v44 = vld [vmem:[%s19430_s1 + $0x2a8] sm:$0xff]  ;;  %v107_v47 = vld [vmem:[%s19430_s1 + $0x2a0] sm:$0xff]  ;;  %v159_v48 = vld [vmem:[%s19431_s0 + $0x138] sm:$0xff] }
  0x26   :  { %237 = vmatprep.mubr.f32.mxu0 %v127_v5  ;;  %14168 = vmatpush3.msra.mxu0 %v102_v6  ;;  %v92_v45 = vld [vmem:[%s19430_s1 + $0x228] sm:$0xff]  ;;  %v91_v49 = vld [vmem:[%s19430_s1 + $0x220] sm:$0xff]  ;;  %v158_v50 = vld [vmem:[%s19431_s0 + $0x130] sm:$0xff] }
  0x27   :  { %342 = vmatprep.mubr.f32.mxu1 %v129_v7  ;;  %14169 = vmatprep.subr.mxu0 %v117_v8  ;;  %v157_v46 = vld [vmem:[%s19431_s0 + $0x128] sm:$0xff]  ;;  %v156_v51 = vld [vmem:[%s19431_s0 + $0x120] sm:$0xff]  ;;  %v106_v52 = vld [vmem:[%s19430_s1 + $0x298] sm:$0xff] }
  0x28   :  { %14170 = vmatpush3.msra.mxu0 %v101_v9  ;;  %v90_v53 = vld [vmem:[%s19430_s1 + $0x218] sm:$0xff]  ;;  %v105_v55 = vld [vmem:[%s19430_s1 + $0x290] sm:$0xff]  ;;  %v165_v56 = vld [vmem:[%s19431_s0 + $0x168] sm:$0xff] }
  0x29   :  { %343 = vmatmul.mubr.f32.gmra.mxu1 %v128_v10  ;;  %238 = vmatmul.mubr.f32.gmra.mxu0 %v126_v11  ;;  %v163_v54 = vld [vmem:[%s19431_s0 + $0x158] sm:$0xff]  ;;  %v89_v57 = vld [vmem:[%s19430_s1 + $0x210] sm:$0xff]  ;;  %v164_v58 = vld [vmem:[%s19431_s0 + $0x160] sm:$0xff] }
  0x2a   :  { %14171 = vmatprep.subr.mxu0 %v116_v12  ;;  %242 = vmatprep.mubr.f32.mxu0 %v133_v14  ;;  %v162_v59 = vld [vmem:[%s19431_s0 + $0x150] sm:$0xff]  ;;  %v104_v60 = vld [vmem:[%s19430_s1 + $0x288] sm:$0xff]  ;;  %v103_v63 = vld [vmem:[%s19430_s1 + $0x280] sm:$0xff] }
  0x2b   :  { %14172 = vmatpush3.msra.mxu0 %v100_v13  ;;  %347 = vmatprep.mubr.f32.mxu1 %v135_v16  ;;  %v88_v61 = vld [vmem:[%s19430_s1 + $0x208] sm:$0xff]  ;;  %v87_v0 = vld [vmem:[%s19430_s1 + $0x200] sm:$0xff]  ;;  %v131_v2 = vld [vmem:[%s19431_s0 + $0x58] sm:$0xff] }
  0x2c   :  { %14173 = vmatprep.subr.mxu0 %v115_v15  ;;  %v125_v62 = vld [vmem:[%s19431_s0 + $0x28] sm:$0xff]  ;;  %v124_v1 = vld [vmem:[%s19431_s0 + $0x20] sm:$0xff]  ;;  %v130_v3 = vld [vmem:[%s19431_s0 + $0x50] sm:$0xff] }
  0x2d   :  { %14174 = vmatpush3.msra.mxu0 %v99_v17  ;;  %348 = vmatmul.mubr.f32.gmra.mxu1 %v134_v18  ;;  %v137_v4 = vld [vmem:[%s19431_s0 + $0x88] sm:$0xff]  ;;  %v136_v5 = vld [vmem:[%s19431_s0 + $0x80] sm:$0xff]  ;;  %v143_v6 = vld [vmem:[%s19431_s0 + $0xb8] sm:$0xff] }
  0x2e   :  { %243 = vmatmul.mubr.f32.gmra.mxu0 %v132_v19  ;;  %14175 = vmatprep.subr.mxu0 %v114_v20  ;;  %v142_v7 = vld [vmem:[%s19431_s0 + $0xb0] sm:$0xff]  ;;  %v149_v8 = vld [vmem:[%s19431_s0 + $0xe8] sm:$0xff]  ;;  %v148_v9 = vld [vmem:[%s19431_s0 + $0xe0] sm:$0xff] }
  0x2f   :  { %14176 = vmatpush3.msra.mxu0 %v98_v21  ;;  %247 = vmatprep.mubr.f32.mxu0 %v139_v22  ;;  %v155_v10 = vld [vmem:[%s19431_s0 + $0x118] sm:$0xff]  ;;  %v154_v11 = vld [vmem:[%s19431_s0 + $0x110] sm:$0xff]  ;;  %v161_v12 = vld [vmem:[%s19431_s0 + $0x148] sm:$0xff] }
  0x30   :  { %14177 = vmatprep.subr.mxu0 %v113_v23  ;;  %352 = vmatprep.mubr.f32.mxu1 %v141_v24  ;;  %v160_v13 = vld [vmem:[%s19431_s0 + $0x140] sm:$0xff]  ;;  %v167_v14 = vld [vmem:[%s19431_s0 + $0x178] sm:$0xff]  ;;  %v166_v15 = vld [vmem:[%s19431_s0 + $0x170] sm:$0xff] }
  0x31   :  { %14178 = vmatpush3.msra.mxu0 %v97_v25  ;;  %353 = vmatmul.mubr.f32.gmra.mxu1 %v140_v26 }
  0x32   :  { %248 = vmatmul.mubr.f32.gmra.mxu0 %v138_v27  ;;  %14179 = vmatprep.subr.mxu0 %v112_v28 }
  0x33   :  { %14180 = vmatpush3.msra.mxu0 %v96_v29  ;;  %252 = vmatprep.mubr.f32.mxu0 %v145_v30 }
  0x34   :  { %14181 = vmatprep.subr.mxu0 %v111_v31  ;;  %357 = vmatprep.mubr.f32.mxu1 %v147_v32 }
  0x35   :  { %14182 = vmatpush3.msra.mxu0 %v95_v33  ;;  %358 = vmatmul.mubr.f32.gmra.mxu1 %v146_v34 }
  0x36   :  { %253 = vmatmul.mubr.f32.gmra.mxu0 %v144_v35  ;;  %14183 = vmatprep.subr.mxu0 %v110_v36 }
  0x37   :  { %14184 = vmatpush3.msra.mxu0 %v94_v37  ;;  %257 = vmatprep.mubr.f32.mxu0 %v151_v38 }
  0x38   :  { %14185 = vmatprep.subr.mxu0 %v109_v39  ;;  %362 = vmatprep.mubr.f32.mxu1 %v153_v40 }
  0x39   :  { %14186 = vmatpush3.msra.mxu0 %v93_v41  ;;  %363 = vmatmul.mubr.f32.gmra.mxu1 %v152_v42 }
  0x3a   :  { %258 = vmatmul.mubr.f32.gmra.mxu0 %v150_v43  ;;  %14187 = vmatprep.subr.mxu0 %v108_v44 }
  0x3b   :  { %14188 = vmatpush3.msra.mxu0 %v92_v45  ;;  %262 = vmatprep.mubr.f32.mxu0 %v157_v46 }
  0x3c   :  { %14189 = vmatprep.subr.mxu0 %v107_v47  ;;  %367 = vmatprep.mubr.f32.mxu1 %v159_v48 }
  0x3d   :  { %14190 = vmatpush3.msra.mxu0 %v91_v49  ;;  %368 = vmatmul.mubr.f32.gmra.mxu1 %v158_v50 }
  0x3e   :  { %263 = vmatmul.mubr.f32.gmra.mxu0 %v156_v51  ;;  %14191 = vmatprep.subr.mxu0 %v106_v52  ;;  %v16380_v51 = vld [vmem:[%s19430_s1 + $0x300] sm:$0xff] }
  0x3f   :  { %14192 = vmatpush3.msra.mxu0 %v90_v53  ;;  %267 = vmatprep.mubr.f32.mxu0 %v163_v54 }
  0x40   :  { %14193 = vmatprep.subr.mxu0 %v105_v55  ;;  %372 = vmatprep.mubr.f32.mxu1 %v165_v56 }
  0x41   :  { %14194 = vmatpush3.msra.mxu0 %v89_v57  ;;  %373 = vmatmul.mubr.f32.gmra.mxu1 %v164_v58 }
  0x42   :  { %268 = vmatmul.mubr.f32.gmra.mxu0 %v162_v59  ;;  %14195 = vmatprep.subr.mxu0 %v104_v60 }
  0x43   :  { %14196 = vmatpush3.msra.mxu0 %v88_v61  ;;  %442 = vmatprep.mubr.f32.mxu0 %v125_v62 }
  0x44   :  { %14197 = vmatprep.subr.mxu0 %v103_v63 }
  0x45   :  { %14198 = vmatpush3.msra.mxu0 %v87_v0 }
  0x46   :  { %443 = vmatmul.mubr.f32.vlgmr.msra.gmra.mxu0 %v124_v1 }
  0x47   :  { %447 = vmatprep.mubr.f32.mxu0 %v131_v2 }
  0x4a   :  { %448 = vmatmul.mubr.f32.gmra.mxu0 %v130_v3 }
  0x4b   :  { %452 = vmatprep.mubr.f32.mxu0 %v137_v4 }
  0x4e   :  { %453 = vmatmul.mubr.f32.gmra.mxu0 %v136_v5 }
  0x4f   :  { %457 = vmatprep.mubr.f32.mxu0 %v143_v6 }
  0x52   :  { %458 = vmatmul.mubr.f32.gmra.mxu0 %v142_v7 }
  0x53   :  { %462 = vmatprep.mubr.f32.mxu0 %v149_v8 }
  0x56   :  { %463 = vmatmul.mubr.f32.gmra.mxu0 %v148_v9 }
  0x57   :  { %467 = vmatprep.mubr.f32.mxu0 %v155_v10 }
  0x5a   :  { %468 = vmatmul.mubr.f32.gmra.mxu0 %v154_v11 }
  0x5b   :  { %472 = vmatprep.mubr.f32.mxu0 %v161_v12 }
  0x5e   :  { %473 = vmatmul.mubr.f32.gmra.mxu0 %v160_v13 }
  0x5f   :  { %477 = vmatprep.mubr.f32.mxu0 %v167_v14 }
  0x62   :  { %478 = vmatmul.mubr.f32.gmra.mxu0 %v166_v15 }
  0xe4   :  { %v14087_v16 = vpop.f32.mrf.mxu0 }
  0xe5   :  { %v14143_v17 = vpop.f32.mrf.mxu1 }
  0xe6   :  { %v14088_v18 = vpop.f32.mrf.mxu0 }
  0xe7   :  { %v14144_v19 = vpop.f32.mrf.mxu1  ;;  %v14089_v41 = vadd.f32 %v14088_v18, %v14087_v16 }
  0xe8   :  { %v14145_v42 = vadd.f32 %v14144_v19, %v14143_v17 }
  0xe9   :  { %v14090_v20 = vpop.f32.mrf.mxu0  ;;  %v14146_v21 = vpop.f32.mrf.mxu1 }
  0xea   :  { %v340_v46 = vadd.f32 %v14145_v42, %v14089_v41 }
  0xeb   :  { %v14091_v22 = vpop.f32.mrf.mxu0  ;;  %v14147_v23 = vpop.f32.mrf.mxu1 }
  0xec   :  { %v14092_v47 = vadd.f32 %v14091_v22, %v14090_v20  ;;  %v14148_v48 = vadd.f32 %v14147_v23, %v14146_v21 }
  0xed   :  { %v14149_v26 = vpop.f32.mrf.mxu1 }
  0xee   :  { %v14093_v24 = vpop.f32.mrf.mxu0  ;;  %v345_v57 = vadd.f32 %v14148_v48, %v14092_v47 }
  0xef   :  { %v14150_v29 = vpop.f32.mrf.mxu1 }
  0xf0   :  { %v14094_v25 = vpop.f32.mrf.mxu0  ;;  %v14151_v55 = vadd.f32 %v14150_v29, %v14149_v26 }
  0xf1   :  { %v14152_v32 = vpop.f32.mrf.mxu1  ;;  %v14095_v54 = vadd.f32 %v14094_v25, %v14093_v24 }
  0xf2   :  { %v14096_v27 = vpop.f32.mrf.mxu0 }
  0xf3   :  { %v14153_v35 = vpop.f32.mrf.mxu1  ;;  %v350_v1 = vadd.f32 %v14151_v55, %v14095_v54 }
  0xf4   :  { %v14097_v28 = vpop.f32.mrf.mxu0  ;;  %v14154_v2 = vadd.f32 %v14153_v35, %v14152_v32 }
  0xf5   :  { %v14155_v38 = vpop.f32.mrf.mxu1  ;;  %v14098_v4 = vadd.f32 %v14097_v28, %v14096_v27 }
  0xf6   :  { %v14099_v30 = vpop.f32.mrf.mxu0 }
  0xf7   :  { %v14156_v43 = vpop.f32.mrf.mxu1  ;;  %v355_v16 = vadd.f32 %v14154_v2, %v14098_v4 }
  0xf8   :  { %v14100_v31 = vpop.f32.mrf.mxu0  ;;  %v14157_v14 = vadd.f32 %v14156_v43, %v14155_v38 }
  0xf9   :  { %v14158_v50 = vpop.f32.mrf.mxu1  ;;  %v14101_v13 = vadd.f32 %v14100_v31, %v14099_v30 }
  0xfa   :  { %v16365_v33 = vpop.f32.mrf.mxu0 }
  0xfb   :  { %v14159_v60 = vpop.f32.mrf.mxu1  ;;  %v360_v25 = vadd.f32 %v14157_v14, %v14101_v13  ;;  %v514_v13 = vld [vmem:[%s19432_s2 + $0x8] sm:$0xff]  ;;  %v513_v14 = vld [vmem:[%s19432_s2] sm:$0xff] }
  0xfc   :  { %v16367_v34 = vpop.f32.mrf.mxu0  ;;  %v14160_v28 = vadd.f32 %v14159_v60, %v14158_v50 }
  0xfd   :  { %v14161_v8 = vpop.f32.mrf.mxu1  ;;  %v14104_v27 = vadd.f32 %v16367_v34, %v16365_v33 }
  0xfe   :  { %v16369_v36 = vpop.f32.mrf.mxu0 }
  0xff   :  { %v14162_v20 = vpop.f32.mrf.mxu1 }
 0x100   :  { %v16371_v37 = vpop.f32.mrf.mxu0  ;;  %v14163_v33 = vadd.f32 %v14162_v20, %v14161_v8 }
 0x101   :  { %v14164_v31 = vpop.f32.mrf.mxu1  ;;  %v14107_v43 = vadd.f32 %v16371_v37, %v16369_v36 }
 0x102   :  { %v16373_v39 = vpop.f32.mrf.mxu0 }
 0x103   :  { %v14165_v47 = vpop.f32.mrf.mxu1  ;;  %v370_v37 = vadd.f32 %v14163_v33, %v14107_v43 }
 0x104   :  { %v16375_v40 = vpop.f32.mrf.mxu0  ;;  %v14166_v55 = vadd.f32 %v14165_v47, %v14164_v31 }
 0x105   :  { %v14110_v54 = vadd.f32 %v16375_v40, %v16373_v39 }
 0x106   :  { %v14199_v44 = vpop.f32.mrf.mxu0 }
 0x108   :  { %v14200_v45 = vpop.f32.mrf.mxu0 }
 0x109   :  { %v14201_v49 = vadd.f32 %v14200_v45, %v14199_v44  ;;  %v365_v44 = vadd.f32 %v14160_v28, %v14104_v27 }
 0x10a   :  { %v14202_v52 = vpop.f32.mrf.mxu0 }
 0x10b   :  { %v445_v53 = vadd.f32 %v14201_v49, %v340_v46 }
 0x10c   :  { %v14203_v56 = vpop.f32.mrf.mxu0 }
 0x10d   :  { %v16383_v58 = vadd.f32 %v445_v53, %v16380_v51  ;;  %v14204_v59 = vadd.f32 %v14203_v56, %v14202_v52 }
 0x10e   :  { %v14205_v61 = vpop.f32.mrf.mxu0 }
 0x10f   :  { %19462 = vst [vmem:[#allocation2_spill] sm:$0xff] %v16383_v58  ;;  %v450_v62 = vadd.f32 %v14204_v59, %v345_v57  ;;  %v524_v63 = vsel %vm523_vm0, %v16383_v58, 0.0  ;;  %v557_v0 = vmul.f32 %v16383_v58, %v16383_v58 }
 0x110   :  { %v14206_v3 = vpop.f32.mrf.mxu0  ;;  %525 = vadd.xlane.f32.xlu0 %v524_v63 }
 0x111   :  { %v16390_v5 = vadd.f32 %v450_v62, %v16380_v51  ;;  %v14207_v6 = vadd.f32 %v14206_v3, %v14205_v61  ;;  %v565_v7 = vsel %vm523_vm0, %v557_v0, 0.0 }
 0x112   :  { %v14208_v9 = vpop.f32.mrf.mxu0  ;;  %566 = vadd.xlane.f32.xlu1 %v565_v7 }
 0x113   :  { %19463 = vst [vmem:[#allocation3_spill] sm:$0xff] %v16390_v5  ;;  %v455_v10 = vadd.f32 %v14207_v6, %v350_v1  ;;  %v527_v11 = vsel %vm523_vm0, %v16390_v5, 0.0  ;;  %v558_v12 = vmul.f32 %v16390_v5, %v16390_v5  ;;  %v375_v1 = vadd.f32 %v14166_v55, %v14110_v54 }
 0x114   :  { %v14209_v15 = vpop.f32.mrf.mxu0  ;;  %528 = vadd.xlane.f32.xlu0 %v527_v11 }
 0x115   :  { %v16398_v17 = vadd.f32 %v455_v10, %v16380_v51  ;;  %v14210_v18 = vadd.f32 %v14209_v15, %v14208_v9  ;;  %v568_v19 = vsel %vm523_vm0, %v558_v12, 0.0  ;;  %v516_v12 = vld [vmem:[%s19432_s2 + $0x18] sm:$0xff] }
 0x116   :  { %v14211_v21 = vpop.f32.mrf.mxu0  ;;  %569 = vadd.xlane.f32.xlu1 %v568_v19  ;;  %14644 = vmatprep.subr.mxu0 %v516_v12 }
 0x117   :  { %19464 = vst [vmem:[#allocation4_spill] sm:$0xff] %v16398_v17  ;;  %v460_v22 = vadd.f32 %v14210_v18, %v355_v16  ;;  %v530_v23 = vsel %vm523_vm0, %v16398_v17, 0.0  ;;  %v559_v24 = vmul.f32 %v16398_v17, %v16398_v17  ;;  %15514 = vmatprep.subr.mxu1 %v516_v12  ;;  %14645 = vmatpush3.msra.mxu0 %v516_v12 }
 0x118   :  { %v14212_v26 = vpop.f32.mrf.mxu0  ;;  %531 = vadd.xlane.f32.xlu0 %v530_v23  ;;  %15518 = vmatpush3.msra.mxu1 %v516_v12 }
 0x119   :  { %v16408_v29 = vadd.f32 %v460_v22, %v16380_v51  ;;  %v14213_v30 = vadd.f32 %v14212_v26, %v14211_v21  ;;  %v571_v41 = vsel %vm523_vm0, %v559_v24, 0.0 }
 0x11a   :  { %v14214_v32 = vpop.f32.mrf.mxu0 }
 0x11b   :  { %19465 = vst [vmem:[#allocation5_spill] sm:$0xff] %v16408_v29  ;;  %v465_v35 = vadd.f32 %v14213_v30, %v360_v25  ;;  %v533_v38 = vsel %vm523_vm0, %v16408_v29, 0.0  ;;  %v560_v42 = vmul.f32 %v16408_v29, %v16408_v29 }
 0x11c   :  { %v14215_v34 = vpop.f32.mrf.mxu0  ;;  %534 = vadd.xlane.f32.xlu1 %v533_v38  ;;  %572 = vadd.xlane.f32.xlu0 %v571_v41 }
 0x11d   :  { %v16418_v45 = vadd.f32 %v465_v35, %v16380_v51  ;;  %v14216_v46 = vadd.f32 %v14215_v34, %v14214_v32  ;;  %v574_v50 = vsel %vm523_vm0, %v560_v42, 0.0 }
 0x11e   :  { %v14217_v48 = vpop.f32.mrf.mxu0 }
 0x11f   :  { %19466 = vst [vmem:[#allocation6_spill] sm:$0xff] %v16418_v45  ;;  %v470_v49 = vadd.f32 %v14216_v46, %v365_v44  ;;  %v536_v52 = vsel %vm523_vm0, %v16418_v45, 0.0  ;;  %v561_v36 = vmul.f32 %v16418_v45, %v16418_v45 }
 0x120   :  { %v14218_v53 = vpop.f32.mrf.mxu0  ;;  %575 = vadd.xlane.f32.xlu1 %v574_v50  ;;  %537 = vadd.xlane.f32.xlu0 %v536_v52 }
 0x121   :  { %v16428_v56 = vadd.f32 %v470_v49, %v16380_v51  ;;  %v14219_v57 = vadd.f32 %v14218_v53, %v14217_v48  ;;  %v577_v62 = vsel %vm523_vm0, %v561_v36, 0.0 }
 0x122   :  { %v14220_v59 = vpop.f32.mrf.mxu0 }
 0x123   :  { %19467 = vst [vmem:[#allocation7_spill] sm:$0xff] %v16428_v56  ;;  %v475_v60 = vadd.f32 %v14219_v57, %v370_v37  ;;  %v539_v61 = vsel %vm523_vm0, %v16428_v56, 0.0  ;;  %v562_v63 = vmul.f32 %v16428_v56, %v16428_v56 }
 0x124   :  { %v14221_v0 = vpop.f32.mrf.mxu0  ;;  %540 = vadd.xlane.f32.xlu1 %v539_v61  ;;  %578 = vadd.xlane.f32.xlu0 %v577_v62 }
 0x125   :  { %v16436_v39 = vadd.f32 %v475_v60, %v16380_v51  ;;  %v14222_v40 = vadd.f32 %v14221_v0, %v14220_v59  ;;  %v580_v3 = vsel %vm523_vm0, %v562_v63, 0.0 }
 0x127   :  { %19468 = vst [vmem:[#allocation8_spill] sm:$0xff] %v16436_v39  ;;  %v480_v2 = vadd.f32 %v14222_v40, %v375_v1  ;;  %v542_v4 = vsel %vm523_vm0, %v16436_v39, 0.0  ;;  %v563_v6 = vmul.f32 %v16436_v39, %v16436_v39 }
 0x128   :  { %581 = vadd.xlane.f32.xlu1 %v580_v3  ;;  %543 = vadd.xlane.f32.xlu0 %v542_v4 }
 0x129   :  { %v16444_v7 = vadd.f32 %v480_v2, %v16380_v51  ;;  %v583_v9 = vsel %vm523_vm0, %v563_v6, 0.0  ;;  %v515_v51 = vld [vmem:[%s19432_s2 + $0x10] sm:$0xff]  ;;  %v16484_v6 = vld [vmem:[%s19430_s1 + $0x30a] ss:$0 sm:$0xff] }
 0x12a   :  { %14646 = vmatprep.subr.mxu0 %v515_v51  ;;  %15515 = vmatprep.subr.mxu1 %v515_v51 }
 0x12b   :  { %19469 = vst [vmem:[#allocation9_spill] sm:$0xff] %v16444_v7  ;;  %v545_v8 = vsel %vm523_vm0, %v16444_v7, 0.0  ;;  %v564_v10 = vmul.f32 %v16444_v7, %v16444_v7  ;;  %14647 = vmatpush3.msra.mxu0 %v515_v51  ;;  %15519 = vmatpush3.msra.mxu1 %v515_v51  ;;  %v16490_v51 = vld [vmem:[%s19430_s1 + $0x30b] ss:$0 sm:$0xff] }
 0x12c   :  { %546 = vadd.xlane.f32.xlu1 %v545_v8  ;;  %584 = vadd.xlane.f32.xlu0 %v583_v9 }
 0x12d   :  { %v586_v11 = vsel %vm523_vm0, %v564_v10, 0.0  ;;  %14648 = vmatprep.subr.mxu0 %v514_v13  ;;  %15516 = vmatprep.subr.mxu1 %v514_v13 }
 0x12e   :  { %14649 = vmatpush3.msra.mxu0 %v514_v13  ;;  %15520 = vmatpush3.msra.mxu1 %v514_v13 }
 0x12f   :  { %14650 = vmatprep.subr.mxu0 %v513_v14  ;;  %15517 = vmatprep.subr.mxu1 %v513_v14 }
 0x130   :  { %587 = vadd.xlane.f32.xlu1 %v586_v11  ;;  %14651 = vmatpush3.msra.mxu0 %v513_v14 }
 0x131   :  { %15521 = vmatpush3.msra.mxu1 %v513_v14 }
 0x199   :  { %v526_v15 = vpop.xlane.xlu0 %525 }
 0x19a   :  { %v549_v16 = vmul.f32 0.03125, %v526_v15 }
 0x19b   :  { %v567_v18 = vpop.xlane.xlu1 %566 }
 0x19c   :  { %v597_v19 = vmul.f32 %v549_v16, %v549_v16  ;;  %v589_v20 = vmul.f32 0.03125, %v567_v18  ;;  %v621_v0 = vsub.f32 %v16383_v58, %v549_v16 }
 0x19d   :  { %v529_v21 = vpop.xlane.xlu0 %528 }
 0x19e   :  { %v605_v22 = vsub.f32 %v589_v20, %v597_v19  ;;  %v550_v23 = vmul.f32 0.03125, %v529_v21 }
 0x19f   :  { %v570_v24 = vpop.xlane.xlu1 %569 }
 0x1a0   :  { %v613_v25 = vmax.f32 %v605_v22, 0.0  ;;  %v598_v26 = vmul.f32 %v550_v23, %v550_v23  ;;  %v590_v27 = vmul.f32 0.03125, %v570_v24  ;;  %v622_v10 = vsub.f32 %v16390_v5, %v550_v23 }
 0x1a1   :  { %v532_v28 = vpop.xlane.xlu0 %531 }
 0x1a2   :  { %v629_v30 = vadd.f32 1e-12, %v613_v25  ;;  %v606_v31 = vsub.f32 %v590_v27, %v598_v26  ;;  %v16464_v32 = vmul.f32 0.03125, %v532_v28 }
 0x1a4   :  { %15533 = vrsqrt.f32 %v629_v30  ;;  %v614_v35 = vmax.f32 %v606_v31, 0.0  ;;  %v599_v43 = vmul.f32 %v16464_v32, %v16464_v32  ;;  %v623_v26 = vsub.f32 %v16398_v17, %v16464_v32 }
 0x1a5   :  { %v535_v38 = vpop.xlane.xlu1 %534  ;;  %v573_v41 = vpop.xlane.xlu0 %572 }
 0x1a6   :  { %v630_v42 = vadd.f32 1e-12, %v614_v35  ;;  %v16468_v33 = vmul.f32 0.03125, %v535_v38  ;;  %v591_v34 = vmul.f32 0.03125, %v573_v41 }
 0x1a8   :  { %15535 = vrsqrt.f32 %v630_v42  ;;  %v607_v44 = vsub.f32 %v591_v34, %v599_v43  ;;  %v600_v48 = vmul.f32 %v16468_v33, %v16468_v33 }
 0x1a9   :  { %v576_v46 = vpop.xlane.xlu1 %575  ;;  %v538_v47 = vpop.xlane.xlu0 %537 }
 0x1aa   :  { %v615_v49 = vmax.f32 %v607_v44, 0.0  ;;  %v592_v50 = vmul.f32 0.03125, %v576_v46  ;;  %v16472_v52 = vmul.f32 0.03125, %v538_v47  ;;  %v624_v44 = vsub.f32 %v16408_v29, %v16468_v33 }
 0x1ac   :  { %v631_v36 = vadd.f32 1e-12, %v615_v49  ;;  %v608_v37 = vsub.f32 %v592_v50, %v600_v48  ;;  %v601_v53 = vmul.f32 %v16472_v52, %v16472_v52 }
 0x1ad   :  { %v541_v54 = vpop.xlane.xlu1 %540  ;;  %v579_v55 = vpop.xlane.xlu0 %578 }
 0x1ae   :  { %15537 = vrsqrt.f32 %v631_v36  ;;  %v616_v57 = vmax.f32 %v608_v37, 0.0  ;;  %v16476_v59 = vmul.f32 0.03125, %v541_v54  ;;  %v593_v60 = vmul.f32 0.03125, %v579_v55 }
 0x1af   :  { %v625_v36 = vsub.f32 %v16418_v45, %v16472_v52 }
 0x1b0   :  { %v632_v61 = vadd.f32 1e-12, %v616_v57  ;;  %v609_v62 = vsub.f32 %v593_v60, %v601_v53  ;;  %v602_v2 = vmul.f32 %v16476_v59, %v16476_v59  ;;  %v626_v55 = vsub.f32 %v16428_v56, %v16476_v59 }
 0x1b1   :  { %v15534_v63 = vpop.eup %15533  ;;  %v582_v1 = vpop.xlane.xlu1 %581 }
 0x1b2   :  { %v544_v40 = vpop.xlane.xlu0 %543  ;;  %15539 = vrsqrt.f32 %v632_v61  ;;  %v617_v3 = vmax.f32 %v609_v62, 0.0  ;;  %v594_v4 = vmul.f32 0.03125, %v582_v1  ;;  %v645_v9 = vmul.f32 %v15534_v63, %v621_v0 }
 0x1b3   :  { %v555_v8 = vmul.f32 0.03125, %v544_v40 }
 0x1b4   :  { %v633_v11 = vadd.f32 1e-12, %v617_v3  ;;  %v610_v12 = vsub.f32 %v594_v4, %v602_v2  ;;  %v657_v16 = vmul.f32 %v16484_v6, %v645_v9 }
 0x1b5   :  { %v15536_v13 = vpop.eup %15535  ;;  %v547_v14 = vpop.xlane.xlu1 %546  ;;  %v603_v21 = vmul.f32 %v555_v8, %v555_v8  ;;  %v627_v63 = vsub.f32 %v16436_v39, %v555_v8 }
 0x1b6   :  { %v585_v15 = vpop.xlane.xlu0 %584  ;;  %v646_v18 = vmul.f32 %v15536_v13, %v622_v10  ;;  %15541 = vrsqrt.f32 %v633_v11  ;;  %v618_v19 = vmax.f32 %v610_v12, 0.0  ;;  %v556_v20 = vmul.f32 0.03125, %v547_v14  ;;  %v13767_v11 = vld [vmem:[%s19432_s2 + $0x20] ss:$0 sm:$0xff] }
 0x1b7   :  { %v595_v22 = vmul.f32 0.03125, %v585_v15  ;;  %v669_v23 = vadd.f32 %v16490_v51, %v657_v16 }
 0x1b8   :  { %v634_v24 = vadd.f32 1e-12, %v618_v19  ;;  %v658_v25 = vmul.f32 %v16484_v6, %v646_v18  ;;  %v604_v30 = vmul.f32 %v556_v20, %v556_v20  ;;  %v628_v59 = vsub.f32 %v16444_v7, %v556_v20 }
 0x1b9   :  { %v611_v27 = vsub.f32 %v595_v22, %v603_v21  ;;  %14652 = vmatprep.mubr.msk.f32.mxu0 %vm523_vm0, %v669_v23  ;;  %v588_v28 = vpop.xlane.xlu1 %587 }
 0x1ba   :  { %15543 = vrsqrt.f32 %v634_v24  ;;  %v596_v31 = vmul.f32 0.03125, %v588_v28  ;;  %v670_v35 = vadd.f32 %v16490_v51, %v658_v25 }
 0x1bb   :  { %v15538_v38 = vpop.eup %15537  ;;  %v619_v41 = vmax.f32 %v611_v27, 0.0  ;;  %v19438_v27 = vmov 0.0  }
 0x1bc   :  { %v612_v42 = vsub.f32 %v596_v31, %v604_v30  ;;  %14653 = vmatmul.mubr.msk.f32.vlgmr.msra.gmra.mxu0 %vm523_vm0, %v670_v35  ;;  %v647_v43 = vmul.f32 %v15538_v38, %v623_v26  ;;  %14664 = vmatprep.subr.mxu1 %v19438_v27 }
 0x1bd   :  { %v635_v34 = vadd.f32 1e-12, %v619_v41  ;;  %14684 = vmatprep.subr.mxu0 %v19438_v27  ;;  %14686 = vmatprep.mubr.msk.f32.mxu0 %vm15890_vm1, %v19438_v27 }
 0x1be   :  { %v620_v32 = vmax.f32 %v612_v42, 0.0  ;;  %v659_v46 = vmul.f32 %v16484_v6, %v647_v43 }
 0x1bf   :  { %v15540_v47 = vpop.eup %15539  ;;  %15545 = vrsqrt.f32 %v635_v34 }
 0x1c0   :  { %v648_v48 = vmul.f32 %v15540_v47, %v624_v44  ;;  %v636_v49 = vadd.f32 1e-12, %v620_v32  ;;  %v671_v50 = vadd.f32 %v16490_v51, %v659_v46 }
 0x1c2   :  { %15547 = vrsqrt.f32 %v636_v49  ;;  %14655 = vmatprep.mubr.msk.f32.mxu1 %vm523_vm0, %v671_v50  ;;  %v660_v37 = vmul.f32 %v16484_v6, %v648_v48 }
 0x1c3   :  { %v15542_v53 = vpop.eup %15541 }
 0x1c4   :  { %v672_v33 = vadd.f32 %v16490_v51, %v660_v37  ;;  %v649_v54 = vmul.f32 %v15542_v53, %v625_v36 }
 0x1c6   :  { %14656 = vmatmul.mubr.msk.f32.vlgmr.msra.gmra.mxu1 %vm523_vm0, %v672_v33  ;;  %v661_v57 = vmul.f32 %v16484_v6, %v649_v54 }
 0x1c7   :  { %v15544_v60 = vpop.eup %15543 }
 0x1c8   :  { %v673_v61 = vadd.f32 %v16490_v51, %v661_v57  ;;  %v650_v52 = vmul.f32 %v15544_v60, %v626_v55 }
 0x1ca   :  { %14658 = vmatprep.mubr.msk.f32.mxu1 %vm523_vm0, %v673_v61  ;;  %v662_v62 = vmul.f32 %v16484_v6, %v650_v52 }
 0x1cc   :  { %v15546_v0 = vpop.eup %15545  ;;  %v674_v1 = vadd.f32 %v16490_v51, %v662_v62 }
 0x1cd   :  { %v651_v40 = vmul.f32 %v15546_v0, %v627_v63 }
 0x1ce   :  { %14659 = vmatmul.mubr.msk.f32.gmra.mxu1 %vm523_vm0, %v674_v1 }
 0x1cf   :  { %v15548_v2 = vpop.eup %15547  ;;  %v663_v3 = vmul.f32 %v16484_v6, %v651_v40 }
 0x1d0   :  { %v652_v4 = vmul.f32 %v15548_v2, %v628_v59 }
 0x1d1   :  { %v675_v9 = vadd.f32 %v16490_v51, %v663_v3 }
 0x1d2   :  { %v664_v10 = vmul.f32 %v16484_v6, %v652_v4 }
 0x1d3   :  { %14661 = vmatprep.mubr.msk.f32.mxu1 %vm523_vm0, %v675_v9 }
 0x1d4   :  { %v676_v8 = vadd.f32 %v16490_v51, %v664_v10 }
 0x1d6   :  { %14662 = vmatmul.mubr.msk.f32.gmra.mxu1 %vm523_vm0, %v676_v8 }
 0x1d7   :  { %14666 = vmatprep.mubr.msk.f32.mxu1 %vm15890_vm1, %v19438_v27 }
 0x27c   :  { %v14654_v12 = vpop.f32.mrf.mxu0 }
 0x27d   :  { %v16529_v13 = vadd.f32 %v14654_v12, %v13767_v11 }
 0x27e   :  { %v771_v14 = vpop.f32.mrf.mxu0 }
 0x27f   :  { %v16531_v15 = vadd.f32 %v13767_v11, %v771_v14  ;;  %820 = vrot.lane.b32.xlu1 %v16529_v13, %s15887_s12 }
 0x281   :  { %818 = vrot.lane.b32.xlu0 %v16531_v15, %s15887_s12 }
 0x283   :  { %836 = vrot.lane.b32.xlu1 %v16529_v13, %s15888_s13 }
 0x285   :  { %834 = vrot.lane.b32.xlu0 %v16531_v15, %s15888_s13 }
 0x286   :  { %v14657_v6 = vpop.f32.mrf.mxu1 }
 0x287   :  { %v16541_v51 = vadd.f32 %v14657_v6, %v13767_v11 }
 0x288   :  { %v781_v16 = vpop.f32.mrf.mxu1 }
 0x289   :  { %824 = vrot.lane.b32.xlu1 %v16541_v51, %s15887_s12  ;;  %v16545_v18 = vadd.f32 %v13767_v11, %v781_v16 }
 0x28d   :  { %822 = vrot.lane.b32.xlu1 %v16545_v18, %s15887_s12 }
 0x28e   :  { %v14660_v19 = vpop.f32.mrf.mxu1 }
 0x28f   :  { %v16549_v20 = vadd.f32 %v14660_v19, %v13767_v11 }
 0x290   :  { %v791_v21 = vpop.f32.mrf.mxu1 }
 0x291   :  { %v16551_v22 = vadd.f32 %v13767_v11, %v791_v21  ;;  %828 = vrot.lane.b32.xlu1 %v16549_v20, %s15887_s12 }
 0x293   :  { %826 = vrot.lane.b32.xlu0 %v16551_v22, %s15887_s12 }
 0x296   :  { %v14663_v23 = vpop.f32.mrf.mxu1 }
 0x297   :  { %v16557_v24 = vadd.f32 %v14663_v23, %v13767_v11 }
 0x298   :  { %v801_v25 = vpop.f32.mrf.mxu1 }
 0x299   :  { %v16559_v26 = vadd.f32 %v13767_v11, %v801_v25  ;;  %832 = vrot.lane.b32.xlu1 %v16557_v24, %s15887_s12 }
 0x29b   :  { %830 = vrot.lane.b32.xlu0 %v16559_v26, %s15887_s12 }
 0x29d   :  { %840 = vrot.lane.b32.xlu1 %v16541_v51, %s15888_s13 }
 0x29f   :  { %838 = vrot.lane.b32.xlu0 %v16545_v18, %s15888_s13 }
 0x2a1   :  { %844 = vrot.lane.b32.xlu1 %v16549_v20, %s15888_s13 }
 0x2a3   :  { %842 = vrot.lane.b32.xlu0 %v16551_v22, %s15888_s13 }
 0x2a5   :  { %848 = vrot.lane.b32.xlu1 %v16557_v24, %s15888_s13 }
 0x2a7   :  { %850 = vrot.lane.b32.xlu0 %v16531_v15, %s15891_s14 }
 0x2a9   :  { %852 = vrot.lane.b32.xlu1 %v16529_v13, %s15891_s14 }
 0x2ab   :  { %846 = vrot.lane.b32.xlu0 %v16559_v26, %s15888_s13 }
 0x2ad   :  { %854 = vrot.lane.b32.xlu1 %v16545_v18, %s15891_s14 }
 0x2af   :  { %866 = vrot.lane.b32.xlu0 %v16531_v15, %s15892_s15 }
 0x2b1   :  { %943 = vrot.lane.b32.xlu1 %v16529_v13, %s15892_s15 }
 0x2b3   :  { %856 = vrot.lane.b32.xlu0 %v16541_v51, %s15891_s14 }
 0x2b5   :  { %860 = vrot.lane.b32.xlu1 %v16549_v20, %s15891_s14 }
 0x2b7   :  { %858 = vrot.lane.b32.xlu0 %v16551_v22, %s15891_s14 }
 0x2b9   :  { %862 = vrot.lane.b32.xlu1 %v16559_v26, %s15891_s14 }
 0x2bb   :  { %1019 = vrot.lane.b32.xlu0 %v16545_v18, %s15892_s15 }
 0x2bd   :  { %1095 = vrot.lane.b32.xlu1 %v16541_v51, %s15892_s15 }
 0x2bf   :  { %864 = vrot.lane.b32.xlu0 %v16557_v24, %s15891_s14 }
 0x2c1   :  { %1247 = vrot.lane.b32.xlu1 %v16549_v20, %s15892_s15 }
 0x2c3   :  { %1171 = vrot.lane.b32.xlu0 %v16551_v22, %s15892_s15 }
 0x2c5   :  { %1399 = vrot.lane.b32.xlu1 %v16557_v24, %s15892_s15 }
 0x2c7   :  { %1323 = vrot.lane.b32.xlu0 %v16559_v26, %s15892_s15 }
 0x2f1   :  { %v16615_v28 = vpop.permute.xlu1 %820 }
 0x2f2   :  { %1551 = vrot.lane.b32.xlu1 %v16615_v28, %s15892_s15 }
 0x2f3   :  { %v16619_v30 = vpop.permute.xlu0 %818 }
 0x2f4   :  { %1475 = vrot.lane.b32.xlu0 %v16619_v30, %s15892_s15 }
 0x2f5   :  { %v16623_v31 = vpop.permute.xlu1 %836 }
 0x2f7   :  { %v16633_v41 = vpop.permute.xlu0 %834 }
 0x2fb   :  { %v16625_v35 = vpop.permute.xlu1 %824 }
 0x2fc   :  { %1703 = vrot.lane.b32.xlu1 %v16625_v35, %s15892_s15 }
 0x2ff   :  { %v16629_v38 = vpop.permute.xlu1 %822 }
 0x300   :  { %1627 = vrot.lane.b32.xlu0 %v16629_v38, %s15892_s15 }
 0x303   :  { %v16635_v42 = vpop.permute.xlu1 %828 }
 0x304   :  { %1855 = vrot.lane.b32.xlu1 %v16635_v42, %s15892_s15 }
 0x305   :  { %v16639_v43 = vpop.permute.xlu0 %826 }
 0x306   :  { %1779 = vrot.lane.b32.xlu0 %v16639_v43, %s15892_s15 }
 0x30b   :  { %v16643_v34 = vpop.permute.xlu1 %832 }
 0x30c   :  { %2007 = vrot.lane.b32.xlu1 %v16643_v34, %s15892_s15 }
 0x30d   :  { %v16647_v44 = vpop.permute.xlu0 %830 }
 0x30e   :  { %1931 = vrot.lane.b32.xlu0 %v16647_v44, %s15892_s15 }
 0x30f   :  { %v16651_v32 = vpop.permute.xlu1 %840 }
 0x310   :  { %2159 = vrot.lane.b32.xlu1 %v16623_v31, %s15892_s15 }
 0x311   :  { %v16655_v46 = vpop.permute.xlu0 %838 }
 0x312   :  { %2083 = vrot.lane.b32.xlu0 %v16633_v41, %s15892_s15 }
 0x313   :  { %v16659_v47 = vpop.permute.xlu1 %844 }
 0x314   :  { %2311 = vrot.lane.b32.xlu1 %v16651_v32, %s15892_s15 }
 0x315   :  { %v16663_v48 = vpop.permute.xlu0 %842 }
 0x316   :  { %2235 = vrot.lane.b32.xlu0 %v16655_v46, %s15892_s15 }
 0x317   :  { %v16667_v49 = vpop.permute.xlu1 %848 }
 0x318   :  { %2463 = vrot.lane.b32.xlu1 %v16659_v47, %s15892_s15 }
 0x319   :  { %v16671_v50 = vpop.permute.xlu0 %850 }
 0x31a   :  { %2387 = vrot.lane.b32.xlu0 %v16663_v48, %s15892_s15 }
 0x31b   :  { %v16675_v36 = vpop.permute.xlu1 %852 }
 0x31c   :  { %2615 = vrot.lane.b32.xlu1 %v16667_v49, %s15892_s15 }
 0x31d   :  { %v16679_v37 = vpop.permute.xlu0 %846 }
 0x31e   :  { %2539 = vrot.lane.b32.xlu0 %v16679_v37, %s15892_s15 }
 0x31f   :  { %v16683_v53 = vpop.permute.xlu1 %854 }
 0x320   :  { %2767 = vrot.lane.b32.xlu1 %v16675_v36, %s15892_s15 }
 0x321   :  { %v867_v33 = vpop.permute.xlu0 %866 }
 0x322   :  { %2691 = vrot.lane.b32.xlu0 %v16671_v50, %s15892_s15  ;;  %14665 = vmatpush3.xpose.msk.msra.mxu1 %vm868_vm2, %v867_v33 }
 0x323   :  { %v944_v54 = vpop.permute.xlu1 %943  ;;  %14669 = vmatprep.subr.mxu1 %v19438_v27 }
 0x325   :  { %14667 = vmatmul.mubr.msk.f32.vlgmr.msra.gmra.mxu1 %vm868_vm2, %v16531_v15  ;;  %v16693_v55 = vpop.permute.xlu0 %856 }
 0x326   :  { %2843 = vrot.lane.b32.xlu0 %v16683_v53, %s15892_s15  ;;  %14670 = vmatpush3.xpose.msk.msra.mxu1 %vm868_vm2, %v944_v54 }
 0x327   :  { %2919 = vrot.lane.b32.xlu1 %v16693_v55, %s15892_s15  ;;  %v16700_v57 = vpop.permute.xlu1 %860  ;;  %14671 = vmatprep.mubr.msk.f32.mxu1 %vm15890_vm1, %v19438_v27 }
 0x328   :  { %14674 = vmatprep.subr.mxu1 %v19438_v27 }
 0x329   :  { %14672 = vmatmul.mubr.msk.f32.vlgmr.msra.gmra.mxu1 %vm868_vm2, %v16529_v13  ;;  %v16707_v60 = vpop.permute.xlu0 %858 }
 0x32a   :  { %2995 = vrot.lane.b32.xlu0 %v16707_v60, %s15892_s15  ;;  %14676 = vmatprep.mubr.msk.f32.mxu1 %vm15890_vm1, %v19438_v27 }
 0x32b   :  { %3071 = vrot.lane.b32.xlu1 %v16700_v57, %s15892_s15  ;;  %v16715_v61 = vpop.permute.xlu1 %862 }
 0x32d   :  { %v1020_v52 = vpop.permute.xlu0 %1019 }
 0x32e   :  { %3147 = vrot.lane.b32.xlu0 %v16715_v61, %s15892_s15  ;;  %14675 = vmatpush3.xpose.msk.msra.mxu1 %vm868_vm2, %v1020_v52 }
 0x32f   :  { %v1096_v62 = vpop.permute.xlu1 %1095  ;;  %14679 = vmatprep.subr.mxu1 %v19438_v27 }
 0x331   :  { %14677 = vmatmul.mubr.msk.f32.vlgmr.msra.gmra.mxu1 %vm868_vm2, %v16545_v18  ;;  %v16723_v63 = vpop.permute.xlu0 %864 }
 0x332   :  { %3715 = vrot.lane.b32.xlu0 %v16531_v15, %s15893_s16  ;;  %14680 = vmatpush3.xpose.msk.msra.mxu1 %vm868_vm2, %v1096_v62 }
 0x333   :  { %3223 = vrot.lane.b32.xlu1 %v16723_v63, %s15892_s15  ;;  %14681 = vmatprep.mubr.msk.f32.mxu1 %vm15890_vm1, %v19438_v27  ;;  %v1248_v0 = vpop.permute.xlu1 %1247 }
 0x334   :  { %14689 = vmatprep.subr.mxu1 %v19438_v27 }
 0x335   :  { %14682 = vmatmul.mubr.msk.f32.vlgmr.msra.gmra.mxu1 %vm868_vm2, %v16541_v51  ;;  %v1172_v1 = vpop.permute.xlu0 %1171 }
 0x336   :  { %3867 = vrot.lane.b32.xlu0 %v16545_v18, %s15893_s16  ;;  %14690 = vmatpush3.xpose.msk.msra.mxu1 %vm868_vm2, %v1248_v0 }
 0x337   :  { %3791 = vrot.lane.b32.xlu1 %v16529_v13, %s15893_s16  ;;  %14685 = vmatpush3.xpose.msk.msra.mxu0 %vm868_vm2, %v1172_v1  ;;  %v1400_v59 = vpop.permute.xlu1 %1399 }
 0x338   :  { %14691 = vmatprep.mubr.msk.f32.mxu1 %vm15890_vm1, %v19438_v27  ;;  %14694 = vmatprep.subr.mxu0 %v19438_v27 }
 0x339   :  { %14692 = vmatmul.mubr.msk.f32.vlgmr.msra.gmra.mxu1 %vm868_vm2, %v16549_v20  ;;  %14699 = vmatprep.subr.mxu1 %v19438_v27  ;;  %v1324_v40 = vpop.permute.xlu0 %1323 }
 0x33a   :  { %14687 = vmatmul.mubr.msk.f32.vlgmr.msra.gmra.mxu0 %vm868_vm2, %v16551_v22  ;;  %3943 = vrot.lane.b32.xlu0 %v16541_v51, %s15893_s16 }
 0x33b   :  { %14700 = vmatpush3.xpose.msk.msra.mxu1 %vm868_vm2, %v1400_v59  ;;  %4019 = vrot.lane.b32.xlu1 %v16551_v22, %s15893_s16 }
 0x33c   :  { %14695 = vmatpush3.xpose.msk.msra.mxu0 %vm868_vm2, %v1324_v40  ;;  %14696 = vmatprep.mubr.msk.f32.mxu0 %vm15890_vm1, %v19438_v27 }
 0x33d   :  { %14701 = vmatprep.mubr.msk.f32.mxu1 %vm15890_vm1, %v19438_v27  ;;  %14709 = vmatprep.subr.mxu1 %v19438_v27 }
 0x33e   :  { %14702 = vmatmul.mubr.msk.f32.vlgmr.msra.gmra.mxu1 %vm868_vm2, %v16557_v24  ;;  %4095 = vrot.lane.b32.xlu0 %v16549_v20, %s15893_s16 }
 0x33f   :  { %14697 = vmatmul.mubr.msk.f32.vlgmr.msra.gmra.mxu0 %vm868_vm2, %v16559_v26  ;;  %4247 = vrot.lane.b32.xlu1 %v16557_v24, %s15893_s16 }
 0x340   :  { %14704 = vmatprep.subr.mxu0 %v19438_v27  ;;  %14711 = vmatprep.mubr.msk.f32.mxu1 %vm15890_vm1, %v19438_v27 }
 0x341   :  { %14706 = vmatprep.mubr.msk.f32.mxu0 %vm15890_vm1, %v19438_v27 }
 0x342   :  { %4171 = vrot.lane.b32.xlu0 %v16559_v26, %s15893_s16 }
 0x343   :  { %4475 = vrot.lane.b32.xlu1 %v16629_v38, %s15893_s16 }
 0x346   :  { %4323 = vrot.lane.b32.xlu0 %v16619_v30, %s15893_s16 }
 0x347   :  { %4703 = vrot.lane.b32.xlu1 %v16635_v42, %s15893_s16 }
 0x34a   :  { %4399 = vrot.lane.b32.xlu0 %v16615_v28, %s15893_s16 }
 0x34b   :  { %4931 = vrot.lane.b32.xlu1 %v16633_v41, %s15893_s16 }
 0x34e   :  { %4551 = vrot.lane.b32.xlu0 %v16625_v35, %s15893_s16 }
 0x34f   :  { %5159 = vrot.lane.b32.xlu1 %v16651_v32, %s15893_s16 }
 0x352   :  { %4627 = vrot.lane.b32.xlu0 %v16639_v43, %s15893_s16 }
 0x353   :  { %5235 = vrot.lane.b32.xlu1 %v16663_v48, %s15893_s16 }
 0x356   :  { %4855 = vrot.lane.b32.xlu0 %v16643_v34, %s15893_s16 }
 0x357   :  { %5311 = vrot.lane.b32.xlu1 %v16659_v47, %s15893_s16 }
 0x35a   :  { %5007 = vrot.lane.b32.xlu0 %v16623_v31, %s15893_s16 }
 0x35b   :  { %5463 = vrot.lane.b32.xlu1 %v16667_v49, %s15893_s16 }
 0x35e   :  { %5083 = vrot.lane.b32.xlu0 %v16655_v46, %s15893_s16 }
 0x35f   :  { %5615 = vrot.lane.b32.xlu1 %v16675_v36, %s15893_s16 }
 0x362   :  { %5539 = vrot.lane.b32.xlu0 %v16671_v50, %s15893_s16 }
 0x363   :  { %5767 = vrot.lane.b32.xlu1 %v16693_v55, %s15893_s16 }
 0x364   :  { %v1552_v2 = vpop.permute.xlu1 %1551 }
 0x365   :  { %14710 = vmatpush3.xpose.msk.msra.mxu1 %vm868_vm2, %v1552_v2 }
 0x366   :  { %5691 = vrot.lane.b32.xlu0 %v16683_v53, %s15893_s16  ;;  %v1476_v3 = vpop.permute.xlu0 %1475  ;;  %14719 = vmatprep.subr.mxu1 %v19438_v27 }
 0x367   :  { %14705 = vmatpush3.xpose.msk.msra.mxu0 %vm868_vm2, %v1476_v3 }
 0x368   :  { %14712 = vmatmul.mubr.msk.f32.vlgmr.msra.gmra.mxu1 %vm868_vm2, %v16615_v28  ;;  %14714 = vmatprep.subr.mxu0 %v19438_v27 }
 0x369   :  { %14721 = vmatprep.mubr.msk.f32.mxu1 %vm15890_vm1, %v19438_v27 }
 0x36a   :  { %4779 = vrot.lane.b32.xlu0 %v16647_v44, %s15893_s16  ;;  %14707 = vmatmul.mubr.msk.f32.vlgmr.msra.gmra.mxu0 %vm868_vm2, %v16619_v30 }
 0x36b   :  { %14716 = vmatprep.mubr.msk.f32.mxu0 %vm15890_vm1, %v19438_v27 }
 0x36e   :  { %v1704_v4 = vpop.permute.xlu1 %1703  ;;  %5387 = vrot.lane.b32.xlu0 %v16679_v37, %s15893_s16 }
 0x36f   :  { %14720 = vmatpush3.xpose.msk.msra.mxu1 %vm868_vm2, %v1704_v4 }
 0x370   :  { %14729 = vmatprep.subr.mxu1 %v19438_v27 }
 0x372   :  { %14722 = vmatmul.mubr.msk.f32.vlgmr.msra.gmra.mxu1 %vm868_vm2, %v16625_v35  ;;  %v1628_v9 = vpop.permute.xlu0 %1627  ;;  %v19437_v35 = vlaneseq }
 0x373   :  { %14715 = vmatpush3.xpose.msk.msra.mxu0 %vm868_vm2, %v1628_v9  ;;  %14731 = vmatprep.mubr.msk.f32.mxu1 %vm15890_vm1, %v19438_v27 }
 0x374   :  { %14724 = vmatprep.subr.mxu0 %v19438_v27 }
 0x376   :  { %v1856_v10 = vpop.permute.xlu1 %1855  ;;  %14717 = vmatmul.mubr.msk.f32.vlgmr.msra.gmra.mxu0 %vm868_vm2, %v16629_v38  ;;  %v16962_v38 = vand.u32 127, %v19437_v35 }
 0x377   :  { %14730 = vmatpush3.xpose.msk.msra.mxu1 %vm868_vm2, %v1856_v10  ;;  %14726 = vmatprep.mubr.msk.f32.mxu0 %vm15890_vm1, %v19438_v27 }
 0x378   :  { %v1780_v8 = vpop.permute.xlu0 %1779  ;;  %14739 = vmatprep.subr.mxu1 %v19438_v27  ;;  %19470 = vst [vmem:[#allocation10_spill] sm:$0xff] %v16962_v38  ;;  %vm493_vm3 = vcmp.lt.s32.totalorder %v16962_v38, 5 }
 0x379   :  { %14725 = vmatpush3.xpose.msk.msra.mxu0 %vm868_vm2, %v1780_v8 }
 0x37a   :  { %14732 = vmatmul.mubr.msk.f32.vlgmr.msra.gmra.mxu1 %vm868_vm2, %v16635_v42  ;;  %14734 = vmatprep.subr.mxu0 %v19438_v27 }
 0x37b   :  { %14741 = vmatprep.mubr.msk.f32.mxu1 %vm15890_vm1, %v19438_v27 }
 0x37c   :  { %14727 = vmatmul.mubr.msk.f32.vlgmr.msra.gmra.mxu0 %vm868_vm2, %v16639_v43 }
 0x37d   :  { %14736 = vmatprep.mubr.msk.f32.mxu0 %vm15890_vm1, %v19438_v27 }
 0x37e   :  { %v2008_v11 = vpop.permute.xlu1 %2007 }
 0x37f   :  { %14740 = vmatpush3.xpose.msk.msra.mxu1 %vm868_vm2, %v2008_v11 }
 0x380   :  { %v1932_v12 = vpop.permute.xlu0 %1931  ;;  %14749 = vmatprep.subr.mxu1 %v19438_v27 }
 0x381   :  { %14735 = vmatpush3.xpose.msk.msra.mxu0 %vm868_vm2, %v1932_v12 }
 0x382   :  { %v2160_v13 = vpop.permute.xlu1 %2159  ;;  %14742 = vmatmul.mubr.msk.f32.vlgmr.msra.gmra.mxu1 %vm868_vm2, %v16643_v34  ;;  %14744 = vmatprep.subr.mxu0 %v19438_v27 }
 0x383   :  { %14750 = vmatpush3.xpose.msk.msra.mxu1 %vm868_vm2, %v2160_v13  ;;  %14751 = vmatprep.mubr.msk.f32.mxu1 %vm15890_vm1, %v19438_v27 }
 0x384   :  { %14737 = vmatmul.mubr.msk.f32.vlgmr.msra.gmra.mxu0 %vm868_vm2, %v16647_v44  ;;  %v2084_v14 = vpop.permute.xlu0 %2083  ;;  %14759 = vmatprep.subr.mxu1 %v19438_v27 }
 0x385   :  { %14745 = vmatpush3.xpose.msk.msra.mxu0 %vm868_vm2, %v2084_v14  ;;  %14746 = vmatprep.mubr.msk.f32.mxu0 %vm15890_vm1, %v19438_v27 }
 0x386   :  { %v2312_v15 = vpop.permute.xlu1 %2311  ;;  %14752 = vmatmul.mubr.msk.f32.vlgmr.msra.gmra.mxu1 %vm868_vm2, %v16623_v31  ;;  %14754 = vmatprep.subr.mxu0 %v19438_v27 }
 0x387   :  { %14760 = vmatpush3.xpose.msk.msra.mxu1 %vm868_vm2, %v2312_v15  ;;  %14761 = vmatprep.mubr.msk.f32.mxu1 %vm15890_vm1, %v19438_v27 }
 0x388   :  { %14747 = vmatmul.mubr.msk.f32.vlgmr.msra.gmra.mxu0 %vm868_vm2, %v16633_v41  ;;  %v2236_v6 = vpop.permute.xlu0 %2235  ;;  %14769 = vmatprep.subr.mxu1 %v19438_v27  ;;  %v15894_v41 = vmov -1e+30  }
 0x389   :  { %14755 = vmatpush3.xpose.msk.msra.mxu0 %vm868_vm2, %v2236_v6  ;;  %14756 = vmatprep.mubr.msk.f32.mxu0 %vm15890_vm1, %v19438_v27  ;;  %v16965_v42 = vsel %vm493_vm3, 0.0, %v15894_v41 }
 0x38a   :  { %v2464_v51 = vpop.permute.xlu1 %2463  ;;  %14762 = vmatmul.mubr.msk.f32.vlgmr.msra.gmra.mxu1 %vm868_vm2, %v16651_v32  ;;  %14764 = vmatprep.subr.mxu0 %v19438_v27  ;;  %19471 = vst [vmem:[#allocation11_spill] sm:$0xff] %v16965_v42 }
 0x38b   :  { %14770 = vmatpush3.xpose.msk.msra.mxu1 %vm868_vm2, %v2464_v51  ;;  %14771 = vmatprep.mubr.msk.f32.mxu1 %vm15890_vm1, %v19438_v27 }
 0x38c   :  { %14757 = vmatmul.mubr.msk.f32.vlgmr.msra.gmra.mxu0 %vm868_vm2, %v16655_v46  ;;  %v2388_v16 = vpop.permute.xlu0 %2387  ;;  %14779 = vmatprep.subr.mxu1 %v19438_v27 }
 0x38d   :  { %14765 = vmatpush3.xpose.msk.msra.mxu0 %vm868_vm2, %v2388_v16  ;;  %14766 = vmatprep.mubr.msk.f32.mxu0 %vm15890_vm1, %v19438_v27 }
 0x38e   :  { %v2616_v18 = vpop.permute.xlu1 %2615  ;;  %14772 = vmatmul.mubr.msk.f32.vlgmr.msra.gmra.mxu1 %vm868_vm2, %v16659_v47  ;;  %14774 = vmatprep.subr.mxu0 %v19438_v27 }
 0x38f   :  { %14780 = vmatpush3.xpose.msk.msra.mxu1 %vm868_vm2, %v2616_v18  ;;  %14781 = vmatprep.mubr.msk.f32.mxu1 %vm15890_vm1, %v19438_v27 }
 0x390   :  { %14767 = vmatmul.mubr.msk.f32.vlgmr.msra.gmra.mxu0 %vm868_vm2, %v16663_v48  ;;  %v2540_v19 = vpop.permute.xlu0 %2539  ;;  %14789 = vmatprep.subr.mxu1 %v19438_v27 }
 0x391   :  { %14775 = vmatpush3.xpose.msk.msra.mxu0 %vm868_vm2, %v2540_v19  ;;  %14776 = vmatprep.mubr.msk.f32.mxu0 %vm15890_vm1, %v19438_v27 }
 0x392   :  { %v2768_v20 = vpop.permute.xlu1 %2767  ;;  %14782 = vmatmul.mubr.msk.f32.vlgmr.msra.gmra.mxu1 %vm868_vm2, %v16667_v49  ;;  %14784 = vmatprep.subr.mxu0 %v19438_v27 }
 0x393   :  { %14790 = vmatpush3.xpose.msk.msra.mxu1 %vm868_vm2, %v2768_v20  ;;  %14791 = vmatprep.mubr.msk.f32.mxu1 %vm15890_vm1, %v19438_v27 }
 0x394   :  { %14777 = vmatmul.mubr.msk.f32.vlgmr.msra.gmra.mxu0 %vm868_vm2, %v16679_v37  ;;  %v2692_v21 = vpop.permute.xlu0 %2691  ;;  %14799 = vmatprep.subr.mxu1 %v19438_v27 }
 0x395   :  { %14785 = vmatpush3.xpose.msk.msra.mxu0 %vm868_vm2, %v2692_v21  ;;  %14786 = vmatprep.mubr.msk.f32.mxu0 %vm15890_vm1, %v19438_v27 }
 0x396   :  { %14792 = vmatmul.mubr.msk.f32.vlgmr.msra.gmra.mxu1 %vm868_vm2, %v16675_v36  ;;  %14794 = vmatprep.subr.mxu0 %v19438_v27 }
 0x397   :  { %14801 = vmatprep.mubr.msk.f32.mxu1 %vm15890_vm1, %v19438_v27 }
 0x398   :  { %14787 = vmatmul.mubr.msk.f32.vlgmr.msra.gmra.mxu0 %vm868_vm2, %v16671_v50  ;;  %v2844_v22 = vpop.permute.xlu0 %2843 }
 0x399   :  { %v2920_v23 = vpop.permute.xlu1 %2919  ;;  %14795 = vmatpush3.xpose.msk.msra.mxu0 %vm868_vm2, %v2844_v22  ;;  %14796 = vmatprep.mubr.msk.f32.mxu0 %vm15890_vm1, %v19438_v27 }
 0x39a   :  { %14800 = vmatpush3.xpose.msk.msra.mxu1 %vm868_vm2, %v2920_v23  ;;  %14804 = vmatprep.subr.mxu0 %v19438_v27 }
 0x39b   :  { %14809 = vmatprep.subr.mxu1 %v19438_v27 }
 0x39c   :  { %14797 = vmatmul.mubr.msk.f32.vlgmr.msra.gmra.mxu0 %vm868_vm2, %v16683_v53  ;;  %v2996_v24 = vpop.permute.xlu0 %2995 }
 0x39d   :  { %v3072_v25 = vpop.permute.xlu1 %3071  ;;  %14802 = vmatmul.mubr.msk.f32.vlgmr.msra.gmra.mxu1 %vm868_vm2, %v16693_v55  ;;  %14805 = vmatpush3.xpose.msk.msra.mxu0 %vm868_vm2, %v2996_v24 }
 0x39e   :  { %14810 = vmatpush3.xpose.msk.msra.mxu1 %vm868_vm2, %v3072_v25  ;;  %14806 = vmatprep.mubr.msk.f32.mxu0 %vm15890_vm1, %v19438_v27 }
 0x39f   :  { %14811 = vmatprep.mubr.msk.f32.mxu1 %vm15890_vm1, %v19438_v27  ;;  %14814 = vmatprep.subr.mxu0 %v19438_v27 }
 0x3a0   :  { %14807 = vmatmul.mubr.msk.f32.vlgmr.msra.gmra.mxu0 %vm868_vm2, %v16707_v60  ;;  %v3148_v26 = vpop.permute.xlu0 %3147  ;;  %14819 = vmatprep.subr.mxu1 %v19438_v27 }
 0x3a1   :  { %14812 = vmatmul.mubr.msk.f32.vlgmr.msra.gmra.mxu1 %vm868_vm2, %v16700_v57  ;;  %14815 = vmatpush3.xpose.msk.msra.mxu0 %vm868_vm2, %v3148_v26 }
 0x3a2   :  { %14816 = vmatprep.mubr.msk.f32.mxu0 %vm15890_vm1, %v19438_v27  ;;  %14824 = vmatprep.subr.mxu0 %v19438_v27 }
 0x3a3   :  { %14821 = vmatprep.mubr.msk.f32.mxu1 %vm15890_vm1, %v19438_v27 }
 0x3a4   :  { %14817 = vmatmul.mubr.msk.f32.vlgmr.msra.gmra.mxu0 %vm868_vm2, %v16715_v61  ;;  %v3716_v28 = vpop.permute.xlu0 %3715 }
 0x3a5   :  { %v3224_v30 = vpop.permute.xlu1 %3223  ;;  %14825 = vmatpush3.msra.mxu0 %v3716_v28  ;;  %14826 = vmatprep.mubr.msk.f32.mxu0 %vm15890_vm1, %v19438_v27 }
 0x3a6   :  { %14820 = vmatpush3.xpose.msk.msra.mxu1 %vm868_vm2, %v3224_v30  ;;  %14834 = vmatprep.subr.mxu0 %v19438_v27 }
 0x3a7   :  { %14829 = vmatprep.subr.mxu1 %v19438_v27 }
 0x3a8   :  { %v17007_v23 = vpop.permute.xlu0 %3867 }
 0x3a9   :  { %14822 = vmatmul.mubr.msk.f32.vlgmr.msra.gmra.mxu1 %vm868_vm2, %v16723_v63  ;;  %v3792_v31 = vpop.permute.xlu1 %3791 }
 0x3aa   :  { %14830 = vmatpush3.msra.mxu1 %v3792_v31  ;;  %14831 = vmatprep.mubr.msk.f32.mxu1 %vm15890_vm1, %v19438_v27 }
 0x3ab   :  { %14839 = vmatprep.subr.mxu1 %v19438_v27 }
 0x3ac   :  { %v17009_v24 = vpop.permute.xlu0 %3943 }
 0x3b0   :  { %v17011_v25 = vpop.permute.xlu0 %4095 }
 0x3e5   :  { %v939_v43 = vpop.f32.mrf.mxu1 }
 0x3e6   :  { %v3299_v34 = vmul.f32 0.35355338, %v939_v43 }
 0x3e7   :  { %v14668_v44 = vpop.f32.mrf.mxu1 }
 0x3e8   :  { %v16968_v32 = vadd.f32 %v3299_v34, %v16965_v42  ;;  %v17016_v44 = vpop.permute.xlu0 %4171 }
 0x3e9   :  { %v1015_v46 = vpop.f32.mrf.mxu1 }
 0x3ea   :  { %v3300_v47 = vmul.f32 0.35355338, %v1015_v46  ;;  %v3363_v48 = vsel %vm868_vm2, %v16968_v32, -inf }
 0x3eb   :  { %v14673_v49 = vpop.f32.mrf.mxu1  ;;  %3364 = vmax.xlane.f32.xlu0 %v3363_v48 }
 0x3ec   :  { %v16973_v50 = vadd.f32 %v3300_v47, %v16965_v42 }
 0x3ee   :  { %v3366_v36 = vsel %vm868_vm2, %v16973_v50, -inf }
 0x3ef   :  { %3367 = vmax.xlane.f32.xlu1 %v3366_v36  ;;  %v17025_v36 = vpop.permute.xlu0 %4323 }
 0x3f1   :  { %v1091_v37 = vpop.f32.mrf.mxu1 }
 0x3f2   :  { %v3301_v53 = vmul.f32 0.35355338, %v1091_v37 }
 0x3f3   :  { %v14678_v33 = vpop.f32.mrf.mxu1 }
 0x3f4   :  { %v16978_v54 = vadd.f32 %v3301_v53, %v16965_v42 }
 0x3f5   :  { %v1167_v55 = vpop.f32.mrf.mxu1 }
 0x3f6   :  { %v3302_v52 = vmul.f32 0.35355338, %v1167_v55  ;;  %v3369_v62 = vsel %vm868_vm2, %v16978_v54, -inf }
 0x3f7   :  { %3370 = vmax.xlane.f32.xlu0 %v3369_v62  ;;  %v14683_v0 = vpop.f32.mrf.mxu1 }
 0x3f8   :  { %v16983_v1 = vadd.f32 %v3302_v52, %v16965_v42  ;;  %v17030_v52 = vpop.permute.xlu1 %4019 }
 0x3f9   :  { %v1319_v40 = vpop.f32.mrf.mxu1 }
 0x3fa   :  { %v1243_v59 = vpop.f32.mrf.mxu0  ;;  %v3304_v2 = vmul.f32 0.35355338, %v1319_v40  ;;  %v3372_v3 = vsel %vm868_vm2, %v16983_v1, -inf }
 0x3fb   :  { %v3303_v4 = vmul.f32 0.35355338, %v1243_v59  ;;  %3373 = vmax.xlane.f32.xlu0 %v3372_v3  ;;  %v14693_v9 = vpop.f32.mrf.mxu1  ;;  %v17034_v59 = vpop.permute.xlu0 %4399 }
 0x3fc   :  { %v16988_v10 = vadd.f32 %v3304_v2, %v16965_v42  ;;  %v14688_v8 = vpop.f32.mrf.mxu0 }
 0x3fd   :  { %v16991_v11 = vadd.f32 %v3303_v4, %v16965_v42 }
 0x3fe   :  { %v1471_v12 = vpop.f32.mrf.mxu1  ;;  %v3378_v13 = vsel %vm868_vm2, %v16988_v10, -inf }
 0x3ff   :  { %v1395_v14 = vpop.f32.mrf.mxu0  ;;  %v3306_v15 = vmul.f32 0.35355338, %v1471_v12  ;;  %3379 = vmax.xlane.f32.xlu1 %v3378_v13  ;;  %v3375_v6 = vsel %vm868_vm2, %v16991_v11, -inf  ;;  %v17041_v13 = vpop.permute.xlu1 %4247 }
 0x400   :  { %v3305_v51 = vmul.f32 0.35355338, %v1395_v14  ;;  %v14703_v16 = vpop.f32.mrf.mxu1  ;;  %3376 = vmax.xlane.f32.xlu0 %v3375_v6 }
 0x401   :  { %v16998_v18 = vadd.f32 %v3306_v15, %v16965_v42  ;;  %v14698_v19 = vpop.f32.mrf.mxu0 }
 0x402   :  { %v17001_v20 = vadd.f32 %v3305_v51, %v16965_v42  ;;  %v17046_v51 = vpop.permute.xlu0 %4551 }
 0x403   :  { %v3384_v21 = vsel %vm868_vm2, %v16998_v18, -inf }
 0x404   :  { %3385 = vmax.xlane.f32.xlu1 %v3384_v21  ;;  %v3381_v22 = vsel %vm868_vm2, %v17001_v20, -inf }
 0x405   :  { %3382 = vmax.xlane.f32.xlu0 %v3381_v22 }
 0x428   :  { %v1623_v26 = vpop.f32.mrf.mxu1 }
 0x429   :  { %v3308_v28 = vmul.f32 0.35355338, %v1623_v26  ;;  %v17055_v26 = vpop.permute.xlu1 %4475 }
 0x42a   :  { %v1547_v30 = vpop.f32.mrf.mxu0  ;;  %v14713_v31 = vpop.f32.mrf.mxu1 }
 0x42b   :  { %v17014_v41 = vadd.f32 %v3308_v28, %v16965_v42  ;;  %v3307_v43 = vmul.f32 0.35355338, %v1547_v30 }
 0x42c   :  { %v14708_v34 = vpop.f32.mrf.mxu0 }
 0x42d   :  { %v17019_v46 = vadd.f32 %v3307_v43, %v16965_v42  ;;  %v3390_v47 = vsel %vm868_vm2, %v17014_v41, -inf  ;;  %v17057_v43 = vpop.permute.xlu0 %4627 }
 0x42e   :  { %3391 = vmax.xlane.f32.xlu1 %v3390_v47 }
 0x42f   :  { %v3387_v48 = vsel %vm868_vm2, %v17019_v46, -inf }
 0x430   :  { %3388 = vmax.xlane.f32.xlu0 %v3387_v48 }
 0x432   :  { %v1775_v49 = vpop.f32.mrf.mxu1 }
 0x433   :  { %v3310_v37 = vmul.f32 0.35355338, %v1775_v49 }
 0x434   :  { %v14723_v53 = vpop.f32.mrf.mxu1 }
 0x435   :  { %v17028_v33 = vadd.f32 %v3310_v37, %v16965_v42 }
 0x436   :  { %v1699_v55 = vpop.f32.mrf.mxu0 }
 0x437   :  { %v3309_v62 = vmul.f32 0.35355338, %v1699_v55  ;;  %v3396_v0 = vsel %vm868_vm2, %v17028_v33, -inf }
 0x438   :  { %3397 = vmax.xlane.f32.xlu1 %v3396_v0  ;;  %v14718_v40 = vpop.f32.mrf.mxu0 }
 0x439   :  { %v17037_v2 = vadd.f32 %v3309_v62, %v16965_v42  ;;  %v17067_v40 = vpop.permute.xlu1 %4703 }
 0x43a   :  { %v1927_v3 = vpop.f32.mrf.mxu1 }
 0x43b   :  { %v3312_v4 = vmul.f32 0.35355338, %v1927_v3  ;;  %v3393_v9 = vsel %vm868_vm2, %v17037_v2, -inf }
 0x43c   :  { %v14733_v8 = vpop.f32.mrf.mxu1  ;;  %3394 = vmax.xlane.f32.xlu0 %v3393_v9  ;;  %v1851_v12 = vpop.f32.mrf.mxu0 }
 0x43d   :  { %v17044_v14 = vadd.f32 %v3312_v4, %v16965_v42  ;;  %v3311_v15 = vmul.f32 0.35355338, %v1851_v12 }
 0x43e   :  { %v14728_v6 = vpop.f32.mrf.mxu0 }
 0x43f   :  { %v17049_v16 = vadd.f32 %v3311_v15, %v16965_v42  ;;  %v3402_v19 = vsel %vm868_vm2, %v17044_v14, -inf  ;;  %v17074_v15 = vpop.permute.xlu0 %4855 }
 0x440   :  { %3403 = vmax.xlane.f32.xlu1 %v3402_v19 }
 0x441   :  { %v3399_v21 = vsel %vm868_vm2, %v17049_v16, -inf }
 0x442   :  { %v2079_v22 = vpop.f32.mrf.mxu1  ;;  %3400 = vmax.xlane.f32.xlu0 %v3399_v21 }
 0x443   :  { %v3314_v28 = vmul.f32 0.35355338, %v2079_v22 }
 0x444   :  { %v2003_v30 = vpop.f32.mrf.mxu0  ;;  %v14743_v31 = vpop.f32.mrf.mxu1 }
 0x445   :  { %v17060_v34 = vadd.f32 %v3314_v28, %v16965_v42  ;;  %v3313_v47 = vmul.f32 0.35355338, %v2003_v30 }
 0x446   :  { %v14738_v48 = vpop.f32.mrf.mxu0  ;;  %v2231_v49 = vpop.f32.mrf.mxu1 }
 0x447   :  { %v17063_v37 = vadd.f32 %v3313_v47, %v16965_v42  ;;  %v3316_v53 = vmul.f32 0.35355338, %v2231_v49  ;;  %v3408_v55 = vsel %vm868_vm2, %v17060_v34, -inf }
 0x448   :  { %v14753_v62 = vpop.f32.mrf.mxu1  ;;  %3409 = vmax.xlane.f32.xlu1 %v3408_v55  ;;  %v2155_v0 = vpop.f32.mrf.mxu0 }
 0x449   :  { %v17070_v3 = vadd.f32 %v3316_v53, %v16965_v42  ;;  %v3315_v4 = vmul.f32 0.35355338, %v2155_v0  ;;  %v3405_v9 = vsel %vm868_vm2, %v17063_v37, -inf  ;;  %v17086_v53 = vpop.permute.xlu1 %4931 }
 0x44a   :  { %v2383_v8 = vpop.f32.mrf.mxu1  ;;  %3406 = vmax.xlane.f32.xlu0 %v3405_v9  ;;  %v14748_v12 = vpop.f32.mrf.mxu0  ;;  %19472 = vst [vmem:[#allocation12_spill] sm:$0xff] %v17086_v53 }
 0x44b   :  { %v17077_v6 = vadd.f32 %v3315_v4, %v16965_v42  ;;  %v3318_v19 = vmul.f32 0.35355338, %v2383_v8  ;;  %v3414_v21 = vsel %vm868_vm2, %v17070_v3, -inf  ;;  %v17093_v8 = vpop.permute.xlu0 %5007 }
 0x44c   :  { %v14763_v22 = vpop.f32.mrf.mxu1  ;;  %3415 = vmax.xlane.f32.xlu1 %v3414_v21  ;;  %v2307_v28 = vpop.f32.mrf.mxu0  ;;  %19473 = vst [vmem:[#allocation13_spill] sm:$0xff] %v17093_v8 }
 0x44d   :  { %v17082_v30 = vadd.f32 %v3318_v19, %v16965_v42  ;;  %v3317_v31 = vmul.f32 0.35355338, %v2307_v28  ;;  %v3411_v47 = vsel %vm868_vm2, %v17077_v6, -inf }
 0x44e   :  { %v2535_v48 = vpop.f32.mrf.mxu1  ;;  %3412 = vmax.xlane.f32.xlu0 %v3411_v47  ;;  %v14758_v49 = vpop.f32.mrf.mxu0 }
 0x44f   :  { %v17089_v55 = vadd.f32 %v3317_v31, %v16965_v42  ;;  %v3320_v62 = vmul.f32 0.35355338, %v2535_v48  ;;  %v3420_v0 = vsel %vm868_vm2, %v17082_v30, -inf  ;;  %v17112_v35 = vpop.permute.xlu0 %5083 }
 0x450   :  { %v14773_v4 = vpop.f32.mrf.mxu1  ;;  %3421 = vmax.xlane.f32.xlu1 %v3420_v0  ;;  %v2459_v9 = vpop.f32.mrf.mxu0  ;;  %19475 = vst [vmem:[#allocation15_spill] sm:$0xff] %v17112_v35 }
 0x451   :  { %v17096_v12 = vadd.f32 %v3320_v62, %v16965_v42  ;;  %v3319_v19 = vmul.f32 0.35355338, %v2459_v9  ;;  %v3417_v21 = vsel %vm868_vm2, %v17089_v55, -inf  ;;  %v17105_v4 = vpop.permute.xlu1 %5159 }
 0x452   :  { %v2687_v22 = vpop.f32.mrf.mxu1  ;;  %3418 = vmax.xlane.f32.xlu0 %v3417_v21  ;;  %v14768_v28 = vpop.f32.mrf.mxu0  ;;  %19474 = vst [vmem:[#allocation14_spill] sm:$0xff] %v17105_v4 }
 0x453   :  { %v17101_v31 = vadd.f32 %v3319_v19, %v16965_v42  ;;  %v3322_v47 = vmul.f32 0.35355338, %v2687_v22  ;;  %v3426_v48 = vsel %vm868_vm2, %v17096_v12, -inf  ;;  %v17128_v7 = vpop.permute.xlu0 %5539 }
 0x454   :  { %v14783_v49 = vpop.f32.mrf.mxu1  ;;  %3427 = vmax.xlane.f32.xlu1 %v3426_v48  ;;  %v2611_v0 = vpop.f32.mrf.mxu0  ;;  %19477 = vst [vmem:[#allocation17_spill] sm:$0xff] %v17128_v7 }
 0x455   :  { %v17108_v62 = vadd.f32 %v3322_v47, %v16965_v42  ;;  %v3321_v9 = vmul.f32 0.35355338, %v2611_v0  ;;  %v3423_v21 = vsel %vm868_vm2, %v17101_v31, -inf }
 0x456   :  { %v2839_v28 = vpop.f32.mrf.mxu1  ;;  %3424 = vmax.xlane.f32.xlu0 %v3423_v21  ;;  %v14778_v19 = vpop.f32.mrf.mxu0 }
 0x457   :  { %v17115_v22 = vadd.f32 %v3321_v9, %v16965_v42  ;;  %v3324_v49 = vmul.f32 0.35355338, %v2839_v28  ;;  %v3432_v48 = vsel %vm868_vm2, %v17108_v62, -inf  ;;  %v17126_v9 = vpop.permute.xlu1 %5235 }
 0x458   :  { %v14793_v27 = vpop.f32.mrf.mxu1  ;;  %3433 = vmax.xlane.f32.xlu1 %v3432_v48  ;;  %v2763_v47 = vpop.f32.mrf.mxu0  ;;  %19476 = vst [vmem:[#allocation16_spill] sm:$0xff] %v17126_v9 }
 0x459   :  { %v17120_v0 = vadd.f32 %v3324_v49, %v16965_v42  ;;  %v3429_v38 = vsel %vm868_vm2, %v17115_v22, -inf }
 0x45a   :  { %3430 = vmax.xlane.f32.xlu0 %v3429_v38  ;;  %v14788_v21 = vpop.f32.mrf.mxu0 }
 0x45b   :  { %v3438_v19 = vsel %vm868_vm2, %v17120_v0, -inf  ;;  %v17133_v38 = vpop.permute.xlu1 %5311 }
 0x45c   :  { %3439 = vmax.xlane.f32.xlu1 %v3438_v19  ;;  %v2915_v28 = vpop.f32.mrf.mxu0  ;;  %19478 = vst [vmem:[#allocation18_spill] sm:$0xff] %v17133_v38  ;;  %v17137_v19 = vpop.permute.xlu0 %5691 }
 0x45d   :  { %v2991_v39 = vpop.f32.mrf.mxu1  ;;  %19479 = vst [vmem:[#allocation19_spill] sm:$0xff] %v17137_v19 }
 0x45e   :  { %v3326_v27 = vmul.f32 0.35355338, %v2991_v39  ;;  %v14798_v48 = vpop.f32.mrf.mxu0 }
 0x45f   :  { %v14803_v45 = vpop.f32.mrf.mxu1  ;;  %v17139_v39 = vpop.permute.xlu1 %5463 }
 0x460   :  { %v17131_v49 = vadd.f32 %v3326_v27, %v16965_v42  ;;  %v3067_v56 = vpop.f32.mrf.mxu0  ;;  %19480 = vst [vmem:[#allocation20_spill] sm:$0xff] %v17139_v39  ;;  %v17141_v48 = vpop.permute.xlu0 %4779 }
 0x461   :  { %v3143_v17 = vpop.f32.mrf.mxu1 }
 0x462   :  { %v3444_v21 = vsel %vm868_vm2, %v17131_v49, -inf  ;;  %v14808_v29 = vpop.f32.mrf.mxu0 }
 0x463   :  { %v14813_v58 = vpop.f32.mrf.mxu1  ;;  %3445 = vmax.xlane.f32.xlu1 %v3444_v21  ;;  %v17143_v9 = vpop.permute.xlu1 %5615 }
 0x464   :  { %v3219_v5 = vpop.f32.mrf.mxu0  ;;  %19481 = vst [vmem:[#allocation21_spill] sm:$0xff] %v17143_v9  ;;  %v17145_v4 = vpop.permute.xlu0 %5387 }
 0x465   :  { %19482 = vst [vmem:[#allocation22_spill] sm:$0xff] %v17145_v4 }
 0x466   :  { %v14818_v7 = vpop.f32.mrf.mxu0 }
 0x467   :  { %v17147_v38 = vpop.permute.xlu1 %5767 }
 0x468   :  { %19483 = vst [vmem:[#allocation23_spill] sm:$0xff] %v17147_v38 }
 0x469   :  { %v3295_v45 = vpop.f32.mrf.mxu1 }
 0x46b   :  { %v14823_v27 = vpop.f32.mrf.mxu1 }
 0x46c   :  { %v3323_v27 = vmul.f32 0.35355338, %v2763_v47 }
 0x474   :  { %v3365_v35 = vpop.xlane.xlu0 %3364 }
 0x475   :  { %v3459_v58 = vsub.f32 %v16968_v32, %v3365_v35  ;;  %v17156_v35 = vadd.f32 %v3323_v27, %v16965_v42  ;;  %v3325_v32 = vmul.f32 0.35355338, %v2915_v28 }
 0x477   :  { %v3491_v29 = vmul.f32 1.442695, %v3459_v58  ;;  %v3328_v58 = vmul.f32 0.35355338, %v3143_v17  ;;  %v3435_v17 = vsel %vm868_vm2, %v17156_v35, -inf }
 0x478   :  { %v3368_v21 = vpop.xlane.xlu1 %3367 }
 0x479   :  { %15549 = vpow2.f32 %v3491_v29  ;;  %v3460_v7 = vsub.f32 %v16973_v50, %v3368_v21 }
 0x47b   :  { %v3493_v19 = vmul.f32 1.442695, %v3460_v7  ;;  %v3327_v7 = vmul.f32 0.35355338, %v3067_v56 }
 0x47d   :  { %15551 = vpow2.f32 %v3493_v19 }
 0x480   :  { %v3371_v39 = vpop.xlane.xlu0 %3370 }
 0x481   :  { %v3461_v53 = vsub.f32 %v16978_v54, %v3371_v39 }
 0x483   :  { %v3495_v8 = vmul.f32 1.442695, %v3461_v53 }
 0x484   :  { %v3374_v9 = vpop.xlane.xlu0 %3373 }
 0x485   :  { %15553 = vpow2.f32 %v3495_v8  ;;  %v3462_v4 = vsub.f32 %v16983_v1, %v3374_v9  ;;  %v17164_v1 = vadd.f32 %v3325_v32, %v16965_v42  ;;  %v3330_v9 = vmul.f32 0.35355338, %v3295_v45 }
 0x486   :  { %v17153_v38 = vpop.eup %15549 }
 0x487   :  { %v3497_v29 = vmul.f32 1.442695, %v3462_v4  ;;  %v3555_v50 = vsel %vm868_vm2, %v17153_v38, 0.0  ;;  %v17170_v4 = vadd.f32 %v3328_v58, %v16965_v42  ;;  %v3441_v32 = vsel %vm868_vm2, %v17164_v1, -inf }
 0x488   :  { %v3380_v19 = vpop.xlane.xlu1 %3379  ;;  %3556 = vadd.xlane.f32.xlu0 %v3555_v50  ;;  %v17178_v58 = vadd.f32 %v3330_v9, %v16965_v42 }
 0x489   :  { %15555 = vpow2.f32 %v3497_v29  ;;  %v3464_v54 = vsub.f32 %v16988_v10, %v3380_v19  ;;  %v3377_v53 = vpop.xlane.xlu0 %3376  ;;  %v3450_v29 = vsel %vm868_vm2, %v17170_v4, -inf }
 0x48a   :  { %v17161_v8 = vpop.eup %15551  ;;  %v3463_v47 = vsub.f32 %v16991_v11, %v3377_v53  ;;  %v3456_v53 = vsel %vm868_vm2, %v17178_v58, -inf }
 0x48b   :  { %v3501_v28 = vmul.f32 1.442695, %v3464_v54  ;;  %v3558_v39 = vsel %vm868_vm2, %v17161_v8, 0.0  ;;  %v3329_v54 = vmul.f32 0.35355338, %v3219_v5 }
 0x48c   :  { %v3499_v10 = vmul.f32 1.442695, %v3463_v47  ;;  %3559 = vadd.xlane.f32.xlu1 %v3558_v39  ;;  %3436 = vmax.xlane.f32.xlu0 %v3435_v17 }
 0x48d   :  { %15557 = vpow2.f32 %v3501_v28  ;;  %v3386_v21 = vpop.xlane.xlu1 %3385  ;;  %v17195_v17 = vadd.f32 %v3329_v54, %v16965_v42 }
 0x48e   :  { %v3466_v27 = vsub.f32 %v16998_v18, %v3386_v21  ;;  %v3383_v11 = vpop.xlane.xlu0 %3382  ;;  %15559 = vpow2.f32 %v3499_v10  ;;  %v17186_v18 = vadd.f32 %v3327_v7, %v16965_v42 }
 0x48f   :  { %v3465_v45 = vsub.f32 %v17001_v20, %v3383_v11  ;;  %v3453_v39 = vsel %vm868_vm2, %v17195_v17, -inf }
 0x490   :  { %v3505_v50 = vmul.f32 1.442695, %v3466_v27  ;;  %3451 = vmax.xlane.f32.xlu1 %v3450_v29  ;;  %3442 = vmax.xlane.f32.xlu0 %v3441_v32  ;;  %v3447_v9 = vsel %vm868_vm2, %v17186_v18, -inf }
 0x491   :  { %v3503_v19 = vmul.f32 1.442695, %v3465_v45 }
 0x492   :  { %v17183_v56 = vpop.eup %15553  ;;  %15561 = vpow2.f32 %v3505_v50 }
 0x493   :  { %15563 = vpow2.f32 %v3503_v19  ;;  %v3561_v20 = vsel %vm868_vm2, %v17183_v56, 0.0 }
 0x494   :  { %3457 = vmax.xlane.f32.xlu1 %v3456_v53  ;;  %3562 = vadd.xlane.f32.xlu0 %v3561_v20 }
 0x496   :  { %v17192_v47 = vpop.eup %15555 }
 0x497   :  { %v3564_v5 = vsel %vm868_vm2, %v17192_v47, 0.0 }
 0x498   :  { %3448 = vmax.xlane.f32.xlu0 %v3447_v9  ;;  %3565 = vadd.xlane.f32.xlu1 %v3564_v5 }
 0x49a   :  { %v17201_v28 = vpop.eup %15557 }
 0x49b   :  { %v3570_v10 = vsel %vm868_vm2, %v17201_v28, 0.0  ;;  %v17207_v21 = vpop.eup %15559 }
 0x49c   :  { %3454 = vmax.xlane.f32.xlu0 %v3453_v39  ;;  %3571 = vadd.xlane.f32.xlu1 %v3570_v10  ;;  %v3567_v27 = vsel %vm868_vm2, %v17207_v21, 0.0 }
 0x49f   :  { %v17209_v7 = vpop.eup %15561 }
 0x4a0   :  { %v17213_v11 = vpop.eup %15563  ;;  %v3576_v32 = vsel %vm868_vm2, %v17209_v7, 0.0  ;;  %3568 = vadd.xlane.f32.xlu0 %v3567_v27 }
 0x4a1   :  { %3577 = vadd.xlane.f32.xlu1 %v3576_v32  ;;  %v3573_v45 = vsel %vm868_vm2, %v17213_v11, 0.0 }
 0x4a4   :  { %3574 = vadd.xlane.f32.xlu0 %v3573_v45 }
 0x4b7   :  { %v3392_v29 = vpop.xlane.xlu1 %3391 }
 0x4b8   :  { %v3468_v50 = vsub.f32 %v17014_v41, %v3392_v29 }
 0x4b9   :  { %v3389_v19 = vpop.xlane.xlu0 %3388 }
 0x4ba   :  { %v3509_v54 = vmul.f32 1.442695, %v3468_v50  ;;  %v3467_v53 = vsub.f32 %v17019_v46, %v3389_v19 }
 0x4bc   :  { %15565 = vpow2.f32 %v3509_v54  ;;  %v3507_v20 = vmul.f32 1.442695, %v3467_v53 }
 0x4be   :  { %15567 = vpow2.f32 %v3507_v20 }
 0x4c1   :  { %v3398_v9 = vpop.xlane.xlu1 %3397 }
 0x4c2   :  { %v3470_v5 = vsub.f32 %v17028_v33, %v3398_v9 }
 0x4c4   :  { %v3513_v39 = vmul.f32 1.442695, %v3470_v5 }
 0x4c5   :  { %v3395_v10 = vpop.xlane.xlu0 %3394 }
 0x4c6   :  { %15569 = vpow2.f32 %v3513_v39  ;;  %v3469_v27 = vsub.f32 %v17037_v2, %v3395_v10 }
 0x4c8   :  { %v3511_v32 = vmul.f32 1.442695, %v3469_v27 }
 0x4c9   :  { %v17223_v45 = vpop.eup %15565  ;;  %v3404_v42 = vpop.xlane.xlu1 %3403 }
 0x4ca   :  { %15571 = vpow2.f32 %v3511_v32  ;;  %v3472_v41 = vsub.f32 %v17044_v14, %v3404_v42  ;;  %v3582_v46 = vsel %vm868_vm2, %v17223_v45, 0.0 }
 0x4cb   :  { %v17228_v29 = vpop.eup %15567  ;;  %3583 = vadd.xlane.f32.xlu1 %v3582_v46  ;;  %v3401_v50 = vpop.xlane.xlu0 %3400 }
 0x4cc   :  { %v3517_v33 = vmul.f32 1.442695, %v3472_v41  ;;  %v3471_v19 = vsub.f32 %v17049_v16, %v3401_v50  ;;  %v3579_v2 = vsel %vm868_vm2, %v17228_v29, 0.0 }
 0x4cd   :  { %3580 = vadd.xlane.f32.xlu0 %v3579_v2 }
 0x4ce   :  { %15573 = vpow2.f32 %v3517_v33  ;;  %v3515_v54 = vmul.f32 1.442695, %v3471_v19 }
 0x4d0   :  { %15575 = vpow2.f32 %v3515_v54 }
 0x4d1   :  { %v3410_v53 = vpop.xlane.xlu1 %3409 }
 0x4d2   :  { %v3474_v42 = vsub.f32 %v17060_v34, %v3410_v53 }
 0x4d3   :  { %v17234_v14 = vpop.eup %15569  ;;  %v3407_v20 = vpop.xlane.xlu0 %3406 }
 0x4d4   :  { %v3521_v9 = vmul.f32 1.442695, %v3474_v42  ;;  %v3473_v5 = vsub.f32 %v17063_v37, %v3407_v20  ;;  %v3588_v39 = vsel %vm868_vm2, %v17234_v14, 0.0 }
 0x4d5   :  { %v3416_v16 = vpop.xlane.xlu1 %3415  ;;  %3589 = vadd.xlane.f32.xlu1 %v3588_v39 }
 0x4d6   :  { %15577 = vpow2.f32 %v3521_v9  ;;  %v3519_v10 = vmul.f32 1.442695, %v3473_v5  ;;  %v3476_v27 = vsub.f32 %v17070_v3, %v3416_v16 }
 0x4d7   :  { %v17240_v32 = vpop.eup %15571  ;;  %v3413_v41 = vpop.xlane.xlu0 %3412 }
 0x4d8   :  { %15579 = vpow2.f32 %v3519_v10  ;;  %v3525_v34 = vmul.f32 1.442695, %v3476_v27  ;;  %v3475_v46 = vsub.f32 %v17077_v6, %v3413_v41  ;;  %v3585_v50 = vsel %vm868_vm2, %v17240_v32, 0.0 }
 0x4d9   :  { %v3422_v37 = vpop.xlane.xlu1 %3421  ;;  %3586 = vadd.xlane.f32.xlu0 %v3585_v50 }
 0x4da   :  { %v3523_v33 = vmul.f32 1.442695, %v3475_v46  ;;  %v3478_v19 = vsub.f32 %v17082_v30, %v3422_v37  ;;  %15581 = vpow2.f32 %v3525_v34 }
 0x4db   :  { %v17246_v2 = vpop.eup %15573  ;;  %v3419_v34 = vpop.xlane.xlu0 %3418 }
 0x4dc   :  { %15583 = vpow2.f32 %v3523_v33  ;;  %v3529_v3 = vmul.f32 1.442695, %v3478_v19  ;;  %v3594_v54 = vsel %vm868_vm2, %v17246_v2, 0.0  ;;  %v3477_v19 = vsub.f32 %v17089_v55, %v3419_v34 }
 0x4dd   :  { %v17250_v53 = vpop.eup %15575  ;;  %3595 = vadd.xlane.f32.xlu1 %v3594_v54  ;;  %v3428_v46 = vpop.xlane.xlu1 %3427 }
 0x4de   :  { %15585 = vpow2.f32 %v3529_v3  ;;  %v3591_v6 = vsel %vm868_vm2, %v17250_v53, 0.0 }
 0x4df   :  { %3592 = vadd.xlane.f32.xlu0 %v3591_v6  ;;  %v3425_v50 = vpop.xlane.xlu0 %3424  ;;  %v3527_v6 = vmul.f32 1.442695, %v3477_v19 }
 0x4e1   :  { %v3434_v37 = vpop.xlane.xlu1 %3433  ;;  %15587 = vpow2.f32 %v3527_v6 }
 0x4e3   :  { %v17254_v42 = vpop.eup %15577  ;;  %v3431_v33 = vpop.xlane.xlu0 %3430 }
 0x4e4   :  { %v3600_v30 = vsel %vm868_vm2, %v17254_v42, 0.0  ;;  %v3481_v3 = vsub.f32 %v17115_v22, %v3431_v33  ;;  %v3482_v22 = vsub.f32 %v17108_v62, %v3434_v37 }
 0x4e5   :  { %v17258_v20 = vpop.eup %15579  ;;  %3601 = vadd.xlane.f32.xlu1 %v3600_v30  ;;  %v3440_v54 = vpop.xlane.xlu1 %3439  ;;  %v3480_v30 = vsub.f32 %v17096_v12, %v3428_v46 }
 0x4e6   :  { %v3597_v5 = vsel %vm868_vm2, %v17258_v20, 0.0  ;;  %v3537_v12 = vmul.f32 1.442695, %v3482_v22 }
 0x4e7   :  { %v17260_v9 = vpop.eup %15581 }
 0x4e8   :  { %v3606_v27 = vsel %vm868_vm2, %v17260_v9, 0.0 }
 0x4e9   :  { %v17264_v39 = vpop.eup %15583  ;;  %3598 = vadd.xlane.f32.xlu1 %v3597_v5  ;;  %v3535_v5 = vmul.f32 1.442695, %v3481_v3 }
 0x4ea   :  { %v3603_v16 = vsel %vm868_vm2, %v17264_v39, 0.0 }
 0x4eb   :  { %v17268_v10 = vpop.eup %15585  ;;  %3604 = vadd.xlane.f32.xlu0 %v3603_v16  ;;  %v3484_v16 = vsub.f32 %v17120_v0, %v3440_v54 }
 0x4ec   :  { %19484 = vst [vmem:[#allocation24_spill] sm:$0xff] %v17268_v10  ;;  %v3612_v41 = vsel %vm868_vm2, %v17268_v10, 0.0 }
 0x4ed   :  { %3607 = vadd.xlane.f32.xlu1 %v3606_v27  ;;  %v3479_v27 = vsub.f32 %v17101_v31, %v3425_v50 }
 0x4ee   :  { %v17286_v54 = vpop.eup %15587 }
 0x4ef   :  { %3613 = vadd.xlane.f32.xlu0 %v3612_v41  ;;  %v3446_v41 = vpop.xlane.xlu1 %3445  ;;  %v3531_v55 = vmul.f32 1.442695, %v3479_v27 }
 0x4f0   :  { %v3486_v31 = vsub.f32 %v17131_v49, %v3446_v41  ;;  %v3609_v49 = vsel %vm868_vm2, %v17286_v54, 0.0 }
 0x4fe   :  { %5919 = vrot.lane.b32.xlu1 %v16700_v57, %s15893_s16  ;;  %v3533_v57 = vmul.f32 1.442695, %v3480_v30 }
 0x505   :  { %5843 = vrot.lane.b32.xlu0 %v16707_v60, %s15893_s16  ;;  %v3541_v60 = vmul.f32 1.442695, %v3484_v16 }
 0x511   :  { %v3557_v10 = vpop.xlane.xlu0 %3556 }
 0x512   :  { %15589 = vrcp.f32 %v3557_v10 }
 0x513   :  { %15591 = vpow2.f32 %v3535_v5  ;;  %v3545_v5 = vmul.f32 1.442695, %v3486_v31 }
 0x514   :  { %15593 = vpow2.f32 %v3533_v57 }
 0x515   :  { %v3560_v34 = vpop.xlane.xlu1 %3559  ;;  %v3437_v33 = vpop.xlane.xlu0 %3436 }
 0x516   :  { %15595 = vrcp.f32 %v3560_v34  ;;  %v3483_v0 = vsub.f32 %v17156_v35, %v3437_v33 }
 0x517   :  { %15597 = vpow2.f32 %v3541_v60 }
 0x518   :  { %15599 = vpow2.f32 %v3531_v55  ;;  %v3539_v10 = vmul.f32 1.442695, %v3483_v0 }
 0x519   :  { %v3452_v46 = vpop.xlane.xlu1 %3451  ;;  %v3443_v19 = vpop.xlane.xlu0 %3442  ;;  %15601 = vpow2.f32 %v3537_v12 }
 0x51a   :  { %v3485_v35 = vsub.f32 %v17164_v1, %v3443_v19  ;;  %v19485_v1 = vmov 0.0   ;;  %v3488_v34 = vsub.f32 %v17170_v4, %v3452_v46 }
 0x51c   :  { %v3543_v33 = vmul.f32 1.442695, %v3485_v35  ;;  %v3549_v4 = vmul.f32 1.442695, %v3488_v34 }
 0x51d   :  { %v3458_v50 = vpop.xlane.xlu1 %3457  ;;  %v3563_v3 = vpop.xlane.xlu0 %3562 }
 0x51e   :  { %v3490_v37 = vsub.f32 %v17178_v58, %v3458_v50  ;;  %15603 = vrcp.f32 %v3563_v3 }
 0x51f   :  { %v15590_v6 = vpop.eup %15589  ;;  %15605 = vpow2.f32 %v3539_v10 }
 0x520   :  { %v17288_v62 = vpop.eup %15591  ;;  %v3652_v30 = vmul.f32 %v15590_v6, %v17153_v38  ;;  %v3553_v55 = vmul.f32 1.442695, %v3490_v37 }
 0x521   :  { %v3566_v16 = vpop.xlane.xlu1 %3565  ;;  %v3449_v57 = vpop.xlane.xlu0 %3448  ;;  %v3621_v38 = vsel %vm868_vm2, %v17288_v62, 0.0 }
 0x522   :  { %v17295_v27 = vpop.eup %15593  ;;  %v3487_v41 = vsub.f32 %v17186_v18, %v3449_v57  ;;  %3610 = vadd.xlane.f32.xlu1 %v3609_v49  ;;  %14827 = vmatmul.mubr.msk.f32.vlgmr.msra.gmra.mxu0 %vm868_vm2, %v3652_v30  ;;  %15607 = vrcp.f32 %v3566_v16 }
 0x523   :  { %v15596_v58 = vpop.eup %15595  ;;  %14835 = vmatpush3.msra.mxu0 %v17007_v23  ;;  %14836 = vmatprep.mubr.msk.f32.mxu0 %vm15890_vm1, %v19485_v1  ;;  %15609 = vpow2.f32 %v3545_v5  ;;  %v3618_v0 = vsel %vm868_vm2, %v17295_v27, 0.0 }
 0x524   :  { %v17304_v60 = vpop.eup %15597  ;;  %v3547_v22 = vmul.f32 1.442695, %v3487_v41  ;;  %3622 = vadd.xlane.f32.xlu0 %v3621_v38  ;;  %v3654_v18 = vmul.f32 %v15596_v58, %v17161_v8  ;;  %14844 = vmatprep.subr.mxu0 %v19485_v1 }
 0x525   :  { %v3572_v23 = vpop.xlane.xlu1 %3571  ;;  %v3455_v12 = vpop.xlane.xlu0 %3454  ;;  %v3630_v8 = vsel %vm868_vm2, %v17304_v60, 0.0 }
 0x526   :  { %v17311_v19 = vpop.eup %15599  ;;  %15611 = vpow2.f32 %v3547_v22  ;;  %14832 = vmatmul.mubr.msk.f32.vlgmr.msra.gmra.mxu1 %vm868_vm2, %v3654_v18  ;;  %3619 = vadd.xlane.f32.xlu1 %v3618_v0  ;;  %v3489_v46 = vsub.f32 %v17195_v17, %v3455_v12 }
 0x527   :  { %15613 = vrcp.f32 %v3572_v23  ;;  %14840 = vmatpush3.msra.mxu1 %v17009_v24  ;;  %14841 = vmatprep.mubr.msk.f32.mxu1 %vm15890_vm1, %v19485_v1  ;;  %v3615_v10 = vsel %vm868_vm2, %v17311_v19, 0.0  ;;  %v17323_v50 = vpop.eup %15601 }
 0x528   :  { %15615 = vpow2.f32 %v3553_v55  ;;  %3631 = vadd.xlane.f32.xlu0 %v3630_v8  ;;  %14849 = vmatprep.subr.mxu1 %v19485_v1  ;;  %v3551_v6 = vmul.f32 1.442695, %v3489_v46  ;;  %v3624_v30 = vsel %vm868_vm2, %v17323_v50, 0.0 }
 0x529   :  { %15617 = vpow2.f32 %v3543_v33  ;;  %v3569_v31 = vpop.xlane.xlu0 %3568 }
 0x52a   :  { %v3578_v24 = vpop.xlane.xlu1 %3577  ;;  %3616 = vadd.xlane.f32.xlu1 %v3615_v10 }
 0x52b   :  { %15619 = vrcp.f32 %v3578_v24  ;;  %v15604_v3 = vpop.eup %15603 }
 0x52c   :  { %15621 = vrcp.f32 %v3569_v31  ;;  %v17327_v5 = vpop.eup %15605  ;;  %v3656_v17 = vmul.f32 %v15604_v3, %v17183_v56 }
 0x52d   :  { %15623 = vpow2.f32 %v3549_v4  ;;  %v3575_v37 = vpop.xlane.xlu0 %3574  ;;  %v3627_v57 = vsel %vm868_vm2, %v17327_v5, 0.0 }
 0x52e   :  { %15625 = vrcp.f32 %v3575_v37  ;;  %3625 = vadd.xlane.f32.xlu1 %v3624_v30  ;;  %14837 = vmatmul.mubr.msk.f32.vlgmr.msra.gmra.mxu0 %vm868_vm2, %v3656_v17 }
 0x52f   :  { %v15608_v35 = vpop.eup %15607  ;;  %15627 = vpow2.f32 %v3551_v6  ;;  %14845 = vmatpush3.msra.mxu0 %v17030_v52  ;;  %14846 = vmatprep.mubr.msk.f32.mxu0 %vm15890_vm1, %v19485_v1 }
 0x530   :  { %v3658_v16 = vmul.f32 %v15608_v35, %v17192_v47  ;;  %v17337_v49 = vpop.eup %15609  ;;  %14854 = vmatprep.subr.mxu0 %v19485_v1 }
 0x531   :  { %v3636_v38 = vsel %vm868_vm2, %v17337_v49, 0.0 }
 0x532   :  { %3628 = vadd.xlane.f32.xlu1 %v3627_v57  ;;  %14842 = vmatmul.mubr.msk.f32.vlgmr.msra.gmra.mxu1 %vm868_vm2, %v3658_v16  ;;  %v19487_v16 = vld [vmem:[#allocation12_spill] sm:$0xff] }
 0x533   :  { %v17340_v56 = vpop.eup %15611  ;;  %14850 = vmatpush3.msra.mxu1 %v17011_v25  ;;  %14851 = vmatprep.mubr.msk.f32.mxu1 %vm15890_vm1, %v19485_v1 }
 0x534   :  { %v15614_v41 = vpop.eup %15613  ;;  %v3639_v52 = vsel %vm868_vm2, %v17340_v56, 0.0  ;;  %14859 = vmatprep.subr.mxu1 %v19485_v1 }
 0x535   :  { %v17348_v47 = vpop.eup %15615  ;;  %3640 = vadd.xlane.f32.xlu0 %v3639_v52  ;;  %v3662_v58 = vmul.f32 %v15614_v41, %v17201_v28  ;;  %v19489_v52 = vld [vmem:[#allocation14_spill] sm:$0xff] }
 0x536   :  { %v17354_v55 = vpop.eup %15617  ;;  %3637 = vadd.xlane.f32.xlu1 %v3636_v38  ;;  %v3648_v22 = vsel %vm868_vm2, %v17348_v47, 0.0 }
 0x537   :  { %14852 = vmatmul.mubr.msk.f32.vlgmr.msra.gmra.mxu1 %vm868_vm2, %v3662_v58  ;;  %v3633_v34 = vsel %vm868_vm2, %v17354_v55, 0.0  ;;  %v19490_v58 = vld [vmem:[#allocation24_spill] sm:$0xff] }
 0x538   :  { %v15620_v25 = vpop.eup %15619  ;;  %14860 = vmatpush3.msra.mxu1 %v17041_v13  ;;  %14861 = vmatprep.mubr.msk.f32.mxu1 %vm15890_vm1, %v19485_v1 }
 0x539   :  { %v15622_v18 = vpop.eup %15621  ;;  %14869 = vmatprep.subr.mxu1 %v19485_v1  ;;  %3649 = vadd.xlane.f32.xlu0 %v3648_v22  ;;  %v3666_v28 = vmul.f32 %v15620_v25, %v17209_v7 }
 0x53a   :  { %v17366_v33 = vpop.eup %15623  ;;  %3634 = vadd.xlane.f32.xlu1 %v3633_v34  ;;  %v3660_v13 = vmul.f32 %v15622_v18, %v17207_v21 }
 0x53b   :  { %v15626_v23 = vpop.eup %15625  ;;  %14862 = vmatmul.mubr.msk.f32.vlgmr.msra.gmra.mxu1 %vm868_vm2, %v3666_v28  ;;  %v3642_v7 = vsel %vm868_vm2, %v17366_v33, 0.0 }
 0x53c   :  { %14870 = vmatpush3.msra.mxu1 %v17034_v59  ;;  %14847 = vmatmul.mubr.msk.f32.vlgmr.msra.gmra.mxu0 %vm868_vm2, %v3660_v13  ;;  %v3664_v12 = vmul.f32 %v15626_v23, %v17213_v11  ;;  %v17378_v0 = vpop.eup %15627 }
 0x53d   :  { %14855 = vmatpush3.msra.mxu0 %v17016_v44  ;;  %14856 = vmatprep.mubr.msk.f32.mxu0 %vm15890_vm1, %v19485_v1  ;;  %v3645_v44 = vsel %vm868_vm2, %v17378_v0, 0.0 }
 0x53e   :  { %14864 = vmatprep.subr.mxu0 %v19485_v1  ;;  %3643 = vadd.xlane.f32.xlu1 %v3642_v7 }
 0x53f   :  { %14871 = vmatprep.mubr.msk.f32.mxu1 %vm15890_vm1, %v19485_v1  ;;  %14879 = vmatprep.subr.mxu1 %v19485_v1 }
 0x540   :  { %14857 = vmatmul.mubr.msk.f32.vlgmr.msra.gmra.mxu0 %vm868_vm2, %v3664_v12 }
 0x541   :  { %14865 = vmatpush3.msra.mxu0 %v17025_v36  ;;  %14866 = vmatprep.mubr.msk.f32.mxu0 %vm15890_vm1, %v19485_v1 }
 0x542   :  { %3646 = vadd.xlane.f32.xlu1 %v3645_v44  ;;  %14874 = vmatprep.subr.mxu0 %v19485_v1 }
 0x54f   :  { %5995 = vrot.lane.b32.xlu0 %v16715_v61, %s15893_s16 }
 0x553   :  { %6071 = vrot.lane.b32.xlu1 %v16723_v63, %s15893_s16 }
 0x554   :  { %v3584_v59 = vpop.xlane.xlu1 %3583 }
 0x555   :  { %15629 = vrcp.f32 %v3584_v59 }
 0x556   :  { %v3581_v21 = vpop.xlane.xlu0 %3580 }
 0x557   :  { %15631 = vrcp.f32 %v3581_v21  ;;  %v19492_v21 = vld [vmem:[#allocation16_spill] sm:$0xff] }
 0x55e   :  { %v3590_v36 = vpop.xlane.xlu1 %3589 }
 0x55f   :  { %15633 = vrcp.f32 %v3590_v36 }
 0x562   :  { %v15630_v11 = vpop.eup %15629  ;;  %v3587_v8 = vpop.xlane.xlu0 %3586 }
 0x563   :  { %15635 = vrcp.f32 %v3587_v8  ;;  %v3670_v4 = vmul.f32 %v15630_v11, %v17223_v45 }
 0x564   :  { %v15632_v46 = vpop.eup %15631 }
 0x565   :  { %14872 = vmatmul.mubr.msk.f32.vlgmr.msra.gmra.mxu1 %vm868_vm2, %v3670_v4  ;;  %v3668_v31 = vmul.f32 %v15632_v46, %v17228_v29  ;;  %v19493_v4 = vld [vmem:[#allocation20_spill] sm:$0xff] }
 0x566   :  { %14880 = vmatpush3.msra.mxu1 %v17046_v51  ;;  %v3596_v61 = vpop.xlane.xlu1 %3595  ;;  %14881 = vmatprep.mubr.msk.f32.mxu1 %vm15890_vm1, %v19485_v1 }
 0x567   :  { %15637 = vrcp.f32 %v3596_v61  ;;  %14867 = vmatmul.mubr.msk.f32.vlgmr.msra.gmra.mxu0 %vm868_vm2, %v3668_v31  ;;  %14889 = vmatprep.subr.mxu1 %v19485_v1 }
 0x568   :  { %14875 = vmatpush3.msra.mxu0 %v17055_v26  ;;  %v3593_v63 = vpop.xlane.xlu0 %3592  ;;  %14876 = vmatprep.mubr.msk.f32.mxu0 %vm15890_vm1, %v19485_v1 }
 0x569   :  { %15639 = vrcp.f32 %v3593_v63  ;;  %14884 = vmatprep.subr.mxu0 %v19485_v1  ;;  %v19494_v63 = vld [vmem:[#allocation22_spill] sm:$0xff] }
 0x56c   :  { %v15634_v45 = vpop.eup %15633 }
 0x56d   :  { %v3674_v51 = vmul.f32 %v15634_v45, %v17234_v14 }
 0x56e   :  { %v3602_v29 = vpop.xlane.xlu1 %3601 }
 0x56f   :  { %15641 = vrcp.f32 %v3602_v29  ;;  %14882 = vmatmul.mubr.msk.f32.vlgmr.msra.gmra.mxu1 %vm868_vm2, %v3674_v51 }
 0x570   :  { %v15636_v10 = vpop.eup %15635  ;;  %14890 = vmatpush3.msra.mxu1 %v17067_v40  ;;  %14891 = vmatprep.mubr.msk.f32.mxu1 %vm15890_vm1, %v19485_v1 }
 0x571   :  { %v3672_v26 = vmul.f32 %v15636_v10, %v17240_v32  ;;  %14899 = vmatprep.subr.mxu1 %v19485_v1 }
 0x572   :  { %v3599_v24 = vpop.xlane.xlu1 %3598 }
 0x573   :  { %15643 = vrcp.f32 %v3599_v24  ;;  %14877 = vmatmul.mubr.msk.f32.vlgmr.msra.gmra.mxu0 %vm868_vm2, %v3672_v26  ;;  %v19495_v24 = vld [vmem:[#allocation17_spill] sm:$0xff] }
 0x574   :  { %v15638_v3 = vpop.eup %15637  ;;  %14885 = vmatpush3.msra.mxu0 %v17057_v43  ;;  %v3605_v14 = vpop.xlane.xlu0 %3604  ;;  %14886 = vmatprep.mubr.msk.f32.mxu0 %vm15890_vm1, %v19485_v1 }
 0x575   :  { %15645 = vrcp.f32 %v3605_v14  ;;  %v3678_v40 = vmul.f32 %v15638_v3, %v17246_v2  ;;  %14894 = vmatprep.subr.mxu0 %v19485_v1  ;;  %v19496_v3 = vld [vmem:[#allocation21_spill] sm:$0xff] }
 0x576   :  { %v15640_v6 = vpop.eup %15639  ;;  %v3608_v32 = vpop.xlane.xlu1 %3607 }
 0x577   :  { %15647 = vrcp.f32 %v3608_v32  ;;  %14892 = vmatmul.mubr.msk.f32.vlgmr.msra.gmra.mxu1 %vm868_vm2, %v3678_v40  ;;  %v3676_v37 = vmul.f32 %v15640_v6, %v17250_v53  ;;  %v19486_v53 = vld [vmem:[#allocation13_spill] sm:$0xff]  ;;  %v19497_v6 = vld [vmem:[#allocation19_spill] sm:$0xff] }
 0x578   :  { %14900 = vmatpush3.msra.mxu1 %v17074_v15  ;;  %v3614_v30 = vpop.xlane.xlu0 %3613  ;;  %14901 = vmatprep.mubr.msk.f32.mxu1 %vm15890_vm1, %v19485_v1  ;;  %v19498_v32 = vld [vmem:[#allocation23_spill] sm:$0xff] }
 0x579   :  { %15649 = vrcp.f32 %v3614_v30  ;;  %14887 = vmatmul.mubr.msk.f32.vlgmr.msra.gmra.mxu0 %vm868_vm2, %v3676_v37  ;;  %14909 = vmatprep.subr.mxu1 %v19485_v1 }
 0x57a   :  { %14895 = vmatpush3.msra.mxu0 %v17141_v48  ;;  %14896 = vmatprep.mubr.msk.f32.mxu0 %vm15890_vm1, %v19485_v1 }
 0x57b   :  { %14904 = vmatprep.subr.mxu0 %v19485_v1 }
 0x57c   :  { %v15642_v43 = vpop.eup %15641  ;;  %v17463_v22 = vpop.permute.xlu0 %5843 }
 0x57d   :  { %v3682_v2 = vmul.f32 %v15642_v43, %v17254_v42 }
 0x57f   :  { %14902 = vmatmul.mubr.msk.f32.vlgmr.msra.gmra.mxu1 %vm868_vm2, %v3682_v2 }
 0x580   :  { %v15644_v15 = vpop.eup %15643  ;;  %14910 = vmatpush3.msra.mxu1 %v19486_v53  ;;  %14911 = vmatprep.mubr.msk.f32.mxu1 %vm15890_vm1, %v19485_v1 }
 0x581   :  { %v3680_v17 = vmul.f32 %v15644_v15, %v17258_v20  ;;  %14919 = vmatprep.subr.mxu1 %v19485_v1  ;;  %v19488_v20 = vld [vmem:[#allocation15_spill] sm:$0xff] }
 0x582   :  { %v15646_v48 = vpop.eup %15645 }
 0x583   :  { %14897 = vmatmul.mubr.msk.f32.vlgmr.msra.gmra.mxu0 %vm868_vm2, %v3680_v17  ;;  %v3684_v42 = vmul.f32 %v15646_v48, %v17264_v39  ;;  %v17461_v39 = vpop.permute.xlu1 %5919 }
 0x584   :  { %v15648_v35 = vpop.eup %15647  ;;  %14905 = vmatpush3.msra.mxu0 %v19487_v16  ;;  %14906 = vmatprep.mubr.msk.f32.mxu0 %vm15890_vm1, %v19485_v1 }
 0x585   :  { %14914 = vmatprep.subr.mxu0 %v19485_v1  ;;  %v3686_v57 = vmul.f32 %v15648_v35, %v17260_v9  ;;  %v19491_v9 = vld [vmem:[#allocation18_spill] sm:$0xff] }
 0x586   :  { %v15650_v41 = vpop.eup %15649 }
 0x587   :  { %14907 = vmatmul.mubr.msk.f32.vlgmr.msra.gmra.mxu0 %vm868_vm2, %v3684_v42  ;;  %14912 = vmatmul.mubr.msk.f32.vlgmr.msra.gmra.mxu1 %vm868_vm2, %v3686_v57  ;;  %v3690_v38 = vmul.f32 %v15650_v41, %v19490_v58 }
 0x588   :  { %14915 = vmatpush3.msra.mxu0 %v19488_v20  ;;  %14920 = vmatpush3.msra.mxu1 %v19489_v52 }
 0x589   :  { %14921 = vmatprep.mubr.msk.f32.mxu1 %vm15890_vm1, %v19485_v1  ;;  %14929 = vmatprep.subr.mxu1 %v19485_v1 }
 0x58a   :  { %14916 = vmatprep.mubr.msk.f32.mxu0 %vm15890_vm1, %v19485_v1  ;;  %14924 = vmatprep.subr.mxu0 %v19485_v1 }
 0x58b   :  { %14922 = vmatmul.mubr.msk.f32.vlgmr.msra.gmra.mxu1 %vm868_vm2, %v3690_v38 }
 0x58c   :  { %14930 = vmatpush3.msra.mxu1 %v19491_v9  ;;  %14931 = vmatprep.mubr.msk.f32.mxu1 %vm15890_vm1, %v19485_v1 }
 0x58d   :  { %14939 = vmatprep.subr.mxu1 %v19485_v1 }
 0x5ab   :  { %v3611_v25 = vpop.xlane.xlu1 %3610 }
 0x5ac   :  { %15651 = vrcp.f32 %v3611_v25 }
 0x5ad   :  { %v3623_v28 = vpop.xlane.xlu0 %3622 }
 0x5af   :  { %v3620_v18 = vpop.xlane.xlu1 %3619 }
 0x5b0   :  { %15653 = vrcp.f32 %v3620_v18 }
 0x5b1   :  { %v3632_v13 = vpop.xlane.xlu0 %3631 }
 0x5b3   :  { %v3617_v34 = vpop.xlane.xlu1 %3616 }
 0x5b4   :  { %15655 = vrcp.f32 %v3617_v34 }
 0x5b5   :  { %15657 = vrcp.f32 %v3623_v28 }
 0x5b7   :  { %v3626_v23 = vpop.xlane.xlu1 %3625 }
 0x5b8   :  { %15659 = vrcp.f32 %v3626_v23 }
 0x5b9   :  { %v15652_v12 = vpop.eup %15651  ;;  %15661 = vrcp.f32 %v3632_v13 }
 0x5ba   :  { %v3688_v7 = vmul.f32 %v15652_v12, %v17286_v54 }
 0x5bb   :  { %v3629_v44 = vpop.xlane.xlu1 %3628 }
 0x5bc   :  { %15663 = vrcp.f32 %v3629_v44  ;;  %14917 = vmatmul.mubr.msk.f32.vlgmr.msra.gmra.mxu0 %vm868_vm2, %v3688_v7 }
 0x5bd   :  { %v15654_v59 = vpop.eup %15653  ;;  %14925 = vmatpush3.msra.mxu0 %v19492_v21  ;;  %14926 = vmatprep.mubr.msk.f32.mxu0 %vm15890_vm1, %v19485_v1 }
 0x5be   :  { %v3694_v36 = vmul.f32 %v15654_v59, %v17295_v27  ;;  %14934 = vmatprep.subr.mxu0 %v19485_v1  ;;  %v3641_v54 = vpop.xlane.xlu0 %3640 }
 0x5bf   :  { %v3638_v11 = vpop.xlane.xlu1 %3637 }
 0x5c0   :  { %15665 = vrcp.f32 %v3638_v11  ;;  %14932 = vmatmul.mubr.msk.f32.vlgmr.msra.gmra.mxu1 %vm868_vm2, %v3694_v36 }
 0x5c1   :  { %v15656_v8 = vpop.eup %15655  ;;  %14940 = vmatpush3.msra.mxu1 %v19493_v4  ;;  %14941 = vmatprep.mubr.msk.f32.mxu1 %vm15890_vm1, %v19485_v1 }
 0x5c2   :  { %v3692_v46 = vmul.f32 %v15656_v8, %v17311_v19  ;;  %14949 = vmatprep.subr.mxu1 %v19485_v1  ;;  %v15658_v31 = vpop.eup %15657  ;;  %v3650_v29 = vpop.xlane.xlu0 %3649 }
 0x5c3   :  { %v3635_v61 = vpop.xlane.xlu1 %3634  ;;  %v3696_v45 = vmul.f32 %v15658_v31, %v17288_v62 }
 0x5c4   :  { %15667 = vrcp.f32 %v3635_v61  ;;  %14927 = vmatmul.mubr.msk.f32.vlgmr.msra.gmra.mxu0 %vm868_vm2, %v3692_v46 }
 0x5c5   :  { %v15660_v27 = vpop.eup %15659  ;;  %14935 = vmatpush3.msra.mxu0 %v19494_v63  ;;  %14936 = vmatprep.mubr.msk.f32.mxu0 %vm15890_vm1, %v19485_v1  ;;  %15669 = vrcp.f32 %v3641_v54 }
 0x5c6   :  { %14944 = vmatprep.subr.mxu0 %v19485_v1  ;;  %v3698_v19 = vmul.f32 %v15660_v27, %v17323_v50  ;;  %v15662_v51 = vpop.eup %15661  ;;  %v5996_v53 = vpop.permute.xlu0 %5995 }
 0x5c7   :  { %v3644_v10 = vpop.xlane.xlu1 %3643  ;;  %v3702_v50 = vmul.f32 %v15662_v51, %v17304_v60  ;;  %v504_v51 = vld [vmem:[%s19430_s1 + $0x32e] sm:$0xff] }
 0x5c8   :  { %15671 = vrcp.f32 %v3644_v10  ;;  %14937 = vmatmul.mubr.msk.f32.vlgmr.msra.gmra.mxu0 %vm868_vm2, %v3696_v45  ;;  %14942 = vmatmul.mubr.msk.f32.vlgmr.msra.gmra.mxu1 %vm868_vm2, %v3698_v19  ;;  %v503_v10 = vld [vmem:[%s19430_s1 + $0x326] sm:$0xff] }
 0x5c9   :  { %v15664_v26 = vpop.eup %15663  ;;  %14945 = vmatpush3.msra.mxu0 %v19495_v24  ;;  %14950 = vmatpush3.msra.mxu1 %v19496_v3  ;;  %15673 = vrcp.f32 %v3650_v29 }
 0x5ca   :  { %14946 = vmatprep.mubr.msk.f32.mxu0 %vm15890_vm1, %v19485_v1  ;;  %14951 = vmatprep.mubr.msk.f32.mxu1 %vm15890_vm1, %v19485_v1  ;;  %v3700_v62 = vmul.f32 %v15664_v26, %v17327_v5  ;;  %v502_v26 = vld [vmem:[%s19430_s1 + $0x31e] sm:$0xff] }
 0x5cb   :  { %v3647_v14 = vpop.xlane.xlu1 %3646  ;;  %14954 = vmatprep.subr.mxu0 %v19485_v1  ;;  %14959 = vmatprep.subr.mxu1 %v19485_v1 }
 0x5cc   :  { %15675 = vrcp.f32 %v3647_v14  ;;  %14947 = vmatmul.mubr.msk.f32.vlgmr.msra.gmra.mxu0 %vm868_vm2, %v3700_v62  ;;  %14952 = vmatmul.mubr.msk.f32.vlgmr.msra.gmra.mxu1 %vm868_vm2, %v3702_v50  ;;  %v501_v62 = vld [vmem:[%s19430_s1 + $0x316] sm:$0xff] }
 0x5cd   :  { %v15666_v40 = vpop.eup %15665  ;;  %14955 = vmatpush3.msra.mxu0 %v19497_v6  ;;  %14960 = vmatpush3.msra.mxu1 %v19498_v32 }
 0x5ce   :  { %14961 = vmatprep.mubr.msk.f32.mxu1 %vm15890_vm1, %v19485_v1  ;;  %14969 = vmatprep.subr.mxu1 %v19485_v1  ;;  %v3706_v60 = vmul.f32 %v15666_v40, %v17337_v49 }
 0x5cf   :  { %14956 = vmatprep.mubr.msk.f32.mxu0 %vm15890_vm1, %v19485_v1  ;;  %14964 = vmatprep.subr.mxu0 %v19485_v1 }
 0x5d0   :  { %14962 = vmatmul.mubr.msk.f32.vlgmr.msra.gmra.mxu1 %vm868_vm2, %v3706_v60 }
 0x5d1   :  { %v15668_v5 = vpop.eup %15667  ;;  %14970 = vmatpush3.msra.mxu1 %v17461_v39  ;;  %14971 = vmatprep.mubr.msk.f32.mxu1 %vm15890_vm1, %v19485_v1 }
 0x5d2   :  { %v3704_v37 = vmul.f32 %v15668_v5, %v17354_v55  ;;  %14979 = vmatprep.subr.mxu1 %v19485_v1  ;;  %v15670_v30 = vpop.eup %15669  ;;  %v6072_v55 = vpop.permute.xlu1 %6071 }
 0x5d3   :  { %v3708_v43 = vmul.f32 %v15670_v30, %v17340_v56 }
 0x5d4   :  { %14957 = vmatmul.mubr.msk.f32.vlgmr.msra.gmra.mxu0 %vm868_vm2, %v3704_v37 }
 0x5d5   :  { %v15672_v49 = vpop.eup %15671  ;;  %14965 = vmatpush3.msra.mxu0 %v17463_v22  ;;  %14966 = vmatprep.mubr.msk.f32.mxu0 %vm15890_vm1, %v19485_v1 }
 0x5d6   :  { %14974 = vmatprep.subr.mxu0 %v19485_v1  ;;  %v3710_v2 = vmul.f32 %v15672_v49, %v17366_v33  ;;  %v15674_v15 = vpop.eup %15673 }
 0x5d7   :  { %v3714_v33 = vmul.f32 %v15674_v15, %v17348_v47 }
 0x5d8   :  { %14967 = vmatmul.mubr.msk.f32.vlgmr.msra.gmra.mxu0 %vm868_vm2, %v3708_v43  ;;  %14972 = vmatmul.mubr.msk.f32.vlgmr.msra.gmra.mxu1 %vm868_vm2, %v3710_v2 }
 0x5d9   :  { %v15676_v17 = vpop.eup %15675  ;;  %14975 = vmatpush3.msra.mxu0 %v5996_v53  ;;  %14980 = vmatpush3.msra.mxu1 %v6072_v55 }
 0x5da   :  { %14976 = vmatprep.mubr.msk.f32.mxu0 %vm15890_vm1, %v19485_v1  ;;  %14981 = vmatprep.mubr.msk.f32.mxu1 %vm15890_vm1, %v19485_v1  ;;  %v3712_v56 = vmul.f32 %v15676_v17, %v17378_v0 }
 0x5db   :  { %14984 = vmatprep.subr.mxu0 %v504_v51 }
 0x5dc   :  { %14977 = vmatmul.mubr.msk.f32.vlgmr.msra.gmra.mxu0 %vm868_vm2, %v3712_v56  ;;  %14982 = vmatmul.mubr.msk.f32.vlgmr.msra.gmra.mxu1 %vm868_vm2, %v3714_v33 }
 0x5dd   :  { %14985 = vmatpush3.msra.mxu0 %v504_v51 }
 0x5de   :  { %14986 = vmatprep.subr.mxu0 %v503_v10 }
 0x5df   :  { %14987 = vmatpush3.msra.mxu0 %v503_v10 }
 0x5e0   :  { %14988 = vmatprep.subr.mxu0 %v502_v26 }
 0x5e1   :  { %14989 = vmatpush3.msra.mxu0 %v502_v26 }
 0x5e2   :  { %v17531_v48 = vpop.f32.mrf.mxu0  ;;  %14990 = vmatprep.subr.mxu0 %v501_v62 }
 0x5e3   :  { %14991 = vmatpush3.msra.mxu0 %v501_v62 }
 0x5e4   :  { %v14828_v35 = vpop.f32.mrf.mxu0 }
 0x5e6   :  { %v17533_v16 = vpop.f32.mrf.mxu1 }
 0x5e8   :  { %v14833_v42 = vpop.f32.mrf.mxu1 }
 0x5ee   :  { %v17535_v57 = vpop.f32.mrf.mxu0 }
 0x5f0   :  { %v14838_v41 = vpop.f32.mrf.mxu0 }
 0x5f2   :  { %v17537_v20 = vpop.f32.mrf.mxu1 }
 0x5f4   :  { %v14843_v52 = vpop.f32.mrf.mxu1 }
 0x5f7   :  { %v17539_v58 = vpop.f32.mrf.mxu1 }
 0x5f9   :  { %v14853_v0 = vpop.f32.mrf.mxu1 }
 0x5fb   :  { %v17541_v47 = vpop.f32.mrf.mxu1 }
 0x5fc   :  { %v17543_v38 = vpop.f32.mrf.mxu0 }
 0x5fd   :  { %v14863_v9 = vpop.f32.mrf.mxu1 }
 0x5fe   :  { %v14848_v39 = vpop.f32.mrf.mxu0 }
 0x600   :  { %v17545_v25 = vpop.f32.mrf.mxu0 }
 0x602   :  { %v14858_v22 = vpop.f32.mrf.mxu0 }
 0x625   :  { %v4471_v18 = vpop.f32.mrf.mxu1 }
 0x626   :  { %6157 = vrot.lane.b32.xlu1 %v4471_v18, %s15895_s17 }
 0x627   :  { %v4395_v28 = vpop.f32.mrf.mxu0  ;;  %v14873_v34 = vpop.f32.mrf.mxu1 }
 0x628   :  { %6155 = vrot.lane.b32.xlu0 %v4395_v28, %s15895_s17 }
 0x629   :  { %v14868_v13 = vpop.f32.mrf.mxu0 }
 0x62f   :  { %v4623_v23 = vpop.f32.mrf.mxu1 }
 0x630   :  { %6161 = vrot.lane.b32.xlu1 %v4623_v23, %s15895_s17 }
 0x631   :  { %v14883_v12 = vpop.f32.mrf.mxu1 }
 0x633   :  { %v4547_v7 = vpop.f32.mrf.mxu0 }
 0x634   :  { %6159 = vrot.lane.b32.xlu0 %v4547_v7, %s15895_s17 }
 0x635   :  { %v14878_v44 = vpop.f32.mrf.mxu0 }
 0x637   :  { %v4775_v59 = vpop.f32.mrf.mxu1 }
 0x638   :  { %6165 = vrot.lane.b32.xlu1 %v4775_v59, %s15895_s17 }
 0x639   :  { %v4699_v21 = vpop.f32.mrf.mxu0  ;;  %v14893_v36 = vpop.f32.mrf.mxu1 }
 0x63a   :  { %6163 = vrot.lane.b32.xlu0 %v4699_v21, %s15895_s17 }
 0x63b   :  { %v14888_v11 = vpop.f32.mrf.mxu0 }
 0x63f   :  { %v4927_v8 = vpop.f32.mrf.mxu1 }
 0x640   :  { %6169 = vrot.lane.b32.xlu1 %v4927_v8, %s15895_s17 }
 0x641   :  { %v14903_v54 = vpop.f32.mrf.mxu1 }
 0x643   :  { %v4851_v4 = vpop.f32.mrf.mxu0 }
 0x644   :  { %6167 = vrot.lane.b32.xlu0 %v4851_v4, %s15895_s17 }
 0x645   :  { %v14898_v46 = vpop.f32.mrf.mxu0 }
 0x647   :  { %v5003_v31 = vpop.f32.mrf.mxu0  ;;  %v5079_v61 = vpop.f32.mrf.mxu1 }
 0x648   :  { %6189 = vrot.lane.b32.xlu1 %v5079_v61, %s15896_s18  ;;  %6187 = vrot.lane.b32.xlu0 %v5003_v31, %s15896_s18 }
 0x649   :  { %v14908_v27 = vpop.f32.mrf.mxu0  ;;  %v14913_v63 = vpop.f32.mrf.mxu1 }
 0x64b   :  { %v5231_v45 = vpop.f32.mrf.mxu1 }
 0x64c   :  { %6193 = vrot.lane.b32.xlu1 %v5231_v45, %s15896_s18 }
 0x64d   :  { %v14923_v19 = vpop.f32.mrf.mxu1 }
 0x67c   :  { %v5155_v29 = vpop.f32.mrf.mxu0 }
 0x67d   :  { %6191 = vrot.lane.b32.xlu0 %v5155_v29, %s15896_s18 }
 0x67e   :  { %v14918_v24 = vpop.f32.mrf.mxu0 }
 0x680   :  { %v5383_v3 = vpop.f32.mrf.mxu1 }
 0x681   :  { %6197 = vrot.lane.b32.xlu1 %v5383_v3, %s15896_s18 }
 0x682   :  { %v14933_v50 = vpop.f32.mrf.mxu1 }
 0x684   :  { %v5307_v14 = vpop.f32.mrf.mxu0 }
 0x685   :  { %6195 = vrot.lane.b32.xlu0 %v5307_v14, %s15896_s18 }
 0x686   :  { %v14928_v40 = vpop.f32.mrf.mxu0 }
 0x688   :  { %v5459_v6 = vpop.f32.mrf.mxu0  ;;  %v5535_v32 = vpop.f32.mrf.mxu1 }
 0x689   :  { %6201 = vrot.lane.b32.xlu1 %v5535_v32, %s15896_s18  ;;  %6199 = vrot.lane.b32.xlu0 %v5459_v6, %s15896_s18 }
 0x68a   :  { %v14938_v60 = vpop.f32.mrf.mxu0  ;;  %v14943_v5 = vpop.f32.mrf.mxu1 }
 0x68c   :  { %v5611_v37 = vpop.f32.mrf.mxu0  ;;  %v5687_v30 = vpop.f32.mrf.mxu1 }
 0x68d   :  { %6219 = vrot.lane.b32.xlu0 %v5611_v37, %s15897_s26  ;;  %6221 = vrot.lane.b32.xlu1 %v5687_v30, %s15897_s26 }
 0x68e   :  { %v14948_v49 = vpop.f32.mrf.mxu0  ;;  %v14953_v43 = vpop.f32.mrf.mxu1 }
 0x690   :  { %v5839_v2 = vpop.f32.mrf.mxu1 }
 0x691   :  { %6225 = vrot.lane.b32.xlu1 %v5839_v2, %s15897_s26 }
 0x692   :  { %v14963_v15 = vpop.f32.mrf.mxu1 }
 0x694   :  { %v5763_v53 = vpop.f32.mrf.mxu0 }
 0x695   :  { %6223 = vrot.lane.b32.xlu0 %v5763_v53, %s15897_s26 }
 0x696   :  { %v14958_v55 = vpop.f32.mrf.mxu0 }
 0x697   :  { %v19500_v55 = vld [vmem:[#allocation2_spill] sm:$0xff] }
 0x698   :  { %v5915_v17 = vpop.f32.mrf.mxu0  ;;  %v5991_v56 = vpop.f32.mrf.mxu1 }
 0x699   :  { %6227 = vrot.lane.b32.xlu0 %v5915_v17, %s15897_s26  ;;  %6229 = vrot.lane.b32.xlu1 %v5991_v56, %s15897_s26  ;;  %v6158_v9 = vpop.permute.xlu1 %6157 }
 0x69a   :  { %v14968_v33 = vpop.f32.mrf.mxu0  ;;  %v14973_v35 = vpop.f32.mrf.mxu1  ;;  %v6244_v54 = vsel %vm868_vm2, %v17533_v16, %v6158_v9 }
 0x69b   :  { %v6156_v39 = vpop.permute.xlu0 %6155 }
 0x69c   :  { %v6067_v42 = vpop.f32.mrf.mxu0  ;;  %v6143_v41 = vpop.f32.mrf.mxu1  ;;  %v6243_v4 = vsel %vm868_vm2, %v17531_v48, %v6156_v39 }
 0x69d   :  { %6231 = vrot.lane.b32.xlu0 %v6067_v42, %s15897_s26  ;;  %6233 = vrot.lane.b32.xlu1 %v6143_v41, %s15897_s26 }
 0x69e   :  { %v14978_v52 = vpop.f32.mrf.mxu0  ;;  %v14983_v0 = vpop.f32.mrf.mxu1 }
 0x69f   :  { %v19501_v52 = vld [vmem:[#allocation5_spill] sm:$0xff] }
 0x6a2   :  { %v6162_v22 = vpop.permute.xlu1 %6161 }
 0x6a3   :  { %v6246_v48 = vsel %vm868_vm2, %v17537_v20, %v6162_v22  ;;  %v19502_v22 = vld [vmem:[#allocation4_spill] sm:$0xff] }
 0x6a6   :  { %v6160_v18 = vpop.permute.xlu0 %6159 }
 0x6a7   :  { %v6245_v16 = vsel %vm868_vm2, %v17535_v57, %v6160_v18 }
 0x6aa   :  { %v6166_v28 = vpop.permute.xlu1 %6165 }
 0x6ab   :  { %v6248_v57 = vsel %vm868_vm2, %v17539_v58, %v6166_v28 }
 0x6ac   :  { %v6164_v34 = vpop.permute.xlu0 %6163 }
 0x6ad   :  { %v6247_v3 = vsel %vm868_vm2, %v17543_v38, %v6164_v34 }
 0x6b2   :  { %v6170_v13 = vpop.permute.xlu1 %6169 }
 0x6b3   :  { %v6250_v58 = vsel %vm868_vm2, %v17541_v47, %v6170_v13  ;;  %v19499_v47 = vld [vmem:[#allocation3_spill] sm:$0xff] }
 0x6b6   :  { %v6168_v23 = vpop.permute.xlu0 %6167 }
 0x6b7   :  { %v6249_v38 = vsel %vm868_vm2, %v17545_v25, %v6168_v23  ;;  %v13880_v25 = vld [vmem:[%s19430_s1 + $0x312] ss:$0 sm:$0xff]  ;;  %v19503_v23 = vld [vmem:[#allocation7_spill] sm:$0xff] }
 0x6ba   :  { %v6190_v12 = vpop.permute.xlu1 %6189  ;;  %v6188_v7 = vpop.permute.xlu0 %6187 }
 0x6bb   :  { %v6253_v46 = vsel %vm6251_vm4, %v6244_v54, %v6190_v12  ;;  %v6252_v31 = vsel %vm6251_vm4, %v6243_v4, %v6188_v7  ;;  %v19504_v4 = vld [vmem:[#allocation6_spill] sm:$0xff] }
 0x6be   :  { %v6194_v44 = vpop.permute.xlu1 %6193 }
 0x6bf   :  { %v6255_v10 = vsel %vm6251_vm4, %v6246_v48, %v6194_v44 }
 0x6ef   :  { %v6192_v59 = vpop.permute.xlu0 %6191 }
 0x6f0   :  { %v6254_v51 = vsel %vm6251_vm4, %v6245_v16, %v6192_v59 }
 0x6f3   :  { %v6198_v21 = vpop.permute.xlu1 %6197 }
 0x6f4   :  { %v6257_v50 = vsel %vm6251_vm4, %v6248_v57, %v6198_v21 }
 0x6f7   :  { %v6196_v36 = vpop.permute.xlu0 %6195 }
 0x6f8   :  { %v6256_v20 = vsel %vm6251_vm4, %v6247_v3, %v6196_v36 }
 0x6fb   :  { %v6202_v11 = vpop.permute.xlu1 %6201  ;;  %v6200_v8 = vpop.permute.xlu0 %6199 }
 0x6fc   :  { %v6258_v32 = vsel %vm6251_vm4, %v6249_v38, %v6200_v8  ;;  %v6259_v5 = vsel %vm6251_vm4, %v6250_v58, %v6202_v11 }
 0x6ff   :  { %v6222_v61 = vpop.permute.xlu1 %6221  ;;  %v6220_v27 = vpop.permute.xlu0 %6219 }
 0x700   :  { %v6262_v63 = vsel %vm6260_vm5, %v6253_v46, %v6222_v61  ;;  %v6261_v45 = vsel %vm6260_vm5, %v6252_v31, %v6220_v27  ;;  %v19505_v27 = vld [vmem:[#allocation9_spill] sm:$0xff] }
 0x701   :  { %14992 = vmatprep.mubr.msk.f32.mxu0 %vm523_vm0, %v6261_v45 }
 0x702   :  { %14993 = vmatmul.mubr.msk.f32.vlgmr.msra.gmra.mxu0 %vm523_vm0, %v6262_v63 }
 0x703   :  { %v6226_v19 = vpop.permute.xlu1 %6225 }
 0x704   :  { %v6264_v24 = vsel %vm6260_vm5, %v6255_v10, %v6226_v19 }
 0x707   :  { %v6224_v29 = vpop.permute.xlu0 %6223 }
 0x708   :  { %v6263_v26 = vsel %vm6260_vm5, %v6254_v51, %v6224_v29 }
 0x709   :  { %14995 = vmatprep.mubr.msk.f32.mxu0 %vm523_vm0, %v6263_v26  ;;  %v19506_v26 = vld [vmem:[#allocation8_spill] sm:$0xff] }
 0x70a   :  { %14996 = vmatmul.mubr.msk.f32.gmra.mxu0 %vm523_vm0, %v6264_v24 }
 0x70b   :  { %v6228_v62 = vpop.permute.xlu0 %6227  ;;  %v6230_v14 = vpop.permute.xlu1 %6229 }
 0x70c   :  { %v6265_v40 = vsel %vm6260_vm5, %v6256_v20, %v6228_v62  ;;  %v6266_v6 = vsel %vm6260_vm5, %v6257_v50, %v6230_v14 }
 0x70d   :  { %14998 = vmatprep.mubr.msk.f32.mxu0 %vm523_vm0, %v6265_v40 }
 0x70e   :  { %14999 = vmatmul.mubr.msk.f32.gmra.mxu0 %vm523_vm0, %v6266_v6 }
 0x70f   :  { %v6232_v60 = vpop.permute.xlu0 %6231  ;;  %v6234_v37 = vpop.permute.xlu1 %6233 }
 0x710   :  { %v6267_v30 = vsel %vm6260_vm5, %v6258_v32, %v6232_v60  ;;  %v6268_v49 = vsel %vm6260_vm5, %v6259_v5, %v6234_v37  ;;  %v521_v32 = vld [vmem:[%s19433_s3 + $0x18] sm:$0xff]  ;;  %v520_v60 = vld [vmem:[%s19433_s3 + $0x10] sm:$0xff]  ;;  %v519_v5 = vld [vmem:[%s19433_s3 + $0x8] sm:$0xff] }
 0x711   :  { %15001 = vmatprep.mubr.msk.f32.mxu0 %vm523_vm0, %v6267_v30  ;;  %15004 = vmatprep.subr.mxu1 %v521_v32  ;;  %v518_v37 = vld [vmem:[%s19433_s3] sm:$0xff] }
 0x712   :  { %15002 = vmatmul.mubr.msk.f32.gmra.mxu0 %vm523_vm0, %v6268_v49  ;;  %15005 = vmatpush3.msra.mxu1 %v521_v32 }
 0x713   :  { %15006 = vmatprep.subr.mxu1 %v520_v60 }
 0x714   :  { %15007 = vmatpush3.msra.mxu1 %v520_v60 }
 0x715   :  { %15008 = vmatprep.subr.mxu1 %v519_v5 }
 0x716   :  { %15009 = vmatpush3.msra.mxu1 %v519_v5 }
 0x717   :  { %15010 = vmatprep.subr.mxu1 %v518_v37 }
 0x718   :  { %15011 = vmatpush3.msra.mxu1 %v518_v37 }
 0x7c2   :  { %v14994_v43 = vpop.f32.mrf.mxu0 }
 0x7c3   :  { %v6399_v2 = vadd.f32 %v14994_v43, %v19499_v47 }
 0x7c4   :  { %v6359_v15 = vpop.f32.mrf.mxu0 }
 0x7c5   :  { %v17627_v53 = vadd.f32 %v13880_v25, %v6399_v2  ;;  %v6398_v17 = vadd.f32 %v6359_v15, %v19500_v55 }
 0x7c7   :  { %v17630_v56 = vadd.f32 %v13880_v25, %v6398_v17  ;;  %v6421_v33 = vsel %vm523_vm0, %v17627_v53, 0.0  ;;  %v6451_v42 = vmul.f32 %v17627_v53, %v17627_v53 }
 0x7c8   :  { %6422 = vadd.xlane.f32.xlu1 %v6421_v33 }
 0x7c9   :  { %v6418_v35 = vsel %vm523_vm0, %v17630_v56, 0.0  ;;  %v6461_v28 = vsel %vm523_vm0, %v6451_v42, 0.0  ;;  %v6450_v34 = vmul.f32 %v17630_v56, %v17630_v56 }
 0x7ca   :  { %6419 = vadd.xlane.f32.xlu0 %v6418_v35  ;;  %v14997_v41 = vpop.f32.mrf.mxu0 }
 0x7cb   :  { %v6401_v0 = vadd.f32 %v14997_v41, %v19501_v52  ;;  %v6458_v36 = vsel %vm523_vm0, %v6450_v34, 0.0 }
 0x7cc   :  { %v6369_v9 = vpop.f32.mrf.mxu0 }
 0x7cd   :  { %v17639_v39 = vadd.f32 %v13880_v25, %v6401_v0  ;;  %v6400_v18 = vadd.f32 %v6369_v9, %v19502_v22 }
 0x7ce   :  { %6462 = vadd.xlane.f32.xlu0 %v6461_v28  ;;  %v15000_v13 = vpop.f32.mrf.mxu0 }
 0x7cf   :  { %v6403_v12 = vadd.f32 %v15000_v13, %v19503_v23  ;;  %v6427_v7 = vsel %vm523_vm0, %v17639_v39, 0.0  ;;  %v6453_v44 = vmul.f32 %v17639_v39, %v17639_v39  ;;  %v17650_v21 = vadd.f32 %v13880_v25, %v6400_v18 }
 0x7d0   :  { %6428 = vadd.xlane.f32.xlu1 %v6427_v7  ;;  %v6379_v59 = vpop.f32.mrf.mxu0 }
 0x7d1   :  { %v17653_v11 = vadd.f32 %v13880_v25, %v6403_v12  ;;  %v6467_v8 = vsel %vm523_vm0, %v6453_v44, 0.0  ;;  %v6402_v46 = vadd.f32 %v6379_v59, %v19504_v4  ;;  %v6424_v31 = vsel %vm523_vm0, %v17650_v21, 0.0 }
 0x7d2   :  { %6459 = vadd.xlane.f32.xlu0 %v6458_v36  ;;  %v15003_v54 = vpop.f32.mrf.mxu0  ;;  %v6452_v61 = vmul.f32 %v17650_v21, %v17650_v21 }
 0x7d3   :  { %v6405_v63 = vadd.f32 %v15003_v54, %v19505_v27  ;;  %v6433_v45 = vsel %vm523_vm0, %v17653_v11, 0.0  ;;  %v6455_v16 = vmul.f32 %v17653_v11, %v17653_v11  ;;  %v17666_v19 = vadd.f32 %v13880_v25, %v6402_v46 }
 0x7d4   :  { %6468 = vadd.xlane.f32.xlu1 %v6467_v8  ;;  %v6464_v48 = vsel %vm523_vm0, %v6452_v61, 0.0  ;;  %v6389_v51 = vpop.f32.mrf.mxu0 }
 0x7d5   :  { %v17669_v29 = vadd.f32 %v13880_v25, %v6405_v63  ;;  %v6473_v10 = vsel %vm523_vm0, %v6455_v16, 0.0  ;;  %v6404_v24 = vadd.f32 %v6389_v51, %v19506_v26  ;;  %v6430_v3 = vsel %vm523_vm0, %v17666_v19, 0.0 }
 0x7d6   :  { %6425 = vadd.xlane.f32.xlu0 %v6424_v31  ;;  %v6454_v57 = vmul.f32 %v17666_v19, %v17666_v19 }
 0x7d7   :  { %v6439_v20 = vsel %vm523_vm0, %v17669_v29, 0.0  ;;  %v6457_v62 = vmul.f32 %v17669_v29, %v17669_v29  ;;  %v17681_v50 = vadd.f32 %v13880_v25, %v6404_v24 }
 0x7d8   :  { %6434 = vadd.xlane.f32.xlu1 %v6433_v45  ;;  %v6470_v14 = vsel %vm523_vm0, %v6454_v57, 0.0 }
 0x7d9   :  { %v6479_v40 = vsel %vm523_vm0, %v6457_v62, 0.0  ;;  %v6436_v6 = vsel %vm523_vm0, %v17681_v50, 0.0  ;;  %v6456_v38 = vmul.f32 %v17681_v50, %v17681_v50 }
 0x7da   :  { %6465 = vadd.xlane.f32.xlu0 %v6464_v48 }
 0x7db   :  { %v6476_v58 = vsel %vm523_vm0, %v6456_v38, 0.0 }
 0x7dc   :  { %6474 = vadd.xlane.f32.xlu1 %v6473_v10 }
 0x7de   :  { %6431 = vadd.xlane.f32.xlu0 %v6430_v3 }
 0x7e0   :  { %6440 = vadd.xlane.f32.xlu1 %v6439_v20 }
 0x7e2   :  { %6471 = vadd.xlane.f32.xlu0 %v6470_v14 }
 0x7e4   :  { %6480 = vadd.xlane.f32.xlu1 %v6479_v40 }
 0x7e6   :  { %6437 = vadd.xlane.f32.xlu0 %v6436_v6 }
 0x7ea   :  { %6477 = vadd.xlane.f32.xlu0 %v6476_v58 }
 0x851   :  { %v6423_v30 = vpop.xlane.xlu1 %6422 }
 0x852   :  { %v6443_v25 = vmul.f32 0.03125, %v6423_v30 }
 0x853   :  { %v6420_v49 = vpop.xlane.xlu0 %6419 }
 0x854   :  { %v6491_v47 = vmul.f32 %v6443_v25, %v6443_v25  ;;  %v17702_v2 = vmul.f32 0.03125, %v6420_v49  ;;  %v6515_v6 = vsub.f32 %v17627_v53, %v6443_v25 }
 0x856   :  { %v6490_v42 = vmul.f32 %v17702_v2, %v17702_v2  ;;  %v6514_v25 = vsub.f32 %v17630_v56, %v17702_v2 }
 0x857   :  { %v6463_v43 = vpop.xlane.xlu0 %6462 }
 0x858   :  { %v6483_v15 = vmul.f32 0.03125, %v6463_v43 }
 0x859   :  { %v6429_v55 = vpop.xlane.xlu1 %6428 }
 0x85a   :  { %v6499_v17 = vsub.f32 %v6483_v15, %v6491_v47  ;;  %v17704_v33 = vmul.f32 0.03125, %v6429_v55  ;;  %v13881_v47 = vld [vmem:[%s19430_s1 + $0x30c] ss:$0 sm:$0xff] }
 0x85b   :  { %v6460_v35 = vpop.xlane.xlu0 %6459 }
 0x85c   :  { %v6507_v41 = vmax.f32 %v6499_v17, 0.0  ;;  %v6482_v52 = vmul.f32 0.03125, %v6460_v35  ;;  %v6493_v22 = vmul.f32 %v17704_v33, %v17704_v33 }
 0x85d   :  { %v6469_v0 = vpop.xlane.xlu1 %6468 }
 0x85e   :  { %v6523_v9 = vadd.f32 1e-12, %v6507_v41  ;;  %v6498_v18 = vsub.f32 %v6482_v52, %v6490_v42  ;;  %v6485_v28 = vmul.f32 0.03125, %v6469_v0 }
 0x85f   :  { %v6426_v34 = vpop.xlane.xlu0 %6425 }
 0x860   :  { %15677 = vrsqrt.f32 %v6523_v9  ;;  %v6506_v13 = vmax.f32 %v6498_v18, 0.0  ;;  %v6501_v23 = vsub.f32 %v6485_v28, %v6493_v22  ;;  %v17710_v12 = vmul.f32 0.03125, %v6426_v34  ;;  %v13882_v28 = vld [vmem:[%s19430_s1 + $0x30d] ss:$0 sm:$0xff] }
 0x861   :  { %v6435_v7 = vpop.xlane.xlu1 %6434  ;;  %v6517_v18 = vsub.f32 %v17639_v39, %v17704_v33 }
 0x862   :  { %v6522_v44 = vadd.f32 1e-12, %v6506_v13  ;;  %v6509_v59 = vmax.f32 %v6501_v23, 0.0  ;;  %v17712_v36 = vmul.f32 0.03125, %v6435_v7  ;;  %v6492_v4 = vmul.f32 %v17710_v12, %v17710_v12 }
 0x863   :  { %v6466_v8 = vpop.xlane.xlu0 %6465  ;;  %v6516_v7 = vsub.f32 %v17650_v21, %v17710_v12 }
 0x864   :  { %15679 = vrsqrt.f32 %v6522_v44  ;;  %v6525_v54 = vadd.f32 1e-12, %v6509_v59  ;;  %v6484_v46 = vmul.f32 0.03125, %v6466_v8  ;;  %v6495_v61 = vmul.f32 %v17712_v36, %v17712_v36 }
 0x865   :  { %v6475_v31 = vpop.xlane.xlu1 %6474 }
 0x866   :  { %v6500_v27 = vsub.f32 %v6484_v46, %v6492_v4  ;;  %v6487_v63 = vmul.f32 0.03125, %v6475_v31  ;;  %15681 = vrsqrt.f32 %v6525_v54 }
 0x867   :  { %v6432_v45 = vpop.xlane.xlu0 %6431 }
 0x868   :  { %v6508_v16 = vmax.f32 %v6500_v27, 0.0  ;;  %v6503_v48 = vsub.f32 %v6487_v63, %v6495_v61  ;;  %v17718_v51 = vmul.f32 0.03125, %v6432_v45  ;;  %v6519_v61 = vsub.f32 %v17653_v11, %v17712_v36 }
 0x869   :  { %v6441_v10 = vpop.xlane.xlu1 %6440 }
 0x86a   :  { %v6524_v26 = vadd.f32 1e-12, %v6508_v16  ;;  %v6511_v24 = vmax.f32 %v6503_v48, 0.0  ;;  %v17720_v3 = vmul.f32 0.03125, %v6441_v10  ;;  %v6494_v62 = vmul.f32 %v17718_v51, %v17718_v51 }
 0x86b   :  { %v6472_v57 = vpop.xlane.xlu0 %6471  ;;  %v6518_v12 = vsub.f32 %v17666_v19, %v17718_v51 }
 0x86c   :  { %15683 = vrsqrt.f32 %v6524_v26  ;;  %v6527_v20 = vadd.f32 1e-12, %v6511_v24  ;;  %v6486_v14 = vmul.f32 0.03125, %v6472_v57  ;;  %v6497_v58 = vmul.f32 %v17720_v3, %v17720_v3 }
 0x86d   :  { %v15678_v40 = vpop.eup %15677  ;;  %v6481_v38 = vpop.xlane.xlu1 %6480  ;;  %v6521_v57 = vsub.f32 %v17669_v29, %v17720_v3  ;;  %v512_v3 = vld [vmem:[%s19430_s1 + $0x38e] sm:$0xff] }
 0x86e   :  { %v6502_v32 = vsub.f32 %v6486_v14, %v6494_v62  ;;  %v6489_v60 = vmul.f32 0.03125, %v6481_v38  ;;  %15685 = vrsqrt.f32 %v6527_v20  ;;  %v6539_v37 = vmul.f32 %v15678_v40, %v6515_v6  ;;  %15024 = vmatprep.subr.mxu0 %v512_v3 }
 0x86f   :  { %v6438_v5 = vpop.xlane.xlu0 %6437  ;;  %15025 = vmatpush3.msra.mxu0 %v512_v3 }
 0x870   :  { %v6510_v30 = vmax.f32 %v6502_v32, 0.0  ;;  %v6505_v49 = vsub.f32 %v6489_v60, %v6497_v58  ;;  %v6448_v43 = vmul.f32 0.03125, %v6438_v5  ;;  %v6551_v41 = vmul.f32 %v13881_v47, %v6539_v37  ;;  %v511_v60 = vld [vmem:[%s19430_s1 + $0x386] sm:$0xff]  ;;  %v510_v5 = vld [vmem:[%s19430_s1 + $0x37e] sm:$0xff]  ;;  %v509_v37 = vld [vmem:[%s19430_s1 + $0x376] sm:$0xff] }
 0x871   :  { %v15680_v15 = vpop.eup %15679  ;;  %15026 = vmatprep.subr.mxu0 %v511_v60 }
 0x872   :  { %v6526_v55 = vadd.f32 1e-12, %v6510_v30  ;;  %v6513_v17 = vmax.f32 %v6505_v49, 0.0  ;;  %v6538_v42 = vmul.f32 %v15680_v15, %v6514_v25  ;;  %v6496_v9 = vmul.f32 %v6448_v43, %v6448_v43  ;;  %15027 = vmatpush3.msra.mxu0 %v511_v60  ;;  %v508_v30 = vld [vmem:[%s19430_s1 + $0x36e] sm:$0xff]  ;;  %v507_v49 = vld [vmem:[%s19430_s1 + $0x366] sm:$0xff] }
 0x873   :  { %v6478_v35 = vpop.xlane.xlu0 %6477  ;;  %v15682_v52 = vpop.eup %15681  ;;  %v6563_v59 = vadd.f32 %v13882_v28, %v6551_v41  ;;  %v6520_v14 = vsub.f32 %v17681_v50, %v6448_v43  ;;  %15028 = vmatprep.subr.mxu0 %v510_v5  ;;  %v506_v43 = vld [vmem:[%s19430_s1 + $0x35e] sm:$0xff] }
 0x874   :  { %15687 = vrsqrt.f32 %v6526_v55  ;;  %v6529_v0 = vadd.f32 1e-12, %v6513_v17  ;;  %v6488_v22 = vmul.f32 0.03125, %v6478_v35  ;;  %v6550_v34 = vmul.f32 %v13881_v47, %v6538_v42  ;;  %15029 = vmatpush3.msra.mxu0 %v510_v5  ;;  %v13883_v15 = vld [vmem:[%s19433_s3 + $0x20] ss:$0 sm:$0xff] }
 0x875   :  { %v6541_v23 = vmul.f32 %v15682_v52, %v6517_v18  ;;  %15030 = vmatprep.subr.mxu0 %v509_v37 }
 0x876   :  { %v6504_v13 = vsub.f32 %v6488_v22, %v6496_v9  ;;  %15689 = vrsqrt.f32 %v6529_v0  ;;  %v6562_v2 = vadd.f32 %v13882_v28, %v6550_v34  ;;  %15031 = vmatpush3.msra.mxu0 %v509_v37 }
 0x877   :  { %v6553_v4 = vmul.f32 %v13881_v47, %v6541_v23  ;;  %15032 = vmatprep.subr.mxu0 %v508_v30 }
 0x878   :  { %v6512_v44 = vmax.f32 %v6504_v13, 0.0  ;;  %15012 = vmatprep.mubr.msk.f32.mxu1 %vm523_vm0, %v6562_v2  ;;  %15033 = vmatpush3.msra.mxu0 %v508_v30 }
 0x879   :  { %v15684_v8 = vpop.eup %15683  ;;  %15013 = vmatmul.mubr.msk.f32.vlgmr.msra.gmra.mxu1 %vm523_vm0, %v6563_v59  ;;  %v6565_v63 = vadd.f32 %v13882_v28, %v6553_v4  ;;  %15034 = vmatprep.subr.mxu0 %v507_v49 }
 0x87a   :  { %v6528_v54 = vadd.f32 1e-12, %v6512_v44  ;;  %v6540_v33 = vmul.f32 %v15684_v8, %v6516_v7  ;;  %15035 = vmatpush3.msra.mxu0 %v507_v49 }
 0x87b   :  { %v15686_v46 = vpop.eup %15685  ;;  %15036 = vmatprep.subr.mxu0 %v506_v43 }
 0x87c   :  { %15691 = vrsqrt.f32 %v6528_v54  ;;  %v6552_v31 = vmul.f32 %v13881_v47, %v6540_v33  ;;  %v6543_v45 = vmul.f32 %v15686_v46, %v6519_v61  ;;  %15037 = vmatpush3.msra.mxu0 %v506_v43 }
 0x87e   :  { %v6564_v27 = vadd.f32 %v13882_v28, %v6552_v31  ;;  %v6555_v10 = vmul.f32 %v13881_v47, %v6543_v45 }
 0x880   :  { %15015 = vmatprep.mubr.msk.f32.mxu1 %vm523_vm0, %v6564_v27  ;;  %v6567_v36 = vadd.f32 %v13882_v28, %v6555_v10 }
 0x881   :  { %v15688_v16 = vpop.eup %15687  ;;  %15016 = vmatmul.mubr.msk.f32.gmra.mxu1 %vm523_vm0, %v6565_v63 }
 0x882   :  { %v6542_v48 = vmul.f32 %v15688_v16, %v6518_v12 }
 0x883   :  { %v15690_v26 = vpop.eup %15689 }
 0x884   :  { %v6554_v24 = vmul.f32 %v13881_v47, %v6542_v48  ;;  %v6545_v62 = vmul.f32 %v15690_v26, %v6521_v57 }
 0x886   :  { %v6566_v20 = vadd.f32 %v13882_v28, %v6554_v24  ;;  %v6557_v6 = vmul.f32 %v13881_v47, %v6545_v62 }
 0x888   :  { %15018 = vmatprep.mubr.msk.f32.mxu1 %vm523_vm0, %v6566_v20  ;;  %v6569_v32 = vadd.f32 %v13882_v28, %v6557_v6 }
 0x889   :  { %v15692_v51 = vpop.eup %15691  ;;  %15019 = vmatmul.mubr.msk.f32.gmra.mxu1 %vm523_vm0, %v6567_v36 }
 0x88a   :  { %v6544_v40 = vmul.f32 %v15692_v51, %v6520_v14 }
 0x88c   :  { %v6556_v38 = vmul.f32 %v13881_v47, %v6544_v40  ;;  %v505_v47 = vld [vmem:[%s19430_s1 + $0x356] sm:$0xff] }
 0x88d   :  { %15038 = vmatprep.subr.mxu0 %v505_v47 }
 0x88e   :  { %v6568_v58 = vadd.f32 %v13882_v28, %v6556_v38  ;;  %15039 = vmatpush3.msra.mxu0 %v505_v47 }
 0x88f   :  { %15072 = vmatprep.subr.mxu0 %v19485_v1 }
 0x890   :  { %15021 = vmatprep.mubr.msk.f32.mxu1 %vm523_vm0, %v6568_v58 }
 0x891   :  { %15022 = vmatmul.mubr.msk.f32.gmra.mxu1 %vm523_vm0, %v6569_v32 }
 0x939   :  { %v15014_v25 = vpop.f32.mrf.mxu1 }
 0x93a   :  { %v6670_v55 = vadd.f32 %v15014_v25, %v13883_v15 }
 0x93b   :  { %v6664_v17 = vpop.f32.mrf.mxu1 }
 0x93c   :  { %v6712_v35 = vmul.f32 0.044715, %v6670_v55  ;;  %v6665_v42 = vadd.f32 %v13883_v15, %v6664_v17  ;;  %v6704_v25 = vmul.f32 0.5, %v6670_v55 }
 0x93e   :  { %v6720_v41 = vmul.f32 %v6712_v35, %v6670_v55  ;;  %v6711_v52 = vmul.f32 0.044715, %v6665_v42  ;;  %v6703_v43 = vmul.f32 0.5, %v6665_v42 }
 0x940   :  { %v6728_v0 = vmul.f32 %v6720_v41, %v6670_v55  ;;  %v6719_v9 = vmul.f32 %v6711_v52, %v6665_v42 }
 0x941   :  { %v15017_v22 = vpop.f32.mrf.mxu1 }
 0x942   :  { %v17782_v18 = vadd.f32 %v15017_v22, %v13883_v15  ;;  %v6736_v28 = vadd.f32 %v6728_v0, %v6670_v55  ;;  %v6727_v34 = vmul.f32 %v6719_v9, %v6665_v42 }
 0x943   :  { %v6674_v13 = vpop.f32.mrf.mxu1 }
 0x944   :  { %v6714_v2 = vmul.f32 0.044715, %v17782_v18  ;;  %v6675_v23 = vadd.f32 %v13883_v15, %v6674_v13  ;;  %v6744_v7 = vmul.f32 0.7978846, %v6736_v28  ;;  %v6735_v44 = vadd.f32 %v6727_v34, %v6665_v42 }
 0x945   :  { %v6706_v55 = vmul.f32 0.5, %v17782_v18 }
 0x946   :  { %v6722_v59 = vmul.f32 %v6714_v2, %v17782_v18  ;;  %v6713_v8 = vmul.f32 0.044715, %v6675_v23  ;;  %15693 = vtanh.f32 %v6744_v7  ;;  %v6743_v54 = vmul.f32 0.7978846, %v6735_v44 }
 0x947   :  { %v6705_v42 = vmul.f32 0.5, %v6675_v23 }
 0x948   :  { %v6730_v33 = vmul.f32 %v6722_v59, %v17782_v18  ;;  %v6721_v4 = vmul.f32 %v6713_v8, %v6675_v23  ;;  %15695 = vtanh.f32 %v6743_v54 }
 0x949   :  { %v15020_v46 = vpop.f32.mrf.mxu1 }
 0x94a   :  { %v6738_v31 = vadd.f32 %v6730_v33, %v17782_v18  ;;  %v6729_v61 = vmul.f32 %v6721_v4, %v6675_v23  ;;  %v6690_v27 = vadd.f32 %v15020_v46, %v13883_v15 }
 0x94b   :  { %v6684_v63 = vpop.f32.mrf.mxu1 }
 0x94c   :  { %v6737_v45 = vadd.f32 %v6729_v61, %v6675_v23  ;;  %v6716_v12 = vmul.f32 0.044715, %v6690_v27  ;;  %v6685_v16 = vadd.f32 %v13883_v15, %v6684_v63  ;;  %v6746_v48 = vmul.f32 0.7978846, %v6738_v31 }
 0x94d   :  { %v6708_v31 = vmul.f32 0.5, %v6690_v27 }
 0x94e   :  { %v6724_v10 = vmul.f32 %v6716_v12, %v6690_v27  ;;  %v6715_v26 = vmul.f32 0.044715, %v6685_v16  ;;  %v6745_v24 = vmul.f32 0.7978846, %v6737_v45  ;;  %15697 = vtanh.f32 %v6746_v48 }
 0x94f   :  { %v6707_v4 = vmul.f32 0.5, %v6685_v16 }
 0x950   :  { %v6732_v57 = vmul.f32 %v6724_v10, %v6690_v27  ;;  %v6723_v20 = vmul.f32 %v6715_v26, %v6685_v16  ;;  %15699 = vtanh.f32 %v6745_v24 }
 0x951   :  { %v15023_v36 = vpop.f32.mrf.mxu1 }
 0x952   :  { %v6740_v62 = vadd.f32 %v6732_v57, %v6690_v27  ;;  %v6731_v14 = vmul.f32 %v6723_v20, %v6685_v16  ;;  %v6700_v51 = vadd.f32 %v15023_v36, %v13883_v15  ;;  %v13900_v27 = vld [vmem:[%s19430_s1 + $0x314] ss:$0 sm:$0xff] }
 0x953   :  { %v6694_v40 = vpop.f32.mrf.mxu1  ;;  %v15694_v6 = vpop.eup %15693 }
 0x954   :  { %v6739_v38 = vadd.f32 %v6731_v14, %v6685_v16  ;;  %v6718_v58 = vmul.f32 0.044715, %v6700_v51  ;;  %v6695_v32 = vadd.f32 %v13883_v15, %v6694_v40  ;;  %v6748_v3 = vmul.f32 0.7978846, %v6740_v62 }
 0x955   :  { %v6760_v60 = vadd.f32 1.0, %v15694_v6  ;;  %v15696_v5 = vpop.eup %15695  ;;  %v6710_v10 = vmul.f32 0.5, %v6700_v51 }
 0x956   :  { %v6726_v37 = vmul.f32 %v6718_v58, %v6700_v51  ;;  %v6717_v30 = vmul.f32 0.044715, %v6695_v32  ;;  %v6747_v49 = vmul.f32 0.7978846, %v6739_v38  ;;  %15701 = vtanh.f32 %v6748_v3 }
 0x957   :  { %v6759_v47 = vadd.f32 1.0, %v15696_v5  ;;  %v6768_v52 = vmul.f32 %v6760_v60, %v6704_v25  ;;  %v6709_v12 = vmul.f32 0.5, %v6695_v32 }
 0x958   :  { %v6734_v17 = vmul.f32 %v6726_v37, %v6700_v51  ;;  %v6725_v35 = vmul.f32 %v6717_v30, %v6695_v32  ;;  %15703 = vtanh.f32 %v6747_v49 }
 0x959   :  { %v6767_v41 = vmul.f32 %v6759_v47, %v6703_v43 }
 0x95a   :  { %v6742_v0 = vadd.f32 %v6734_v17, %v6700_v51  ;;  %v6733_v9 = vmul.f32 %v6725_v35, %v6695_v32 }
 0x95b   :  { %v15698_v22 = vpop.eup %15697  ;;  %15040 = vmatprep.mubr.msk.f32.mxu0 %vm6775_vm6, %v6767_v41 }
 0x95c   :  { %v6741_v15 = vadd.f32 %v6733_v9, %v6695_v32  ;;  %15041 = vmatmul.mubr.msk.f32.vlgmr.msra.gmra.mxu0 %vm6775_vm6, %v6768_v52  ;;  %v6750_v28 = vmul.f32 0.7978846, %v6742_v0  ;;  %v6762_v13 = vadd.f32 1.0, %v15698_v22 }
 0x95d   :  { %v15700_v34 = vpop.eup %15699 }
 0x95e   :  { %v6761_v2 = vadd.f32 1.0, %v15700_v34  ;;  %v6749_v7 = vmul.f32 0.7978846, %v6741_v15  ;;  %15705 = vtanh.f32 %v6750_v28  ;;  %v6770_v59 = vmul.f32 %v6762_v13, %v6706_v55 }
 0x960   :  { %v6769_v44 = vmul.f32 %v6761_v2, %v6705_v42  ;;  %15707 = vtanh.f32 %v6749_v7 }
 0x962   :  { %15043 = vmatprep.mubr.msk.f32.mxu0 %vm6775_vm6, %v6769_v44 }
 0x963   :  { %v15702_v8 = vpop.eup %15701  ;;  %15044 = vmatmul.mubr.msk.f32.gmra.mxu0 %vm6775_vm6, %v6770_v59 }
 0x964   :  { %v6764_v33 = vadd.f32 1.0, %v15702_v8 }
 0x965   :  { %v15704_v54 = vpop.eup %15703 }
 0x966   :  { %v6763_v46 = vadd.f32 1.0, %v15704_v54  ;;  %v6772_v23 = vmul.f32 %v6764_v33, %v6708_v31  ;;  %v13904_v33 = vld [vmem:[%s19432_s2 + $0x40] sm:$0xff]  ;;  %v13901_v31 = vld [vmem:[%s19432_s2 + $0x28] sm:$0xff] }
 0x967   :  { %15052 = vmatprep.subr.mxu1 %v13904_v33 }
 0x968   :  { %v6771_v61 = vmul.f32 %v6763_v46, %v6707_v4  ;;  %15053 = vmatpush3.msra.mxu1 %v13904_v33  ;;  %v13903_v4 = vld [vmem:[%s19432_s2 + $0x38] sm:$0xff]  ;;  %v13902_v46 = vld [vmem:[%s19432_s2 + $0x30] sm:$0xff] }
 0x969   :  { %15054 = vmatprep.subr.mxu1 %v13903_v4 }
 0x96a   :  { %15046 = vmatprep.mubr.msk.f32.mxu0 %vm6775_vm6, %v6771_v61  ;;  %15055 = vmatpush3.msra.mxu1 %v13903_v4 }
 0x96b   :  { %v15706_v63 = vpop.eup %15705  ;;  %15047 = vmatmul.mubr.msk.f32.gmra.mxu0 %vm6775_vm6, %v6772_v23  ;;  %15056 = vmatprep.subr.mxu1 %v13902_v46 }
 0x96c   :  { %v6766_v45 = vadd.f32 1.0, %v15706_v63  ;;  %15057 = vmatpush3.msra.mxu1 %v13902_v46 }
 0x96d   :  { %v15708_v18 = vpop.eup %15707  ;;  %15058 = vmatprep.subr.mxu1 %v13901_v31 }
 0x96e   :  { %v6765_v48 = vadd.f32 1.0, %v15708_v18  ;;  %v6774_v24 = vmul.f32 %v6766_v45, %v6710_v10  ;;  %15059 = vmatpush3.msra.mxu1 %v13901_v31  ;;  %v13911_v31 = vld [vmem:[%s19430_s1 + $0x30e] ss:$0 sm:$0xff] }
 0x96f   :  { %15077 = vmatprep.subr.mxu1 %v19485_v1 }
 0x970   :  { %v6773_v26 = vmul.f32 %v6765_v48, %v6709_v12 }
 0x972   :  { %15049 = vmatprep.mubr.msk.f32.mxu0 %vm6775_vm6, %v6773_v26 }
 0x973   :  { %15050 = vmatmul.mubr.msk.f32.gmra.mxu0 %vm6775_vm6, %v6774_v24 }
 0x974   :  { %15074 = vmatprep.mubr.msk.f32.mxu0 %vm15890_vm1, %v19485_v1 }
 0xa1c   :  { %v15042_v16 = vpop.f32.mrf.mxu0 }
 0xa1d   :  { %v6906_v57 = vadd.f32 %v15042_v16, %v17627_v53 }
 0xa1e   :  { %v6866_v20 = vpop.f32.mrf.mxu0 }
 0xa1f   :  { %v17803_v36 = vadd.f32 %v13900_v27, %v6906_v57  ;;  %v6905_v62 = vadd.f32 %v6866_v20, %v17630_v56 }
 0xa21   :  { %19507 = vst [vmem:[#allocation13_spill] sm:$0xff] %v17803_v36  ;;  %v17806_v14 = vadd.f32 %v13900_v27, %v6905_v62  ;;  %v6958_v51 = vsel %vm523_vm0, %v17803_v36, 0.0  ;;  %v6988_v40 = vmul.f32 %v17803_v36, %v17803_v36 }
 0xa22   :  { %6959 = vadd.xlane.f32.xlu1 %v6958_v51 }
 0xa23   :  { %19508 = vst [vmem:[#allocation12_spill] sm:$0xff] %v17806_v14  ;;  %v6955_v6 = vsel %vm523_vm0, %v17806_v14, 0.0  ;;  %v15045_v38 = vpop.f32.mrf.mxu0  ;;  %v6987_v53 = vmul.f32 %v17806_v14, %v17806_v14  ;;  %v6998_v56 = vsel %vm523_vm0, %v6988_v40, 0.0 }
 0xa24   :  { %6956 = vadd.xlane.f32.xlu0 %v6955_v6  ;;  %v6908_v58 = vadd.f32 %v15045_v38, %v17639_v39 }
 0xa25   :  { %v6876_v32 = vpop.f32.mrf.mxu0  ;;  %v6995_v5 = vsel %vm523_vm0, %v6987_v53, 0.0 }
 0xa26   :  { %v17818_v3 = vadd.f32 %v13900_v27, %v6908_v58  ;;  %6999 = vadd.xlane.f32.xlu1 %v6998_v56  ;;  %v6907_v60 = vadd.f32 %v6876_v32, %v17650_v21 }
 0xa28   :  { %19509 = vst [vmem:[#allocation15_spill] sm:$0xff] %v17818_v3  ;;  %v17822_v37 = vadd.f32 %v13900_v27, %v6907_v60  ;;  %6996 = vadd.xlane.f32.xlu0 %v6995_v5  ;;  %v6964_v30 = vsel %vm523_vm0, %v17818_v3, 0.0  ;;  %v6990_v49 = vmul.f32 %v17818_v3, %v17818_v3 }
 0xa2a   :  { %19510 = vst [vmem:[#allocation14_spill] sm:$0xff] %v17822_v37  ;;  %6965 = vadd.xlane.f32.xlu1 %v6964_v30  ;;  %v6961_v39 = vsel %vm523_vm0, %v17822_v37, 0.0  ;;  %v6989_v47 = vmul.f32 %v17822_v37, %v17822_v37  ;;  %v7004_v25 = vsel %vm523_vm0, %v6990_v49, 0.0 }
 0xa2b   :  { %v15048_v43 = vpop.f32.mrf.mxu0 }
 0xa2c   :  { %6962 = vadd.xlane.f32.xlu0 %v6961_v39  ;;  %v6910_v21 = vadd.f32 %v15048_v43, %v17653_v11  ;;  %v7001_v52 = vsel %vm523_vm0, %v6989_v47, 0.0 }
 0xa2d   :  { %v6886_v17 = vpop.f32.mrf.mxu0 }
 0xa2e   :  { %v17834_v35 = vadd.f32 %v13900_v27, %v6910_v21  ;;  %7005 = vadd.xlane.f32.xlu1 %v7004_v25  ;;  %v6909_v41 = vadd.f32 %v6886_v17, %v17666_v19 }
 0xa30   :  { %19511 = vst [vmem:[#allocation24_spill] sm:$0xff] %v17834_v35  ;;  %v17838_v0 = vadd.f32 %v13900_v27, %v6909_v41  ;;  %7002 = vadd.xlane.f32.xlu0 %v7001_v52  ;;  %v6970_v9 = vsel %vm523_vm0, %v17834_v35, 0.0  ;;  %v6992_v22 = vmul.f32 %v17834_v35, %v17834_v35 }
 0xa32   :  { %19512 = vst [vmem:[#allocation18_spill] sm:$0xff] %v17838_v0  ;;  %6971 = vadd.xlane.f32.xlu1 %v6970_v9  ;;  %v6967_v11 = vsel %vm523_vm0, %v17838_v0, 0.0  ;;  %v6991_v28 = vmul.f32 %v17838_v0, %v17838_v0  ;;  %v7010_v34 = vsel %vm523_vm0, %v6992_v22, 0.0 }
 0xa33   :  { %v15051_v15 = vpop.f32.mrf.mxu0 }
 0xa34   :  { %6968 = vadd.xlane.f32.xlu0 %v6967_v11  ;;  %v6912_v19 = vadd.f32 %v15051_v15, %v17669_v29  ;;  %v7007_v7 = vsel %vm523_vm0, %v6991_v28, 0.0 }
 0xa35   :  { %v6896_v13 = vpop.f32.mrf.mxu0 }
 0xa36   :  { %v17850_v42 = vadd.f32 %v13900_v27, %v6912_v19  ;;  %7011 = vadd.xlane.f32.xlu1 %v7010_v34  ;;  %v6911_v2 = vadd.f32 %v6896_v13, %v17681_v50 }
 0xa38   :  { %19513 = vst [vmem:[#allocation16_spill] sm:$0xff] %v17850_v42  ;;  %v17854_v55 = vadd.f32 %v13900_v27, %v6911_v2  ;;  %7008 = vadd.xlane.f32.xlu0 %v7007_v7  ;;  %v6976_v44 = vsel %vm523_vm0, %v17850_v42, 0.0  ;;  %v6994_v59 = vmul.f32 %v17850_v42, %v17850_v42 }
 0xa3a   :  { %19514 = vst [vmem:[#allocation20_spill] sm:$0xff] %v17854_v55  ;;  %6977 = vadd.xlane.f32.xlu1 %v6976_v44  ;;  %v6973_v29 = vsel %vm523_vm0, %v17854_v55, 0.0  ;;  %v6993_v8 = vmul.f32 %v17854_v55, %v17854_v55  ;;  %v7016_v50 = vsel %vm523_vm0, %v6994_v59, 0.0 }
 0xa3c   :  { %6974 = vadd.xlane.f32.xlu0 %v6973_v29  ;;  %v7013_v54 = vsel %vm523_vm0, %v6993_v8, 0.0 }
 0xa3e   :  { %7017 = vadd.xlane.f32.xlu1 %v7016_v50 }
 0xa40   :  { %7014 = vadd.xlane.f32.xlu0 %v7013_v54 }
 0xaab   :  { %v6960_v61 = vpop.xlane.xlu1 %6959 }
 0xaac   :  { %v6980_v23 = vmul.f32 0.03125, %v6960_v61 }
 0xaad   :  { %v6957_v63 = vpop.xlane.xlu0 %6956 }
 0xaae   :  { %v17879_v18 = vmul.f32 0.03125, %v6957_v63  ;;  %v7028_v12 = vmul.f32 %v6980_v23, %v6980_v23  ;;  %v7052_v7 = vsub.f32 %v17803_v36, %v6980_v23 }
 0xaaf   :  { %v7000_v45 = vpop.xlane.xlu1 %6999 }
 0xab0   :  { %v7020_v48 = vmul.f32 0.03125, %v7000_v45  ;;  %v7027_v26 = vmul.f32 %v17879_v18, %v17879_v18  ;;  %v7051_v54 = vsub.f32 %v17806_v14, %v17879_v18 }
 0xab1   :  { %v6997_v10 = vpop.xlane.xlu0 %6996 }
 0xab2   :  { %v7036_v24 = vsub.f32 %v7020_v48, %v7028_v12  ;;  %v7019_v27 = vmul.f32 0.03125, %v6997_v10 }
 0xab3   :  { %v6966_v16 = vpop.xlane.xlu1 %6965 }
 0xab4   :  { %v7044_v57 = vmax.f32 %v7036_v24, 0.0  ;;  %v7035_v20 = vsub.f32 %v7019_v27, %v7027_v26  ;;  %v17883_v62 = vmul.f32 0.03125, %v6966_v16 }
 0xab5   :  { %v6963_v51 = vpop.xlane.xlu0 %6962 }
 0xab6   :  { %v7060_v40 = vadd.f32 1e-12, %v7044_v57  ;;  %v7043_v6 = vmax.f32 %v7035_v20, 0.0  ;;  %v17885_v38 = vmul.f32 0.03125, %v6963_v51  ;;  %v7030_v56 = vmul.f32 %v17883_v62, %v17883_v62  ;;  %v13912_v57 = vld [vmem:[%s19430_s1 + $0x30f] ss:$0 sm:$0xff] }
 0xab7   :  { %v7006_v53 = vpop.xlane.xlu1 %7005  ;;  %v7054_v51 = vsub.f32 %v17818_v3, %v17883_v62 }
 0xab8   :  { %15709 = vrsqrt.f32 %v7060_v40  ;;  %v7059_v58 = vadd.f32 1e-12, %v7043_v6  ;;  %v7022_v32 = vmul.f32 0.03125, %v7006_v53  ;;  %v7029_v5 = vmul.f32 %v17885_v38, %v17885_v38 }
 0xab9   :  { %v7003_v60 = vpop.xlane.xlu0 %7002 }
 0xaba   :  { %15711 = vrsqrt.f32 %v7059_v58  ;;  %v7038_v30 = vsub.f32 %v7022_v32, %v7030_v56  ;;  %v7021_v49 = vmul.f32 0.03125, %v7003_v60  ;;  %v7053_v32 = vsub.f32 %v17822_v37, %v17885_v38 }
 0xabb   :  { %v6972_v39 = vpop.xlane.xlu1 %6971 }
 0xabc   :  { %v7046_v43 = vmax.f32 %v7038_v30, 0.0  ;;  %v7037_v47 = vsub.f32 %v7021_v49, %v7029_v5  ;;  %v17891_v21 = vmul.f32 0.03125, %v6972_v39 }
 0xabd   :  { %v6969_v25 = vpop.xlane.xlu0 %6968 }
 0xabe   :  { %v7062_v17 = vadd.f32 1e-12, %v7046_v43  ;;  %v7045_v41 = vmax.f32 %v7037_v47, 0.0  ;;  %v17893_v52 = vmul.f32 0.03125, %v6969_v25  ;;  %v7032_v11 = vmul.f32 %v17891_v21, %v17891_v21 }
 0xabf   :  { %v7012_v9 = vpop.xlane.xlu1 %7011  ;;  %v7056_v25 = vsub.f32 %v17834_v35, %v17891_v21 }
 0xac0   :  { %15713 = vrsqrt.f32 %v7062_v17  ;;  %v7061_v22 = vadd.f32 1e-12, %v7045_v41  ;;  %v7024_v15 = vmul.f32 0.03125, %v7012_v9  ;;  %v7031_v19 = vmul.f32 %v17893_v52, %v17893_v52 }
 0xac1   :  { %v7009_v28 = vpop.xlane.xlu0 %7008  ;;  %v7055_v9 = vsub.f32 %v17838_v0, %v17893_v52 }
 0xac2   :  { %15715 = vrsqrt.f32 %v7061_v22  ;;  %v7040_v34 = vsub.f32 %v7024_v15, %v7032_v11  ;;  %v7023_v13 = vmul.f32 0.03125, %v7009_v28 }
 0xac3   :  { %v6978_v2 = vpop.xlane.xlu1 %6977 }
 0xac4   :  { %v7048_v44 = vmax.f32 %v7040_v34, 0.0  ;;  %v7039_v59 = vsub.f32 %v7023_v13, %v7031_v19  ;;  %v6986_v29 = vmul.f32 0.03125, %v6978_v2 }
 0xac5   :  { %v15710_v8 = vpop.eup %15709  ;;  %v6975_v50 = vpop.xlane.xlu0 %6974 }
 0xac6   :  { %v7076_v33 = vmul.f32 %v15710_v8, %v7052_v7  ;;  %v7064_v4 = vadd.f32 1e-12, %v7048_v44  ;;  %v7047_v46 = vmax.f32 %v7039_v59, 0.0  ;;  %v7034_v63 = vmul.f32 %v6986_v29, %v6986_v29 }
 0xac7   :  { %v15712_v61 = vpop.eup %15711  ;;  %v6985_v45 = vmul.f32 0.03125, %v6975_v50  ;;  %v7018_v12 = vpop.xlane.xlu1 %7017  ;;  %v7058_v34 = vsub.f32 %v17850_v42, %v6986_v29  ;;  %v13913_v29 = vld [vmem:[%s19432_s2 + $0x48] ss:$0 sm:$0xff] }
 0xac8   :  { %15717 = vrsqrt.f32 %v7064_v4  ;;  %v7063_v23 = vadd.f32 1e-12, %v7047_v46  ;;  %v7026_v48 = vmul.f32 0.03125, %v7018_v12  ;;  %v7075_v10 = vmul.f32 %v15712_v61, %v7051_v54 }
 0xac9   :  { %v7033_v26 = vmul.f32 %v6985_v45, %v6985_v45  ;;  %v7015_v24 = vpop.xlane.xlu0 %7014  ;;  %v7088_v27 = vmul.f32 %v13911_v31, %v7076_v33  ;;  %v7057_v7 = vsub.f32 %v17854_v55, %v6985_v45 }
 0xaca   :  { %15719 = vrsqrt.f32 %v7063_v23  ;;  %v7042_v18 = vsub.f32 %v7026_v48, %v7034_v63  ;;  %v7025_v16 = vmul.f32 0.03125, %v7015_v24  ;;  %v7087_v20 = vmul.f32 %v13911_v31, %v7075_v10 }
 0xacb   :  { %v7100_v56 = vadd.f32 %v13912_v57, %v7088_v27 }
 0xacc   :  { %v7050_v40 = vmax.f32 %v7042_v18, 0.0  ;;  %v7041_v6 = vsub.f32 %v7025_v16, %v7033_v26  ;;  %v7099_v53 = vadd.f32 %v13912_v57, %v7087_v20 }
 0xacd   :  { %v15714_v58 = vpop.eup %15713 }
 0xace   :  { %v7066_v60 = vadd.f32 1e-12, %v7050_v40  ;;  %v7049_v5 = vmax.f32 %v7041_v6, 0.0  ;;  %15060 = vmatprep.mubr.msk.f32.mxu1 %vm523_vm0, %v7099_v53  ;;  %v7078_v30 = vmul.f32 %v15714_v58, %v7054_v51 }
 0xacf   :  { %v15716_v49 = vpop.eup %15715  ;;  %15061 = vmatmul.mubr.msk.f32.vlgmr.msra.gmra.mxu1 %vm523_vm0, %v7100_v56 }
 0xad0   :  { %15721 = vrsqrt.f32 %v7066_v60  ;;  %v7065_v39 = vadd.f32 1e-12, %v7049_v5  ;;  %v7077_v43 = vmul.f32 %v15716_v49, %v7053_v32  ;;  %v7090_v62 = vmul.f32 %v13911_v31, %v7078_v30 }
 0xad2   :  { %15723 = vrsqrt.f32 %v7065_v39  ;;  %v7089_v47 = vmul.f32 %v13911_v31, %v7077_v43  ;;  %v7102_v38 = vadd.f32 %v13912_v57, %v7090_v62 }
 0xad4   :  { %v7101_v17 = vadd.f32 %v13912_v57, %v7089_v47 }
 0xad5   :  { %v15718_v41 = vpop.eup %15717 }
 0xad6   :  { %15063 = vmatprep.mubr.msk.f32.mxu1 %vm523_vm0, %v7101_v17  ;;  %v7080_v22 = vmul.f32 %v15718_v41, %v7056_v25 }
 0xad7   :  { %v15720_v11 = vpop.eup %15719  ;;  %15064 = vmatmul.mubr.msk.f32.gmra.mxu1 %vm523_vm0, %v7102_v38 }
 0xad8   :  { %v7079_v15 = vmul.f32 %v15720_v11, %v7055_v9  ;;  %v7092_v28 = vmul.f32 %v13911_v31, %v7080_v22 }
 0xada   :  { %v7091_v19 = vmul.f32 %v13911_v31, %v7079_v15  ;;  %v7104_v21 = vadd.f32 %v13912_v57, %v7092_v28 }
 0xadc   :  { %v7103_v13 = vadd.f32 %v13912_v57, %v7091_v19 }
 0xadd   :  { %v15722_v2 = vpop.eup %15721 }
 0xade   :  { %15066 = vmatprep.mubr.msk.f32.mxu1 %vm523_vm0, %v7103_v13  ;;  %v7082_v44 = vmul.f32 %v15722_v2, %v7058_v34 }
 0xadf   :  { %v15724_v52 = vpop.eup %15723  ;;  %15067 = vmatmul.mubr.msk.f32.gmra.mxu1 %vm523_vm0, %v7104_v21 }
 0xae0   :  { %v7081_v59 = vmul.f32 %v15724_v52, %v7057_v7  ;;  %v7094_v8 = vmul.f32 %v13911_v31, %v7082_v44 }
 0xae2   :  { %v7093_v50 = vmul.f32 %v13911_v31, %v7081_v59  ;;  %v7106_v33 = vadd.f32 %v13912_v57, %v7094_v8 }
 0xae4   :  { %v7105_v54 = vadd.f32 %v13912_v57, %v7093_v50 }
 0xae6   :  { %15069 = vmatprep.mubr.msk.f32.mxu1 %vm523_vm0, %v7105_v54 }
 0xae7   :  { %15070 = vmatmul.mubr.msk.f32.gmra.mxu1 %vm523_vm0, %v7106_v33 }
 0xae8   :  { %15079 = vmatprep.mubr.msk.f32.mxu1 %vm15890_vm1, %v19485_v1 }
 0xb8f   :  { %v15062_v4 = vpop.f32.mrf.mxu1 }
 0xb90   :  { %v17931_v46 = vadd.f32 %v15062_v4, %v13913_v29 }
 0xb91   :  { %v7201_v61 = vpop.f32.mrf.mxu1 }
 0xb92   :  { %v17933_v63 = vadd.f32 %v13913_v29, %v7201_v61  ;;  %7250 = vrot.lane.b32.xlu1 %v17931_v46, %s15887_s12 }
 0xb94   :  { %7248 = vrot.lane.b32.xlu0 %v17933_v63, %s15887_s12 }
 0xb96   :  { %7266 = vrot.lane.b32.xlu1 %v17931_v46, %s15888_s13 }
 0xb97   :  { %v15065_v31 = vpop.f32.mrf.mxu1 }
 0xb98   :  { %v17941_v45 = vadd.f32 %v15065_v31, %v13913_v29  ;;  %7264 = vrot.lane.b32.xlu0 %v17933_v63, %s15888_s13 }
 0xb99   :  { %v7211_v12 = vpop.f32.mrf.mxu1 }
 0xb9a   :  { %7254 = vrot.lane.b32.xlu1 %v17941_v45, %s15887_s12  ;;  %v17947_v23 = vadd.f32 %v13913_v29, %v7211_v12 }
 0xb9e   :  { %7252 = vrot.lane.b32.xlu1 %v17947_v23, %s15887_s12 }
 0xb9f   :  { %v15068_v48 = vpop.f32.mrf.mxu1 }
 0xba0   :  { %v17951_v10 = vadd.f32 %v15068_v48, %v13913_v29 }
 0xba1   :  { %v7221_v26 = vpop.f32.mrf.mxu1 }
 0xba2   :  { %v17953_v24 = vadd.f32 %v13913_v29, %v7221_v26  ;;  %7258 = vrot.lane.b32.xlu1 %v17951_v10, %s15887_s12 }
 0xba4   :  { %7256 = vrot.lane.b32.xlu0 %v17953_v24, %s15887_s12 }
 0xba7   :  { %v15071_v27 = vpop.f32.mrf.mxu1 }
 0xba8   :  { %v17959_v18 = vadd.f32 %v15071_v27, %v13913_v29 }
 0xba9   :  { %v7231_v16 = vpop.f32.mrf.mxu1 }
 0xbaa   :  { %v17961_v57 = vadd.f32 %v13913_v29, %v7231_v16  ;;  %7262 = vrot.lane.b32.xlu1 %v17959_v18, %s15887_s12 }
 0xbac   :  { %7260 = vrot.lane.b32.xlu0 %v17961_v57, %s15887_s12 }
 0xbae   :  { %7270 = vrot.lane.b32.xlu1 %v17941_v45, %s15888_s13 }
 0xbb0   :  { %7268 = vrot.lane.b32.xlu0 %v17947_v23, %s15888_s13 }
 0xbb2   :  { %7274 = vrot.lane.b32.xlu1 %v17951_v10, %s15888_s13 }
 0xbb4   :  { %7272 = vrot.lane.b32.xlu0 %v17953_v24, %s15888_s13 }
 0xbb6   :  { %7278 = vrot.lane.b32.xlu1 %v17959_v18, %s15888_s13 }
 0xbb8   :  { %7280 = vrot.lane.b32.xlu0 %v17933_v63, %s15891_s14 }
 0xbba   :  { %7282 = vrot.lane.b32.xlu1 %v17931_v46, %s15891_s14 }
 0xbbc   :  { %7276 = vrot.lane.b32.xlu0 %v17961_v57, %s15888_s13 }
 0xbbe   :  { %7286 = vrot.lane.b32.xlu1 %v17941_v45, %s15891_s14 }
 0xbc0   :  { %7284 = vrot.lane.b32.xlu0 %v17947_v23, %s15891_s14 }
 0xbc2   :  { %7290 = vrot.lane.b32.xlu1 %v17951_v10, %s15891_s14 }
 0xbc4   :  { %7288 = vrot.lane.b32.xlu0 %v17953_v24, %s15891_s14 }
 0xbc6   :  { %7372 = vrot.lane.b32.xlu1 %v17931_v46, %s15892_s15 }
 0xbc8   :  { %7296 = vrot.lane.b32.xlu0 %v17933_v63, %s15892_s15 }
 0xbca   :  { %7294 = vrot.lane.b32.xlu1 %v17959_v18, %s15891_s14 }
 0xbcc   :  { %7292 = vrot.lane.b32.xlu0 %v17961_v57, %s15891_s14 }
 0xbce   :  { %7524 = vrot.lane.b32.xlu1 %v17941_v45, %s15892_s15 }
 0xbd0   :  { %7448 = vrot.lane.b32.xlu0 %v17947_v23, %s15892_s15 }
 0xbd2   :  { %7676 = vrot.lane.b32.xlu1 %v17951_v10, %s15892_s15 }
 0xbd4   :  { %7600 = vrot.lane.b32.xlu0 %v17953_v24, %s15892_s15 }
 0xbd6   :  { %7828 = vrot.lane.b32.xlu1 %v17959_v18, %s15892_s15 }
 0xbd8   :  { %7752 = vrot.lane.b32.xlu0 %v17961_v57, %s15892_s15 }
 0xc04   :  { %v18011_v20 = vpop.permute.xlu1 %7250 }
 0xc05   :  { %7980 = vrot.lane.b32.xlu1 %v18011_v20, %s15892_s15 }
 0xc06   :  { %v18015_v51 = vpop.permute.xlu0 %7248 }
 0xc07   :  { %7904 = vrot.lane.b32.xlu0 %v18015_v51, %s15892_s15 }
 0xc08   :  { %v18019_v40 = vpop.permute.xlu1 %7266 }
 0xc0a   :  { %v18029_v58 = vpop.permute.xlu0 %7264 }
 0xc0c   :  { %v18021_v6 = vpop.permute.xlu1 %7254 }
 0xc0d   :  { %8132 = vrot.lane.b32.xlu1 %v18021_v6, %s15892_s15 }
 0xc10   :  { %v18025_v53 = vpop.permute.xlu1 %7252 }
 0xc11   :  { %8056 = vrot.lane.b32.xlu0 %v18025_v53, %s15892_s15 }
 0xc14   :  { %v18031_v56 = vpop.permute.xlu1 %7258 }
 0xc15   :  { %8284 = vrot.lane.b32.xlu1 %v18031_v56, %s15892_s15 }
 0xc16   :  { %v18035_v32 = vpop.permute.xlu0 %7256 }
 0xc17   :  { %8208 = vrot.lane.b32.xlu0 %v18035_v32, %s15892_s15 }
 0xc1c   :  { %v18039_v60 = vpop.permute.xlu1 %7262 }
 0xc1d   :  { %8436 = vrot.lane.b32.xlu1 %v18039_v60, %s15892_s15 }
 0xc1e   :  { %v18043_v5 = vpop.permute.xlu0 %7260 }
 0xc1f   :  { %8360 = vrot.lane.b32.xlu0 %v18043_v5, %s15892_s15 }
 0xc20   :  { %v18047_v30 = vpop.permute.xlu1 %7270 }
 0xc21   :  { %8588 = vrot.lane.b32.xlu1 %v18019_v40, %s15892_s15 }
 0xc22   :  { %v18051_v49 = vpop.permute.xlu0 %7268 }
 0xc23   :  { %8512 = vrot.lane.b32.xlu0 %v18029_v58, %s15892_s15 }
 0xc24   :  { %v18055_v39 = vpop.permute.xlu1 %7274 }
 0xc25   :  { %8740 = vrot.lane.b32.xlu1 %v18047_v30, %s15892_s15 }
 0xc26   :  { %v18059_v43 = vpop.permute.xlu0 %7272 }
 0xc27   :  { %8664 = vrot.lane.b32.xlu0 %v18051_v49, %s15892_s15 }
 0xc28   :  { %v18063_v62 = vpop.permute.xlu1 %7278 }
 0xc29   :  { %8892 = vrot.lane.b32.xlu1 %v18055_v39, %s15892_s15 }
 0xc2a   :  { %v18067_v47 = vpop.permute.xlu0 %7280 }
 0xc2b   :  { %8816 = vrot.lane.b32.xlu0 %v18059_v43, %s15892_s15 }
 0xc2c   :  { %v18071_v25 = vpop.permute.xlu1 %7282 }
 0xc2d   :  { %9044 = vrot.lane.b32.xlu1 %v18063_v62, %s15892_s15 }
 0xc2e   :  { %v18075_v17 = vpop.permute.xlu0 %7276 }
 0xc2f   :  { %8968 = vrot.lane.b32.xlu0 %v18075_v17, %s15892_s15 }
 0xc30   :  { %v18079_v41 = vpop.permute.xlu1 %7286 }
 0xc31   :  { %9196 = vrot.lane.b32.xlu1 %v18071_v25, %s15892_s15 }
 0xc32   :  { %v18083_v38 = vpop.permute.xlu0 %7284 }
 0xc33   :  { %9120 = vrot.lane.b32.xlu0 %v18067_v47, %s15892_s15 }
 0xc34   :  { %v18087_v9 = vpop.permute.xlu1 %7290 }
 0xc35   :  { %9348 = vrot.lane.b32.xlu1 %v18079_v41, %s15892_s15 }
 0xc36   :  { %v18091_v22 = vpop.permute.xlu0 %7288 }
 0xc37   :  { %9272 = vrot.lane.b32.xlu0 %v18083_v38, %s15892_s15 }
 0xc38   :  { %v7373_v11 = vpop.permute.xlu1 %7372 }
 0xc39   :  { %9500 = vrot.lane.b32.xlu1 %v18087_v9, %s15892_s15  ;;  %15078 = vmatpush3.xpose.msk.msra.mxu1 %vm868_vm2, %v7373_v11 }
 0xc3a   :  { %v7297_v15 = vpop.permute.xlu0 %7296  ;;  %15087 = vmatprep.subr.mxu1 %v19485_v1 }
 0xc3b   :  { %9424 = vrot.lane.b32.xlu0 %v18091_v22, %s15892_s15  ;;  %15073 = vmatpush3.xpose.msk.msra.mxu0 %vm868_vm2, %v7297_v15 }
 0xc3c   :  { %15080 = vmatmul.mubr.msk.f32.vlgmr.msra.gmra.mxu1 %vm868_vm2, %v17931_v46  ;;  %v18104_v28 = vpop.permute.xlu1 %7294  ;;  %15082 = vmatprep.subr.mxu0 %v19485_v1 }
 0xc3d   :  { %9652 = vrot.lane.b32.xlu1 %v18104_v28, %s15892_s15  ;;  %15089 = vmatprep.mubr.msk.f32.mxu1 %vm15890_vm1, %v19485_v1 }
 0xc3e   :  { %15075 = vmatmul.mubr.msk.f32.vlgmr.msra.gmra.mxu0 %vm868_vm2, %v17933_v63  ;;  %v18113_v19 = vpop.permute.xlu0 %7292 }
 0xc3f   :  { %9576 = vrot.lane.b32.xlu0 %v18113_v19, %s15892_s15  ;;  %15084 = vmatprep.mubr.msk.f32.mxu0 %vm15890_vm1, %v19485_v1 }
 0xc40   :  { %v7525_v34 = vpop.permute.xlu1 %7524 }
 0xc41   :  { %10220 = vrot.lane.b32.xlu1 %v17931_v46, %s15893_s16  ;;  %15088 = vmatpush3.xpose.msk.msra.mxu1 %vm868_vm2, %v7525_v34 }
 0xc42   :  { %v7449_v13 = vpop.permute.xlu0 %7448  ;;  %15097 = vmatprep.subr.mxu1 %v19485_v1 }
 0xc43   :  { %10144 = vrot.lane.b32.xlu0 %v17933_v63, %s15893_s16  ;;  %15083 = vmatpush3.xpose.msk.msra.mxu0 %vm868_vm2, %v7449_v13 }
 0xc44   :  { %15090 = vmatmul.mubr.msk.f32.vlgmr.msra.gmra.mxu1 %vm868_vm2, %v17941_v45  ;;  %v7677_v2 = vpop.permute.xlu1 %7676  ;;  %15092 = vmatprep.subr.mxu0 %v19485_v1 }
 0xc45   :  { %10448 = vrot.lane.b32.xlu1 %v17953_v24, %s15893_s16  ;;  %15098 = vmatpush3.xpose.msk.msra.mxu1 %vm868_vm2, %v7677_v2 }
 0xc46   :  { %15085 = vmatmul.mubr.msk.f32.vlgmr.msra.gmra.mxu0 %vm868_vm2, %v17947_v23  ;;  %v7601_v21 = vpop.permute.xlu0 %7600  ;;  %15099 = vmatprep.mubr.msk.f32.mxu1 %vm15890_vm1, %v19485_v1 }
 0xc47   :  { %10296 = vrot.lane.b32.xlu0 %v17947_v23, %s15893_s16  ;;  %15093 = vmatpush3.xpose.msk.msra.mxu0 %vm868_vm2, %v7601_v21 }
 0xc48   :  { %15100 = vmatmul.mubr.msk.f32.vlgmr.msra.gmra.mxu1 %vm868_vm2, %v17951_v10  ;;  %15107 = vmatprep.subr.mxu1 %v19485_v1  ;;  %v7829_v7 = vpop.permute.xlu1 %7828 }
 0xc49   :  { %10676 = vrot.lane.b32.xlu1 %v17959_v18, %s15893_s16  ;;  %15094 = vmatprep.mubr.msk.f32.mxu0 %vm15890_vm1, %v19485_v1 }
 0xc4a   :  { %15108 = vmatpush3.xpose.msk.msra.mxu1 %vm868_vm2, %v7829_v7  ;;  %15095 = vmatmul.mubr.msk.f32.vlgmr.msra.gmra.mxu0 %vm868_vm2, %v17953_v24  ;;  %v7753_v44 = vpop.permute.xlu0 %7752 }
 0xc4b   :  { %15102 = vmatprep.subr.mxu0 %v19485_v1  ;;  %15109 = vmatprep.mubr.msk.f32.mxu1 %vm15890_vm1, %v19485_v1 }
 0xc4c   :  { %10372 = vrot.lane.b32.xlu0 %v17941_v45, %s15893_s16  ;;  %15103 = vmatpush3.xpose.msk.msra.mxu0 %vm868_vm2, %v7753_v44 }
 0xc4d   :  { %15110 = vmatmul.mubr.msk.f32.vlgmr.msra.gmra.mxu1 %vm868_vm2, %v17959_v18  ;;  %10904 = vrot.lane.b32.xlu1 %v18025_v53, %s15893_s16 }
 0xc4e   :  { %15104 = vmatprep.mubr.msk.f32.mxu0 %vm15890_vm1, %v19485_v1  ;;  %15117 = vmatprep.subr.mxu1 %v19485_v1 }
 0xc4f   :  { %15105 = vmatmul.mubr.msk.f32.vlgmr.msra.gmra.mxu0 %vm868_vm2, %v17961_v57  ;;  %15112 = vmatprep.subr.mxu0 %v19485_v1 }
 0xc50   :  { %10524 = vrot.lane.b32.xlu0 %v17951_v10, %s15893_s16  ;;  %15119 = vmatprep.mubr.msk.f32.mxu1 %vm15890_vm1, %v19485_v1 }
 0xc51   :  { %11132 = vrot.lane.b32.xlu1 %v18031_v56, %s15893_s16  ;;  %15114 = vmatprep.mubr.msk.f32.mxu0 %vm15890_vm1, %v19485_v1 }
 0xc54   :  { %10600 = vrot.lane.b32.xlu0 %v17961_v57, %s15893_s16 }
 0xc55   :  { %11360 = vrot.lane.b32.xlu1 %v18029_v58, %s15893_s16 }
 0xc58   :  { %10752 = vrot.lane.b32.xlu0 %v18015_v51, %s15893_s16 }
 0xc59   :  { %11588 = vrot.lane.b32.xlu1 %v18047_v30, %s15893_s16 }
 0xc5c   :  { %10828 = vrot.lane.b32.xlu0 %v18011_v20, %s15893_s16 }
 0xc5d   :  { %11664 = vrot.lane.b32.xlu1 %v18059_v43, %s15893_s16 }
 0xc60   :  { %10980 = vrot.lane.b32.xlu0 %v18021_v6, %s15893_s16 }
 0xc61   :  { %11740 = vrot.lane.b32.xlu1 %v18055_v39, %s15893_s16 }
 0xc64   :  { %11056 = vrot.lane.b32.xlu0 %v18035_v32, %s15893_s16 }
 0xc65   :  { %11892 = vrot.lane.b32.xlu1 %v18063_v62, %s15893_s16 }
 0xc68   :  { %11284 = vrot.lane.b32.xlu0 %v18039_v60, %s15893_s16 }
 0xc69   :  { %12044 = vrot.lane.b32.xlu1 %v18071_v25, %s15893_s16 }
 0xc6c   :  { %11436 = vrot.lane.b32.xlu0 %v18019_v40, %s15893_s16 }
 0xc6d   :  { %12196 = vrot.lane.b32.xlu1 %v18079_v41, %s15893_s16 }
 0xc70   :  { %11512 = vrot.lane.b32.xlu0 %v18051_v49, %s15893_s16 }
 0xc74   :  { %11968 = vrot.lane.b32.xlu0 %v18067_v47, %s15893_s16 }
 0xc77   :  { %v7981_v52 = vpop.permute.xlu1 %7980 }
 0xc78   :  { %12120 = vrot.lane.b32.xlu0 %v18083_v38, %s15893_s16  ;;  %15118 = vmatpush3.xpose.msk.msra.mxu1 %vm868_vm2, %v7981_v52 }
 0xc79   :  { %v7905_v59 = vpop.permute.xlu0 %7904  ;;  %15127 = vmatprep.subr.mxu1 %v19485_v1 }
 0xc7a   :  { %15113 = vmatpush3.xpose.msk.msra.mxu0 %vm868_vm2, %v7905_v59 }
 0xc7b   :  { %15120 = vmatmul.mubr.msk.f32.vlgmr.msra.gmra.mxu1 %vm868_vm2, %v18011_v20  ;;  %15122 = vmatprep.subr.mxu0 %v19485_v1 }
 0xc7c   :  { %11208 = vrot.lane.b32.xlu0 %v18043_v5, %s15893_s16  ;;  %15129 = vmatprep.mubr.msk.f32.mxu1 %vm15890_vm1, %v19485_v1 }
 0xc7d   :  { %15115 = vmatmul.mubr.msk.f32.vlgmr.msra.gmra.mxu0 %vm868_vm2, %v18015_v51 }
 0xc7e   :  { %15124 = vmatprep.mubr.msk.f32.mxu0 %vm15890_vm1, %v19485_v1 }
 0xc7f   :  { %v8133_v8 = vpop.permute.xlu1 %8132 }
 0xc80   :  { %11816 = vrot.lane.b32.xlu0 %v18075_v17, %s15893_s16  ;;  %15128 = vmatpush3.xpose.msk.msra.mxu1 %vm868_vm2, %v8133_v8 }
 0xc81   :  { %15137 = vmatprep.subr.mxu1 %v19485_v1 }
 0xc83   :  { %15130 = vmatmul.mubr.msk.f32.vlgmr.msra.gmra.mxu1 %vm868_vm2, %v18021_v6  ;;  %v8057_v50 = vpop.permute.xlu0 %8056 }
 0xc84   :  { %15123 = vmatpush3.xpose.msk.msra.mxu0 %vm868_vm2, %v8057_v50  ;;  %15139 = vmatprep.mubr.msk.f32.mxu1 %vm15890_vm1, %v19485_v1 }
 0xc85   :  { %15132 = vmatprep.subr.mxu0 %v19485_v1 }
 0xc87   :  { %v8285_v54 = vpop.permute.xlu1 %8284  ;;  %15125 = vmatmul.mubr.msk.f32.vlgmr.msra.gmra.mxu0 %vm868_vm2, %v18025_v53 }
 0xc88   :  { %15138 = vmatpush3.xpose.msk.msra.mxu1 %vm868_vm2, %v8285_v54  ;;  %15134 = vmatprep.mubr.msk.f32.mxu0 %vm15890_vm1, %v19485_v1 }
 0xc89   :  { %v8209_v33 = vpop.permute.xlu0 %8208  ;;  %15147 = vmatprep.subr.mxu1 %v19485_v1 }
 0xc8a   :  { %15133 = vmatpush3.xpose.msk.msra.mxu0 %vm868_vm2, %v8209_v33 }
 0xc8b   :  { %15140 = vmatmul.mubr.msk.f32.vlgmr.msra.gmra.mxu1 %vm868_vm2, %v18031_v56  ;;  %15142 = vmatprep.subr.mxu0 %v19485_v1 }
 0xc8c   :  { %15149 = vmatprep.mubr.msk.f32.mxu1 %vm15890_vm1, %v19485_v1 }
 0xc8d   :  { %15135 = vmatmul.mubr.msk.f32.vlgmr.msra.gmra.mxu0 %vm868_vm2, %v18035_v32  ;;  %v19515_v32 = vld [vmem:[#allocation11_spill] sm:$0xff] }
 0xc8e   :  { %15144 = vmatprep.mubr.msk.f32.mxu0 %vm15890_vm1, %v19485_v1 }
 0xc8f   :  { %v8437_v29 = vpop.permute.xlu1 %8436 }
 0xc90   :  { %15148 = vmatpush3.xpose.msk.msra.mxu1 %vm868_vm2, %v8437_v29 }
 0xc91   :  { %v8361_v4 = vpop.permute.xlu0 %8360  ;;  %15157 = vmatprep.subr.mxu1 %v19485_v1 }
 0xc92   :  { %15143 = vmatpush3.xpose.msk.msra.mxu0 %vm868_vm2, %v8361_v4 }
 0xc93   :  { %15150 = vmatmul.mubr.msk.f32.vlgmr.msra.gmra.mxu1 %vm868_vm2, %v18039_v60  ;;  %v8589_v46 = vpop.permute.xlu1 %8588  ;;  %15152 = vmatprep.subr.mxu0 %v19485_v1 }
 0xc94   :  { %15158 = vmatpush3.xpose.msk.msra.mxu1 %vm868_vm2, %v8589_v46  ;;  %15159 = vmatprep.mubr.msk.f32.mxu1 %vm15890_vm1, %v19485_v1 }
 0xc95   :  { %15145 = vmatmul.mubr.msk.f32.vlgmr.msra.gmra.mxu0 %vm868_vm2, %v18043_v5  ;;  %v8513_v61 = vpop.permute.xlu0 %8512  ;;  %15167 = vmatprep.subr.mxu1 %v19485_v1 }
 0xc96   :  { %15153 = vmatpush3.xpose.msk.msra.mxu0 %vm868_vm2, %v8513_v61  ;;  %15154 = vmatprep.mubr.msk.f32.mxu0 %vm15890_vm1, %v19485_v1 }
 0xc97   :  { %15160 = vmatmul.mubr.msk.f32.vlgmr.msra.gmra.mxu1 %vm868_vm2, %v18019_v40  ;;  %v8741_v63 = vpop.permute.xlu1 %8740  ;;  %15162 = vmatprep.subr.mxu0 %v19485_v1 }
 0xc98   :  { %15168 = vmatpush3.xpose.msk.msra.mxu1 %vm868_vm2, %v8741_v63  ;;  %15169 = vmatprep.mubr.msk.f32.mxu1 %vm15890_vm1, %v19485_v1 }
 0xc99   :  { %15155 = vmatmul.mubr.msk.f32.vlgmr.msra.gmra.mxu0 %vm868_vm2, %v18029_v58  ;;  %v8665_v31 = vpop.permute.xlu0 %8664  ;;  %15177 = vmatprep.subr.mxu1 %v19485_v1 }
 0xc9a   :  { %15163 = vmatpush3.xpose.msk.msra.mxu0 %vm868_vm2, %v8665_v31  ;;  %15164 = vmatprep.mubr.msk.f32.mxu0 %vm15890_vm1, %v19485_v1 }
 0xc9b   :  { %15170 = vmatmul.mubr.msk.f32.vlgmr.msra.gmra.mxu1 %vm868_vm2, %v18047_v30  ;;  %v8893_v45 = vpop.permute.xlu1 %8892  ;;  %15172 = vmatprep.subr.mxu0 %v19485_v1 }
 0xc9c   :  { %15178 = vmatpush3.xpose.msk.msra.mxu1 %vm868_vm2, %v8893_v45  ;;  %15179 = vmatprep.mubr.msk.f32.mxu1 %vm15890_vm1, %v19485_v1 }
 0xc9d   :  { %15165 = vmatmul.mubr.msk.f32.vlgmr.msra.gmra.mxu0 %vm868_vm2, %v18051_v49  ;;  %v8817_v12 = vpop.permute.xlu0 %8816  ;;  %15187 = vmatprep.subr.mxu1 %v19485_v1 }
 0xc9e   :  { %15173 = vmatpush3.xpose.msk.msra.mxu0 %vm868_vm2, %v8817_v12  ;;  %15174 = vmatprep.mubr.msk.f32.mxu0 %vm15890_vm1, %v19485_v1 }
 0xc9f   :  { %15180 = vmatmul.mubr.msk.f32.vlgmr.msra.gmra.mxu1 %vm868_vm2, %v18055_v39  ;;  %v9045_v23 = vpop.permute.xlu1 %9044  ;;  %15182 = vmatprep.subr.mxu0 %v19485_v1 }
 0xca0   :  { %15188 = vmatpush3.xpose.msk.msra.mxu1 %vm868_vm2, %v9045_v23  ;;  %15189 = vmatprep.mubr.msk.f32.mxu1 %vm15890_vm1, %v19485_v1 }
 0xca1   :  { %15175 = vmatmul.mubr.msk.f32.vlgmr.msra.gmra.mxu0 %vm868_vm2, %v18059_v43  ;;  %v8969_v48 = vpop.permute.xlu0 %8968  ;;  %15197 = vmatprep.subr.mxu1 %v19485_v1 }
 0xca2   :  { %15183 = vmatpush3.xpose.msk.msra.mxu0 %vm868_vm2, %v8969_v48  ;;  %15184 = vmatprep.mubr.msk.f32.mxu0 %vm15890_vm1, %v19485_v1 }
 0xca3   :  { %15190 = vmatmul.mubr.msk.f32.vlgmr.msra.gmra.mxu1 %vm868_vm2, %v18063_v62  ;;  %v9197_v10 = vpop.permute.xlu1 %9196  ;;  %15192 = vmatprep.subr.mxu0 %v19485_v1 }
 0xca4   :  { %15198 = vmatpush3.xpose.msk.msra.mxu1 %vm868_vm2, %v9197_v10  ;;  %15199 = vmatprep.mubr.msk.f32.mxu1 %vm15890_vm1, %v19485_v1 }
 0xca5   :  { %15185 = vmatmul.mubr.msk.f32.vlgmr.msra.gmra.mxu0 %vm868_vm2, %v18075_v17  ;;  %v9121_v26 = vpop.permute.xlu0 %9120  ;;  %15207 = vmatprep.subr.mxu1 %v19485_v1 }
 0xca6   :  { %15193 = vmatpush3.xpose.msk.msra.mxu0 %vm868_vm2, %v9121_v26  ;;  %15194 = vmatprep.mubr.msk.f32.mxu0 %vm15890_vm1, %v19485_v1 }
 0xca7   :  { %15200 = vmatmul.mubr.msk.f32.vlgmr.msra.gmra.mxu1 %vm868_vm2, %v18071_v25  ;;  %v9349_v24 = vpop.permute.xlu1 %9348  ;;  %15202 = vmatprep.subr.mxu0 %v19485_v1 }
 0xca8   :  { %15208 = vmatpush3.xpose.msk.msra.mxu1 %vm868_vm2, %v9349_v24  ;;  %15209 = vmatprep.mubr.msk.f32.mxu1 %vm15890_vm1, %v19485_v1 }
 0xca9   :  { %15195 = vmatmul.mubr.msk.f32.vlgmr.msra.gmra.mxu0 %vm868_vm2, %v18067_v47  ;;  %v9273_v27 = vpop.permute.xlu0 %9272  ;;  %15217 = vmatprep.subr.mxu1 %v19485_v1 }
 0xcaa   :  { %15203 = vmatpush3.xpose.msk.msra.mxu0 %vm868_vm2, %v9273_v27  ;;  %15204 = vmatprep.mubr.msk.f32.mxu0 %vm15890_vm1, %v19485_v1 }
 0xcab   :  { %15210 = vmatmul.mubr.msk.f32.vlgmr.msra.gmra.mxu1 %vm868_vm2, %v18079_v41  ;;  %v9501_v18 = vpop.permute.xlu1 %9500  ;;  %15212 = vmatprep.subr.mxu0 %v19485_v1 }
 0xcac   :  { %15218 = vmatpush3.xpose.msk.msra.mxu1 %vm868_vm2, %v9501_v18  ;;  %15219 = vmatprep.mubr.msk.f32.mxu1 %vm15890_vm1, %v19485_v1 }
 0xcad   :  { %15205 = vmatmul.mubr.msk.f32.vlgmr.msra.gmra.mxu0 %vm868_vm2, %v18083_v38  ;;  %v9425_v16 = vpop.permute.xlu0 %9424  ;;  %15227 = vmatprep.subr.mxu1 %v19485_v1 }
 0xcae   :  { %15213 = vmatpush3.xpose.msk.msra.mxu0 %vm868_vm2, %v9425_v16  ;;  %15214 = vmatprep.mubr.msk.f32.mxu0 %vm15890_vm1, %v19485_v1 }
 0xcaf   :  { %15220 = vmatmul.mubr.msk.f32.vlgmr.msra.gmra.mxu1 %vm868_vm2, %v18087_v9  ;;  %v9653_v57 = vpop.permute.xlu1 %9652  ;;  %15222 = vmatprep.subr.mxu0 %v19485_v1 }
 0xcb0   :  { %15228 = vmatpush3.xpose.msk.msra.mxu1 %vm868_vm2, %v9653_v57  ;;  %15229 = vmatprep.mubr.msk.f32.mxu1 %vm15890_vm1, %v19485_v1 }
 0xcb1   :  { %15215 = vmatmul.mubr.msk.f32.vlgmr.msra.gmra.mxu0 %vm868_vm2, %v18091_v22  ;;  %v9577_v20 = vpop.permute.xlu0 %9576  ;;  %15237 = vmatprep.subr.mxu1 %v19485_v1 }
 0xcb2   :  { %15223 = vmatpush3.xpose.msk.msra.mxu0 %vm868_vm2, %v9577_v20  ;;  %15224 = vmatprep.mubr.msk.f32.mxu0 %vm15890_vm1, %v19485_v1 }
 0xcb3   :  { %15230 = vmatmul.mubr.msk.f32.vlgmr.msra.gmra.mxu1 %vm868_vm2, %v18104_v28  ;;  %v10221_v51 = vpop.permute.xlu1 %10220  ;;  %15232 = vmatprep.subr.mxu0 %v19485_v1 }
 0xcb4   :  { %15238 = vmatpush3.msra.mxu1 %v10221_v51  ;;  %15239 = vmatprep.mubr.msk.f32.mxu1 %vm15890_vm1, %v19485_v1 }
 0xcb5   :  { %15225 = vmatmul.mubr.msk.f32.vlgmr.msra.gmra.mxu0 %vm868_vm2, %v18113_v19  ;;  %v10145_v40 = vpop.permute.xlu0 %10144  ;;  %15247 = vmatprep.subr.mxu1 %v19485_v1 }
 0xcb6   :  { %15233 = vmatpush3.msra.mxu0 %v10145_v40  ;;  %15234 = vmatprep.mubr.msk.f32.mxu0 %vm15890_vm1, %v19485_v1 }
 0xcb7   :  { %15242 = vmatprep.subr.mxu0 %v19485_v1 }
 0xcb9   :  { %v18397_v10 = vpop.permute.xlu0 %10296 }
 0xcbe   :  { %v18399_v26 = vpop.permute.xlu0 %10372 }
 0xcc2   :  { %v18404_v40 = vpop.permute.xlu0 %10524 }
 0xcfc   :  { %v7444_v6 = vpop.f32.mrf.mxu1 }
 0xcfd   :  { %v9729_v53 = vmul.f32 0.35355338, %v7444_v6 }
 0xcfe   :  { %v7368_v58 = vpop.f32.mrf.mxu0  ;;  %v15081_v56 = vpop.f32.mrf.mxu1 }
 0xcff   :  { %v18358_v60 = vadd.f32 %v9729_v53, %v19515_v32  ;;  %v9728_v5 = vmul.f32 0.35355338, %v7368_v58 }
 0xd00   :  { %v15076_v30 = vpop.f32.mrf.mxu0 }
 0xd01   :  { %v18361_v49 = vadd.f32 %v9728_v5, %v19515_v32  ;;  %v9795_v39 = vsel %vm868_vm2, %v18358_v60, -inf }
 0xd02   :  { %9796 = vmax.xlane.f32.xlu1 %v9795_v39  ;;  %v18413_v39 = vpop.permute.xlu0 %10600 }
 0xd03   :  { %v9792_v43 = vsel %vm868_vm2, %v18361_v49, -inf }
 0xd04   :  { %v7596_v62 = vpop.f32.mrf.mxu1  ;;  %9793 = vmax.xlane.f32.xlu0 %v9792_v43 }
 0xd05   :  { %v9731_v47 = vmul.f32 0.35355338, %v7596_v62 }
 0xd06   :  { %v7520_v25 = vpop.f32.mrf.mxu0  ;;  %v15091_v17 = vpop.f32.mrf.mxu1 }
 0xd07   :  { %v18368_v41 = vadd.f32 %v9731_v47, %v19515_v32  ;;  %v9730_v38 = vmul.f32 0.35355338, %v7520_v25 }
 0xd08   :  { %v15086_v11 = vpop.f32.mrf.mxu0  ;;  %v7748_v15 = vpop.f32.mrf.mxu1 }
 0xd09   :  { %v18371_v34 = vadd.f32 %v9730_v38, %v19515_v32  ;;  %v9733_v13 = vmul.f32 0.35355338, %v7748_v15  ;;  %v9801_v2 = vsel %vm868_vm2, %v18368_v41, -inf  ;;  %v18420_v38 = vpop.permute.xlu1 %10448 }
 0xd0a   :  { %v15101_v21 = vpop.f32.mrf.mxu1  ;;  %9802 = vmax.xlane.f32.xlu0 %v9801_v2  ;;  %v7672_v7 = vpop.f32.mrf.mxu0 }
 0xd0b   :  { %v18376_v44 = vadd.f32 %v9733_v13, %v19515_v32  ;;  %v9732_v52 = vmul.f32 0.35355338, %v7672_v7  ;;  %v9798_v33 = vsel %vm868_vm2, %v18371_v34, -inf  ;;  %v18425_v13 = vpop.permute.xlu0 %10752 }
 0xd0c   :  { %v15096_v59 = vpop.f32.mrf.mxu0 }
 0xd0d   :  { %v18379_v8 = vadd.f32 %v9732_v52, %v19515_v32  ;;  %v7900_v50 = vpop.f32.mrf.mxu1  ;;  %v9807_v54 = vsel %vm868_vm2, %v18376_v44, -inf }
 0xd0e   :  { %v9735_v29 = vmul.f32 0.35355338, %v7900_v50  ;;  %9808 = vmax.xlane.f32.xlu1 %v9807_v54  ;;  %9799 = vmax.xlane.f32.xlu0 %v9798_v33  ;;  %v18432_v33 = vpop.permute.xlu1 %10676 }
 0xd0f   :  { %v15111_v4 = vpop.f32.mrf.mxu1  ;;  %v7824_v46 = vpop.f32.mrf.mxu0  ;;  %v9804_v45 = vsel %vm868_vm2, %v18379_v8, -inf }
 0xd10   :  { %v18386_v61 = vadd.f32 %v9735_v29, %v19515_v32  ;;  %v9734_v63 = vmul.f32 0.35355338, %v7824_v46  ;;  %v18439_v46 = vpop.permute.xlu0 %10828 }
 0xd11   :  { %v15106_v31 = vpop.f32.mrf.mxu0 }
 0xd12   :  { %v18391_v12 = vadd.f32 %v9734_v63, %v19515_v32  ;;  %v9813_v23 = vsel %vm868_vm2, %v18386_v61, -inf  ;;  %9805 = vmax.xlane.f32.xlu0 %v9804_v45 }
 0xd13   :  { %9814 = vmax.xlane.f32.xlu1 %v9813_v23 }
 0xd14   :  { %v9810_v48 = vsel %vm868_vm2, %v18391_v12, -inf }
 0xd16   :  { %9811 = vmax.xlane.f32.xlu0 %v9810_v48 }
 0xd3b   :  { %v8052_v24 = vpop.f32.mrf.mxu1 }
 0xd3c   :  { %v9737_v27 = vmul.f32 0.35355338, %v8052_v24  ;;  %v18443_v24 = vpop.permute.xlu1 %10904 }
 0xd3d   :  { %v7976_v18 = vpop.f32.mrf.mxu0  ;;  %v15121_v16 = vpop.f32.mrf.mxu1 }
 0xd3e   :  { %v18402_v57 = vadd.f32 %v9737_v27, %v19515_v32  ;;  %v9736_v20 = vmul.f32 0.35355338, %v7976_v18 }
 0xd3f   :  { %v15116_v51 = vpop.f32.mrf.mxu0 }
 0xd40   :  { %v18407_v6 = vadd.f32 %v9736_v20, %v19515_v32  ;;  %v9819_v53 = vsel %vm868_vm2, %v18402_v57, -inf  ;;  %v18448_v51 = vpop.permute.xlu0 %10980 }
 0xd41   :  { %9820 = vmax.xlane.f32.xlu1 %v9819_v53 }
 0xd42   :  { %v9816_v58 = vsel %vm868_vm2, %v18407_v6, -inf }
 0xd43   :  { %v8204_v56 = vpop.f32.mrf.mxu1  ;;  %9817 = vmax.xlane.f32.xlu0 %v9816_v58 }
 0xd44   :  { %v9739_v5 = vmul.f32 0.35355338, %v8204_v56 }
 0xd45   :  { %v15131_v30 = vpop.f32.mrf.mxu1 }
 0xd46   :  { %v18416_v43 = vadd.f32 %v9739_v5, %v19515_v32 }
 0xd47   :  { %v8128_v62 = vpop.f32.mrf.mxu0 }
 0xd48   :  { %v9738_v47 = vmul.f32 0.35355338, %v8128_v62  ;;  %v9825_v25 = vsel %vm868_vm2, %v18416_v43, -inf }
 0xd49   :  { %9826 = vmax.xlane.f32.xlu1 %v9825_v25  ;;  %v15126_v17 = vpop.f32.mrf.mxu0 }
 0xd4a   :  { %v18423_v11 = vadd.f32 %v9738_v47, %v19515_v32 }
 0xd4b   :  { %v8356_v15 = vpop.f32.mrf.mxu1 }
 0xd4c   :  { %v9741_v2 = vmul.f32 0.35355338, %v8356_v15  ;;  %v9822_v21 = vsel %vm868_vm2, %v18423_v11, -inf }
 0xd4d   :  { %v15141_v7 = vpop.f32.mrf.mxu1  ;;  %9823 = vmax.xlane.f32.xlu0 %v9822_v21  ;;  %v8280_v52 = vpop.f32.mrf.mxu0 }
 0xd4e   :  { %v18430_v59 = vadd.f32 %v9741_v2, %v19515_v32  ;;  %v9740_v50 = vmul.f32 0.35355338, %v8280_v52  ;;  %v18460_v2 = vpop.permute.xlu1 %11132 }
 0xd4f   :  { %v15136_v54 = vpop.f32.mrf.mxu0 }
 0xd50   :  { %v18435_v29 = vadd.f32 %v9740_v50, %v19515_v32  ;;  %v9831_v4 = vsel %vm868_vm2, %v18430_v59, -inf }
 0xd51   :  { %9832 = vmax.xlane.f32.xlu1 %v9831_v4  ;;  %v18467_v4 = vpop.permute.xlu0 %11056 }
 0xd52   :  { %v9828_v63 = vsel %vm868_vm2, %v18435_v29, -inf  ;;  %19516 = vst [vmem:[#allocation22_spill] sm:$0xff] %v18467_v4 }
 0xd53   :  { %v8508_v31 = vpop.f32.mrf.mxu1  ;;  %9829 = vmax.xlane.f32.xlu0 %v9828_v63 }
 0xd54   :  { %v9743_v45 = vmul.f32 0.35355338, %v8508_v31 }
 0xd55   :  { %v8432_v23 = vpop.f32.mrf.mxu0  ;;  %v15151_v48 = vpop.f32.mrf.mxu1 }
 0xd56   :  { %v18446_v27 = vadd.f32 %v9743_v45, %v19515_v32  ;;  %v9742_v18 = vmul.f32 0.35355338, %v8432_v23 }
 0xd57   :  { %v15146_v16 = vpop.f32.mrf.mxu0  ;;  %v8660_v20 = vpop.f32.mrf.mxu1 }
 0xd58   :  { %v18451_v53 = vadd.f32 %v9742_v18, %v19515_v32  ;;  %v9745_v58 = vmul.f32 0.35355338, %v8660_v20  ;;  %v9837_v56 = vsel %vm868_vm2, %v18446_v27, -inf }
 0xd59   :  { %v15161_v5 = vpop.f32.mrf.mxu1  ;;  %9838 = vmax.xlane.f32.xlu1 %v9837_v56  ;;  %v8584_v30 = vpop.f32.mrf.mxu0 }
 0xd5a   :  { %v18456_v62 = vadd.f32 %v9745_v58, %v19515_v32  ;;  %v9744_v47 = vmul.f32 0.35355338, %v8584_v30  ;;  %v9834_v25 = vsel %vm868_vm2, %v18451_v53, -inf  ;;  %v18479_v5 = vpop.permute.xlu1 %11360 }
 0xd5b   :  { %v8812_v17 = vpop.f32.mrf.mxu1  ;;  %9835 = vmax.xlane.f32.xlu0 %v9834_v25  ;;  %v15156_v15 = vpop.f32.mrf.mxu0  ;;  %19517 = vst [vmem:[#allocation17_spill] sm:$0xff] %v18479_v5 }
 0xd5c   :  { %v18463_v21 = vadd.f32 %v9744_v47, %v19515_v32  ;;  %v9747_v7 = vmul.f32 0.35355338, %v8812_v17  ;;  %v9843_v52 = vsel %vm868_vm2, %v18456_v62, -inf }
 0xd5d   :  { %v15171_v50 = vpop.f32.mrf.mxu1  ;;  %9844 = vmax.xlane.f32.xlu1 %v9843_v52  ;;  %v8736_v54 = vpop.f32.mrf.mxu0 }
 0xd5e   :  { %v18470_v63 = vadd.f32 %v9747_v7, %v19515_v32  ;;  %v9746_v31 = vmul.f32 0.35355338, %v8736_v54  ;;  %v9840_v45 = vsel %vm868_vm2, %v18463_v21, -inf  ;;  %v18486_v7 = vpop.permute.xlu0 %11284 }
 0xd5f   :  { %v8964_v23 = vpop.f32.mrf.mxu1  ;;  %9841 = vmax.xlane.f32.xlu0 %v9840_v45  ;;  %v15166_v48 = vpop.f32.mrf.mxu0  ;;  %19518 = vst [vmem:[#allocation21_spill] sm:$0xff] %v18486_v7 }
 0xd60   :  { %v18475_v18 = vadd.f32 %v9746_v31, %v19515_v32  ;;  %v9749_v16 = vmul.f32 0.35355338, %v8964_v23  ;;  %v9849_v20 = vsel %vm868_vm2, %v18470_v63, -inf }
 0xd61   :  { %v15181_v58 = vpop.f32.mrf.mxu1  ;;  %9850 = vmax.xlane.f32.xlu1 %v9849_v20  ;;  %v8888_v56 = vpop.f32.mrf.mxu0 }
 0xd62   :  { %v18482_v30 = vadd.f32 %v9749_v16, %v19515_v32  ;;  %v9748_v47 = vmul.f32 0.35355338, %v8888_v56  ;;  %v9846_v25 = vsel %vm868_vm2, %v18475_v18, -inf  ;;  %v18498_v56 = vpop.permute.xlu1 %11588 }
 0xd63   :  { %v9116_v17 = vpop.f32.mrf.mxu1  ;;  %9847 = vmax.xlane.f32.xlu0 %v9846_v25  ;;  %v15176_v15 = vpop.f32.mrf.mxu0  ;;  %19519 = vst [vmem:[#allocation19_spill] sm:$0xff] %v18498_v56 }
 0xd64   :  { %v18489_v52 = vadd.f32 %v9748_v47, %v19515_v32  ;;  %v9751_v50 = vmul.f32 0.35355338, %v9116_v17  ;;  %v9855_v54 = vsel %vm868_vm2, %v18482_v30, -inf }
 0xd65   :  { %v15191_v31 = vpop.f32.mrf.mxu1  ;;  %9856 = vmax.xlane.f32.xlu1 %v9855_v54  ;;  %v9040_v45 = vpop.f32.mrf.mxu0 }
 0xd66   :  { %v18494_v23 = vadd.f32 %v9751_v50, %v19515_v32  ;;  %v9750_v48 = vmul.f32 0.35355338, %v9040_v45  ;;  %v9852_v16 = vsel %vm868_vm2, %v18489_v52, -inf  ;;  %v18505_v54 = vpop.permute.xlu0 %11436  ;;  %v18517_v0 = vpop.permute.xlu1 %11664 }
 0xd67   :  { %v9268_v20 = vpop.f32.mrf.mxu1  ;;  %9853 = vmax.xlane.f32.xlu0 %v9852_v16  ;;  %v15186_v58 = vpop.f32.mrf.mxu0  ;;  %19520 = vst [vmem:[#allocation23_spill] sm:$0xff] %v18505_v54  ;;  %19521 = vst [vmem:[#allocation3_spill] sm:$0xff] %v18517_v0 }
 0xd68   :  { %v18501_v47 = vadd.f32 %v9750_v48, %v19515_v32  ;;  %v9753_v25 = vmul.f32 0.35355338, %v9268_v20  ;;  %v9861_v17 = vsel %vm868_vm2, %v18494_v23, -inf }
 0xd69   :  { %v15201_v15 = vpop.f32.mrf.mxu1  ;;  %9862 = vmax.xlane.f32.xlu1 %v9861_v17  ;;  %v9192_v50 = vpop.f32.mrf.mxu0 }
 0xd6a   :  { %v18508_v31 = vadd.f32 %v9753_v25, %v19515_v32  ;;  %v9752_v45 = vmul.f32 0.35355338, %v9192_v50  ;;  %v9858_v16 = vsel %vm868_vm2, %v18501_v47, -inf  ;;  %v18524_v35 = vpop.permute.xlu0 %11512  ;;  %v18536_v36 = vpop.permute.xlu1 %11740 }
 0xd6b   :  { %v9420_v58 = vpop.f32.mrf.mxu1  ;;  %9859 = vmax.xlane.f32.xlu0 %v9858_v16  ;;  %v15196_v48 = vpop.f32.mrf.mxu0  ;;  %19522 = vst [vmem:[#allocation2_spill] sm:$0xff] %v18524_v35  ;;  %19523 = vst [vmem:[#allocation5_spill] sm:$0xff] %v18536_v36 }
 0xd6c   :  { %v18513_v20 = vadd.f32 %v9752_v45, %v19515_v32  ;;  %v9755_v55 = vmul.f32 0.35355338, %v9420_v58  ;;  %v9867_v17 = vsel %vm868_vm2, %v18508_v31, -inf }
 0xd6d   :  { %v15211_v15 = vpop.f32.mrf.mxu1  ;;  %9868 = vmax.xlane.f32.xlu1 %v9867_v17  ;;  %v9344_v42 = vpop.f32.mrf.mxu0 }
 0xd6e   :  { %v18520_v25 = vadd.f32 %v9755_v55, %v19515_v32  ;;  %v9754_v50 = vmul.f32 0.35355338, %v9344_v42  ;;  %v9864_v16 = vsel %vm868_vm2, %v18513_v20, -inf }
 0xd6f   :  { %v9572_v48 = vpop.f32.mrf.mxu1  ;;  %9865 = vmax.xlane.f32.xlu0 %v9864_v16  ;;  %v15206_v45 = vpop.f32.mrf.mxu0 }
 0xd70   :  { %v18527_v58 = vadd.f32 %v9754_v50, %v19515_v32  ;;  %v9757_v15 = vmul.f32 0.35355338, %v9572_v48  ;;  %v9873_v17 = vsel %vm868_vm2, %v18520_v25, -inf }
 0xd71   :  { %v15221_v37 = vpop.f32.mrf.mxu1  ;;  %9874 = vmax.xlane.f32.xlu1 %v9873_v17  ;;  %v9496_v55 = vpop.f32.mrf.mxu0 }
 0xd72   :  { %v18532_v42 = vadd.f32 %v9757_v15, %v19515_v32  ;;  %v9756_v3 = vmul.f32 0.35355338, %v9496_v55  ;;  %v9870_v16 = vsel %vm868_vm2, %v18527_v58, -inf  ;;  %v18545_v55 = vpop.permute.xlu0 %11968 }
 0xd73   :  { %v9724_v45 = vpop.f32.mrf.mxu1  ;;  %9871 = vmax.xlane.f32.xlu0 %v9870_v16  ;;  %v15216_v14 = vpop.f32.mrf.mxu0  ;;  %19524 = vst [vmem:[#allocation4_spill] sm:$0xff] %v18545_v55 }
 0xd74   :  { %v18539_v50 = vadd.f32 %v9756_v3, %v19515_v32  ;;  %v9879_v37 = vsel %vm868_vm2, %v18532_v42, -inf  ;;  %v18547_v16 = vpop.permute.xlu1 %11892  ;;  %v9759_v7 = vmul.f32 0.35355338, %v9724_v45 }
 0xd75   :  { %v15231_v48 = vpop.f32.mrf.mxu1  ;;  %9880 = vmax.xlane.f32.xlu1 %v9879_v37  ;;  %v9648_v17 = vpop.f32.mrf.mxu0  ;;  %19525 = vst [vmem:[#allocation7_spill] sm:$0xff] %v18547_v16 }
 0xd76   :  { %v9876_v15 = vsel %vm868_vm2, %v18539_v50, -inf  ;;  %v18549_v14 = vpop.permute.xlu0 %12120  ;;  %v9758_v4 = vmul.f32 0.35355338, %v9648_v17 }
 0xd77   :  { %9877 = vmax.xlane.f32.xlu0 %v9876_v15  ;;  %v15226_v0 = vpop.f32.mrf.mxu0  ;;  %19526 = vst [vmem:[#allocation6_spill] sm:$0xff] %v18549_v14 }
 0xd78   :  { %v18551_v36 = vpop.permute.xlu1 %12044 }
 0xd79   :  { %19527 = vst [vmem:[#allocation9_spill] sm:$0xff] %v18551_v36 }
 0xd7a   :  { %v18553_v3 = vpop.permute.xlu0 %11208 }
 0xd7b   :  { %19528 = vst [vmem:[#allocation8_spill] sm:$0xff] %v18553_v3 }
 0xd7c   :  { %v18555_v56 = vpop.permute.xlu1 %12196 }
 0xd7d   :  { %19529 = vst [vmem:[#allocation11_spill] sm:$0xff] %v18555_v56 }
 0xd7e   :  { %v18557_v48 = vpop.permute.xlu0 %11816 }
 0xd7f   :  { %19530 = vst [vmem:[#allocation25_spill] sm:$0xff] %v18557_v48 }
 0xd8b   :  { %v9797_v37 = vpop.xlane.xlu1 %9796 }
 0xd8c   :  { %v9889_v35 = vsub.f32 %v18358_v60, %v9797_v37 }
 0xd8d   :  { %v9794_v5 = vpop.xlane.xlu0 %9793 }
 0xd8e   :  { %v9922_v54 = vmul.f32 1.442695, %v9889_v35  ;;  %v9888_v15 = vsub.f32 %v18361_v49, %v9794_v5 }
 0xd90   :  { %15725 = vpow2.f32 %v9922_v54  ;;  %v9920_v0 = vmul.f32 1.442695, %v9888_v15 }
 0xd92   :  { %15727 = vpow2.f32 %v9920_v0 }
 0xd93   :  { %v9803_v55 = vpop.xlane.xlu0 %9802 }
 0xd94   :  { %v9891_v14 = vsub.f32 %v18368_v41, %v9803_v55  ;;  %v18576_v55 = vadd.f32 %v9758_v4, %v19515_v32 }
 0xd96   :  { %v9926_v36 = vmul.f32 1.442695, %v9891_v14  ;;  %v9882_v14 = vsel %vm868_vm2, %v18576_v55, -inf }
 0xd97   :  { %v9809_v16 = vpop.xlane.xlu1 %9808  ;;  %v9800_v3 = vpop.xlane.xlu0 %9799 }
 0xd98   :  { %15729 = vpow2.f32 %v9926_v36  ;;  %v9893_v56 = vsub.f32 %v18376_v44, %v9809_v16  ;;  %v9890_v48 = vsub.f32 %v18371_v34, %v9800_v3  ;;  %v18569_v36 = vadd.f32 %v9759_v7, %v19515_v32 }
 0xd9a   :  { %v9930_v60 = vmul.f32 1.442695, %v9893_v56  ;;  %v9924_v37 = vmul.f32 1.442695, %v9890_v48  ;;  %v9885_v16 = vsel %vm868_vm2, %v18569_v36, -inf }
 0xd9b   :  { %v9806_v35 = vpop.xlane.xlu0 %9805 }
 0xd9c   :  { %15731 = vpow2.f32 %v9930_v60  ;;  %v9815_v49 = vpop.xlane.xlu1 %9814  ;;  %v9892_v5 = vsub.f32 %v18379_v8, %v9806_v35 }
 0xd9d   :  { %v18565_v54 = vpop.eup %15725  ;;  %15733 = vpow2.f32 %v9924_v37  ;;  %v9895_v41 = vsub.f32 %v18386_v61, %v9815_v49 }
 0xd9e   :  { %v9928_v44 = vmul.f32 1.442695, %v9892_v5  ;;  %v9987_v34 = vsel %vm868_vm2, %v18565_v54, 0.0 }
 0xd9f   :  { %v18573_v56 = vpop.eup %15727  ;;  %v9934_v45 = vmul.f32 1.442695, %v9895_v41  ;;  %9988 = vadd.xlane.f32.xlu1 %v9987_v34  ;;  %v9812_v17 = vpop.xlane.xlu0 %9811 }
 0xda0   :  { %15735 = vpow2.f32 %v9928_v44  ;;  %v9894_v8 = vsub.f32 %v18391_v12, %v9812_v17  ;;  %v9984_v61 = vsel %vm868_vm2, %v18573_v56, 0.0 }
 0xda1   :  { %15737 = vpow2.f32 %v9934_v45  ;;  %9985 = vadd.xlane.f32.xlu0 %v9984_v61 }
 0xda2   :  { %v9932_v7 = vmul.f32 1.442695, %v9894_v8 }
 0xda3   :  { %9886 = vmax.xlane.f32.xlu1 %v9885_v16 }
 0xda4   :  { %15739 = vpow2.f32 %v9932_v7 }
 0xda5   :  { %v18585_v3 = vpop.eup %15729  ;;  %9883 = vmax.xlane.f32.xlu0 %v9882_v14 }
 0xda6   :  { %v9993_v32 = vsel %vm868_vm2, %v18585_v3, 0.0 }
 0xda7   :  { %9994 = vadd.xlane.f32.xlu1 %v9993_v32 }
 0xda9   :  { %v18589_v12 = vpop.eup %15731 }
 0xdaa   :  { %v18591_v4 = vpop.eup %15733  ;;  %v9999_v48 = vsel %vm868_vm2, %v18589_v12, 0.0 }
 0xdab   :  { %10000 = vadd.xlane.f32.xlu1 %v9999_v48  ;;  %v9990_v15 = vsel %vm868_vm2, %v18591_v4, 0.0 }
 0xdac   :  { %9991 = vadd.xlane.f32.xlu0 %v9990_v15 }
 0xdad   :  { %v18597_v0 = vpop.eup %15735 }
 0xdae   :  { %v18599_v60 = vpop.eup %15737  ;;  %v9996_v37 = vsel %vm868_vm2, %v18597_v0, 0.0 }
 0xdaf   :  { %v10005_v35 = vsel %vm868_vm2, %v18599_v60, 0.0 }
 0xdb0   :  { %10006 = vadd.xlane.f32.xlu1 %v10005_v35  ;;  %9997 = vadd.xlane.f32.xlu0 %v9996_v37 }
 0xdb1   :  { %v18605_v49 = vpop.eup %15739 }
 0xdb2   :  { %v10002_v5 = vsel %vm868_vm2, %v18605_v49, 0.0 }
 0xdb4   :  { %10003 = vadd.xlane.f32.xlu0 %v10002_v5 }
 0xdca   :  { %v9821_v41 = vpop.xlane.xlu1 %9820 }
 0xdcb   :  { %v9897_v44 = vsub.f32 %v18402_v57, %v9821_v41 }
 0xdcc   :  { %v9818_v34 = vpop.xlane.xlu0 %9817 }
 0xdcd   :  { %v9938_v45 = vmul.f32 1.442695, %v9897_v44  ;;  %v9896_v17 = vsub.f32 %v18407_v6, %v9818_v34 }
 0xdcf   :  { %15741 = vpow2.f32 %v9938_v45  ;;  %v9936_v8 = vmul.f32 1.442695, %v9896_v17 }
 0xdd1   :  { %15743 = vpow2.f32 %v9936_v8 }
 0xdd2   :  { %v9827_v61 = vpop.xlane.xlu1 %9826 }
 0xdd3   :  { %v9899_v7 = vsub.f32 %v18416_v43, %v9827_v61 }
 0xdd5   :  { %v9942_v16 = vmul.f32 1.442695, %v9899_v7 }
 0xdd6   :  { %v9824_v14 = vpop.xlane.xlu0 %9823 }
 0xdd7   :  { %15745 = vpow2.f32 %v9942_v16  ;;  %v9898_v32 = vsub.f32 %v18423_v11, %v9824_v14 }
 0xdd9   :  { %v9940_v48 = vmul.f32 1.442695, %v9898_v32 }
 0xdda   :  { %v9833_v15 = vpop.xlane.xlu1 %9832 }
 0xddb   :  { %15747 = vpow2.f32 %v9940_v48  ;;  %v9901_v57 = vsub.f32 %v18430_v59, %v9833_v15 }
 0xddc   :  { %v18614_v37 = vpop.eup %15741  ;;  %v9830_v35 = vpop.xlane.xlu0 %9829 }
 0xddd   :  { %v9946_v6 = vmul.f32 1.442695, %v9901_v57  ;;  %v9900_v5 = vsub.f32 %v18435_v29, %v9830_v35  ;;  %v10011_v41 = vsel %vm868_vm2, %v18614_v37, 0.0 }
 0xdde   :  { %v18619_v43 = vpop.eup %15743  ;;  %10012 = vadd.xlane.f32.xlu1 %v10011_v41 }
 0xddf   :  { %15749 = vpow2.f32 %v9946_v6  ;;  %v9944_v44 = vmul.f32 1.442695, %v9900_v5  ;;  %v10008_v11 = vsel %vm868_vm2, %v18619_v43, 0.0 }
 0xde0   :  { %10009 = vadd.xlane.f32.xlu0 %v10008_v11 }
 0xde1   :  { %15751 = vpow2.f32 %v9944_v44 }
 0xde2   :  { %v9839_v59 = vpop.xlane.xlu1 %9838 }
 0xde3   :  { %v9903_v34 = vsub.f32 %v18446_v27, %v9839_v59 }
 0xde4   :  { %v18624_v45 = vpop.eup %15745  ;;  %v9836_v17 = vpop.xlane.xlu0 %9835 }
 0xde5   :  { %v9950_v29 = vmul.f32 1.442695, %v9903_v34  ;;  %v9902_v8 = vsub.f32 %v18451_v53, %v9836_v17  ;;  %v10017_v61 = vsel %vm868_vm2, %v18624_v45, 0.0 }
 0xde6   :  { %v9845_v7 = vpop.xlane.xlu1 %9844  ;;  %10018 = vadd.xlane.f32.xlu1 %v10017_v61 }
 0xde7   :  { %15753 = vpow2.f32 %v9950_v29  ;;  %v9948_v16 = vmul.f32 1.442695, %v9902_v8  ;;  %v9905_v14 = vsub.f32 %v18456_v62, %v9845_v7 }
 0xde8   :  { %v18630_v32 = vpop.eup %15747  ;;  %v9842_v48 = vpop.xlane.xlu0 %9841 }
 0xde9   :  { %15755 = vpow2.f32 %v9948_v16  ;;  %v9954_v27 = vmul.f32 1.442695, %v9905_v14  ;;  %v9904_v15 = vsub.f32 %v18463_v21, %v9842_v48  ;;  %v10014_v57 = vsel %vm868_vm2, %v18630_v32, 0.0 }
 0xdea   :  { %v9851_v53 = vpop.xlane.xlu1 %9850  ;;  %10015 = vadd.xlane.f32.xlu0 %v10014_v57 }
 0xdeb   :  { %v9952_v35 = vmul.f32 1.442695, %v9904_v15  ;;  %v9907_v6 = vsub.f32 %v18470_v63, %v9851_v53  ;;  %15757 = vpow2.f32 %v9954_v27 }
 0xdec   :  { %v18636_v5 = vpop.eup %15749  ;;  %v9848_v14 = vpop.xlane.xlu0 %9847 }
 0xded   :  { %15759 = vpow2.f32 %v9952_v35  ;;  %v9958_v62 = vmul.f32 1.442695, %v9907_v6  ;;  %v10023_v41 = vsel %vm868_vm2, %v18636_v5, 0.0  ;;  %v9906_v6 = vsub.f32 %v18475_v18, %v9848_v14 }
 0xdee   :  { %v18640_v44 = vpop.eup %15751  ;;  %10024 = vadd.xlane.f32.xlu1 %v10023_v41  ;;  %v9857_v27 = vpop.xlane.xlu1 %9856 }
 0xdef   :  { %15761 = vpow2.f32 %v9958_v62  ;;  %v10020_v21 = vsel %vm868_vm2, %v18640_v44, 0.0 }
 0xdf0   :  { %10021 = vadd.xlane.f32.xlu0 %v10020_v21  ;;  %v9854_v48 = vpop.xlane.xlu0 %9853  ;;  %v9956_v21 = vmul.f32 1.442695, %v9906_v6 }
 0xdf2   :  { %v9863_v57 = vpop.xlane.xlu1 %9862  ;;  %15763 = vpow2.f32 %v9956_v21 }
 0xdf4   :  { %v18644_v11 = vpop.eup %15753  ;;  %v9860_v15 = vpop.xlane.xlu0 %9859 }
 0xdf5   :  { %v10029_v63 = vsel %vm868_vm2, %v18644_v11, 0.0  ;;  %v9910_v41 = vsub.f32 %v18501_v47, %v9860_v15  ;;  %v9911_v47 = vsub.f32 %v18494_v23, %v9863_v57 }
 0xdf6   :  { %v18648_v59 = vpop.eup %15755  ;;  %10030 = vadd.xlane.f32.xlu1 %v10029_v63  ;;  %v9869_v35 = vpop.xlane.xlu1 %9868  ;;  %v9909_v63 = vsub.f32 %v18482_v30, %v9857_v27 }
 0xdf7   :  { %v10026_v17 = vsel %vm868_vm2, %v18648_v59, 0.0 }
 0xdf8   :  { %v18650_v34 = vpop.eup %15757  ;;  %v9866_v53 = vpop.xlane.xlu0 %9865 }
 0xdf9   :  { %19531 = vst [vmem:[#allocation26_spill] sm:$0xff] %v18650_v34  ;;  %v10035_v7 = vsel %vm868_vm2, %v18650_v34, 0.0  ;;  %v9912_v30 = vsub.f32 %v18513_v20, %v9866_v53 }
 0xdfa   :  { %v18654_v29 = vpop.eup %15759  ;;  %10027 = vadd.xlane.f32.xlu1 %v10026_v17  ;;  %v9875_v17 = vpop.xlane.xlu1 %9874 }
 0xdfb   :  { %v10032_v8 = vsel %vm868_vm2, %v18654_v29, 0.0  ;;  %v9915_v23 = vsub.f32 %v18520_v25, %v9875_v17 }
 0xdfc   :  { %v18658_v61 = vpop.eup %15761  ;;  %10033 = vadd.xlane.f32.xlu0 %v10032_v8  ;;  %v9872_v62 = vpop.xlane.xlu0 %9871  ;;  %v9964_v8 = vmul.f32 1.442695, %v9910_v41 }
 0xdfd   :  { %19532 = vst [vmem:[#allocation27_spill] sm:$0xff] %v18658_v61  ;;  %v10041_v16 = vsel %vm868_vm2, %v18658_v61, 0.0  ;;  %v9908_v61 = vsub.f32 %v18489_v52, %v9854_v48  ;;  %v9968_v52 = vmul.f32 1.442695, %v9912_v30  ;;  %v9914_v53 = vsub.f32 %v18527_v58, %v9872_v62 }
 0xdfe   :  { %10036 = vadd.xlane.f32.xlu1 %v10035_v7  ;;  %v9913_v7 = vsub.f32 %v18508_v31, %v9869_v35  ;;  %15765 = vpow2.f32 %v9964_v8  ;;  %v9881_v34 = vpop.xlane.xlu1 %9880  ;;  %v9966_v31 = vmul.f32 1.442695, %v9911_v47 }
 0xdff   :  { %v9960_v14 = vmul.f32 1.442695, %v9908_v61 }
 0xe00   :  { %10042 = vadd.xlane.f32.xlu0 %v10041_v16  ;;  %v9878_v16 = vpop.xlane.xlu0 %9877 }
 0xe01   :  { %v9916_v18 = vsub.f32 %v18539_v50, %v9878_v16  ;;  %v18677_v50 = vpop.eup %15763 }
 0xe02   :  { %v10038_v21 = vsel %vm868_vm2, %v18677_v50, 0.0 }
 0xe03   :  { %v9976_v27 = vmul.f32 1.442695, %v9916_v18 }
 0xe0b   :  { %v18680_v57 = vpop.eup %15765 }
 0xe0c   :  { %v10050_v25 = vsel %vm868_vm2, %v18680_v57, 0.0 }
 0xe0f   :  { %12348 = vrot.lane.b32.xlu1 %v18087_v9, %s15893_s16  ;;  %v9962_v9 = vmul.f32 1.442695, %v9909_v63 }
 0xe11   :  { %15767 = vpow2.f32 %v9962_v9 }
 0xe16   :  { %12272 = vrot.lane.b32.xlu0 %v18091_v22, %s15893_s16  ;;  %v9970_v22 = vmul.f32 1.442695, %v9913_v7  ;;  %v9972_v7 = vmul.f32 1.442695, %v9914_v53 }
 0xe18   :  { %15769 = vpow2.f32 %v9970_v22  ;;  %v9917_v22 = vsub.f32 %v18532_v42, %v9881_v34 }
 0xe1a   :  { %v9978_v34 = vmul.f32 1.442695, %v9917_v22 }
 0xe1e   :  { %v18685_v63 = vpop.eup %15767 }
 0xe1f   :  { %v10047_v62 = vsel %vm868_vm2, %v18685_v63, 0.0 }
 0xe25   :  { %v18689_v17 = vpop.eup %15769 }
 0xe26   :  { %v10059_v47 = vsel %vm868_vm2, %v18689_v17, 0.0 }
 0xe28   :  { %v9989_v15 = vpop.xlane.xlu1 %9988 }
 0xe29   :  { %15771 = vrcp.f32 %v9989_v15 }
 0xe2a   :  { %15773 = vpow2.f32 %v9960_v14  ;;  %v9986_v35 = vpop.xlane.xlu0 %9985 }
 0xe2b   :  { %15775 = vrcp.f32 %v9986_v35 }
 0xe2c   :  { %15777 = vpow2.f32 %v9976_v27  ;;  %v9887_v48 = vpop.xlane.xlu1 %9886 }
 0xe2d   :  { %v9919_v6 = vsub.f32 %v18569_v36, %v9887_v48  ;;  %15779 = vpow2.f32 %v9966_v31  ;;  %v9974_v36 = vmul.f32 1.442695, %v9915_v23 }
 0xe2e   :  { %15781 = vpow2.f32 %v9968_v52  ;;  %v9884_v41 = vpop.xlane.xlu0 %9883 }
 0xe2f   :  { %v9982_v61 = vmul.f32 1.442695, %v9919_v6  ;;  %v9918_v35 = vsub.f32 %v18576_v55, %v9884_v41 }
 0xe30   :  { %v9995_v20 = vpop.xlane.xlu1 %9994 }
 0xe31   :  { %15783 = vpow2.f32 %v9982_v61  ;;  %v9980_v6 = vmul.f32 1.442695, %v9918_v35 }
 0xe32   :  { %15785 = vrcp.f32 %v9995_v20 }
 0xe33   :  { %10039 = vadd.xlane.f32.xlu1 %v10038_v21 }
 0xe34   :  { %v10001_v8 = vpop.xlane.xlu1 %10000 }
 0xe35   :  { %15787 = vrcp.f32 %v10001_v8  ;;  %v9992_v16 = vpop.xlane.xlu0 %9991  ;;  %10051 = vadd.xlane.f32.xlu0 %v10050_v25 }
 0xe36   :  { %v15772_v58 = vpop.eup %15771  ;;  %15789 = vrcp.f32 %v9992_v16 }
 0xe37   :  { %v18693_v9 = vpop.eup %15773  ;;  %15791 = vpow2.f32 %v9974_v36  ;;  %v10083_v18 = vmul.f32 %v15772_v58, %v18565_v54  ;;  %10048 = vadd.xlane.f32.xlu1 %v10047_v62 }
 0xe38   :  { %v15776_v14 = vpop.eup %15775  ;;  %15793 = vpow2.f32 %v9972_v7  ;;  %v10044_v42 = vsel %vm868_vm2, %v18693_v9, 0.0 }
 0xe39   :  { %v18699_v30 = vpop.eup %15777  ;;  %v10081_v27 = vmul.f32 %v15776_v14, %v18573_v56  ;;  %v10007_v15 = vpop.xlane.xlu1 %10006  ;;  %15240 = vmatmul.mubr.msk.f32.vlgmr.msra.gmra.mxu1 %vm868_vm2, %v10083_v18  ;;  %10060 = vadd.xlane.f32.xlu0 %v10059_v47 }
 0xe3a   :  { %v9998_v31 = vpop.xlane.xlu0 %9997  ;;  %15795 = vrcp.f32 %v10007_v15  ;;  %15248 = vmatpush3.msra.mxu1 %v18399_v26  ;;  %15249 = vmatprep.mubr.msk.f32.mxu1 %vm15890_vm1, %v19485_v1  ;;  %v18708_v54 = vpop.eup %15779  ;;  %v10068_v26 = vsel %vm868_vm2, %v18699_v30, 0.0 }
 0xe3b   :  { %15797 = vrcp.f32 %v9998_v31  ;;  %10045 = vadd.xlane.f32.xlu1 %v10044_v42  ;;  %15235 = vmatmul.mubr.msk.f32.vlgmr.msra.gmra.mxu0 %vm868_vm2, %v10081_v27  ;;  %v18716_v56 = vpop.eup %15781  ;;  %v10053_v55 = vsel %vm868_vm2, %v18708_v54, 0.0 }
 0xe3c   :  { %15243 = vmatpush3.msra.mxu0 %v18397_v10  ;;  %15257 = vmatprep.subr.mxu1 %v19485_v1  ;;  %v10056_v53 = vsel %vm868_vm2, %v18716_v56, 0.0 }
 0xe3d   :  { %10069 = vadd.xlane.f32.xlu0 %v10068_v26  ;;  %15244 = vmatprep.mubr.msk.f32.mxu0 %vm15890_vm1, %v19485_v1  ;;  %v19534_v26 = vld [vmem:[#allocation21_spill] sm:$0xff] }
 0xe3e   :  { %v10004_v52 = vpop.xlane.xlu0 %10003  ;;  %v18720_v48 = vpop.eup %15783  ;;  %15252 = vmatprep.subr.mxu0 %v19485_v1 }
 0xe3f   :  { %15799 = vrcp.f32 %v10004_v52  ;;  %v15786_v10 = vpop.eup %15785  ;;  %10054 = vadd.xlane.f32.xlu1 %v10053_v55  ;;  %v10077_v23 = vsel %vm868_vm2, %v18720_v48, 0.0 }
 0xe40   :  { %15801 = vpow2.f32 %v9978_v34  ;;  %v10087_v61 = vmul.f32 %v15786_v10, %v18585_v3 }
 0xe41   :  { %10078 = vadd.xlane.f32.xlu0 %v10077_v23  ;;  %15803 = vpow2.f32 %v9980_v6  ;;  %v19536_v6 = vld [vmem:[#allocation23_spill] sm:$0xff] }
 0xe42   :  { %v15788_v20 = vpop.eup %15787  ;;  %15250 = vmatmul.mubr.msk.f32.vlgmr.msra.gmra.mxu1 %vm868_vm2, %v10087_v61 }
 0xe43   :  { %v15790_v41 = vpop.eup %15789  ;;  %v10091_v21 = vmul.f32 %v15788_v20, %v18589_v12  ;;  %15258 = vmatpush3.msra.mxu1 %v18404_v40  ;;  %10057 = vadd.xlane.f32.xlu1 %v10056_v53  ;;  %v19537_v53 = vld [vmem:[#allocation17_spill] sm:$0xff] }
 0xe44   :  { %v18733_v36 = vpop.eup %15791  ;;  %v10085_v8 = vmul.f32 %v15790_v41, %v18591_v4  ;;  %15259 = vmatprep.mubr.msk.f32.mxu1 %vm15890_vm1, %v19485_v1  ;;  %15267 = vmatprep.subr.mxu1 %v19485_v1  ;;  %v19538_v41 = vld [vmem:[#allocation26_spill] sm:$0xff] }
 0xe45   :  { %v18739_v3 = vpop.eup %15793  ;;  %v10065_v40 = vsel %vm868_vm2, %v18733_v36, 0.0 }
 0xe46   :  { %15245 = vmatmul.mubr.msk.f32.vlgmr.msra.gmra.mxu0 %vm868_vm2, %v10085_v8  ;;  %15260 = vmatmul.mubr.msk.f32.vlgmr.msra.gmra.mxu1 %vm868_vm2, %v10091_v21 }
 0xe47   :  { %v15796_v25 = vpop.eup %15795  ;;  %15253 = vmatpush3.msra.mxu0 %v18420_v38  ;;  %15268 = vmatpush3.msra.mxu1 %v18432_v33  ;;  %v10062_v33 = vsel %vm868_vm2, %v18739_v3, 0.0 }
 0xe48   :  { %v15798_v12 = vpop.eup %15797  ;;  %v10095_v4 = vmul.f32 %v15796_v25, %v18599_v60  ;;  %10066 = vadd.xlane.f32.xlu1 %v10065_v40  ;;  %15254 = vmatprep.mubr.msk.f32.mxu0 %vm15890_vm1, %v19485_v1  ;;  %v19540_v25 = vld [vmem:[#allocation19_spill] sm:$0xff] }
 0xe49   :  { %v10089_v7 = vmul.f32 %v15798_v12, %v18597_v0  ;;  %15262 = vmatprep.subr.mxu0 %v19485_v1  ;;  %15269 = vmatprep.mubr.msk.f32.mxu1 %vm15890_vm1, %v19485_v1  ;;  %v19541_v40 = vld [vmem:[#allocation27_spill] sm:$0xff] }
 0xe4a   :  { %15277 = vmatprep.subr.mxu1 %v19485_v1  ;;  %15270 = vmatmul.mubr.msk.f32.vlgmr.msra.gmra.mxu1 %vm868_vm2, %v10095_v4 }
 0xe4b   :  { %15255 = vmatmul.mubr.msk.f32.vlgmr.msra.gmra.mxu0 %vm868_vm2, %v10089_v7  ;;  %15278 = vmatpush3.msra.mxu1 %v18439_v46 }
 0xe4c   :  { %v15800_v38 = vpop.eup %15799  ;;  %15263 = vmatpush3.msra.mxu0 %v18413_v39  ;;  %10063 = vadd.xlane.f32.xlu1 %v10062_v33 }
 0xe4d   :  { %v18760_v60 = vpop.eup %15801  ;;  %v10093_v0 = vmul.f32 %v15800_v38, %v18605_v49  ;;  %15264 = vmatprep.mubr.msk.f32.mxu0 %vm15890_vm1, %v19485_v1  ;;  %15272 = vmatprep.subr.mxu0 %v19485_v1 }
 0xe4e   :  { %15279 = vmatprep.mubr.msk.f32.mxu1 %vm15890_vm1, %v19485_v1  ;;  %15287 = vmatprep.subr.mxu1 %v19485_v1  ;;  %v10071_v46 = vsel %vm868_vm2, %v18760_v60, 0.0  ;;  %v18773_v16 = vpop.eup %15803 }
 0xe4f   :  { %15265 = vmatmul.mubr.msk.f32.vlgmr.msra.gmra.mxu0 %vm868_vm2, %v10093_v0  ;;  %v10074_v39 = vsel %vm868_vm2, %v18773_v16, 0.0 }
 0xe50   :  { %15273 = vmatpush3.msra.mxu0 %v18425_v13  ;;  %10072 = vadd.xlane.f32.xlu1 %v10071_v46 }
 0xe51   :  { %15274 = vmatprep.mubr.msk.f32.mxu0 %vm15890_vm1, %v19485_v1  ;;  %15282 = vmatprep.subr.mxu0 %v19485_v1 }
 0xe54   :  { %10075 = vadd.xlane.f32.xlu1 %v10074_v39 }
 0xe57   :  { %12424 = vrot.lane.b32.xlu0 %v18113_v19, %s15893_s16 }
 0xe65   :  { %12500 = vrot.lane.b32.xlu1 %v18104_v28, %s15893_s16 }
 0xe67   :  { %v10013_v49 = vpop.xlane.xlu1 %10012 }
 0xe68   :  { %15805 = vrcp.f32 %v10013_v49 }
 0xe69   :  { %v10010_v58 = vpop.xlane.xlu0 %10009 }
 0xe6a   :  { %15807 = vrcp.f32 %v10010_v58 }
 0xe6f   :  { %v10019_v13 = vpop.xlane.xlu1 %10018 }
 0xe70   :  { %15809 = vrcp.f32 %v10019_v13 }
 0xe73   :  { %v10016_v62 = vpop.xlane.xlu0 %10015 }
 0xe74   :  { %15811 = vrcp.f32 %v10016_v62 }
 0xe75   :  { %v15806_v22 = vpop.eup %15805 }
 0xe76   :  { %v10099_v18 = vmul.f32 %v15806_v22, %v18614_v37 }
 0xe77   :  { %v15808_v14 = vpop.eup %15807  ;;  %v10025_v47 = vpop.xlane.xlu1 %10024 }
 0xe78   :  { %v10097_v27 = vmul.f32 %v15808_v14, %v18619_v43  ;;  %15813 = vrcp.f32 %v10025_v47  ;;  %15280 = vmatmul.mubr.msk.f32.vlgmr.msra.gmra.mxu1 %vm868_vm2, %v10099_v18  ;;  %v19543_v18 = vld [vmem:[#allocation3_spill] sm:$0xff] }
 0xe79   :  { %15288 = vmatpush3.msra.mxu1 %v18448_v51  ;;  %v10022_v28 = vpop.xlane.xlu0 %10021  ;;  %15289 = vmatprep.mubr.msk.f32.mxu1 %vm15890_vm1, %v19485_v1 }
 0xe7a   :  { %15815 = vrcp.f32 %v10022_v28  ;;  %15275 = vmatmul.mubr.msk.f32.vlgmr.msra.gmra.mxu0 %vm868_vm2, %v10097_v27  ;;  %15297 = vmatprep.subr.mxu1 %v19485_v1 }
 0xe7b   :  { %15283 = vmatpush3.msra.mxu0 %v18443_v24  ;;  %15284 = vmatprep.mubr.msk.f32.mxu0 %vm15890_vm1, %v19485_v1 }
 0xe7c   :  { %15292 = vmatprep.subr.mxu0 %v19485_v1 }
 0xe7d   :  { %v15810_v19 = vpop.eup %15809 }
 0xe7e   :  { %v10103_v37 = vmul.f32 %v15810_v19, %v18624_v45  ;;  %v19533_v45 = vld [vmem:[#allocation22_spill] sm:$0xff] }
 0xe7f   :  { %v10031_v51 = vpop.xlane.xlu1 %10030 }
 0xe80   :  { %15817 = vrcp.f32 %v10031_v51  ;;  %15290 = vmatmul.mubr.msk.f32.vlgmr.msra.gmra.mxu1 %vm868_vm2, %v10103_v37 }
 0xe81   :  { %v15812_v43 = vpop.eup %15811  ;;  %15298 = vmatpush3.msra.mxu1 %v18460_v2  ;;  %15299 = vmatprep.mubr.msk.f32.mxu1 %vm15890_vm1, %v19485_v1 }
 0xe82   :  { %v10101_v24 = vmul.f32 %v15812_v43, %v18630_v32  ;;  %15307 = vmatprep.subr.mxu1 %v19485_v1  ;;  %v19545_v43 = vld [vmem:[#allocation25_spill] sm:$0xff] }
 0xe83   :  { %v10028_v15 = vpop.xlane.xlu1 %10027 }
 0xe84   :  { %15819 = vrcp.f32 %v10028_v15  ;;  %15285 = vmatmul.mubr.msk.f32.vlgmr.msra.gmra.mxu0 %vm868_vm2, %v10101_v24 }
 0xe85   :  { %v15814_v31 = vpop.eup %15813  ;;  %15293 = vmatpush3.msra.mxu0 %v19533_v45  ;;  %v10034_v42 = vpop.xlane.xlu0 %10033  ;;  %15294 = vmatprep.mubr.msk.f32.mxu0 %vm15890_vm1, %v19485_v1 }
 0xe86   :  { %v10107_v2 = vmul.f32 %v15814_v31, %v18636_v5  ;;  %15821 = vrcp.f32 %v10034_v42  ;;  %15302 = vmatprep.subr.mxu0 %v19485_v1  ;;  %v19535_v5 = vld [vmem:[#allocation8_spill] sm:$0xff] }
 0xe87   :  { %v15816_v34 = vpop.eup %15815  ;;  %v10037_v32 = vpop.xlane.xlu1 %10036 }
 0xe88   :  { %v10105_v35 = vmul.f32 %v15816_v34, %v18640_v44  ;;  %15823 = vrcp.f32 %v10037_v32  ;;  %15300 = vmatmul.mubr.msk.f32.vlgmr.msra.gmra.mxu1 %vm868_vm2, %v10107_v2  ;;  %v19546_v2 = vld [vmem:[#allocation4_spill] sm:$0xff]  ;;  %v19547_v34 = vld [vmem:[#allocation9_spill] sm:$0xff] }
 0xe89   :  { %15308 = vmatpush3.msra.mxu1 %v19534_v26  ;;  %v10043_v52 = vpop.xlane.xlu0 %10042  ;;  %15309 = vmatprep.mubr.msk.f32.mxu1 %vm15890_vm1, %v19485_v1 }
 0xe8a   :  { %15825 = vrcp.f32 %v10043_v52  ;;  %15295 = vmatmul.mubr.msk.f32.vlgmr.msra.gmra.mxu0 %vm868_vm2, %v10105_v35  ;;  %15317 = vmatprep.subr.mxu1 %v19485_v1 }
 0xe8b   :  { %15303 = vmatpush3.msra.mxu0 %v19535_v5  ;;  %15304 = vmatprep.mubr.msk.f32.mxu0 %vm15890_vm1, %v19485_v1  ;;  %v18851_v4 = vpop.permute.xlu1 %12348 }
 0xe8c   :  { %15312 = vmatprep.subr.mxu0 %v19485_v1 }
 0xe8d   :  { %v15818_v44 = vpop.eup %15817  ;;  %v18853_v38 = vpop.permute.xlu0 %12272 }
 0xe8e   :  { %v10111_v55 = vmul.f32 %v15818_v44, %v18644_v11 }
 0xe90   :  { %15310 = vmatmul.mubr.msk.f32.vlgmr.msra.gmra.mxu1 %vm868_vm2, %v10111_v55 }
 0xe91   :  { %v15820_v10 = vpop.eup %15819  ;;  %15318 = vmatpush3.msra.mxu1 %v19536_v6  ;;  %15319 = vmatprep.mubr.msk.f32.mxu1 %vm15890_vm1, %v19485_v1 }
 0xe92   :  { %v10109_v23 = vmul.f32 %v15820_v10, %v18648_v59  ;;  %15327 = vmatprep.subr.mxu1 %v19485_v1  ;;  %v19539_v59 = vld [vmem:[#allocation2_spill] sm:$0xff] }
 0xe93   :  { %v15822_v61 = vpop.eup %15821 }
 0xe94   :  { %15305 = vmatmul.mubr.msk.f32.vlgmr.msra.gmra.mxu0 %vm868_vm2, %v10109_v23  ;;  %v10113_v11 = vmul.f32 %v15822_v61, %v18654_v29  ;;  %v19542_v29 = vld [vmem:[#allocation5_spill] sm:$0xff] }
 0xe95   :  { %v15824_v20 = vpop.eup %15823  ;;  %15313 = vmatpush3.msra.mxu0 %v19537_v53  ;;  %15314 = vmatprep.mubr.msk.f32.mxu0 %vm15890_vm1, %v19485_v1 }
 0xe96   :  { %v10115_v21 = vmul.f32 %v15824_v20, %v19538_v41  ;;  %15322 = vmatprep.subr.mxu0 %v19485_v1 }
 0xe97   :  { %v15826_v8 = vpop.eup %15825 }
 0xe98   :  { %15315 = vmatmul.mubr.msk.f32.vlgmr.msra.gmra.mxu0 %vm868_vm2, %v10113_v11  ;;  %15320 = vmatmul.mubr.msk.f32.vlgmr.msra.gmra.mxu1 %vm868_vm2, %v10115_v21  ;;  %v10119_v12 = vmul.f32 %v15826_v8, %v19541_v40 }
 0xe99   :  { %15323 = vmatpush3.msra.mxu0 %v19539_v59  ;;  %15328 = vmatpush3.msra.mxu1 %v19540_v25 }
 0xe9a   :  { %15329 = vmatprep.mubr.msk.f32.mxu1 %vm15890_vm1, %v19485_v1  ;;  %15337 = vmatprep.subr.mxu1 %v19485_v1 }
 0xe9b   :  { %15324 = vmatprep.mubr.msk.f32.mxu0 %vm15890_vm1, %v19485_v1  ;;  %15332 = vmatprep.subr.mxu0 %v19485_v1 }
 0xe9c   :  { %15330 = vmatmul.mubr.msk.f32.vlgmr.msra.gmra.mxu1 %vm868_vm2, %v10119_v12 }
 0xe9d   :  { %15338 = vmatpush3.msra.mxu1 %v19542_v29  ;;  %15339 = vmatprep.mubr.msk.f32.mxu1 %vm15890_vm1, %v19485_v1 }
 0xe9e   :  { %15347 = vmatprep.subr.mxu1 %v19485_v1 }
 0xebc   :  { %v10040_v7 = vpop.xlane.xlu1 %10039 }
 0xebd   :  { %15827 = vrcp.f32 %v10040_v7 }
 0xebe   :  { %v10052_v0 = vpop.xlane.xlu0 %10051 }
 0xec0   :  { %v10049_v33 = vpop.xlane.xlu1 %10048 }
 0xec1   :  { %15829 = vrcp.f32 %v10049_v33 }
 0xec2   :  { %v10061_v39 = vpop.xlane.xlu0 %10060 }
 0xec4   :  { %v10046_v46 = vpop.xlane.xlu1 %10045 }
 0xec5   :  { %15831 = vrcp.f32 %v10046_v46 }
 0xec6   :  { %15833 = vrcp.f32 %v10052_v0  ;;  %v10070_v19 = vpop.xlane.xlu0 %10069 }
 0xec8   :  { %v10055_v49 = vpop.xlane.xlu1 %10054 }
 0xec9   :  { %15835 = vrcp.f32 %v10055_v49 }
 0xeca   :  { %v15828_v58 = vpop.eup %15827  ;;  %15837 = vrcp.f32 %v10061_v39  ;;  %v10079_v31 = vpop.xlane.xlu0 %10078 }
 0xecb   :  { %v10117_v13 = vmul.f32 %v15828_v58, %v18677_v50  ;;  %v19544_v50 = vld [vmem:[#allocation7_spill] sm:$0xff] }
 0xecc   :  { %v10058_v62 = vpop.xlane.xlu1 %10057 }
 0xecd   :  { %15839 = vrcp.f32 %v10058_v62  ;;  %15325 = vmatmul.mubr.msk.f32.vlgmr.msra.gmra.mxu0 %vm868_vm2, %v10117_v13 }
 0xece   :  { %v15830_v22 = vpop.eup %15829  ;;  %15333 = vmatpush3.msra.mxu0 %v19543_v18  ;;  %15334 = vmatprep.mubr.msk.f32.mxu0 %vm15890_vm1, %v19485_v1  ;;  %v12425_v23 = vpop.permute.xlu0 %12424 }
 0xecf   :  { %v10123_v14 = vmul.f32 %v15830_v22, %v18685_v63  ;;  %15342 = vmatprep.subr.mxu0 %v19485_v1 }
 0xed1   :  { %v10067_v47 = vpop.xlane.xlu1 %10066  ;;  %15340 = vmatmul.mubr.msk.f32.vlgmr.msra.gmra.mxu1 %vm868_vm2, %v10123_v14 }
 0xed2   :  { %v15832_v27 = vpop.eup %15831  ;;  %15841 = vrcp.f32 %v10067_v47  ;;  %15348 = vmatpush3.msra.mxu1 %v19544_v50  ;;  %15349 = vmatprep.mubr.msk.f32.mxu1 %vm15890_vm1, %v19485_v1 }
 0xed3   :  { %v10121_v28 = vmul.f32 %v15832_v27, %v18693_v9  ;;  %15357 = vmatprep.subr.mxu1 %v19485_v1  ;;  %v15834_v37 = vpop.eup %15833 }
 0xed4   :  { %v10125_v24 = vmul.f32 %v15834_v37, %v18680_v57 }
 0xed5   :  { %v10064_v51 = vpop.xlane.xlu1 %10063  ;;  %15335 = vmatmul.mubr.msk.f32.vlgmr.msra.gmra.mxu0 %vm868_vm2, %v10121_v28 }
 0xed6   :  { %v15836_v63 = vpop.eup %15835  ;;  %15843 = vrcp.f32 %v10064_v51  ;;  %15343 = vmatpush3.msra.mxu0 %v19545_v43  ;;  %15344 = vmatprep.mubr.msk.f32.mxu0 %vm15890_vm1, %v19485_v1 }
 0xed7   :  { %v10127_v15 = vmul.f32 %v15836_v63, %v18708_v54  ;;  %15352 = vmatprep.subr.mxu0 %v19485_v1  ;;  %v15838_v9 = vpop.eup %15837  ;;  %15845 = vrcp.f32 %v10070_v19 }
 0xed8   :  { %v10131_v57 = vmul.f32 %v15838_v9, %v18689_v17  ;;  %v19548_v17 = vld [vmem:[#allocation6_spill] sm:$0xff]  ;;  %v6934_v9 = vld [vmem:[%s19430_s1 + $0x34e] sm:$0xff] }
 0xed9   :  { %v10073_v45 = vpop.xlane.xlu1 %10072  ;;  %15345 = vmatmul.mubr.msk.f32.vlgmr.msra.gmra.mxu0 %vm868_vm2, %v10125_v24  ;;  %15350 = vmatmul.mubr.msk.f32.vlgmr.msra.gmra.mxu1 %vm868_vm2, %v10127_v15 }
 0xeda   :  { %v15840_v42 = vpop.eup %15839  ;;  %15847 = vrcp.f32 %v10073_v45  ;;  %15353 = vmatpush3.msra.mxu0 %v19546_v2  ;;  %15358 = vmatpush3.msra.mxu1 %v19547_v34  ;;  %v6933_v45 = vld [vmem:[%s19430_s1 + $0x346] sm:$0xff] }
 0xedb   :  { %v10129_v54 = vmul.f32 %v15840_v42, %v18716_v56  ;;  %15354 = vmatprep.mubr.msk.f32.mxu0 %vm15890_vm1, %v19485_v1  ;;  %15359 = vmatprep.mubr.msk.f32.mxu1 %vm15890_vm1, %v19485_v1  ;;  %15849 = vrcp.f32 %v10079_v31  ;;  %v19549_v56 = vld [vmem:[#allocation11_spill] sm:$0xff]  ;;  %v6932_v42 = vld [vmem:[%s19430_s1 + $0x33e] sm:$0xff] }
 0xedc   :  { %15362 = vmatprep.subr.mxu0 %v19485_v1  ;;  %15367 = vmatprep.subr.mxu1 %v19485_v1 }
 0xedd   :  { %v10076_v32 = vpop.xlane.xlu1 %10075  ;;  %15355 = vmatmul.mubr.msk.f32.vlgmr.msra.gmra.mxu0 %vm868_vm2, %v10129_v54  ;;  %15360 = vmatmul.mubr.msk.f32.vlgmr.msra.gmra.mxu1 %vm868_vm2, %v10131_v57  ;;  %v6931_v57 = vld [vmem:[%s19430_s1 + $0x336] sm:$0xff] }
 0xede   :  { %15851 = vrcp.f32 %v10076_v32  ;;  %15363 = vmatpush3.msra.mxu0 %v19548_v17  ;;  %15368 = vmatpush3.msra.mxu1 %v19549_v56 }
 0xedf   :  { %v15842_v35 = vpop.eup %15841  ;;  %15369 = vmatprep.mubr.msk.f32.mxu1 %vm15890_vm1, %v19485_v1  ;;  %15377 = vmatprep.subr.mxu1 %v19485_v1 }
 0xee0   :  { %v10135_v26 = vmul.f32 %v15842_v35, %v18733_v36  ;;  %15364 = vmatprep.mubr.msk.f32.mxu0 %vm15890_vm1, %v19485_v1  ;;  %15372 = vmatprep.subr.mxu0 %v19485_v1 }
 0xee2   :  { %15370 = vmatmul.mubr.msk.f32.vlgmr.msra.gmra.mxu1 %vm868_vm2, %v10135_v26 }
 0xee3   :  { %v15844_v52 = vpop.eup %15843  ;;  %15378 = vmatpush3.msra.mxu1 %v18851_v4  ;;  %15379 = vmatprep.mubr.msk.f32.mxu1 %vm15890_vm1, %v19485_v1 }
 0xee4   :  { %v10133_v5 = vmul.f32 %v15844_v52, %v18739_v3  ;;  %15387 = vmatprep.subr.mxu1 %v19485_v1  ;;  %v15846_v44 = vpop.eup %15845  ;;  %v12501_v3 = vpop.permute.xlu1 %12500 }
 0xee5   :  { %v10137_v55 = vmul.f32 %v15846_v44, %v18699_v30 }
 0xee6   :  { %15365 = vmatmul.mubr.msk.f32.vlgmr.msra.gmra.mxu0 %vm868_vm2, %v10133_v5 }
 0xee7   :  { %v15848_v36 = vpop.eup %15847  ;;  %15373 = vmatpush3.msra.mxu0 %v18853_v38  ;;  %15374 = vmatprep.mubr.msk.f32.mxu0 %vm15890_vm1, %v19485_v1 }
 0xee8   :  { %v10139_v10 = vmul.f32 %v15848_v36, %v18760_v60  ;;  %15382 = vmatprep.subr.mxu0 %v19485_v1  ;;  %v15850_v6 = vpop.eup %15849 }
 0xee9   :  { %v10143_v20 = vmul.f32 %v15850_v6, %v18720_v48 }
 0xeea   :  { %15375 = vmatmul.mubr.msk.f32.vlgmr.msra.gmra.mxu0 %vm868_vm2, %v10137_v55  ;;  %15380 = vmatmul.mubr.msk.f32.vlgmr.msra.gmra.mxu1 %vm868_vm2, %v10139_v10 }
 0xeeb   :  { %v15852_v61 = vpop.eup %15851  ;;  %15383 = vmatpush3.msra.mxu0 %v12425_v23  ;;  %15388 = vmatpush3.msra.mxu1 %v12501_v3 }
 0xeec   :  { %v10141_v53 = vmul.f32 %v15852_v61, %v18773_v16  ;;  %15384 = vmatprep.mubr.msk.f32.mxu0 %vm15890_vm1, %v19485_v1  ;;  %15389 = vmatprep.mubr.msk.f32.mxu1 %vm15890_vm1, %v19485_v1 }
 0xeed   :  { %15392 = vmatprep.subr.mxu0 %v6934_v9 }
 0xeee   :  { %15385 = vmatmul.mubr.msk.f32.vlgmr.msra.gmra.mxu0 %vm868_vm2, %v10141_v53  ;;  %15390 = vmatmul.mubr.msk.f32.vlgmr.msra.gmra.mxu1 %vm868_vm2, %v10143_v20 }
 0xeef   :  { %15393 = vmatpush3.msra.mxu0 %v6934_v9 }
 0xef0   :  { %15394 = vmatprep.subr.mxu0 %v6933_v45 }
 0xef1   :  { %15395 = vmatpush3.msra.mxu0 %v6933_v45 }
 0xef2   :  { %15396 = vmatprep.subr.mxu0 %v6932_v42 }
 0xef3   :  { %15397 = vmatpush3.msra.mxu0 %v6932_v42 }
 0xef4   :  { %15398 = vmatprep.subr.mxu0 %v6931_v57 }
 0xef5   :  { %15399 = vmatpush3.msra.mxu0 %v6931_v57 }
 0xef9   :  { %v18921_v30 = vpop.f32.mrf.mxu1 }
 0xefb   :  { %v18923_v60 = vpop.f32.mrf.mxu0  ;;  %v15241_v11 = vpop.f32.mrf.mxu1 }
 0xefd   :  { %v15236_v41 = vpop.f32.mrf.mxu0 }
 0xf02   :  { %v18925_v21 = vpop.f32.mrf.mxu1 }
 0xf04   :  { %v15251_v48 = vpop.f32.mrf.mxu1 }
 0xf06   :  { %v18927_v16 = vpop.f32.mrf.mxu0  ;;  %v18929_v8 = vpop.f32.mrf.mxu1 }
 0xf08   :  { %v15246_v59 = vpop.f32.mrf.mxu0  ;;  %v15261_v25 = vpop.f32.mrf.mxu1 }
 0xf0a   :  { %v18931_v40 = vpop.f32.mrf.mxu1 }
 0xf0b   :  { %v18933_v12 = vpop.f32.mrf.mxu0 }
 0xf0c   :  { %v15271_v29 = vpop.f32.mrf.mxu1 }
 0xf0d   :  { %v15256_v4 = vpop.f32.mrf.mxu0 }
 0xf0f   :  { %v18935_v7 = vpop.f32.mrf.mxu0 }
 0xf11   :  { %v15266_v38 = vpop.f32.mrf.mxu0 }
 0xf38   :  { %v10900_v33 = vpop.f32.mrf.mxu1 }
 0xf39   :  { %12586 = vrot.lane.b32.xlu1 %v10900_v33, %s15895_s17 }
 0xf3a   :  { %v10824_v0 = vpop.f32.mrf.mxu0  ;;  %v15281_v46 = vpop.f32.mrf.mxu1 }
 0xf3b   :  { %12584 = vrot.lane.b32.xlu0 %v10824_v0, %s15895_s17 }
 0xf3c   :  { %v15276_v39 = vpop.f32.mrf.mxu0 }
 0xf40   :  { %v11052_v49 = vpop.f32.mrf.mxu1 }
 0xf41   :  { %12590 = vrot.lane.b32.xlu1 %v11052_v49, %s15895_s17 }
 0xf42   :  { %v15291_v58 = vpop.f32.mrf.mxu1 }
 0xf44   :  { %v10976_v13 = vpop.f32.mrf.mxu0 }
 0xf45   :  { %12588 = vrot.lane.b32.xlu0 %v10976_v13, %s15895_s17 }
 0xf46   :  { %v15286_v62 = vpop.f32.mrf.mxu0 }
 0xf48   :  { %v11204_v22 = vpop.f32.mrf.mxu1 }
 0xf49   :  { %12594 = vrot.lane.b32.xlu1 %v11204_v22, %s15895_s17 }
 0xf4a   :  { %v11128_v18 = vpop.f32.mrf.mxu0  ;;  %v15301_v14 = vpop.f32.mrf.mxu1 }
 0xf4b   :  { %12592 = vrot.lane.b32.xlu0 %v11128_v18, %s15895_s17 }
 0xf4c   :  { %v15296_v47 = vpop.f32.mrf.mxu0 }
 0xf50   :  { %v11356_v27 = vpop.f32.mrf.mxu1 }
 0xf51   :  { %12598 = vrot.lane.b32.xlu1 %v11356_v27, %s15895_s17 }
 0xf52   :  { %v15311_v50 = vpop.f32.mrf.mxu1 }
 0xf54   :  { %v11280_v28 = vpop.f32.mrf.mxu0 }
 0xf55   :  { %12596 = vrot.lane.b32.xlu0 %v11280_v28, %s15895_s17 }
 0xf56   :  { %v15306_v19 = vpop.f32.mrf.mxu0 }
 0xf58   :  { %v11432_v37 = vpop.f32.mrf.mxu0  ;;  %v11508_v51 = vpop.f32.mrf.mxu1 }
 0xf59   :  { %12618 = vrot.lane.b32.xlu1 %v11508_v51, %s15896_s18  ;;  %12616 = vrot.lane.b32.xlu0 %v11432_v37, %s15896_s18 }
 0xf5a   :  { %v15316_v63 = vpop.f32.mrf.mxu0  ;;  %v15321_v43 = vpop.f32.mrf.mxu1 }
 0xf5c   :  { %v11660_v24 = vpop.f32.mrf.mxu1 }
 0xf5d   :  { %12622 = vrot.lane.b32.xlu1 %v11660_v24, %s15896_s18 }
 0xf5e   :  { %v15331_v15 = vpop.f32.mrf.mxu1 }
 0xf8d   :  { %v11584_v31 = vpop.f32.mrf.mxu0 }
 0xf8e   :  { %12620 = vrot.lane.b32.xlu0 %v11584_v31, %s15896_s18 }
 0xf8f   :  { %v15326_v2 = vpop.f32.mrf.mxu0 }
 0xf91   :  { %v11812_v34 = vpop.f32.mrf.mxu1 }
 0xf92   :  { %12626 = vrot.lane.b32.xlu1 %v11812_v34, %s15896_s18 }
 0xf93   :  { %v15341_v54 = vpop.f32.mrf.mxu1 }
 0xf95   :  { %v11736_v32 = vpop.f32.mrf.mxu0 }
 0xf96   :  { %12624 = vrot.lane.b32.xlu0 %v11736_v32, %s15896_s18 }
 0xf97   :  { %v15336_v17 = vpop.f32.mrf.mxu0 }
 0xf99   :  { %v11888_v56 = vpop.f32.mrf.mxu0  ;;  %v11964_v35 = vpop.f32.mrf.mxu1 }
 0xf9a   :  { %12630 = vrot.lane.b32.xlu1 %v11964_v35, %s15896_s18  ;;  %12628 = vrot.lane.b32.xlu0 %v11888_v56, %s15896_s18 }
 0xf9b   :  { %v15346_v26 = vpop.f32.mrf.mxu0  ;;  %v15351_v52 = vpop.f32.mrf.mxu1 }
 0xf9d   :  { %v12040_v5 = vpop.f32.mrf.mxu0  ;;  %v12116_v44 = vpop.f32.mrf.mxu1 }
 0xf9e   :  { %12648 = vrot.lane.b32.xlu0 %v12040_v5, %s15897_s26  ;;  %12650 = vrot.lane.b32.xlu1 %v12116_v44, %s15897_s26 }
 0xf9f   :  { %v15356_v36 = vpop.f32.mrf.mxu0  ;;  %v15361_v55 = vpop.f32.mrf.mxu1 }
 0xfa0   :  { %v19550_v55 = vld [vmem:[#allocation13_spill] sm:$0xff] }
 0xfa2   :  { %v12268_v10 = vpop.f32.mrf.mxu1 }
 0xfa3   :  { %12654 = vrot.lane.b32.xlu1 %v12268_v10, %s15897_s26 }
 0xfa4   :  { %v15371_v6 = vpop.f32.mrf.mxu1 }
 0xfa6   :  { %v12192_v23 = vpop.f32.mrf.mxu0 }
 0xfa7   :  { %12652 = vrot.lane.b32.xlu0 %v12192_v23, %s15897_s26 }
 0xfa8   :  { %v15366_v3 = vpop.f32.mrf.mxu0 }
 0xfa9   :  { %v19551_v3 = vld [vmem:[#allocation12_spill] sm:$0xff] }
 0xfaa   :  { %v12344_v61 = vpop.f32.mrf.mxu0  ;;  %v12420_v20 = vpop.f32.mrf.mxu1 }
 0xfab   :  { %12658 = vrot.lane.b32.xlu1 %v12420_v20, %s15897_s26  ;;  %12656 = vrot.lane.b32.xlu0 %v12344_v61, %s15897_s26  ;;  %v12587_v29 = vpop.permute.xlu1 %12586 }
 0xfac   :  { %v15376_v53 = vpop.f32.mrf.mxu0  ;;  %v15381_v11 = vpop.f32.mrf.mxu1  ;;  %v12673_v50 = vsel %vm868_vm2, %v18921_v30, %v12587_v29 }
 0xfad   :  { %v12585_v4 = vpop.permute.xlu0 %12584 }
 0xfae   :  { %v12496_v41 = vpop.f32.mrf.mxu0  ;;  %v12572_v48 = vpop.f32.mrf.mxu1  ;;  %v12672_v28 = vsel %vm868_vm2, %v18923_v60, %v12585_v4 }
 0xfaf   :  { %12662 = vrot.lane.b32.xlu1 %v12572_v48, %s15897_s26  ;;  %12660 = vrot.lane.b32.xlu0 %v12496_v41, %s15897_s26 }
 0xfb0   :  { %v15386_v59 = vpop.f32.mrf.mxu0  ;;  %v15391_v25 = vpop.f32.mrf.mxu1 }
 0xfb1   :  { %v19552_v59 = vld [vmem:[#allocation15_spill] sm:$0xff] }
 0xfb3   :  { %v12591_v38 = vpop.permute.xlu1 %12590 }
 0xfb4   :  { %v12675_v60 = vsel %vm868_vm2, %v18925_v21, %v12591_v38 }
 0xfb7   :  { %v12589_v33 = vpop.permute.xlu0 %12588 }
 0xfb8   :  { %v12674_v30 = vsel %vm868_vm2, %v18927_v16, %v12589_v33 }
 0xfbb   :  { %v12595_v0 = vpop.permute.xlu1 %12594 }
 0xfbc   :  { %v12677_v34 = vsel %vm868_vm2, %v18929_v8, %v12595_v0  ;;  %v19553_v0 = vld [vmem:[#allocation14_spill] sm:$0xff] }
 0xfbd   :  { %v12593_v46 = vpop.permute.xlu0 %12592 }
 0xfbe   :  { %v12676_v16 = vsel %vm868_vm2, %v18933_v12, %v12593_v46 }
 0xfc3   :  { %v12599_v39 = vpop.permute.xlu1 %12598 }
 0xfc4   :  { %v12679_v8 = vsel %vm868_vm2, %v18931_v40, %v12599_v39  ;;  %v14026_v40 = vld [vmem:[%s19430_s1 + $0x313] ss:$0 sm:$0xff] }
 0xfc7   :  { %v12597_v49 = vpop.permute.xlu0 %12596 }
 0xfc8   :  { %v12678_v12 = vsel %vm868_vm2, %v18935_v7, %v12597_v49  ;;  %v19554_v49 = vld [vmem:[#allocation24_spill] sm:$0xff] }
 0xfcb   :  { %v12619_v58 = vpop.permute.xlu1 %12618  ;;  %v12617_v13 = vpop.permute.xlu0 %12616 }
 0xfcc   :  { %v12681_v19 = vsel %vm6251_vm4, %v12673_v50, %v12619_v58  ;;  %v12680_v37 = vsel %vm6251_vm4, %v12672_v28, %v12617_v13  ;;  %v19555_v50 = vld [vmem:[#allocation18_spill] sm:$0xff] }
 0xfcf   :  { %v12623_v62 = vpop.permute.xlu1 %12622 }
 0xfd0   :  { %v12683_v45 = vsel %vm6251_vm4, %v12675_v60, %v12623_v62 }
0x1000   :  { %v12621_v22 = vpop.permute.xlu0 %12620 }
0x1001   :  { %v12682_v9 = vsel %vm6251_vm4, %v12674_v30, %v12621_v22 }
0x1004   :  { %v12627_v18 = vpop.permute.xlu1 %12626 }
0x1005   :  { %v12685_v21 = vsel %vm6251_vm4, %v12677_v34, %v12627_v18 }
0x1008   :  { %v12625_v14 = vpop.permute.xlu0 %12624 }
0x1009   :  { %v12684_v57 = vsel %vm6251_vm4, %v12676_v16, %v12625_v14 }
0x100c   :  { %v12631_v47 = vpop.permute.xlu1 %12630  ;;  %v12629_v27 = vpop.permute.xlu0 %12628 }
0x100d   :  { %v12687_v35 = vsel %vm6251_vm4, %v12679_v8, %v12631_v47  ;;  %v12686_v26 = vsel %vm6251_vm4, %v12678_v12, %v12629_v27 }
0x1010   :  { %v12651_v51 = vpop.permute.xlu1 %12650  ;;  %v12649_v63 = vpop.permute.xlu0 %12648 }
0x1011   :  { %v12689_v43 = vsel %vm6260_vm5, %v12681_v19, %v12651_v51  ;;  %v12688_v24 = vsel %vm6260_vm5, %v12680_v37, %v12649_v63  ;;  %v19556_v63 = vld [vmem:[#allocation16_spill] sm:$0xff] }
0x1012   :  { %15400 = vmatprep.mubr.msk.f32.mxu0 %vm523_vm0, %v12688_v24 }
0x1013   :  { %15401 = vmatmul.mubr.msk.f32.vlgmr.msra.gmra.mxu0 %vm523_vm0, %v12689_v43 }
0x1015   :  { %v12655_v15 = vpop.permute.xlu1 %12654 }
0x1016   :  { %v12691_v2 = vsel %vm6260_vm5, %v12683_v45, %v12655_v15 }
0x1019   :  { %v12653_v31 = vpop.permute.xlu0 %12652 }
0x101a   :  { %v12690_v42 = vsel %vm6260_vm5, %v12682_v9, %v12653_v31 }
0x101b   :  { %15403 = vmatprep.mubr.msk.f32.mxu0 %vm523_vm0, %v12690_v42  ;;  %v19557_v42 = vld [vmem:[#allocation20_spill] sm:$0xff] }
0x101c   :  { %15404 = vmatmul.mubr.msk.f32.gmra.mxu0 %vm523_vm0, %v12691_v2 }
0x101d   :  { %v12659_v54 = vpop.permute.xlu1 %12658  ;;  %v12657_v32 = vpop.permute.xlu0 %12656 }
0x101e   :  { %v12693_v17 = vsel %vm6260_vm5, %v12685_v21, %v12659_v54  ;;  %v12692_v56 = vsel %vm6260_vm5, %v12684_v57, %v12657_v32 }
0x101f   :  { %15406 = vmatprep.mubr.msk.f32.mxu0 %vm523_vm0, %v12692_v56 }
0x1020   :  { %15407 = vmatmul.mubr.msk.f32.gmra.mxu0 %vm523_vm0, %v12693_v17 }
0x1021   :  { %v12663_v52 = vpop.permute.xlu1 %12662  ;;  %v12661_v5 = vpop.permute.xlu0 %12660 }
0x1022   :  { %v12695_v44 = vsel %vm6260_vm5, %v12687_v35, %v12663_v52  ;;  %v12694_v36 = vsel %vm6260_vm5, %v12686_v26, %v12661_v5  ;;  %v13909_v35 = vld [vmem:[%s19433_s3 + $0x40] sm:$0xff]  ;;  %v13908_v26 = vld [vmem:[%s19433_s3 + $0x38] sm:$0xff]  ;;  %v13907_v52 = vld [vmem:[%s19433_s3 + $0x30] sm:$0xff] }
0x1023   :  { %15409 = vmatprep.mubr.msk.f32.mxu0 %vm523_vm0, %v12694_v36  ;;  %15412 = vmatprep.subr.mxu1 %v13909_v35  ;;  %v13906_v5 = vld [vmem:[%s19433_s3 + $0x28] sm:$0xff] }
0x1024   :  { %15410 = vmatmul.mubr.msk.f32.gmra.mxu0 %vm523_vm0, %v12695_v44  ;;  %15413 = vmatpush3.msra.mxu1 %v13909_v35 }
0x1025   :  { %15414 = vmatprep.subr.mxu1 %v13908_v26 }
0x1026   :  { %15415 = vmatpush3.msra.mxu1 %v13908_v26 }
0x1027   :  { %15416 = vmatprep.subr.mxu1 %v13907_v52 }
0x1028   :  { %15417 = vmatpush3.msra.mxu1 %v13907_v52 }
0x1029   :  { %15418 = vmatprep.subr.mxu1 %v13906_v5 }
0x102a   :  { %15419 = vmatpush3.msra.mxu1 %v13906_v5 }
0x102b   :  { %15460 = vmatprep.subr.mxu1 %v19485_v1 }
0x10d3   :  { %v15402_v7 = vpop.f32.mrf.mxu0 }
0x10d4   :  { %v12826_v10 = vadd.f32 %v15402_v7, %v19550_v55 }
0x10d5   :  { %v12786_v6 = vpop.f32.mrf.mxu0 }
0x10d6   :  { %v19017_v23 = vadd.f32 %v14026_v40, %v12826_v10  ;;  %v12825_v61 = vadd.f32 %v12786_v6, %v19551_v3 }
0x10d8   :  { %v19020_v20 = vadd.f32 %v14026_v40, %v12825_v61  ;;  %v12848_v53 = vsel %vm523_vm0, %v19017_v23, 0.0  ;;  %v12878_v41 = vmul.f32 %v19017_v23, %v19017_v23 }
0x10d9   :  { %12849 = vadd.xlane.f32.xlu1 %v12848_v53 }
0x10da   :  { %v12845_v11 = vsel %vm523_vm0, %v19020_v20, 0.0  ;;  %v12888_v4 = vsel %vm523_vm0, %v12878_v41, 0.0  ;;  %v12877_v38 = vmul.f32 %v19020_v20, %v19020_v20 }
0x10db   :  { %12846 = vadd.xlane.f32.xlu0 %v12845_v11 }
0x10dc   :  { %v15405_v48 = vpop.f32.mrf.mxu0  ;;  %v12885_v14 = vsel %vm523_vm0, %v12877_v38, 0.0 }
0x10dd   :  { %v12828_v25 = vadd.f32 %v15405_v48, %v19552_v59 }
0x10de   :  { %v12796_v29 = vpop.f32.mrf.mxu0 }
0x10df   :  { %v19032_v33 = vadd.f32 %v14026_v40, %v12828_v25  ;;  %v12827_v46 = vadd.f32 %v12796_v29, %v19553_v0  ;;  %12889 = vadd.xlane.f32.xlu0 %v12888_v4 }
0x10e0   :  { %v15408_v39 = vpop.f32.mrf.mxu0 }
0x10e1   :  { %v12830_v58 = vadd.f32 %v15408_v39, %v19554_v49  ;;  %v12854_v13 = vsel %vm523_vm0, %v19032_v33, 0.0  ;;  %v12880_v62 = vmul.f32 %v19032_v33, %v19032_v33  ;;  %v19040_v22 = vadd.f32 %v14026_v40, %v12827_v46 }
0x10e2   :  { %12855 = vadd.xlane.f32.xlu1 %v12854_v13  ;;  %v12806_v18 = vpop.f32.mrf.mxu0 }
0x10e3   :  { %12886 = vadd.xlane.f32.xlu0 %v12885_v14  ;;  %v19043_v47 = vadd.f32 %v14026_v40, %v12830_v58  ;;  %v12894_v27 = vsel %vm523_vm0, %v12880_v62, 0.0  ;;  %v12829_v28 = vadd.f32 %v12806_v18, %v19555_v50  ;;  %v12851_v37 = vsel %vm523_vm0, %v19040_v22, 0.0 }
0x10e4   :  { %v15411_v19 = vpop.f32.mrf.mxu0  ;;  %v12879_v51 = vmul.f32 %v19040_v22, %v19040_v22 }
0x10e5   :  { %v12832_v43 = vadd.f32 %v15411_v19, %v19556_v63  ;;  %v12860_v24 = vsel %vm523_vm0, %v19043_v47, 0.0  ;;  %v12882_v30 = vmul.f32 %v19043_v47, %v19043_v47  ;;  %v19056_v15 = vadd.f32 %v14026_v40, %v12829_v28 }
0x10e6   :  { %12895 = vadd.xlane.f32.xlu1 %v12894_v27  ;;  %v12891_v60 = vsel %vm523_vm0, %v12879_v51, 0.0  ;;  %v12816_v9 = vpop.f32.mrf.mxu0 }
0x10e7   :  { %12852 = vadd.xlane.f32.xlu0 %v12851_v37  ;;  %v19059_v31 = vadd.f32 %v14026_v40, %v12832_v43  ;;  %v12900_v45 = vsel %vm523_vm0, %v12882_v30, 0.0  ;;  %v12831_v2 = vadd.f32 %v12816_v9, %v19557_v42  ;;  %v12857_v34 = vsel %vm523_vm0, %v19056_v15, 0.0 }
0x10e8   :  { %v12881_v16 = vmul.f32 %v19056_v15, %v19056_v15 }
0x10e9   :  { %v12866_v21 = vsel %vm523_vm0, %v19059_v31, 0.0  ;;  %v12884_v57 = vmul.f32 %v19059_v31, %v19059_v31  ;;  %v19071_v54 = vadd.f32 %v14026_v40, %v12831_v2 }
0x10ea   :  { %12861 = vadd.xlane.f32.xlu1 %v12860_v24  ;;  %v12897_v32 = vsel %vm523_vm0, %v12881_v16, 0.0 }
0x10eb   :  { %12892 = vadd.xlane.f32.xlu0 %v12891_v60  ;;  %v12906_v17 = vsel %vm523_vm0, %v12884_v57, 0.0  ;;  %v12863_v56 = vsel %vm523_vm0, %v19071_v54, 0.0  ;;  %v12883_v8 = vmul.f32 %v19071_v54, %v19071_v54 }
0x10ed   :  { %v12903_v12 = vsel %vm523_vm0, %v12883_v8, 0.0 }
0x10ee   :  { %12901 = vadd.xlane.f32.xlu1 %v12900_v45 }
0x10ef   :  { %12858 = vadd.xlane.f32.xlu0 %v12857_v34 }
0x10f2   :  { %12867 = vadd.xlane.f32.xlu1 %v12866_v21 }
0x10f3   :  { %12898 = vadd.xlane.f32.xlu0 %v12897_v32 }
0x10f6   :  { %12907 = vadd.xlane.f32.xlu1 %v12906_v17 }
0x10f7   :  { %12864 = vadd.xlane.f32.xlu0 %v12863_v56 }
0x10fb   :  { %12904 = vadd.xlane.f32.xlu0 %v12903_v12 }
0x1162   :  { %v12850_v44 = vpop.xlane.xlu1 %12849 }
0x1163   :  { %v12870_v40 = vmul.f32 0.03125, %v12850_v44 }
0x1164   :  { %v12847_v36 = vpop.xlane.xlu0 %12846 }
0x1165   :  { %v12918_v55 = vmul.f32 %v12870_v40, %v12870_v40  ;;  %v19093_v10 = vmul.f32 0.03125, %v12847_v36  ;;  %v12942_v17 = vsub.f32 %v19017_v23, %v12870_v40 }
0x1167   :  { %v12917_v41 = vmul.f32 %v19093_v10, %v19093_v10  ;;  %v12941_v44 = vsub.f32 %v19020_v20, %v19093_v10  ;;  %v14028_v10 = vld [vmem:[%s19430_s1 + $0x311] ss:$0 sm:$0xff] }
0x1168   :  { %v12890_v7 = vpop.xlane.xlu0 %12889 }
0x1169   :  { %v12910_v6 = vmul.f32 0.03125, %v12890_v7 }
0x116b   :  { %v12926_v3 = vsub.f32 %v12910_v6, %v12918_v55  ;;  %v12856_v61 = vpop.xlane.xlu1 %12855  ;;  %v14027_v55 = vld [vmem:[%s19430_s1 + $0x310] ss:$0 sm:$0xff] }
0x116c   :  { %v19095_v53 = vmul.f32 0.03125, %v12856_v61  ;;  %v12887_v11 = vpop.xlane.xlu0 %12886 }
0x116d   :  { %v12934_v48 = vmax.f32 %v12926_v3, 0.0  ;;  %v12909_v59 = vmul.f32 0.03125, %v12887_v11 }
0x116e   :  { %v12920_v38 = vmul.f32 %v19095_v53, %v19095_v53 }
0x116f   :  { %v12950_v25 = vadd.f32 1e-12, %v12934_v48  ;;  %v12925_v29 = vsub.f32 %v12909_v59, %v12917_v41  ;;  %v12896_v4 = vpop.xlane.xlu1 %12895 }
0x1170   :  { %v12912_v0 = vmul.f32 0.03125, %v12896_v4  ;;  %v12853_v46 = vpop.xlane.xlu0 %12852 }
0x1171   :  { %15853 = vrsqrt.f32 %v12950_v25  ;;  %v12933_v39 = vmax.f32 %v12925_v29, 0.0  ;;  %v19101_v49 = vmul.f32 0.03125, %v12853_v46 }
0x1172   :  { %v12928_v58 = vsub.f32 %v12912_v0, %v12920_v38  ;;  %v12944_v38 = vsub.f32 %v19032_v33, %v19095_v53 }
0x1173   :  { %v12949_v13 = vadd.f32 1e-12, %v12933_v39  ;;  %v12862_v62 = vpop.xlane.xlu1 %12861  ;;  %v12919_v50 = vmul.f32 %v19101_v49, %v19101_v49 }
0x1174   :  { %v12936_v18 = vmax.f32 %v12928_v58, 0.0  ;;  %v19103_v14 = vmul.f32 0.03125, %v12862_v62  ;;  %v12893_v27 = vpop.xlane.xlu0 %12892  ;;  %v12943_v62 = vsub.f32 %v19040_v22, %v19101_v49 }
0x1175   :  { %15855 = vrsqrt.f32 %v12949_v13  ;;  %v12911_v28 = vmul.f32 0.03125, %v12893_v27 }
0x1176   :  { %v12952_v19 = vadd.f32 1e-12, %v12936_v18  ;;  %v12922_v63 = vmul.f32 %v19103_v14, %v19103_v14 }
0x1177   :  { %v12927_v37 = vsub.f32 %v12911_v28, %v12919_v50  ;;  %v12902_v51 = vpop.xlane.xlu1 %12901 }
0x1178   :  { %15857 = vrsqrt.f32 %v12952_v19  ;;  %v12914_v43 = vmul.f32 0.03125, %v12902_v51  ;;  %v12859_v24 = vpop.xlane.xlu0 %12858  ;;  %v12946_v51 = vsub.f32 %v19043_v47, %v19103_v14 }
0x1179   :  { %v12935_v30 = vmax.f32 %v12927_v37, 0.0  ;;  %v19109_v60 = vmul.f32 0.03125, %v12859_v24 }
0x117a   :  { %v12930_v9 = vsub.f32 %v12914_v43, %v12922_v63 }
0x117b   :  { %v12951_v45 = vadd.f32 1e-12, %v12935_v30  ;;  %v12868_v42 = vpop.xlane.xlu1 %12867  ;;  %v12921_v21 = vmul.f32 %v19109_v60, %v19109_v60  ;;  %v12945_v49 = vsub.f32 %v19056_v15, %v19109_v60 }
0x117c   :  { %v12938_v2 = vmax.f32 %v12930_v9, 0.0  ;;  %v19111_v34 = vmul.f32 0.03125, %v12868_v42  ;;  %v12899_v16 = vpop.xlane.xlu0 %12898 }
0x117d   :  { %15859 = vrsqrt.f32 %v12951_v45  ;;  %v12913_v57 = vmul.f32 0.03125, %v12899_v16 }
0x117e   :  { %v15854_v32 = vpop.eup %15853  ;;  %v12954_v56 = vadd.f32 1e-12, %v12938_v2  ;;  %v12924_v26 = vmul.f32 %v19111_v34, %v19111_v34  ;;  %v12948_v16 = vsub.f32 %v19059_v31, %v19111_v34  ;;  %v6942_v34 = vld [vmem:[%s19430_s1 + $0x3ce] sm:$0xff] }
0x117f   :  { %v12929_v8 = vsub.f32 %v12913_v57, %v12921_v21  ;;  %v12908_v12 = vpop.xlane.xlu1 %12907  ;;  %v12966_v35 = vmul.f32 %v15854_v32, %v12942_v17  ;;  %15432 = vmatprep.subr.mxu0 %v6942_v34 }
0x1180   :  { %15861 = vrsqrt.f32 %v12954_v56  ;;  %v12916_v52 = vmul.f32 0.03125, %v12908_v12  ;;  %v12865_v5 = vpop.xlane.xlu0 %12864  ;;  %15433 = vmatpush3.msra.mxu0 %v6942_v34 }
0x1181   :  { %v12937_v36 = vmax.f32 %v12929_v8, 0.0  ;;  %v12875_v7 = vmul.f32 0.03125, %v12865_v5  ;;  %v12978_v48 = vmul.f32 %v14027_v55, %v12966_v35  ;;  %v6939_v5 = vld [vmem:[%s19430_s1 + $0x3b6] sm:$0xff] }
0x1182   :  { %v15856_v40 = vpop.eup %15855  ;;  %v12932_v6 = vsub.f32 %v12916_v52, %v12924_v26  ;;  %v6941_v26 = vld [vmem:[%s19430_s1 + $0x3c6] sm:$0xff]  ;;  %v6940_v52 = vld [vmem:[%s19430_s1 + $0x3be] sm:$0xff] }
0x1183   :  { %v12953_v3 = vadd.f32 1e-12, %v12937_v36  ;;  %v12965_v61 = vmul.f32 %v15856_v40, %v12941_v44  ;;  %v12923_v25 = vmul.f32 %v12875_v7, %v12875_v7  ;;  %v12990_v58 = vadd.f32 %v14028_v10, %v12978_v48  ;;  %15434 = vmatprep.subr.mxu0 %v6941_v26  ;;  %v6938_v44 = vld [vmem:[%s19430_s1 + $0x3ae] sm:$0xff]  ;;  %v6937_v36 = vld [vmem:[%s19430_s1 + $0x3a6] sm:$0xff] }
0x1184   :  { %v12940_v11 = vmax.f32 %v12932_v6, 0.0  ;;  %v12905_v41 = vpop.xlane.xlu0 %12904  ;;  %v12947_v32 = vsub.f32 %v19071_v54, %v12875_v7  ;;  %15435 = vmatpush3.msra.mxu0 %v6941_v26  ;;  %v6936_v7 = vld [vmem:[%s19430_s1 + $0x39e] sm:$0xff]  ;;  %v14029_v40 = vld [vmem:[%s19433_s3 + $0x48] ss:$0 sm:$0xff] }
0x1185   :  { %v15858_v59 = vpop.eup %15857  ;;  %15863 = vrsqrt.f32 %v12953_v3  ;;  %v12915_v29 = vmul.f32 0.03125, %v12905_v41  ;;  %v12977_v4 = vmul.f32 %v14027_v55, %v12965_v61  ;;  %15436 = vmatprep.subr.mxu0 %v6940_v52 }
0x1186   :  { %v12956_v0 = vadd.f32 1e-12, %v12940_v11  ;;  %v12968_v13 = vmul.f32 %v15858_v59, %v12944_v38  ;;  %15437 = vmatpush3.msra.mxu0 %v6940_v52 }
0x1187   :  { %v12931_v46 = vsub.f32 %v12915_v29, %v12923_v25  ;;  %v12989_v39 = vadd.f32 %v14028_v10, %v12977_v4  ;;  %15438 = vmatprep.subr.mxu0 %v6939_v5 }
0x1188   :  { %15865 = vrsqrt.f32 %v12956_v0  ;;  %v12980_v19 = vmul.f32 %v14027_v55, %v12968_v13  ;;  %15439 = vmatpush3.msra.mxu0 %v6939_v5 }
0x1189   :  { %v12939_v18 = vmax.f32 %v12931_v46, 0.0  ;;  %15420 = vmatprep.mubr.msk.f32.mxu1 %vm523_vm0, %v12989_v39  ;;  %15440 = vmatprep.subr.mxu0 %v6938_v44 }
0x118a   :  { %v15860_v27 = vpop.eup %15859  ;;  %15421 = vmatmul.mubr.msk.f32.vlgmr.msra.gmra.mxu1 %vm523_vm0, %v12990_v58  ;;  %v12992_v43 = vadd.f32 %v14028_v10, %v12980_v19  ;;  %15441 = vmatpush3.msra.mxu0 %v6938_v44 }
0x118b   :  { %v12955_v50 = vadd.f32 1e-12, %v12939_v18  ;;  %v12967_v28 = vmul.f32 %v15860_v27, %v12943_v62  ;;  %15442 = vmatprep.subr.mxu0 %v6937_v36 }
0x118c   :  { %15443 = vmatpush3.msra.mxu0 %v6937_v36 }
0x118d   :  { %v15862_v37 = vpop.eup %15861  ;;  %15867 = vrsqrt.f32 %v12955_v50  ;;  %v12979_v53 = vmul.f32 %v14027_v55, %v12967_v28  ;;  %15444 = vmatprep.subr.mxu0 %v6936_v7 }
0x118e   :  { %v12970_v24 = vmul.f32 %v15862_v37, %v12946_v51  ;;  %15445 = vmatpush3.msra.mxu0 %v6936_v7 }
0x118f   :  { %v12991_v63 = vadd.f32 %v14028_v10, %v12979_v53 }
0x1190   :  { %v12982_v45 = vmul.f32 %v14027_v55, %v12970_v24 }
0x1191   :  { %15423 = vmatprep.mubr.msk.f32.mxu1 %vm523_vm0, %v12991_v63 }
0x1192   :  { %v15864_v30 = vpop.eup %15863  ;;  %15424 = vmatmul.mubr.msk.f32.gmra.mxu1 %vm523_vm0, %v12992_v43  ;;  %v12994_v14 = vadd.f32 %v14028_v10, %v12982_v45 }
0x1193   :  { %v12969_v9 = vmul.f32 %v15864_v30, %v12945_v49 }
0x1195   :  { %v15866_v42 = vpop.eup %15865  ;;  %v12981_v2 = vmul.f32 %v14027_v55, %v12969_v9 }
0x1196   :  { %v12972_v57 = vmul.f32 %v15866_v42, %v12948_v16 }
0x1197   :  { %v12993_v21 = vadd.f32 %v14028_v10, %v12981_v2 }
0x1198   :  { %v12984_v56 = vmul.f32 %v14027_v55, %v12972_v57 }
0x1199   :  { %15426 = vmatprep.mubr.msk.f32.mxu1 %vm523_vm0, %v12993_v21 }
0x119a   :  { %v15868_v60 = vpop.eup %15867  ;;  %15427 = vmatmul.mubr.msk.f32.gmra.mxu1 %vm523_vm0, %v12994_v14  ;;  %v12996_v35 = vadd.f32 %v14028_v10, %v12984_v56 }
0x119b   :  { %v12971_v17 = vmul.f32 %v15868_v60, %v12947_v32 }
0x119d   :  { %v12983_v8 = vmul.f32 %v14027_v55, %v12971_v17  ;;  %v6935_v55 = vld [vmem:[%s19430_s1 + $0x396] sm:$0xff] }
0x119e   :  { %15446 = vmatprep.subr.mxu0 %v6935_v55 }
0x119f   :  { %v12995_v12 = vadd.f32 %v14028_v10, %v12983_v8  ;;  %15447 = vmatpush3.msra.mxu0 %v6935_v55 }
0x11a1   :  { %15429 = vmatprep.mubr.msk.f32.mxu1 %vm523_vm0, %v12995_v12 }
0x11a2   :  { %15430 = vmatmul.mubr.msk.f32.gmra.mxu1 %vm523_vm0, %v12996_v35 }
0x11a3   :  { %15476 = vmatprep.mubr.msk.f32.mxu1 %vm15890_vm1, %v19485_v1 }
0x124a   :  { %v15422_v6 = vpop.f32.mrf.mxu1 }
0x124b   :  { %v13097_v3 = vadd.f32 %v15422_v6, %v14029_v40 }
0x124c   :  { %v13091_v61 = vpop.f32.mrf.mxu1 }
0x124d   :  { %v13139_v11 = vmul.f32 0.044715, %v13097_v3  ;;  %v13092_v41 = vadd.f32 %v14029_v40, %v13091_v61  ;;  %v13131_v7 = vmul.f32 0.5, %v13097_v3 }
0x124f   :  { %v13147_v48 = vmul.f32 %v13139_v11, %v13097_v3  ;;  %v13138_v59 = vmul.f32 0.044715, %v13092_v41  ;;  %v13130_v5 = vmul.f32 0.5, %v13092_v41 }
0x1251   :  { %v13155_v25 = vmul.f32 %v13147_v48, %v13097_v3  ;;  %v13146_v29 = vmul.f32 %v13138_v59, %v13092_v41 }
0x1252   :  { %v15425_v10 = vpop.f32.mrf.mxu1 }
0x1253   :  { %v13163_v4 = vadd.f32 %v13155_v25, %v13097_v3  ;;  %v13154_v38 = vmul.f32 %v13146_v29, %v13092_v41  ;;  %v19174_v0 = vadd.f32 %v15425_v10, %v14029_v40 }
0x1254   :  { %v13101_v46 = vpop.f32.mrf.mxu1 }
0x1255   :  { %v13171_v39 = vmul.f32 0.7978846, %v13163_v4  ;;  %v13162_v58 = vadd.f32 %v13154_v38, %v13092_v41  ;;  %v13141_v13 = vmul.f32 0.044715, %v19174_v0  ;;  %v13102_v62 = vadd.f32 %v14029_v40, %v13101_v46 }
0x1257   :  { %15869 = vtanh.f32 %v13171_v39  ;;  %v13149_v18 = vmul.f32 %v13141_v13, %v19174_v0  ;;  %v13170_v27 = vmul.f32 0.7978846, %v13162_v58  ;;  %v13140_v50 = vmul.f32 0.044715, %v13102_v62 }
0x1258   :  { %v13132_v3 = vmul.f32 0.5, %v13102_v62  ;;  %v13133_v58 = vmul.f32 0.5, %v19174_v0 }
0x1259   :  { %v13157_v28 = vmul.f32 %v13149_v18, %v19174_v0  ;;  %15871 = vtanh.f32 %v13170_v27  ;;  %v13148_v19 = vmul.f32 %v13140_v50, %v13102_v62 }
0x125a   :  { %v15428_v37 = vpop.f32.mrf.mxu1 }
0x125b   :  { %v13165_v53 = vadd.f32 %v13157_v28, %v19174_v0  ;;  %v13117_v51 = vadd.f32 %v15428_v37, %v14029_v40  ;;  %v13156_v63 = vmul.f32 %v13148_v19, %v13102_v62 }
0x125c   :  { %v13111_v43 = vpop.f32.mrf.mxu1 }
0x125d   :  { %v13173_v24 = vmul.f32 0.7978846, %v13165_v53  ;;  %v13143_v49 = vmul.f32 0.044715, %v13117_v51  ;;  %v13112_v30 = vadd.f32 %v14029_v40, %v13111_v43  ;;  %v13164_v9 = vadd.f32 %v13156_v63, %v13102_v62 }
0x125e   :  { %v13135_v53 = vmul.f32 0.5, %v13117_v51 }
0x125f   :  { %15873 = vtanh.f32 %v13173_v24  ;;  %v13151_v45 = vmul.f32 %v13143_v49, %v13117_v51  ;;  %v13142_v42 = vmul.f32 0.044715, %v13112_v30  ;;  %v13172_v2 = vmul.f32 0.7978846, %v13164_v9 }
0x1260   :  { %v13134_v19 = vmul.f32 0.5, %v13112_v30 }
0x1261   :  { %v13159_v16 = vmul.f32 %v13151_v45, %v13117_v51  ;;  %v13150_v21 = vmul.f32 %v13142_v42, %v13112_v30  ;;  %15875 = vtanh.f32 %v13172_v2 }
0x1262   :  { %v15431_v14 = vpop.f32.mrf.mxu1 }
0x1263   :  { %v13167_v57 = vadd.f32 %v13159_v16, %v13117_v51  ;;  %v13158_v32 = vmul.f32 %v13150_v21, %v13112_v30  ;;  %v13127_v60 = vadd.f32 %v15431_v14, %v14029_v40 }
0x1264   :  { %v15870_v17 = vpop.eup %15869  ;;  %v13121_v56 = vpop.f32.mrf.mxu1 }
0x1265   :  { %v13175_v8 = vmul.f32 0.7978846, %v13167_v57  ;;  %v13166_v12 = vadd.f32 %v13158_v32, %v13112_v30  ;;  %v13187_v34 = vadd.f32 1.0, %v15870_v17  ;;  %v13145_v26 = vmul.f32 0.044715, %v13127_v60 }
0x1266   :  { %v15872_v35 = vpop.eup %15871  ;;  %v13122_v52 = vadd.f32 %v14029_v40, %v13121_v56  ;;  %v13137_v45 = vmul.f32 0.5, %v13127_v60  ;;  %v14046_v56 = vld [vmem:[%s19430_s1 + $0x315] ss:$0 sm:$0xff] }
0x1267   :  { %15877 = vtanh.f32 %v13175_v8  ;;  %v13186_v44 = vadd.f32 1.0, %v15872_v35  ;;  %v13174_v36 = vmul.f32 0.7978846, %v13166_v12  ;;  %v13153_v55 = vmul.f32 %v13145_v26, %v13127_v60 }
0x1268   :  { %v13144_v6 = vmul.f32 0.044715, %v13122_v52  ;;  %v13195_v11 = vmul.f32 %v13187_v34, %v13131_v7  ;;  %v13136_v49 = vmul.f32 0.5, %v13122_v52 }
0x1269   :  { %v13194_v61 = vmul.f32 %v13186_v44, %v13130_v5  ;;  %15879 = vtanh.f32 %v13174_v36  ;;  %v13161_v48 = vmul.f32 %v13153_v55, %v13127_v60 }
0x126a   :  { %v13152_v59 = vmul.f32 %v13144_v6, %v13122_v52  ;;  %v19559_v6 = vld [vmem:[#allocation10_spill] sm:$0xff] }
0x126b   :  { %15448 = vmatprep.mubr.msk.f32.mxu0 %vm6775_vm6, %v13194_v61  ;;  %v13169_v29 = vadd.f32 %v13161_v48, %v13127_v60 }
0x126c   :  { %v15874_v25 = vpop.eup %15873  ;;  %v13160_v10 = vmul.f32 %v13152_v59, %v13122_v52  ;;  %15449 = vmatmul.mubr.msk.f32.vlgmr.msra.gmra.mxu0 %vm6775_vm6, %v13195_v11 }
0x126d   :  { %v13177_v40 = vmul.f32 0.7978846, %v13169_v29  ;;  %v13189_v38 = vadd.f32 1.0, %v15874_v25  ;;  %v13465_v29 = vld [vmem:[%s19434_s4 + $0x38] sm:$0xff] }
0x126e   :  { %v13168_v4 = vadd.f32 %v13160_v10, %v13122_v52  ;;  %v15876_v41 = vpop.eup %15875  ;;  %v19558_v52 = vlaneseq  ;;  %v13464_v10 = vld [vmem:[%s19434_s4 + $0x30] sm:$0xff] }
0x126f   :  { %15881 = vtanh.f32 %v13177_v40  ;;  %v13188_v46 = vadd.f32 1.0, %v15876_v41  ;;  %v13197_v18 = vmul.f32 %v13189_v38, %v13133_v58  ;;  %v13463_v40 = vld [vmem:[%s19434_s4 + $0x28] sm:$0xff]  ;;  %v13461_v41 = vld [vmem:[%s19434_s4 + $0x18] sm:$0xff]  ;;  %v13460_v38 = vld [vmem:[%s19434_s4 + $0x10] sm:$0xff] }
0x1270   :  { %v13176_v39 = vmul.f32 0.7978846, %v13168_v4  ;;  %v19198_v5 = vshrl.u32 %v19558_v52, 7  ;;  %v13462_v4 = vld [vmem:[%s19434_s4 + $0x20] sm:$0xff]  ;;  %v13574_v58 = vld [vmem:[%s19435_s5 + $0x78] sm:$0xff] }
0x1271   :  { %v13196_v13 = vmul.f32 %v13188_v46, %v13132_v3  ;;  %v13459_v3 = vld [vmem:[%s19434_s4 + $0x8] sm:$0xff]  ;;  %v13458_v46 = vld [vmem:[%s19434_s4] sm:$0xff] }
0x1272   :  { %15883 = vtanh.f32 %v13176_v39  ;;  %v13590_v39 = vld [vmem:[%s19435_s5 + $0xf8] sm:$0xff]  ;;  %v14050_v52 = vld [vmem:[%s19430_s1 + $0x309] ss:$0 sm:$0xff] }
0x1273   :  { %15451 = vmatprep.mubr.msk.f32.mxu0 %vm6775_vm6, %v13196_v13  ;;  %v13589_v13 = vld [vmem:[%s19435_s5 + $0xf0] sm:$0xff]  ;;  %14592 = vmatprep.subr.mxu0 %v13590_v39 }
0x1274   :  { %v15878_v27 = vpop.eup %15877  ;;  %15452 = vmatmul.mubr.msk.f32.gmra.mxu0 %vm6775_vm6, %v13197_v18  ;;  %v13573_v18 = vld [vmem:[%s19435_s5 + $0x70] sm:$0xff] }
0x1275   :  { %v13191_v28 = vadd.f32 1.0, %v15878_v27  ;;  %14593 = vmatpush3.msra.mxu0 %v13574_v58  ;;  %v13588_v27 = vld [vmem:[%s19435_s5 + $0xe8] sm:$0xff] }
0x1276   :  { %v15880_v50 = vpop.eup %15879  ;;  %14594 = vmatprep.subr.mxu0 %v13589_v13 }
0x1277   :  { %v13190_v37 = vadd.f32 1.0, %v15880_v50  ;;  %v13199_v43 = vmul.f32 %v13191_v28, %v13135_v53  ;;  %v13572_v50 = vld [vmem:[%s19435_s5 + $0x68] sm:$0xff]  ;;  %14595 = vmatpush3.msra.mxu0 %v13573_v18  ;;  %v13587_v28 = vld [vmem:[%s19435_s5 + $0xe0] sm:$0xff]  ;;  %v13570_v53 = vld [vmem:[%s19435_s5 + $0x58] sm:$0xff] }
0x1278   :  { %14596 = vmatprep.subr.mxu0 %v13588_v27 }
0x1279   :  { %v13198_v63 = vmul.f32 %v13190_v37, %v13134_v19  ;;  %v13571_v19 = vld [vmem:[%s19435_s5 + $0x60] sm:$0xff]  ;;  %14597 = vmatpush3.msra.mxu0 %v13572_v50  ;;  %v13586_v37 = vld [vmem:[%s19435_s5 + $0xd8] sm:$0xff] }
0x127a   :  { %14598 = vmatprep.subr.mxu0 %v13587_v28 }
0x127b   :  { %15454 = vmatprep.mubr.msk.f32.mxu0 %vm6775_vm6, %v13198_v63  ;;  %14599 = vmatpush3.msra.mxu0 %v13571_v19  ;;  %v13585_v63 = vld [vmem:[%s19435_s5 + $0xd0] sm:$0xff] }
0x127c   :  { %15455 = vmatmul.mubr.msk.f32.gmra.mxu0 %vm6775_vm6, %v13199_v43  ;;  %v15882_v0 = vpop.eup %15881  ;;  %14600 = vmatprep.subr.mxu0 %v13586_v37  ;;  %v13569_v43 = vld [vmem:[%s19435_s5 + $0x50] sm:$0xff] }
0x127d   :  { %v13193_v24 = vadd.f32 1.0, %v15882_v0  ;;  %14601 = vmatpush3.msra.mxu0 %v13570_v53  ;;  %v13584_v0 = vld [vmem:[%s19435_s5 + $0xc8] sm:$0xff] }
0x127e   :  { %14602 = vmatprep.subr.mxu0 %v13585_v63  ;;  %v13673_v53 = vld [vmem:[%s19435_s5 + $0x121] sm:$0xff]  ;;  %v13671_v63 = vld [vmem:[%s19435_s5 + $0x111] sm:$0xff] }
0x127f   :  { %v15884_v62 = vpop.eup %15883  ;;  %v13201_v2 = vmul.f32 %v13193_v24, %v13137_v45  ;;  %14603 = vmatpush3.msra.mxu0 %v13569_v43  ;;  %v13583_v24 = vld [vmem:[%s19435_s5 + $0xc0] sm:$0xff]  ;;  %v13566_v45 = vld [vmem:[%s19435_s5 + $0x38] sm:$0xff]  ;;  %v13670_v43 = vld [vmem:[%s19435_s5 + $0x109] sm:$0xff] }
0x1280   :  { %v13192_v9 = vadd.f32 1.0, %v15884_v62  ;;  %v13568_v62 = vld [vmem:[%s19435_s5 + $0x48] sm:$0xff]  ;;  %14604 = vmatprep.subr.mxu0 %v13584_v0 }
0x1281   :  { %14605 = vmatpush3.msra.mxu0 %v13568_v62  ;;  %v13669_v0 = vld [vmem:[%s19435_s5 + $0x101] sm:$0xff] }
0x1282   :  { %v13200_v42 = vmul.f32 %v13192_v9, %v13136_v49  ;;  %v13567_v49 = vld [vmem:[%s19435_s5 + $0x40] sm:$0xff]  ;;  %v13582_v9 = vld [vmem:[%s19435_s5 + $0xb8] sm:$0xff]  ;;  %14606 = vmatprep.subr.mxu0 %v13583_v24 }
0x1283   :  { %14607 = vmatpush3.msra.mxu0 %v13567_v49  ;;  %v14053_v24 = vld [vmem:[%s19435_s5 + $0x100] ss:$0 sm:$0xff] }
0x1284   :  { %15457 = vmatprep.mubr.msk.f32.mxu0 %vm6775_vm6, %v13200_v42  ;;  %v13581_v42 = vld [vmem:[%s19435_s5 + $0xb0] sm:$0xff]  ;;  %14608 = vmatprep.subr.mxu0 %v13582_v9 }
0x1285   :  { %15458 = vmatmul.mubr.msk.f32.gmra.mxu0 %vm6775_vm6, %v13201_v2  ;;  %v13565_v2 = vld [vmem:[%s19435_s5 + $0x30] sm:$0xff] }
0x1286   :  { %14609 = vmatpush3.msra.mxu0 %v13566_v45 }
0x1287   :  { %14610 = vmatprep.subr.mxu0 %v13581_v42 }
0x1288   :  { %14611 = vmatpush3.msra.mxu0 %v13565_v2 }
0x132c   :  { %v15450_v30 = vpop.f32.mrf.mxu0 }
0x132e   :  { %v13292_v51 = vpop.f32.mrf.mxu0 }
0x1334   :  { %v15453_v16 = vpop.f32.mrf.mxu0 }
0x1336   :  { %v13302_v21 = vpop.f32.mrf.mxu0 }
0x133c   :  { %v15456_v14 = vpop.f32.mrf.mxu0 }
0x133d   :  { %v13336_v8 = vadd.f32 %v15456_v14, %v19043_v47  ;;  %v13333_v47 = vadd.f32 %v13302_v21, %v19040_v22 }
0x133e   :  { %v13312_v57 = vpop.f32.mrf.mxu0 }
0x133f   :  { %v13335_v34 = vadd.f32 %v13312_v57, %v19056_v15  ;;  %v13348_v44 = vadd.f32 %v14046_v56, %v13336_v8  ;;  %v13353_v15 = vmul.u32 8, %v19198_v5  ;;  %v13345_v55 = vadd.f32 %v14046_v56, %v13333_v47  ;;  %v13563_v47 = vld [vmem:[%s19435_s5 + $0x20] sm:$0xff] }
0x1341   :  { %v13347_v36 = vadd.f32 %v14046_v56, %v13335_v34  ;;  %vm13354_vm7 = vcmp.eq.s32.totalorder %v19559_v6, %v13353_v15  ;;  %v14049_v34 = vld [vmem:[%s19430_s1 + $0x308] ss:$0 sm:$0xff]  ;;  %v13562_v15 = vld [vmem:[%s19435_s5 + $0x18] sm:$0xff]  ;;  %v13575_v6 = vld [vmem:[%s19435_s5 + $0x80] sm:$0xff] }
0x1345   :  { %v15459_v32 = vpop.f32.mrf.mxu0 }
0x1346   :  { %v13338_v17 = vadd.f32 %v15459_v32, %v19059_v31  ;;  %v13334_v31 = vadd.f32 %v15453_v16, %v19032_v33  ;;  %v13331_v33 = vadd.f32 %v13292_v51, %v19020_v20  ;;  %v13564_v51 = vld [vmem:[%s19435_s5 + $0x28] sm:$0xff]  ;;  %v13579_v16 = vld [vmem:[%s19435_s5 + $0xa0] sm:$0xff] }
0x1347   :  { %v13322_v60 = vpop.f32.mrf.mxu0 }
0x1348   :  { %v13350_v12 = vadd.f32 %v14046_v56, %v13338_v17  ;;  %v13337_v35 = vadd.f32 %v13322_v60, %v19071_v54  ;;  %v13332_v54 = vadd.f32 %v15450_v30, %v19017_v23  ;;  %v13346_v7 = vadd.f32 %v14046_v56, %v13334_v31  ;;  %v13580_v30 = vld [vmem:[%s19435_s5 + $0xa8] sm:$0xff] }
0x1349   :  { %v13343_v61 = vadd.f32 %v14046_v56, %v13331_v33  ;;  %v14047_v23 = vsel %vm13354_vm7, 1.0, %v19485_v1  ;;  %14612 = vmatprep.subr.mxu0 %v13580_v30  ;;  %v13576_v33 = vld [vmem:[%s19435_s5 + $0x88] sm:$0xff]  ;;  %v14054_v30 = vld [vmem:[%s19435_s5 + $0x181] ss:$0 sm:$0xff] }
0x134a   :  { %v13349_v26 = vadd.f32 %v14046_v56, %v13337_v35  ;;  %15461 = vmatpush3.msra.mxu1 %v13350_v12  ;;  %v13344_v22 = vadd.f32 %v14046_v56, %v13332_v54  ;;  %14613 = vmatpush3.msra.mxu0 %v13564_v51  ;;  %v13577_v54 = vld [vmem:[%s19435_s5 + $0x90] sm:$0xff] }
0x134b   :  { %15462 = vmatprep.subr.mxu1 %v19485_v1  ;;  %14614 = vmatprep.subr.mxu0 %v13579_v16 }
0x134c   :  { %15463 = vmatpush3.msra.mxu1 %v13349_v26  ;;  %14615 = vmatpush3.msra.mxu0 %v13563_v47 }
0x134d   :  { %15464 = vmatprep.subr.mxu1 %v19485_v1 }
0x134e   :  { %15465 = vmatpush3.msra.mxu1 %v13348_v44 }
0x134f   :  { %15466 = vmatprep.subr.mxu1 %v19485_v1 }
0x1350   :  { %15467 = vmatpush3.msra.mxu1 %v13347_v36  ;;  %v13578_v36 = vld [vmem:[%s19435_s5 + $0x98] sm:$0xff] }
0x1351   :  { %15468 = vmatprep.subr.mxu1 %v19485_v1  ;;  %14616 = vmatprep.subr.mxu0 %v13578_v36 }
0x1352   :  { %15469 = vmatpush3.msra.mxu1 %v13346_v7  ;;  %14617 = vmatpush3.msra.mxu0 %v13562_v15  ;;  %v13561_v7 = vld [vmem:[%s19435_s5 + $0x10] sm:$0xff] }
0x1353   :  { %15470 = vmatprep.subr.mxu1 %v19485_v1  ;;  %14618 = vmatprep.subr.mxu0 %v13577_v54 }
0x1354   :  { %15471 = vmatpush3.msra.mxu1 %v13345_v55  ;;  %v13560_v55 = vld [vmem:[%s19435_s5 + $0x8] sm:$0xff]  ;;  %14619 = vmatpush3.msra.mxu0 %v13561_v7 }
0x1355   :  { %15472 = vmatprep.subr.mxu1 %v19485_v1  ;;  %14620 = vmatprep.subr.mxu0 %v13576_v33 }
0x1356   :  { %15473 = vmatpush3.msra.mxu1 %v13344_v22  ;;  %v13559_v22 = vld [vmem:[%s19435_s5] sm:$0xff]  ;;  %14621 = vmatpush3.msra.mxu0 %v13560_v55 }
0x1357   :  { %15474 = vmatprep.subr.mxu1 %v19485_v1  ;;  %14622 = vmatprep.subr.mxu0 %v13575_v6 }
0x1358   :  { %15475 = vmatpush3.msra.mxu1 %v13343_v61  ;;  %v13684_v61 = vld [vmem:[%s19435_s5 + $0x179] sm:$0xff]  ;;  %14623 = vmatpush3.msra.mxu0 %v13559_v22 }
0x1359   :  { %15477 = vmatmul.mubr.msk.f32.vlgmr.msra.gmra.mxu1 %vm6775_vm6, %v14047_v23  ;;  %13506 = vmatprep.subr.mxu1 %v13465_v29  ;;  %v13683_v23 = vld [vmem:[%s19435_s5 + $0x171] sm:$0xff]  ;;  %v13677_v29 = vld [vmem:[%s19435_s5 + $0x141] sm:$0xff] }
0x135a   :  { %13546 = vmatprep.mubr.f32.mxu1 %v19485_v1  ;;  %13507 = vmatpush1.msra.mxu1 %v13464_v10  ;;  %v13676_v10 = vld [vmem:[%s19435_s5 + $0x139] sm:$0xff] }
0x135b   :  { %13508 = vmatprep.subr.mxu1 %v13463_v40  ;;  %v13675_v40 = vld [vmem:[%s19435_s5 + $0x131] sm:$0xff] }
0x135c   :  { %13509 = vmatpush1.msra.mxu1 %v13462_v4  ;;  %v13674_v4 = vld [vmem:[%s19435_s5 + $0x129] sm:$0xff] }
0x135d   :  { %13510 = vmatprep.subr.mxu1 %v13461_v41  ;;  %v13471_v41 = vsub.s32 0, %v19198_v5 }
0x135e   :  { %13511 = vmatpush1.msra.mxu1 %v13460_v38  ;;  %v14051_v38 = vld [vmem:[%s19434_s4 + $0x40] ss:$8 sm:$0x3] }
0x135f   :  { %13512 = vmatprep.subr.mxu1 %v13459_v3  ;;  %v13475_v3 = vsub.s32 1, %v19198_v5  ;;  %v13672_v5 = vld [vmem:[%s19435_s5 + $0x119] sm:$0xff] }
0x1360   :  { %13513 = vmatpush1.msra.mxu1 %v13458_v46  ;;  %v13472_v46 = vrot.slane %v14051_v38, %v13471_v41 }
0x1361   :  { %15479 = vmatprep.subr.mxu1 %v19485_v1  ;;  %v13476_v39 = vrot.slane %v14051_v38, %v13475_v3 }
0x1419   :  { %v19215_v20 = vpop.f32.mrf.mxu1 }
0x141a   :  { %v13436_v11 = vmul.f32 %v19215_v20, %v19215_v20  ;;  %v13432_v48 = vsel %vm523_vm0, %v19215_v20, 0.0 }
0x141b   :  { %13433 = vadd.xlane.f32.xlu0 %v13432_v48  ;;  %v15478_v59 = vpop.f32.mrf.mxu1  ;;  %v13680_v48 = vld [vmem:[%s19435_s5 + $0x159] sm:$0xff] }
0x141c   :  { %v13437_v25 = vsel %vm523_vm0, %v13436_v11, 0.0  ;;  %v13681_v11 = vld [vmem:[%s19435_s5 + $0x161] sm:$0xff]  ;;  %v13679_v59 = vld [vmem:[%s19435_s5 + $0x151] sm:$0xff] }
0x141d   :  { %13438 = vadd.xlane.f32.xlu1 %v13437_v25  ;;  %v13678_v25 = vld [vmem:[%s19435_s5 + $0x149] sm:$0xff] }
0x14a4   :  { %v13434_v21 = vpop.xlane.xlu0 %13433 }
0x14a5   :  { %v13435_v14 = vmul.f32 0.03125, %v13434_v21 }
0x14a6   :  { %v13439_v57 = vpop.xlane.xlu1 %13438 }
0x14a7   :  { %v13441_v32 = vmul.f32 %v13435_v14, %v13435_v14  ;;  %v13440_v17 = vmul.f32 0.03125, %v13439_v57  ;;  %v13444_v12 = vsub.f32 %v19215_v20, %v13435_v14  ;;  %v13682_v20 = vld [vmem:[%s19435_s5 + $0x169] sm:$0xff] }
0x14a9   :  { %v13442_v56 = vsub.f32 %v13440_v17, %v13441_v32 }
0x14ab   :  { %v13443_v60 = vmax.f32 %v13442_v56, 0.0 }
0x14ad   :  { %v13445_v8 = vadd.f32 1e-12, %v13443_v60 }
0x14af   :  { %15885 = vrsqrt.f32 %v13445_v8 }
0x14bc   :  { %v15886_v35 = vpop.eup %15885 }
0x14bd   :  { %v13447_v26 = vmul.f32 %v15886_v35, %v13444_v12 }
0x14bf   :  { %v13452_v31 = vmul.f32 %v14049_v34, %v13447_v26 }
0x14c1   :  { %v13457_v44 = vadd.f32 %v14050_v52, %v13452_v31 }
0x14c3   :  { %14052 = vmatmul.mubr.msk.f32.vlgmr.msra.gmra.mxu1 %vm523_vm0, %v13457_v44 }
0x14c4   :  { %15511 = vmatprep.mubr.msk.f32.mxu1 %vm15890_vm1, %v19485_v1  ;;  %15480 = vmatpush3.msra.mxu1 %v13684_v61 }
0x14c5   :  { %15481 = vmatprep.subr.mxu1 %v19485_v1 }
0x14c6   :  { %15482 = vmatpush3.msra.mxu1 %v13683_v23 }
0x14c7   :  { %15483 = vmatprep.subr.mxu1 %v19485_v1 }
0x14c8   :  { %15484 = vmatpush3.msra.mxu1 %v13682_v20 }
0x14c9   :  { %15485 = vmatprep.subr.mxu1 %v19485_v1 }
0x14ca   :  { %15486 = vmatpush3.msra.mxu1 %v13681_v11 }
0x14cb   :  { %15487 = vmatprep.subr.mxu1 %v19485_v1 }
0x14cc   :  { %15488 = vmatpush3.msra.mxu1 %v13680_v48 }
0x14cd   :  { %15489 = vmatprep.subr.mxu1 %v19485_v1 }
0x14ce   :  { %15490 = vmatpush3.msra.mxu1 %v13679_v59 }
0x14cf   :  { %15491 = vmatprep.subr.mxu1 %v19485_v1 }
0x14d0   :  { %15492 = vmatpush3.msra.mxu1 %v13678_v25 }
0x14d1   :  { %15493 = vmatprep.subr.mxu1 %v19485_v1 }
0x14d2   :  { %15494 = vmatpush3.msra.mxu1 %v13677_v29 }
0x14d3   :  { %15495 = vmatprep.subr.mxu1 %v19485_v1 }
0x14d4   :  { %15496 = vmatpush3.msra.mxu1 %v13676_v10 }
0x14d5   :  { %15497 = vmatprep.subr.mxu1 %v19485_v1 }
0x14d6   :  { %15498 = vmatpush3.msra.mxu1 %v13675_v40 }
0x14d7   :  { %15499 = vmatprep.subr.mxu1 %v19485_v1 }
0x14d8   :  { %15500 = vmatpush3.msra.mxu1 %v13674_v4 }
0x14d9   :  { %15501 = vmatprep.subr.mxu1 %v19485_v1 }
0x14da   :  { %15502 = vmatpush3.msra.mxu1 %v13673_v53 }
0x14db   :  { %15503 = vmatprep.subr.mxu1 %v19485_v1 }
0x14dc   :  { %15504 = vmatpush3.msra.mxu1 %v13672_v5 }
0x14dd   :  { %15505 = vmatprep.subr.mxu1 %v19485_v1 }
0x14de   :  { %15506 = vmatpush3.msra.mxu1 %v13671_v63 }
0x14df   :  { %15507 = vmatprep.subr.mxu1 %v19485_v1 }
0x14e0   :  { %15508 = vmatpush3.msra.mxu1 %v13670_v43 }
0x14e1   :  { %15509 = vmatprep.subr.mxu1 %v19485_v1 }
0x14e2   :  { %15510 = vmatpush3.msra.mxu1 %v13669_v0 }
0x1583   :  { %v13548_v58 = vpop.f32.mrf.mxu1 }
0x1584   :  { %v13549_v13 = vadd.f32 %v13548_v58, %v13472_v46 }
0x1585   :  { %v13550_v18 = vpop.f32.mrf.mxu1 }
0x1586   :  { %v13551_v27 = vadd.f32 %v13550_v18, %v13476_v39  ;;  %v13555_v50 = vmul.f32 0.1, %v13549_v13  ;;  %vm13553_vm8 = vcmp.ge.f32.partialorder %v13549_v13, 0.0 }
0x1588   :  { %v13556_v28 = vmul.f32 0.1, %v13551_v27  ;;  %vm13554_vm9 = vcmp.ge.f32.partialorder %v13551_v27, 0.0  ;;  %v13557_v37 = vsel %vm13553_vm8, %v13549_v13, %v13555_v50 }
0x158a   :  { %v13558_v19 = vsel %vm13554_vm9, %v13551_v27, %v13556_v28 }
0x158b   :  { %13660 = vmatprep.mubr.f32.mxu0 %v13558_v19 }
0x158c   :  { %13661 = vmatmul.mubr.f32.vlgmr.msra.gmra.mxu0 %v13557_v37 }
0x164c   :  { %v14624_v62 = vpop.f32.mrf.mxu0 }
0x164e   :  { %v14625_v49 = vpop.f32.mrf.mxu0 }
0x164f   :  { %v14626_v9 = vadd.f32 %v14625_v49, %v14624_v62 }
0x1651   :  { %v13663_v45 = vadd.f32 %v14626_v9, %v14053_v24 }
0x1653   :  { %vm13666_vm10 = vcmp.ge.f32.partialorder %v13663_v45, 0.0  ;;  %v13667_v42 = vmul.f32 0.1, %v13663_v45 }
0x1655   :  { %v13668_v2 = vsel %vm13666_vm10, %v13663_v45, %v13667_v42 }
0x1656   :  { %15512 = vmatmul.mubr.f32.vlgmr.msra.gmra.mxu1 %v13668_v2 }
0x1716   :  { %v13756_v51 = vpop.f32.mrf.mxu1 }
0x1717   :  { %v13757_v16 = vadd.f32 %v14054_v30, %v13756_v51 }
0x1718   :  { %v15513_v1 = vpop.f32.mrf.mxu1 }
0x1719   :  { %13760 = vst [vmem:[%s19436_s6] sm:$0xff] %v13757_v16 }

</bundles_post_ra>
